<compile_context>
chip_gen: v6e
topology: v6e:2x2x1
jax: 0.10.0
libtpu: 0.0.40
codegen_flags: <defaults>
</compile_context>

<pallas_src>
import functools

import numpy as np
import jax
import jax.numpy as jnp
from jax import lax
from jax.experimental import pallas as pl
from jax.experimental.pallas import tpu as pltpu


LANES = 128            # lane width; channel / class axes are padded to this
CG = 8                 # lane slots per pooled pixel in the packed layout
PPG = LANES // CG      # pooled pixels packed per 128-lane row (16)
BATCH_BLOCK = 8        # images per grid step (keep grid >= 2 for v7x megacore)

# Module's LRN param mapping: LocalResponseNorm(size=p[0], alpha=p[2],
# beta=p[3], k=p[1]) with default param [5, 0.0001, 0.75, 1].
LRN_PARAM = [5, 0.0001, 0.75, 1]
LRN_SIZE, LRN_K, LRN_ALPHA, LRN_BETA = (LRN_PARAM[0], LRN_PARAM[1],
                                        LRN_PARAM[2], LRN_PARAM[3])

# conv1 stays f32 by default: with LRN k = 1e-4 the normalization can amplify
# bf16 rounding of small activations far beyond the test tolerance.  conv2
# operates after the LRN and is safe in bf16.
CONV1_DTYPE = jnp.float32
CONV2_DTYPE = jnp.bfloat16


# ------------------------------ fused kernel --------------------------------

def _fused_kernel(patches_ref, w1_ref, b1_ref, w2_ref, b2_ref, o_ref, *,
                  rows_per_phase, n_chunks, bblk, c2,
                  lrn_size, lrn_alpha, lrn_beta, lrn_k):
    """conv1(+mean fold)+ReLU+2x2 maxpool -> LRN -> pack -> conv2 -> softmax.

    patches_ref : (1, 4*rows_per_phase, k1p) im2col rows for bblk images,
                  row = ph*rows_per_phase + ((chunk*bblk + img)*PPG + pix).
    w1_ref      : (k1p, 128)  lane-padded conv1 weight (cols >= c1 zero).
    b1_ref      : (1, 128)    conv1 bias with the scalar mean folded in.
    w2_ref      : (n_chunks*128, 128) packed "fc" weight, K = pixel*CG + chan.
    b2_ref      : (1, 128)    "fc" bias (softmax mask hides pad lanes).
    o_ref       : (1, bblk, 128) per-image class probabilities.
    """
    f32 = jnp.float32

    # ---- conv1 + 2x2/2 max-pool: running elementwise max over the 4 phases --
    acc = None
    for ph in range(4):
        blk = patches_ref[0, ph * rows_per_phase:(ph + 1) * rows_per_phase, :]
        y = jnp.dot(blk, w1_ref[...], preferred_element_type=f32)
        acc = y if acc is None else jnp.maximum(acc, y)
    # bias (mean folded) + ReLU; lanes >= c1 stay exactly zero.
    pooled = jnp.maximum(acc + b1_ref[...], 0.0)     # (rows_per_phase, 128)

    # ---- LocalResponseNorm across channels (channels live on lanes) ---------
    # Zero-padded sliding window sum as one banded matmul (no lane rotates).
    lo = -(lrn_size // 2)
    hi = lrn_size - 1 - lrn_size // 2
    l_idx = lax.broadcasted_iota(jnp.int32, (LANES, LANES), 0)
    c_idx = lax.broadcasted_iota(jnp.int32, (LANES, LANES), 1)
    diff = l_idx - c_idx
    band = jnp.logical_and(diff >= lo, diff <= hi).astype(f32)
    sq = pooled * pooled
    s = jnp.dot(sq, band, preferred_element_type=f32)
    base = lrn_k + (lrn_alpha / lrn_size) * s
    if lrn_beta == 1.0:            # the module's param mapping gives beta == 1
        lrn = pooled * pl.reciprocal(base, approx=True)
    else:                          # generic fallback (base >= k > 0)
        lrn = pooled * jnp.exp(-lrn_beta * jnp.log(base))

    # ---- pack: move row r's channels to lanes [CG*(r%PPG), CG*(r%PPG)+CG) ---
    # 4-stage butterfly of zero-fill lane-shift matmuls (x @ S_shift), gated by
    # the bits of (row % PPG); only lanes [0, c1) are nonzero so stages never
    # collide and never wrap.
    row = lax.broadcasted_iota(jnp.int32, lrn.shape, 0)
    y = lrn
    for t in range(PPG.bit_length() - 1):            # shifts CG, 2CG, 4CG, 8CG
        shift = CG << t
        smat = (c_idx - l_idx == shift).astype(f32)  # (x @ smat)[:, l+shift] = x[:, l]
        take = (row & (1 << t)) != 0
        y = jnp.where(take, jnp.dot(y, smat, preferred_element_type=f32), y)

    # Sum each group of PPG consecutive rows (disjoint lane groups -> exact)
    # with a group-indicator matmul: packed[i] = sum_j y[i*PPG + j].
    n_packed = n_chunks * bblk
    oi = lax.broadcasted_iota(jnp.int32, (n_packed, rows_per_phase), 0)
    ri = lax.broadcasted_iota(jnp.int32, (n_packed, rows_per_phase), 1)
    gmat = jnp.logical_and(ri >= oi * PPG, ri < (oi + 1) * PPG).astype(f32)
    packed = jnp.dot(gmat, y, preferred_element_type=f32)   # (n_chunks*bblk, 128)

    # ---- conv2 ("fc") + bias + masked channel softmax ------------------------
    # Per-image lane-dense row: lane-concat the n_chunks chunk blocks.
    lhs = jnp.concatenate(
        [packed[g * bblk:(g + 1) * bblk, :] for g in range(n_chunks)], axis=1)
    lhs = lhs.astype(w2_ref.dtype)                   # bf16 fast path, f32 acc
    logits = jnp.dot(lhs, w2_ref[...], preferred_element_type=f32) + b2_ref[...]

    lane = lax.broadcasted_iota(jnp.int32, logits.shape, 1)
    valid = lane < c2
    masked = jnp.where(valid, logits, -1e30)
    m = jnp.max(masked, axis=-1, keepdims=True)
    e = jnp.where(valid, jnp.exp(masked - m), 0.0)
    denom = jnp.sum(e, axis=-1, keepdims=True)
    o_ref[0] = e * pl.reciprocal(denom, approx=True)


# ------------------------------ host-side glue ------------------------------

def _build_patches(x_nhwc, kh, kw, ph_out, pw_out, np16, bblk, k1p):
    """conv1 im2col rows grouped by (pool-phase, chunk, image, pixel-in-chunk)."""
    n_img = x_nhwc.shape[0]
    c_in = x_nhwc.shape[-1]
    k1 = kh * kw * c_in
    n_pool = ph_out * pw_out
    phase_blocks = []
    for di in range(2):
        for dj in range(2):
            feats = []
            for i in range(kh):
                for j in range(kw):
                    h0, w0 = di + i, dj + j
                    feats.append(x_nhwc[:, h0:h0 + 2 * ph_out - 1:2,
                                           w0:w0 + 2 * pw_out - 1:2, :])
            blk = jnp.concatenate(feats, axis=-1).reshape(n_img, n_pool, k1)
            blk = jnp.pad(blk, ((0, 0), (0, np16 - n_pool), (0, 0)))
            phase_blocks.append(blk)
    p4 = jnp.stack(phase_blocks, axis=0)              # (4, n_img, np16, k1)
    t_blocks = n_img // bblk
    n_chunks = np16 // PPG
    p6 = p4.reshape(4, t_blocks, bblk, n_chunks, PPG, k1)
    p6 = jnp.transpose(p6, (1, 0, 3, 2, 4, 5))        # (T, ph, chunk, img, pix, k1)
    rows = 4 * np16 * bblk
    patches = p6.reshape(t_blocks, rows, k1)
    patches = jnp.pad(patches, ((0, 0), (0, 0), (0, k1p - k1)))
    return patches


@jax.jit
def matconvnet_forward(x, mean, w1, b1, w2, b2):
    """x: NCHW f32; w1/w2 in PyTorch OIHW layout; returns (N, Cout2, 1, 1)."""
    N, Cin, H, W = x.shape
    Cout1, _, kh1, kw1 = w1.shape
    Cout2, _, kh2, kw2 = w2.shape
    OH, OW = H - kh1 + 1, W - kw1 + 1                 # conv1 padding = 0
    assert OH % 2 == 0 and OW % 2 == 0
    PH, PW = OH // 2, OW // 2                         # 2x2 / stride-2 max-pool
    n_pool = PH * PW
    np16 = ((n_pool + PPG - 1) // PPG) * PPG          # pool pixels, 16-aligned
    n_chunks = np16 // PPG
    k1 = kh1 * kw1 * Cin
    k1p = ((k1 + 7) // 8) * 8                         # pad contraction 27 -> 32
    k2p = np16 * CG                                   # packed conv2 contraction
    assert (kh2, kw2) == (PH, PW), "fc conv must consume the full pooled map"
    assert Cout1 <= CG and Cout2 <= LANES
    assert mean.size == 1                             # scalar averageImage

    bblk = BATCH_BLOCK
    n_pad = ((N + bblk - 1) // bblk) * bblk
    if n_pad != N:                                    # dummy images, discarded
        x = jnp.pad(x, ((0, n_pad - N), (0, 0), (0, 0), (0, 0)))
    t_blocks = n_pad // bblk
    rows_per_phase = np16 * bblk
    rows_per_block = 4 * rows_per_phase

    # One-time boundary layout work: NHWC + lane/sublane padding.
    x_nhwc = jnp.transpose(x, (0, 2, 3, 1))

    # conv1 weight as (i, j, c)-ordered im2col matrix, padded to (k1p, 128);
    # the scalar mean subtraction is folded into the bias (exact).
    w1_mat = jnp.transpose(w1, (2, 3, 1, 0)).reshape(k1, Cout1)
    w1p = jnp.zeros((k1p, LANES), jnp.float32).at[:k1, :Cout1].set(w1_mat)
    b1_fold = b1 - mean.reshape(()) * jnp.sum(w1, axis=(1, 2, 3))
    b1p = jnp.zeros((1, LANES), jnp.float32).at[0, :Cout1].set(b1_fold)

    # conv2 ("fc") weight with K index = pool_pixel*CG + channel, matching the
    # in-kernel packed layout; rows for pad pixels / pad channels stay zero.
    w2_hwio = jnp.transpose(w2, (2, 3, 1, 0)).reshape(n_pool, Cout1, Cout2)
    w2_full = jnp.zeros((np16, CG, Cout2), jnp.float32)
    w2_full = w2_full.at[:n_pool, :Cout1, :].set(w2_hwio)
    w2p = jnp.zeros((k2p, LANES), jnp.float32).at[:, :Cout2].set(
        w2_full.reshape(k2p, Cout2))
    b2p = jnp.zeros((1, LANES), jnp.float32).at[0, :Cout2].set(b2)

    patches = _build_patches(x_nhwc, kh1, kw1, PH, PW, np16, bblk, k1p)
    patches = patches.astype(CONV1_DTYPE)
    w1p = w1p.astype(CONV1_DTYPE)
    w2p = w2p.astype(CONV2_DTYPE)

    kernel = functools.partial(
        _fused_kernel, rows_per_phase=rows_per_phase, n_chunks=n_chunks,
        bblk=bblk, c2=Cout2, lrn_size=int(LRN_SIZE), lrn_alpha=float(LRN_ALPHA),
        lrn_beta=float(LRN_BETA), lrn_k=float(LRN_K))

    out = pl.pallas_call(
        kernel,
        out_shape=jax.ShapeDtypeStruct((t_blocks, bblk, LANES), jnp.float32),
        grid_spec=pltpu.PrefetchScalarGridSpec(
            num_scalar_prefetch=0,
            grid=(t_blocks,),
            in_specs=[
                pl.BlockSpec((1, rows_per_block, k1p), lambda t: (t, 0, 0)),
                pl.BlockSpec((k1p, LANES), lambda t: (0, 0)),
                pl.BlockSpec((1, LANES), lambda t: (0, 0)),
                pl.BlockSpec((k2p, LANES), lambda t: (0, 0)),
                pl.BlockSpec((1, LANES), lambda t: (0, 0)),
            ],
            out_specs=pl.BlockSpec((1, bblk, LANES), lambda t: (t, 0, 0)),
        ),
        compiler_params=pltpu.CompilerParams(
            dimension_semantics=("parallel",),        # v7x: shard grid over TCs
        ),
    )(patches, w1p, b1p, w2p, b2p)

    # Back to the PyTorch-facing layout: (N, Cout2, 1, 1).
    out = out.reshape(t_blocks * bblk, LANES)[:N, :Cout2]
    return out.reshape(N, Cout2, 1, 1)


# ------------------------------ pure-JAX reference ---------------------------

def _ref_forward(x, mean, w1, b1, w2, b2):
    """Pure-JAX reference mirroring the PyTorch layer semantics."""
    x = x - mean
    x = jax.lax.conv_general_dilated(
        x, w1, (1, 1), 'VALID', dimension_numbers=('NCHW', 'OIHW', 'NCHW'))
    x = x + b1.reshape(1, -1, 1, 1)
    x = jnp.maximum(x, 0.0)
    x = jax.lax.reduce_window(x, -jnp.inf, jax.lax.max,
                              (1, 1, 2, 2), (1, 1, 2, 2), 'VALID')
    size, alpha, beta, k = LRN_SIZE, LRN_ALPHA, LRN_BETA, LRN_K
    C = x.shape[1]
    sq = x * x
    pad = jnp.pad(sq, ((0, 0), (size // 2, size - 1 - size // 2), (0, 0), (0, 0)))
    s = jnp.stack([pad[:, c:c + size].sum(axis=1) for c in range(C)], axis=1)
    x = x / ((k + (alpha / size) * s) ** beta)
    x = jax.lax.conv_general_dilated(
        x, w2, (1, 1), 'VALID', dimension_numbers=('NCHW', 'OIHW', 'NCHW'))
    x = x + b2.reshape(1, -1, 1, 1)
    x = jax.nn.softmax(x, axis=1)
    return x


# ---------------------------------- main -------------------------------------

if __name__ == "__main__":
    key = jax.random.PRNGKey(0)
    k1_, k2_, k3_, k4_, kx = jax.random.split(key, 5)

    # Synthetic "averageImage" (scalar -> np.array(..., ndmin=4) = (1,1,1,1)).
    mean = jnp.asarray(np.array(0.5, ndmin=4), dtype=jnp.float32)

    # MatConvNet layout (kh, kw, Cin, Cout), transposed like the module does:
    # .transpose(3, 2, 0, 1) -> (Cout, Cin, kh, kw).
    w1_mat = jax.random.normal(k1_, (3, 3, 3, 8), jnp.float32) * 0.1
    b1 = jax.random.normal(k2_, (8,), jnp.float32) * 0.1
    w2_mat = jax.random.normal(k3_, (7, 7, 8, 10), jnp.float32) * 0.02
    b2 = jax.random.normal(k4_, (10,), jnp.float32) * 0.1
    w1 = jnp.transpose(w1_mat, (3, 2, 0, 1))
    w2 = jnp.transpose(w2_mat, (3, 2, 0, 1))

    # Input (PyTorch NCHW): batch=2, channels=3, 16x16.
    x = jax.random.normal(kx, (2, 3, 16, 16), jnp.float32)

    out = matconvnet_forward(x, mean, w1, b1, w2, b2)
    out = jax.block_until_ready(out)

    ref = _ref_forward(x, mean, w1, b1, w2, b2)
    assert out.shape == (2, 10, 1, 1), out.shape
    np.testing.assert_allclose(np.asarray(out), np.asarray(ref),
                               rtol=5e-2, atol=2e-3)

    print("KERNEL_OK")
</pallas_src>

<mosaic_0001>
module attributes {stable_mosaic.version = 11 : i64} {
  func.func @_fused_kernel(%arg0: i32, %arg1: memref<1x2048x32xf32, #tpu.memory_space<vmem>>, %arg2: memref<32x128xf32, #tpu.memory_space<vmem>>, %arg3: memref<1x128xf32, #tpu.memory_space<vmem>>, %arg4: memref<512x128xbf16, #tpu.memory_space<vmem>>, %arg5: memref<1x128xf32, #tpu.memory_space<vmem>>, %arg6: memref<1x8x128xf32, #tpu.memory_space<vmem>>) attributes {dimension_semantics = [#tpu.dimension_semantics<parallel>], iteration_bounds = array<i64: 1>, scalar_prefetch = 0 : i64, scratch_operands = 0 : i64, tpu.core_type = #tpu.core_type<tc>, window_params = [{transform_indices = @transform_0, window_bounds = array<i64: 1, 2048, 32>}, {pipeline_mode = #tpu.pipeline_mode<synchronous>, transform_indices = @transform_1, window_bounds = array<i64: 32, 128>}, {pipeline_mode = #tpu.pipeline_mode<synchronous>, transform_indices = @transform_2, window_bounds = array<i64: 1, 128>}, {pipeline_mode = #tpu.pipeline_mode<synchronous>, transform_indices = @transform_3, window_bounds = array<i64: 512, 128>}, {pipeline_mode = #tpu.pipeline_mode<synchronous>, transform_indices = @transform_4, window_bounds = array<i64: 1, 128>}, {transform_indices = @transform_5, window_bounds = array<i64: 1, 8, 128>}]} {
    %c0 = arith.constant 0 : index
    %c0_0 = arith.constant 0 : index
    %c0_1 = arith.constant 0 : index
    %0 = vector.load %arg1[%c0, %c0_0, %c0_1] : memref<1x2048x32xf32, #tpu.memory_space<vmem>>, vector<1x512x32xf32>
    %1 = vector.shape_cast %0 : vector<1x512x32xf32> to vector<512x32xf32>
    %c0_2 = arith.constant 0 : index
    %c0_3 = arith.constant 0 : index
    %2 = vector.load %arg2[%c0_2, %c0_3] : memref<32x128xf32, #tpu.memory_space<vmem>>, vector<32x128xf32>
    %cst = arith.constant dense<0.000000e+00> : vector<512x128xf32>
    %3 = tpu.matmul %1, %2, %cst {dimension_numbers = #tpu.dot_dimension_numbers<[1], [0], [0], [1], [0, 0, 1, 1], [], []>} : vector<512x32xf32>, vector<32x128xf32>, vector<512x128xf32> -> vector<512x128xf32>
    %c0_4 = arith.constant 0 : index
    %c512 = arith.constant 512 : index
    %c0_5 = arith.constant 0 : index
    %4 = vector.load %arg1[%c0_4, %c512, %c0_5] : memref<1x2048x32xf32, #tpu.memory_space<vmem>>, vector<1x512x32xf32>
    %5 = vector.shape_cast %4 : vector<1x512x32xf32> to vector<512x32xf32>
    %c0_6 = arith.constant 0 : index
    %c0_7 = arith.constant 0 : index
    %6 = vector.load %arg2[%c0_6, %c0_7] : memref<32x128xf32, #tpu.memory_space<vmem>>, vector<32x128xf32>
    %cst_8 = arith.constant dense<0.000000e+00> : vector<512x128xf32>
    %7 = tpu.matmul %5, %6, %cst_8 {dimension_numbers = #tpu.dot_dimension_numbers<[1], [0], [0], [1], [0, 0, 1, 1], [], []>} : vector<512x32xf32>, vector<32x128xf32>, vector<512x128xf32> -> vector<512x128xf32>
    %8 = arith.maximumf %3, %7 : vector<512x128xf32>
    %c0_9 = arith.constant 0 : index
    %c1024 = arith.constant 1024 : index
    %c0_10 = arith.constant 0 : index
    %9 = vector.load %arg1[%c0_9, %c1024, %c0_10] : memref<1x2048x32xf32, #tpu.memory_space<vmem>>, vector<1x512x32xf32>
    %10 = vector.shape_cast %9 : vector<1x512x32xf32> to vector<512x32xf32>
    %c0_11 = arith.constant 0 : index
    %c0_12 = arith.constant 0 : index
    %11 = vector.load %arg2[%c0_11, %c0_12] : memref<32x128xf32, #tpu.memory_space<vmem>>, vector<32x128xf32>
    %cst_13 = arith.constant dense<0.000000e+00> : vector<512x128xf32>
    %12 = tpu.matmul %10, %11, %cst_13 {dimension_numbers = #tpu.dot_dimension_numbers<[1], [0], [0], [1], [0, 0, 1, 1], [], []>} : vector<512x32xf32>, vector<32x128xf32>, vector<512x128xf32> -> vector<512x128xf32>
    %13 = arith.maximumf %8, %12 : vector<512x128xf32>
    %c0_14 = arith.constant 0 : index
    %c1536 = arith.constant 1536 : index
    %c0_15 = arith.constant 0 : index
    %14 = vector.load %arg1[%c0_14, %c1536, %c0_15] : memref<1x2048x32xf32, #tpu.memory_space<vmem>>, vector<1x512x32xf32>
    %15 = vector.shape_cast %14 : vector<1x512x32xf32> to vector<512x32xf32>
    %c0_16 = arith.constant 0 : index
    %c0_17 = arith.constant 0 : index
    %16 = vector.load %arg2[%c0_16, %c0_17] : memref<32x128xf32, #tpu.memory_space<vmem>>, vector<32x128xf32>
    %cst_18 = arith.constant dense<0.000000e+00> : vector<512x128xf32>
    %17 = tpu.matmul %15, %16, %cst_18 {dimension_numbers = #tpu.dot_dimension_numbers<[1], [0], [0], [1], [0, 0, 1, 1], [], []>} : vector<512x32xf32>, vector<32x128xf32>, vector<512x128xf32> -> vector<512x128xf32>
    %18 = arith.maximumf %13, %17 : vector<512x128xf32>
    %c0_19 = arith.constant 0 : index
    %c0_20 = arith.constant 0 : index
    %19 = vector.load %arg3[%c0_19, %c0_20] : memref<1x128xf32, #tpu.memory_space<vmem>>, vector<1x128xf32>
    %20 = vector.broadcast %19 : vector<1x128xf32> to vector<512x128xf32>
    %21 = arith.addf %18, %20 : vector<512x128xf32>
    %cst_21 = arith.constant 0.000000e+00 : f32
    %22 = vector.broadcast %cst_21 : f32 to vector<512x128xf32>
    %23 = arith.maximumf %21, %22 : vector<512x128xf32>
    %24 = tpu.iota {dimensions = array<i32: 0>} : vector<128x128xi32>
    %25 = tpu.iota {dimensions = array<i32: 1>} : vector<128x128xi32>
    %26 = arith.subi %24, %25 : vector<128x128xi32>
    %c-2_i32 = arith.constant -2 : i32
    %27 = vector.broadcast %c-2_i32 : i32 to vector<128x128xi32>
    %28 = arith.cmpi sge, %26, %27 : vector<128x128xi32>
    %c2_i32 = arith.constant 2 : i32
    %29 = vector.broadcast %c2_i32 : i32 to vector<128x128xi32>
    %30 = arith.cmpi sle, %26, %29 : vector<128x128xi32>
    %31 = arith.andi %28, %30 : vector<128x128xi1>
    %32 = arith.extui %31 : vector<128x128xi1> to vector<128x128xi32>
    %33 = arith.sitofp %32 : vector<128x128xi32> to vector<128x128xf32>
    %34 = arith.mulf %23, %23 : vector<512x128xf32>
    %cst_22 = arith.constant dense<0.000000e+00> : vector<512x128xf32>
    %35 = tpu.matmul %34, %33, %cst_22 {dimension_numbers = #tpu.dot_dimension_numbers<[1], [0], [0], [1], [0, 0, 1, 1], [], []>} : vector<512x128xf32>, vector<128x128xf32>, vector<512x128xf32> -> vector<512x128xf32>
    %cst_23 = arith.constant 1.500000e-01 : f32
    %36 = vector.broadcast %cst_23 : f32 to vector<512x128xf32>
    %37 = arith.mulf %36, %35 : vector<512x128xf32>
    %cst_24 = arith.constant 9.99999974E-5 : f32
    %38 = vector.broadcast %cst_24 : f32 to vector<512x128xf32>
    %39 = arith.addf %38, %37 : vector<512x128xf32>
    %40 = tpu.reciprocal %39 {approx = true} : vector<512x128xf32> -> vector<512x128xf32>
    %41 = arith.mulf %23, %40 : vector<512x128xf32>
    %42 = tpu.iota {dimensions = array<i32: 0>} : vector<512x128xi32>
    %43 = arith.subi %25, %24 : vector<128x128xi32>
    %c8_i32 = arith.constant 8 : i32
    %44 = vector.broadcast %c8_i32 : i32 to vector<128x128xi32>
    %45 = arith.cmpi eq, %43, %44 : vector<128x128xi32>
    %46 = arith.extui %45 : vector<128x128xi1> to vector<128x128xi32>
    %47 = arith.sitofp %46 : vector<128x128xi32> to vector<128x128xf32>
    %c1_i32 = arith.constant 1 : i32
    %48 = vector.broadcast %c1_i32 : i32 to vector<512x128xi32>
    %49 = arith.andi %42, %48 : vector<512x128xi32>
    %c0_i32 = arith.constant 0 : i32
    %50 = vector.broadcast %c0_i32 : i32 to vector<512x128xi32>
    %51 = arith.cmpi ne, %49, %50 : vector<512x128xi32>
    %cst_25 = arith.constant dense<0.000000e+00> : vector<512x128xf32>
    %52 = tpu.matmul %41, %47, %cst_25 {dimension_numbers = #tpu.dot_dimension_numbers<[1], [0], [0], [1], [0, 0, 1, 1], [], []>} : vector<512x128xf32>, vector<128x128xf32>, vector<512x128xf32> -> vector<512x128xf32>
    %53 = arith.select %51, %52, %41 : vector<512x128xi1>, vector<512x128xf32>
    %54 = arith.subi %25, %24 : vector<128x128xi32>
    %c16_i32 = arith.constant 16 : i32
    %55 = vector.broadcast %c16_i32 : i32 to vector<128x128xi32>
    %56 = arith.cmpi eq, %54, %55 : vector<128x128xi32>
    %57 = arith.extui %56 : vector<128x128xi1> to vector<128x128xi32>
    %58 = arith.sitofp %57 : vector<128x128xi32> to vector<128x128xf32>
    %c2_i32_26 = arith.constant 2 : i32
    %59 = vector.broadcast %c2_i32_26 : i32 to vector<512x128xi32>
    %60 = arith.andi %42, %59 : vector<512x128xi32>
    %c0_i32_27 = arith.constant 0 : i32
    %61 = vector.broadcast %c0_i32_27 : i32 to vector<512x128xi32>
    %62 = arith.cmpi ne, %60, %61 : vector<512x128xi32>
    %cst_28 = arith.constant dense<0.000000e+00> : vector<512x128xf32>
    %63 = tpu.matmul %53, %58, %cst_28 {dimension_numbers = #tpu.dot_dimension_numbers<[1], [0], [0], [1], [0, 0, 1, 1], [], []>} : vector<512x128xf32>, vector<128x128xf32>, vector<512x128xf32> -> vector<512x128xf32>
    %64 = arith.select %62, %63, %53 : vector<512x128xi1>, vector<512x128xf32>
    %65 = arith.subi %25, %24 : vector<128x128xi32>
    %c32_i32 = arith.constant 32 : i32
    %66 = vector.broadcast %c32_i32 : i32 to vector<128x128xi32>
    %67 = arith.cmpi eq, %65, %66 : vector<128x128xi32>
    %68 = arith.extui %67 : vector<128x128xi1> to vector<128x128xi32>
    %69 = arith.sitofp %68 : vector<128x128xi32> to vector<128x128xf32>
    %c4_i32 = arith.constant 4 : i32
    %70 = vector.broadcast %c4_i32 : i32 to vector<512x128xi32>
    %71 = arith.andi %42, %70 : vector<512x128xi32>
    %c0_i32_29 = arith.constant 0 : i32
    %72 = vector.broadcast %c0_i32_29 : i32 to vector<512x128xi32>
    %73 = arith.cmpi ne, %71, %72 : vector<512x128xi32>
    %cst_30 = arith.constant dense<0.000000e+00> : vector<512x128xf32>
    %74 = tpu.matmul %64, %69, %cst_30 {dimension_numbers = #tpu.dot_dimension_numbers<[1], [0], [0], [1], [0, 0, 1, 1], [], []>} : vector<512x128xf32>, vector<128x128xf32>, vector<512x128xf32> -> vector<512x128xf32>
    %75 = arith.select %73, %74, %64 : vector<512x128xi1>, vector<512x128xf32>
    %76 = arith.subi %25, %24 : vector<128x128xi32>
    %c64_i32 = arith.constant 64 : i32
    %77 = vector.broadcast %c64_i32 : i32 to vector<128x128xi32>
    %78 = arith.cmpi eq, %76, %77 : vector<128x128xi32>
    %79 = arith.extui %78 : vector<128x128xi1> to vector<128x128xi32>
    %80 = arith.sitofp %79 : vector<128x128xi32> to vector<128x128xf32>
    %c8_i32_31 = arith.constant 8 : i32
    %81 = vector.broadcast %c8_i32_31 : i32 to vector<512x128xi32>
    %82 = arith.andi %42, %81 : vector<512x128xi32>
    %c0_i32_32 = arith.constant 0 : i32
    %83 = vector.broadcast %c0_i32_32 : i32 to vector<512x128xi32>
    %84 = arith.cmpi ne, %82, %83 : vector<512x128xi32>
    %cst_33 = arith.constant dense<0.000000e+00> : vector<512x128xf32>
    %85 = tpu.matmul %75, %80, %cst_33 {dimension_numbers = #tpu.dot_dimension_numbers<[1], [0], [0], [1], [0, 0, 1, 1], [], []>} : vector<512x128xf32>, vector<128x128xf32>, vector<512x128xf32> -> vector<512x128xf32>
    %86 = arith.select %84, %85, %75 : vector<512x128xi1>, vector<512x128xf32>
    %87 = tpu.iota {dimensions = array<i32: 0>} : vector<32x512xi32>
    %88 = tpu.iota {dimensions = array<i32: 1>} : vector<32x512xi32>
    %c16_i32_34 = arith.constant 16 : i32
    %89 = vector.broadcast %c16_i32_34 : i32 to vector<32x512xi32>
    %90 = arith.muli %87, %89 : vector<32x512xi32>
    %91 = arith.cmpi sge, %88, %90 : vector<32x512xi32>
    %c1_i32_35 = arith.constant 1 : i32
    %92 = vector.broadcast %c1_i32_35 : i32 to vector<32x512xi32>
    %93 = arith.addi %87, %92 : vector<32x512xi32>
    %c16_i32_36 = arith.constant 16 : i32
    %94 = vector.broadcast %c16_i32_36 : i32 to vector<32x512xi32>
    %95 = arith.muli %93, %94 : vector<32x512xi32>
    %96 = arith.cmpi slt, %88, %95 : vector<32x512xi32>
    %97 = arith.andi %91, %96 : vector<32x512xi1>
    %98 = arith.extui %97 : vector<32x512xi1> to vector<32x512xi32>
    %99 = arith.sitofp %98 : vector<32x512xi32> to vector<32x512xf32>
    %cst_37 = arith.constant dense<0.000000e+00> : vector<32x128xf32>
    %100 = tpu.matmul %99, %86, %cst_37 {dimension_numbers = #tpu.dot_dimension_numbers<[1], [0], [0], [1], [0, 0, 1, 1], [], []>} : vector<32x512xf32>, vector<512x128xf32>, vector<32x128xf32> -> vector<32x128xf32>
    %101 = vector.extract_strided_slice %100 {offsets = [0, 0], sizes = [8, 128], strides = [1, 1]} : vector<32x128xf32> to vector<8x128xf32>
    %102 = vector.extract_strided_slice %100 {offsets = [8, 0], sizes = [8, 128], strides = [1, 1]} : vector<32x128xf32> to vector<8x128xf32>
    %103 = vector.extract_strided_slice %100 {offsets = [16, 0], sizes = [8, 128], strides = [1, 1]} : vector<32x128xf32> to vector<8x128xf32>
    %104 = vector.extract_strided_slice %100 {offsets = [24, 0], sizes = [8, 128], strides = [1, 1]} : vector<32x128xf32> to vector<8x128xf32>
    %105 = tpu.concatenate %101, %102, %103, %104 in 1 : vector<8x128xf32>, vector<8x128xf32>, vector<8x128xf32>, vector<8x128xf32> -> vector<8x512xf32>
    %106 = arith.truncf %105 : vector<8x512xf32> to vector<8x512xbf16>
    %c0_38 = arith.constant 0 : index
    %c0_39 = arith.constant 0 : index
    %107 = vector.load %arg4[%c0_38, %c0_39] : memref<512x128xbf16, #tpu.memory_space<vmem>>, vector<512x128xbf16>
    %cst_40 = arith.constant dense<0.000000e+00> : vector<8x128xf32>
    %108 = tpu.matmul %106, %107, %cst_40 {dimension_numbers = #tpu.dot_dimension_numbers<[1], [0], [0], [1], [0, 0, 1, 1], [], []>} : vector<8x512xbf16>, vector<512x128xbf16>, vector<8x128xf32> -> vector<8x128xf32>
    %c0_41 = arith.constant 0 : index
    %c0_42 = arith.constant 0 : index
    %109 = vector.load %arg5[%c0_41, %c0_42] : memref<1x128xf32, #tpu.memory_space<vmem>>, vector<1x128xf32>
    %110 = vector.broadcast %109 : vector<1x128xf32> to vector<8x128xf32>
    %111 = arith.addf %108, %110 : vector<8x128xf32>
    %112 = tpu.iota {dimensions = array<i32: 1>} : vector<8x128xi32>
    %c10_i32 = arith.constant 10 : i32
    %113 = vector.broadcast %c10_i32 : i32 to vector<8x128xi32>
    %114 = arith.cmpi slt, %112, %113 : vector<8x128xi32>
    %cst_43 = arith.constant -1.000000e+30 : f32
    %115 = vector.broadcast %cst_43 : f32 to vector<8x128xf32>
    %116 = arith.select %114, %111, %115 : vector<8x128xi1>, vector<8x128xf32>
    %cst_44 = arith.constant dense<0xFF800000> : vector<8xf32>
    %117 = vector.multi_reduction <maximumf>, %116, %cst_44 [1] : vector<8x128xf32> to vector<8xf32>
    %118 = vector.shape_cast %117 : vector<8xf32> to vector<8x1xf32>
    %119 = vector.broadcast %118 : vector<8x1xf32> to vector<8x128xf32>
    %120 = arith.subf %116, %119 : vector<8x128xf32>
    %121 = math.exp %120 : vector<8x128xf32>
    %cst_45 = arith.constant 0.000000e+00 : f32
    %122 = vector.broadcast %cst_45 : f32 to vector<8x128xf32>
    %123 = arith.select %114, %121, %122 : vector<8x128xi1>, vector<8x128xf32>
    %cst_46 = arith.constant dense<0.000000e+00> : vector<8xf32>
    %124 = vector.multi_reduction <add>, %123, %cst_46 [1] : vector<8x128xf32> to vector<8xf32>
    %125 = vector.shape_cast %124 : vector<8xf32> to vector<8x1xf32>
    %126 = tpu.reciprocal %125 {approx = true} : vector<8x1xf32> -> vector<8x1xf32>
    %127 = vector.broadcast %126 : vector<8x1xf32> to vector<8x128xf32>
    %128 = arith.mulf %123, %127 : vector<8x128xf32>
    %c0_47 = arith.constant 0 : index
    %c0_48 = arith.constant 0 : index
    %c0_49 = arith.constant 0 : index
    %129 = vector.load %arg6[%c0_47, %c0_48, %c0_49] : memref<1x8x128xf32, #tpu.memory_space<vmem>>, vector<1x8x128xf32>
    %130 = vector.shape_cast %129 : vector<1x8x128xf32> to vector<8x128xf32>
    %131 = vector.shape_cast %128 : vector<8x128xf32> to vector<1x8x128xf32>
    tpu.vector_store %arg6[%c0_47, %c0_48, %c0_49], %131 {strides = array<i32>} : memref<1x8x128xf32, #tpu.memory_space<vmem>>, vector<1x8x128xf32>,
    return
  }
  func.func @transform_0(%arg0: i32) -> (i32, i32, i32) {
    %c0_i32 = arith.constant 0 : i32
    %c0_i32_0 = arith.constant 0 : i32
    %c0_i32_1 = arith.constant 0 : i32
    return %arg0, %c0_i32, %c0_i32_0 : i32, i32, i32
  }
  func.func @transform_1(%arg0: i32) -> (i32, i32) {
    %c0_i32 = arith.constant 0 : i32
    %c0_i32_0 = arith.constant 0 : i32
    %c0_i32_1 = arith.constant 0 : i32
    return %c0_i32, %c0_i32_0 : i32, i32
  }
  func.func @transform_2(%arg0: i32) -> (i32, i32) {
    %c0_i32 = arith.constant 0 : i32
    %c0_i32_0 = arith.constant 0 : i32
    %c0_i32_1 = arith.constant 0 : i32
    return %c0_i32, %c0_i32_0 : i32, i32
  }
  func.func @transform_3(%arg0: i32) -> (i32, i32) {
    %c0_i32 = arith.constant 0 : i32
    %c0_i32_0 = arith.constant 0 : i32
    %c0_i32_1 = arith.constant 0 : i32
    return %c0_i32, %c0_i32_0 : i32, i32
  }
  func.func @transform_4(%arg0: i32) -> (i32, i32) {
    %c0_i32 = arith.constant 0 : i32
    %c0_i32_0 = arith.constant 0 : i32
    %c0_i32_1 = arith.constant 0 : i32
    return %c0_i32, %c0_i32_0 : i32, i32
  }
  func.func @transform_5(%arg0: i32) -> (i32, i32, i32) {
    %c0_i32 = arith.constant 0 : i32
    %c0_i32_0 = arith.constant 0 : i32
    %c0_i32_1 = arith.constant 0 : i32
    return %arg0, %c0_i32, %c0_i32_0 : i32, i32, i32
  }
}

</mosaic_0001>

<bundles_post_ra>
// kernel: matconvnet_forward.1
= control target key start
LH: loop header
LB: loop body
LE: loop exit
PB: predicated region body
PF: predicated region fallthrough
CT: control target
= control target key end

     0   :  { %vm89_vm0 = vcmask 261120   ;;  %s13505_s1 = inlined_call_operand.vmem [shape: f32[32,128], index: 1, kind: input, shape index: {}]   ;;  %s13506_s0 = inlined_call_operand.vmem [shape: f32[1,2048,32], index: 0, kind: input, shape index: {}]   ;;  %s13507_s2 = inlined_call_operand.vmem [shape: f32[1,128], index: 2, kind: input, shape index: {}]   ;;  %s13508_s3 = inlined_call_operand.vmem [shape: bf16[512,128], index: 3, kind: input, shape index: {}]   ;;  %s13509_s4 = inlined_call_operand.vmem [shape: f32[1,128], index: 4, kind: input, shape index: {}]   ;;  %s13510_s5 = inlined_call_operand.vmem [shape: f32[1,8,128], index: 5, kind: output, shape index: {}]  }
   0x1   :  { %v9405_v0 = vld [vmem:[%s13505_s1 + $0x18] sm:$0xff]  ;;  %v9410_v1 = vld [vmem:[%s13505_s1 + $0x10] sm:$0xff]  ;;  %v9419_v2 = vld [vmem:[%s13505_s1 + $0x8] sm:$0xff] }
   0x2   :  { %8171 = vmatprep.subr.mxu0 %v9405_v0  ;;  %9197 = vmatprep.subr.mxu1 %v9405_v0  ;;  %v9428_v3 = vld [vmem:[%s13505_s1] sm:$0xff]  ;;  %v79_v5 = vld [vmem:[%s13506_s0 + $0x1d0] sm:$0xff]  ;;  %v22_v6 = vld [vmem:[%s13506_s0 + $0x8] sm:$0xff] }
   0x3   :  { %8172 = vmatpush3.msra.mxu0 %v9405_v0  ;;  %9201 = vmatpush3.msra.mxu1 %v9405_v0  ;;  %v21_v4 = vld [vmem:[%s13506_s0] sm:$0xff]  ;;  %v80_v7 = vld [vmem:[%s13506_s0 + $0x1d8] sm:$0xff]  ;;  %v23_v8 = vld [vmem:[%s13506_s0 + $0x10] sm:$0xff] }
   0x4   :  { %8173 = vmatprep.subr.mxu0 %v9410_v1  ;;  %9198 = vmatprep.subr.mxu1 %v9410_v1  ;;  %v81_v9 = vld [vmem:[%s13506_s0 + $0x1e0] sm:$0xff]  ;;  %v24_v10 = vld [vmem:[%s13506_s0 + $0x18] sm:$0xff]  ;;  %v82_v11 = vld [vmem:[%s13506_s0 + $0x1e8] sm:$0xff] }
   0x5   :  { %8174 = vmatpush3.msra.mxu0 %v9410_v1  ;;  %9202 = vmatpush3.msra.mxu1 %v9410_v1  ;;  %v25_v12 = vld [vmem:[%s13506_s0 + $0x20] sm:$0xff]  ;;  %v83_v13 = vld [vmem:[%s13506_s0 + $0x1f0] sm:$0xff]  ;;  %v26_v14 = vld [vmem:[%s13506_s0 + $0x28] sm:$0xff] }
   0x6   :  { %8175 = vmatprep.subr.mxu0 %v9419_v2  ;;  %9199 = vmatprep.subr.mxu1 %v9419_v2  ;;  %v84_v15 = vld [vmem:[%s13506_s0 + $0x1f8] sm:$0xff]  ;;  %v27_v16 = vld [vmem:[%s13506_s0 + $0x30] sm:$0xff]  ;;  %v667_v17 = vld [vmem:[%s13506_s0 + $0x200] sm:$0xff] }
   0x7   :  { %8176 = vmatpush3.msra.mxu0 %v9419_v2  ;;  %9203 = vmatpush3.msra.mxu1 %v9419_v2  ;;  %v28_v18 = vld [vmem:[%s13506_s0 + $0x38] sm:$0xff]  ;;  %v668_v19 = vld [vmem:[%s13506_s0 + $0x208] sm:$0xff]  ;;  %v29_v20 = vld [vmem:[%s13506_s0 + $0x40] sm:$0xff] }
   0x8   :  { %8177 = vmatprep.subr.mxu0 %v9428_v3  ;;  %9200 = vmatprep.subr.mxu1 %v9428_v3  ;;  %v669_v21 = vld [vmem:[%s13506_s0 + $0x210] sm:$0xff]  ;;  %v30_v22 = vld [vmem:[%s13506_s0 + $0x48] sm:$0xff]  ;;  %v670_v23 = vld [vmem:[%s13506_s0 + $0x218] sm:$0xff] }
   0x9   :  { %8178 = vmatpush3.msra.mxu0 %v9428_v3  ;;  %9204 = vmatpush3.msra.mxu1 %v9428_v3  ;;  %v31_v24 = vld [vmem:[%s13506_s0 + $0x50] sm:$0xff]  ;;  %v671_v25 = vld [vmem:[%s13506_s0 + $0x220] sm:$0xff]  ;;  %v32_v26 = vld [vmem:[%s13506_s0 + $0x58] sm:$0xff] }
   0xa   :  { %8179 = vmatprep.mubr.msk.f32.mxu0 %vm89_vm0, %v21_v4  ;;  %8266 = vmatprep.mubr.msk.f32.mxu1 %vm89_vm0, %v79_v5  ;;  %v672_v27 = vld [vmem:[%s13506_s0 + $0x228] sm:$0xff]  ;;  %v33_v28 = vld [vmem:[%s13506_s0 + $0x60] sm:$0xff]  ;;  %v673_v29 = vld [vmem:[%s13506_s0 + $0x230] sm:$0xff] }
   0xb   :  { %8180 = vmatmul.mubr.msk.f32.vlgmr.msra.gmra.mxu0 %vm89_vm0, %v22_v6  ;;  %8267 = vmatmul.mubr.msk.f32.vlgmr.msra.gmra.mxu1 %vm89_vm0, %v80_v7  ;;  %v34_v30 = vld [vmem:[%s13506_s0 + $0x68] sm:$0xff]  ;;  %v674_v31 = vld [vmem:[%s13506_s0 + $0x238] sm:$0xff]  ;;  %v35_v32 = vld [vmem:[%s13506_s0 + $0x70] sm:$0xff] }
   0xc   :  { %8182 = vmatprep.mubr.msk.f32.mxu0 %vm89_vm0, %v23_v8  ;;  %8269 = vmatprep.mubr.msk.f32.mxu1 %vm89_vm0, %v81_v9  ;;  %v675_v33 = vld [vmem:[%s13506_s0 + $0x240] sm:$0xff]  ;;  %v36_v34 = vld [vmem:[%s13506_s0 + $0x78] sm:$0xff]  ;;  %v676_v35 = vld [vmem:[%s13506_s0 + $0x248] sm:$0xff] }
   0xd   :  { %8275 = vmatprep.subr.mxu1 %v9405_v0  ;;  %8379 = vmatprep.subr.mxu0 %v9405_v0  ;;  %v37_v36 = vld [vmem:[%s13506_s0 + $0x80] sm:$0xff]  ;;  %v677_v37 = vld [vmem:[%s13506_s0 + $0x250] sm:$0xff]  ;;  %v38_v38 = vld [vmem:[%s13506_s0 + $0x88] sm:$0xff] }
   0xe   :  { %8276 = vmatpush3.msra.mxu1 %v9405_v0  ;;  %8380 = vmatpush3.msra.mxu0 %v9405_v0  ;;  %v678_v39 = vld [vmem:[%s13506_s0 + $0x258] sm:$0xff]  ;;  %v39_v40 = vld [vmem:[%s13506_s0 + $0x90] sm:$0xff]  ;;  %v679_v41 = vld [vmem:[%s13506_s0 + $0x260] sm:$0xff] }
   0xf   :  { %8183 = vmatmul.mubr.msk.f32.gmra.mxu0 %vm89_vm0, %v24_v10  ;;  %8270 = vmatmul.mubr.msk.f32.gmra.mxu1 %vm89_vm0, %v82_v11  ;;  %v40_v42 = vld [vmem:[%s13506_s0 + $0x98] sm:$0xff]  ;;  %v680_v43 = vld [vmem:[%s13506_s0 + $0x268] sm:$0xff]  ;;  %v41_v44 = vld [vmem:[%s13506_s0 + $0xa0] sm:$0xff] }
  0x10   :  { %8277 = vmatprep.subr.mxu1 %v9410_v1  ;;  %8185 = vmatprep.mubr.msk.f32.mxu0 %vm89_vm0, %v25_v12  ;;  %v681_v45 = vld [vmem:[%s13506_s0 + $0x270] sm:$0xff]  ;;  %v42_v46 = vld [vmem:[%s13506_s0 + $0xa8] sm:$0xff]  ;;  %v682_v47 = vld [vmem:[%s13506_s0 + $0x278] sm:$0xff] }
  0x11   :  { %8272 = vmatprep.mubr.msk.f32.mxu1 %vm89_vm0, %v83_v13  ;;  %8278 = vmatpush3.msra.mxu1 %v9410_v1  ;;  %v43_v48 = vld [vmem:[%s13506_s0 + $0xb0] sm:$0xff]  ;;  %v683_v49 = vld [vmem:[%s13506_s0 + $0x280] sm:$0xff]  ;;  %v44_v50 = vld [vmem:[%s13506_s0 + $0xb8] sm:$0xff] }
  0x12   :  { %8279 = vmatprep.subr.mxu1 %v9419_v2  ;;  %8381 = vmatprep.subr.mxu0 %v9410_v1  ;;  %v684_v51 = vld [vmem:[%s13506_s0 + $0x288] sm:$0xff]  ;;  %v45_v52 = vld [vmem:[%s13506_s0 + $0xc0] sm:$0xff]  ;;  %v685_v53 = vld [vmem:[%s13506_s0 + $0x290] sm:$0xff] }
  0x13   :  { %8186 = vmatmul.mubr.msk.f32.gmra.mxu0 %vm89_vm0, %v26_v14  ;;  %8273 = vmatmul.mubr.msk.f32.gmra.mxu1 %vm89_vm0, %v84_v15  ;;  %v46_v54 = vld [vmem:[%s13506_s0 + $0xc8] sm:$0xff]  ;;  %v686_v55 = vld [vmem:[%s13506_s0 + $0x298] sm:$0xff]  ;;  %v47_v56 = vld [vmem:[%s13506_s0 + $0xd0] sm:$0xff] }
  0x14   :  { %8280 = vmatpush3.msra.mxu1 %v9419_v2  ;;  %8188 = vmatprep.mubr.msk.f32.mxu0 %vm89_vm0, %v27_v16  ;;  %v687_v57 = vld [vmem:[%s13506_s0 + $0x2a0] sm:$0xff]  ;;  %v48_v58 = vld [vmem:[%s13506_s0 + $0xd8] sm:$0xff]  ;;  %v688_v59 = vld [vmem:[%s13506_s0 + $0x2a8] sm:$0xff] }
  0x15   :  { %8281 = vmatprep.subr.mxu1 %v9428_v3  ;;  %8283 = vmatprep.mubr.msk.f32.mxu1 %vm89_vm0, %v667_v17  ;;  %v49_v60 = vld [vmem:[%s13506_s0 + $0xe0] sm:$0xff]  ;;  %v689_v61 = vld [vmem:[%s13506_s0 + $0x2b0] sm:$0xff]  ;;  %v50_v62 = vld [vmem:[%s13506_s0 + $0xe8] sm:$0xff] }
  0x16   :  { %8282 = vmatpush3.msra.mxu1 %v9428_v3  ;;  %8382 = vmatpush3.msra.mxu0 %v9410_v1  ;;  %v690_v63 = vld [vmem:[%s13506_s0 + $0x2b8] sm:$0xff]  ;;  %v53_v4 = vld [vmem:[%s13506_s0 + $0x100] sm:$0xff]  ;;  %v693_v5 = vld [vmem:[%s13506_s0 + $0x2d0] sm:$0xff] }
  0x17   :  { %8189 = vmatmul.mubr.msk.f32.gmra.mxu0 %vm89_vm0, %v28_v18  ;;  %8284 = vmatmul.mubr.msk.f32.vlgmr.msra.gmra.mxu1 %vm89_vm0, %v668_v19  ;;  %v54_v6 = vld [vmem:[%s13506_s0 + $0x108] sm:$0xff]  ;;  %v694_v7 = vld [vmem:[%s13506_s0 + $0x2d8] sm:$0xff]  ;;  %v55_v8 = vld [vmem:[%s13506_s0 + $0x110] sm:$0xff] }
  0x18   :  { %8191 = vmatprep.mubr.msk.f32.mxu0 %vm89_vm0, %v29_v20  ;;  %8286 = vmatprep.mubr.msk.f32.mxu1 %vm89_vm0, %v669_v21  ;;  %v695_v9 = vld [vmem:[%s13506_s0 + $0x2e0] sm:$0xff]  ;;  %v56_v10 = vld [vmem:[%s13506_s0 + $0x118] sm:$0xff]  ;;  %v696_v11 = vld [vmem:[%s13506_s0 + $0x2e8] sm:$0xff] }
  0x19   :  { %8483 = vmatprep.subr.mxu1 %v9405_v0  ;;  %8383 = vmatprep.subr.mxu0 %v9419_v2  ;;  %v57_v12 = vld [vmem:[%s13506_s0 + $0x120] sm:$0xff]  ;;  %v697_v13 = vld [vmem:[%s13506_s0 + $0x2f0] sm:$0xff]  ;;  %v58_v14 = vld [vmem:[%s13506_s0 + $0x128] sm:$0xff] }
  0x1a   :  { %8484 = vmatpush3.msra.mxu1 %v9405_v0  ;;  %8384 = vmatpush3.msra.mxu0 %v9419_v2  ;;  %v51_v0 = vld [vmem:[%s13506_s0 + $0xf0] sm:$0xff]  ;;  %v698_v15 = vld [vmem:[%s13506_s0 + $0x2f8] sm:$0xff]  ;;  %v699_v17 = vld [vmem:[%s13506_s0 + $0x300] sm:$0xff] }
  0x1b   :  { %8192 = vmatmul.mubr.msk.f32.gmra.mxu0 %vm89_vm0, %v30_v22  ;;  %8287 = vmatmul.mubr.msk.f32.gmra.mxu1 %vm89_vm0, %v670_v23  ;;  %v59_v16 = vld [vmem:[%s13506_s0 + $0x130] sm:$0xff]  ;;  %v60_v18 = vld [vmem:[%s13506_s0 + $0x138] sm:$0xff]  ;;  %v700_v19 = vld [vmem:[%s13506_s0 + $0x308] sm:$0xff] }
  0x1c   :  { %8194 = vmatprep.mubr.msk.f32.mxu0 %vm89_vm0, %v31_v24  ;;  %8289 = vmatprep.mubr.msk.f32.mxu1 %vm89_vm0, %v671_v25  ;;  %v61_v20 = vld [vmem:[%s13506_s0 + $0x140] sm:$0xff]  ;;  %v701_v21 = vld [vmem:[%s13506_s0 + $0x310] sm:$0xff]  ;;  %v62_v22 = vld [vmem:[%s13506_s0 + $0x148] sm:$0xff] }
  0x1d   :  { %8485 = vmatprep.subr.mxu1 %v9410_v1  ;;  %8385 = vmatprep.subr.mxu0 %v9428_v3  ;;  %v702_v23 = vld [vmem:[%s13506_s0 + $0x318] sm:$0xff]  ;;  %v63_v24 = vld [vmem:[%s13506_s0 + $0x150] sm:$0xff]  ;;  %v703_v25 = vld [vmem:[%s13506_s0 + $0x320] sm:$0xff] }
  0x1e   :  { %8486 = vmatpush3.msra.mxu1 %v9410_v1  ;;  %8386 = vmatpush3.msra.mxu0 %v9428_v3  ;;  %v691_v1 = vld [vmem:[%s13506_s0 + $0x2c0] sm:$0xff] }
  0x1f   :  { %8195 = vmatmul.mubr.msk.f32.gmra.mxu0 %vm89_vm0, %v32_v26  ;;  %8290 = vmatmul.mubr.msk.f32.gmra.mxu1 %vm89_vm0, %v672_v27  ;;  %v64_v26 = vld [vmem:[%s13506_s0 + $0x158] sm:$0xff]  ;;  %v704_v27 = vld [vmem:[%s13506_s0 + $0x328] sm:$0xff] }
  0x20   :  { %8197 = vmatprep.mubr.msk.f32.mxu0 %vm89_vm0, %v33_v28  ;;  %8292 = vmatprep.mubr.msk.f32.mxu1 %vm89_vm0, %v673_v29  ;;  %v65_v28 = vld [vmem:[%s13506_s0 + $0x160] sm:$0xff]  ;;  %v705_v29 = vld [vmem:[%s13506_s0 + $0x330] sm:$0xff] }
  0x21   :  { %8487 = vmatprep.subr.mxu1 %v9419_v2 }
  0x22   :  { %8488 = vmatpush3.msra.mxu1 %v9419_v2  ;;  %v52_v2 = vld [vmem:[%s13506_s0 + $0xf8] sm:$0xff] }
  0x23   :  { %8198 = vmatmul.mubr.msk.f32.gmra.mxu0 %vm89_vm0, %v34_v30  ;;  %8293 = vmatmul.mubr.msk.f32.gmra.mxu1 %vm89_vm0, %v674_v31  ;;  %v66_v30 = vld [vmem:[%s13506_s0 + $0x168] sm:$0xff]  ;;  %v706_v31 = vld [vmem:[%s13506_s0 + $0x338] sm:$0xff] }
  0x24   :  { %8200 = vmatprep.mubr.msk.f32.mxu0 %vm89_vm0, %v35_v32  ;;  %8295 = vmatprep.mubr.msk.f32.mxu1 %vm89_vm0, %v675_v33  ;;  %v67_v32 = vld [vmem:[%s13506_s0 + $0x170] sm:$0xff]  ;;  %v707_v33 = vld [vmem:[%s13506_s0 + $0x340] sm:$0xff] }
  0x25   :  { %8489 = vmatprep.subr.mxu1 %v9428_v3 }
  0x26   :  { %8490 = vmatpush3.msra.mxu1 %v9428_v3  ;;  %v692_v3 = vld [vmem:[%s13506_s0 + $0x2c8] sm:$0xff] }
  0x27   :  { %8201 = vmatmul.mubr.msk.f32.gmra.mxu0 %vm89_vm0, %v36_v34  ;;  %8296 = vmatmul.mubr.msk.f32.gmra.mxu1 %vm89_vm0, %v676_v35  ;;  %v68_v34 = vld [vmem:[%s13506_s0 + $0x178] sm:$0xff]  ;;  %v708_v35 = vld [vmem:[%s13506_s0 + $0x348] sm:$0xff] }
  0x28   :  { %8203 = vmatprep.mubr.msk.f32.mxu0 %vm89_vm0, %v37_v36  ;;  %8298 = vmatprep.mubr.msk.f32.mxu1 %vm89_vm0, %v677_v37  ;;  %v69_v36 = vld [vmem:[%s13506_s0 + $0x180] sm:$0xff]  ;;  %v709_v37 = vld [vmem:[%s13506_s0 + $0x350] sm:$0xff] }
  0x2b   :  { %8204 = vmatmul.mubr.msk.f32.gmra.mxu0 %vm89_vm0, %v38_v38  ;;  %8299 = vmatmul.mubr.msk.f32.gmra.mxu1 %vm89_vm0, %v678_v39  ;;  %v70_v38 = vld [vmem:[%s13506_s0 + $0x188] sm:$0xff]  ;;  %v710_v39 = vld [vmem:[%s13506_s0 + $0x358] sm:$0xff] }
  0x2c   :  { %8206 = vmatprep.mubr.msk.f32.mxu0 %vm89_vm0, %v39_v40  ;;  %8301 = vmatprep.mubr.msk.f32.mxu1 %vm89_vm0, %v679_v41  ;;  %v71_v40 = vld [vmem:[%s13506_s0 + $0x190] sm:$0xff]  ;;  %v711_v41 = vld [vmem:[%s13506_s0 + $0x360] sm:$0xff] }
  0x2f   :  { %8207 = vmatmul.mubr.msk.f32.gmra.mxu0 %vm89_vm0, %v40_v42  ;;  %8302 = vmatmul.mubr.msk.f32.gmra.mxu1 %vm89_vm0, %v680_v43  ;;  %v72_v42 = vld [vmem:[%s13506_s0 + $0x198] sm:$0xff]  ;;  %v712_v43 = vld [vmem:[%s13506_s0 + $0x368] sm:$0xff] }
  0x30   :  { %8209 = vmatprep.mubr.msk.f32.mxu0 %vm89_vm0, %v41_v44  ;;  %8304 = vmatprep.mubr.msk.f32.mxu1 %vm89_vm0, %v681_v45  ;;  %v73_v44 = vld [vmem:[%s13506_s0 + $0x1a0] sm:$0xff]  ;;  %v713_v45 = vld [vmem:[%s13506_s0 + $0x370] sm:$0xff] }
  0x33   :  { %8210 = vmatmul.mubr.msk.f32.gmra.mxu0 %vm89_vm0, %v42_v46  ;;  %8305 = vmatmul.mubr.msk.f32.gmra.mxu1 %vm89_vm0, %v682_v47  ;;  %v74_v46 = vld [vmem:[%s13506_s0 + $0x1a8] sm:$0xff]  ;;  %v714_v47 = vld [vmem:[%s13506_s0 + $0x378] sm:$0xff] }
  0x34   :  { %8212 = vmatprep.mubr.msk.f32.mxu0 %vm89_vm0, %v43_v48  ;;  %8307 = vmatprep.mubr.msk.f32.mxu1 %vm89_vm0, %v683_v49  ;;  %v75_v48 = vld [vmem:[%s13506_s0 + $0x1b0] sm:$0xff]  ;;  %v715_v49 = vld [vmem:[%s13506_s0 + $0x380] sm:$0xff] }
  0x37   :  { %8213 = vmatmul.mubr.msk.f32.gmra.mxu0 %vm89_vm0, %v44_v50  ;;  %8308 = vmatmul.mubr.msk.f32.gmra.mxu1 %vm89_vm0, %v684_v51  ;;  %v76_v50 = vld [vmem:[%s13506_s0 + $0x1b8] sm:$0xff]  ;;  %v716_v51 = vld [vmem:[%s13506_s0 + $0x388] sm:$0xff] }
  0x38   :  { %8215 = vmatprep.mubr.msk.f32.mxu0 %vm89_vm0, %v45_v52  ;;  %8310 = vmatprep.mubr.msk.f32.mxu1 %vm89_vm0, %v685_v53  ;;  %v77_v52 = vld [vmem:[%s13506_s0 + $0x1c0] sm:$0xff]  ;;  %v717_v53 = vld [vmem:[%s13506_s0 + $0x390] sm:$0xff] }
  0x3b   :  { %8216 = vmatmul.mubr.msk.f32.gmra.mxu0 %vm89_vm0, %v46_v54  ;;  %8311 = vmatmul.mubr.msk.f32.gmra.mxu1 %vm89_vm0, %v686_v55  ;;  %v78_v54 = vld [vmem:[%s13506_s0 + $0x1c8] sm:$0xff]  ;;  %v718_v55 = vld [vmem:[%s13506_s0 + $0x398] sm:$0xff] }
  0x3c   :  { %8218 = vmatprep.mubr.msk.f32.mxu0 %vm89_vm0, %v47_v56  ;;  %8313 = vmatprep.mubr.msk.f32.mxu1 %vm89_vm0, %v687_v57  ;;  %v719_v56 = vld [vmem:[%s13506_s0 + $0x3a0] sm:$0xff] }
  0x3d   :  { %v1372_v57 = vld [vmem:[%s13506_s0 + $0x400] sm:$0xff] }
  0x3f   :  { %8219 = vmatmul.mubr.msk.f32.gmra.mxu0 %vm89_vm0, %v48_v58  ;;  %8314 = vmatmul.mubr.msk.f32.gmra.mxu1 %vm89_vm0, %v688_v59  ;;  %v720_v58 = vld [vmem:[%s13506_s0 + $0x3a8] sm:$0xff] }
  0x40   :  { %8221 = vmatprep.mubr.msk.f32.mxu0 %vm89_vm0, %v49_v60  ;;  %8316 = vmatprep.mubr.msk.f32.mxu1 %vm89_vm0, %v689_v61  ;;  %v1373_v59 = vld [vmem:[%s13506_s0 + $0x408] sm:$0xff]  ;;  %v721_v60 = vld [vmem:[%s13506_s0 + $0x3b0] sm:$0xff] }
  0x41   :  { %v1374_v61 = vld [vmem:[%s13506_s0 + $0x410] sm:$0xff] }
  0x43   :  { %8222 = vmatmul.mubr.msk.f32.gmra.mxu0 %vm89_vm0, %v50_v62  ;;  %8317 = vmatmul.mubr.msk.f32.gmra.mxu1 %vm89_vm0, %v690_v63  ;;  %v722_v62 = vld [vmem:[%s13506_s0 + $0x3b8] sm:$0xff] }
  0x44   :  { %8224 = vmatprep.mubr.msk.f32.mxu0 %vm89_vm0, %v51_v0  ;;  %8319 = vmatprep.mubr.msk.f32.mxu1 %vm89_vm0, %v691_v1  ;;  %v1375_v63 = vld [vmem:[%s13506_s0 + $0x418] sm:$0xff]  ;;  %v723_v0 = vld [vmem:[%s13506_s0 + $0x3c0] sm:$0xff] }
  0x45   :  { %v1376_v1 = vld [vmem:[%s13506_s0 + $0x420] sm:$0xff] }
  0x47   :  { %8225 = vmatmul.mubr.msk.f32.gmra.mxu0 %vm89_vm0, %v52_v2  ;;  %8320 = vmatmul.mubr.msk.f32.gmra.mxu1 %vm89_vm0, %v692_v3  ;;  %v724_v2 = vld [vmem:[%s13506_s0 + $0x3c8] sm:$0xff] }
  0x48   :  { %8227 = vmatprep.mubr.msk.f32.mxu0 %vm89_vm0, %v53_v4  ;;  %8322 = vmatprep.mubr.msk.f32.mxu1 %vm89_vm0, %v693_v5  ;;  %v1377_v3 = vld [vmem:[%s13506_s0 + $0x428] sm:$0xff]  ;;  %v725_v4 = vld [vmem:[%s13506_s0 + $0x3d0] sm:$0xff] }
  0x49   :  { %v1378_v5 = vld [vmem:[%s13506_s0 + $0x430] sm:$0xff] }
  0x4b   :  { %8228 = vmatmul.mubr.msk.f32.gmra.mxu0 %vm89_vm0, %v54_v6  ;;  %8323 = vmatmul.mubr.msk.f32.gmra.mxu1 %vm89_vm0, %v694_v7  ;;  %v726_v6 = vld [vmem:[%s13506_s0 + $0x3d8] sm:$0xff] }
  0x4c   :  { %8230 = vmatprep.mubr.msk.f32.mxu0 %vm89_vm0, %v55_v8  ;;  %8325 = vmatprep.mubr.msk.f32.mxu1 %vm89_vm0, %v695_v9  ;;  %v1379_v7 = vld [vmem:[%s13506_s0 + $0x438] sm:$0xff]  ;;  %v727_v8 = vld [vmem:[%s13506_s0 + $0x3e0] sm:$0xff] }
  0x4d   :  { %v1380_v9 = vld [vmem:[%s13506_s0 + $0x440] sm:$0xff] }
  0x4f   :  { %8231 = vmatmul.mubr.msk.f32.gmra.mxu0 %vm89_vm0, %v56_v10  ;;  %8326 = vmatmul.mubr.msk.f32.gmra.mxu1 %vm89_vm0, %v696_v11  ;;  %v728_v10 = vld [vmem:[%s13506_s0 + $0x3e8] sm:$0xff] }
  0x50   :  { %8233 = vmatprep.mubr.msk.f32.mxu0 %vm89_vm0, %v57_v12  ;;  %8328 = vmatprep.mubr.msk.f32.mxu1 %vm89_vm0, %v697_v13  ;;  %v1381_v11 = vld [vmem:[%s13506_s0 + $0x448] sm:$0xff]  ;;  %v729_v12 = vld [vmem:[%s13506_s0 + $0x3f0] sm:$0xff] }
  0x51   :  { %v1382_v13 = vld [vmem:[%s13506_s0 + $0x450] sm:$0xff] }
  0x53   :  { %8234 = vmatmul.mubr.msk.f32.gmra.mxu0 %vm89_vm0, %v58_v14  ;;  %8329 = vmatmul.mubr.msk.f32.gmra.mxu1 %vm89_vm0, %v698_v15  ;;  %v730_v14 = vld [vmem:[%s13506_s0 + $0x3f8] sm:$0xff] }
  0x54   :  { %8236 = vmatprep.mubr.msk.f32.mxu0 %vm89_vm0, %v59_v16  ;;  %8331 = vmatprep.mubr.msk.f32.mxu1 %vm89_vm0, %v699_v17  ;;  %v1383_v15 = vld [vmem:[%s13506_s0 + $0x458] sm:$0xff]  ;;  %v1384_v16 = vld [vmem:[%s13506_s0 + $0x460] sm:$0xff] }
  0x55   :  { %v2077_v17 = vld [vmem:[%s13506_s0 + $0x600] sm:$0xff] }
  0x57   :  { %8237 = vmatmul.mubr.msk.f32.gmra.mxu0 %vm89_vm0, %v60_v18  ;;  %8332 = vmatmul.mubr.msk.f32.gmra.mxu1 %vm89_vm0, %v700_v19  ;;  %v1385_v18 = vld [vmem:[%s13506_s0 + $0x468] sm:$0xff] }
  0x58   :  { %8239 = vmatprep.mubr.msk.f32.mxu0 %vm89_vm0, %v61_v20  ;;  %8334 = vmatprep.mubr.msk.f32.mxu1 %vm89_vm0, %v701_v21  ;;  %v2078_v19 = vld [vmem:[%s13506_s0 + $0x608] sm:$0xff]  ;;  %v1386_v20 = vld [vmem:[%s13506_s0 + $0x470] sm:$0xff] }
  0x59   :  { %v2079_v21 = vld [vmem:[%s13506_s0 + $0x610] sm:$0xff] }
  0x5b   :  { %8240 = vmatmul.mubr.msk.f32.gmra.mxu0 %vm89_vm0, %v62_v22  ;;  %8335 = vmatmul.mubr.msk.f32.gmra.mxu1 %vm89_vm0, %v702_v23  ;;  %v1387_v22 = vld [vmem:[%s13506_s0 + $0x478] sm:$0xff] }
  0x5c   :  { %8242 = vmatprep.mubr.msk.f32.mxu0 %vm89_vm0, %v63_v24  ;;  %8337 = vmatprep.mubr.msk.f32.mxu1 %vm89_vm0, %v703_v25  ;;  %v2080_v23 = vld [vmem:[%s13506_s0 + $0x618] sm:$0xff]  ;;  %v1388_v24 = vld [vmem:[%s13506_s0 + $0x480] sm:$0xff] }
  0x5d   :  { %v2081_v25 = vld [vmem:[%s13506_s0 + $0x620] sm:$0xff] }
  0x5f   :  { %8243 = vmatmul.mubr.msk.f32.gmra.mxu0 %vm89_vm0, %v64_v26  ;;  %8338 = vmatmul.mubr.msk.f32.gmra.mxu1 %vm89_vm0, %v704_v27  ;;  %v1389_v26 = vld [vmem:[%s13506_s0 + $0x488] sm:$0xff] }
  0x60   :  { %8245 = vmatprep.mubr.msk.f32.mxu0 %vm89_vm0, %v65_v28  ;;  %8340 = vmatprep.mubr.msk.f32.mxu1 %vm89_vm0, %v705_v29  ;;  %v2082_v27 = vld [vmem:[%s13506_s0 + $0x628] sm:$0xff]  ;;  %v1390_v28 = vld [vmem:[%s13506_s0 + $0x490] sm:$0xff] }
  0x61   :  { %v2083_v29 = vld [vmem:[%s13506_s0 + $0x630] sm:$0xff] }
  0x63   :  { %8246 = vmatmul.mubr.msk.f32.gmra.mxu0 %vm89_vm0, %v66_v30  ;;  %8341 = vmatmul.mubr.msk.f32.gmra.mxu1 %vm89_vm0, %v706_v31  ;;  %v1391_v30 = vld [vmem:[%s13506_s0 + $0x498] sm:$0xff] }
  0x64   :  { %8248 = vmatprep.mubr.msk.f32.mxu0 %vm89_vm0, %v67_v32  ;;  %8343 = vmatprep.mubr.msk.f32.mxu1 %vm89_vm0, %v707_v33  ;;  %v2084_v31 = vld [vmem:[%s13506_s0 + $0x638] sm:$0xff]  ;;  %v1392_v32 = vld [vmem:[%s13506_s0 + $0x4a0] sm:$0xff] }
  0x65   :  { %v2085_v33 = vld [vmem:[%s13506_s0 + $0x640] sm:$0xff] }
  0x67   :  { %8249 = vmatmul.mubr.msk.f32.gmra.mxu0 %vm89_vm0, %v68_v34  ;;  %8344 = vmatmul.mubr.msk.f32.gmra.mxu1 %vm89_vm0, %v708_v35  ;;  %v2917_v34 = vlaneseq  ;;  %v1393_v35 = vld [vmem:[%s13506_s0 + $0x4a8] sm:$0xff] }
  0x68   :  { %8251 = vmatprep.mubr.msk.f32.mxu0 %vm89_vm0, %v69_v36  ;;  %8346 = vmatprep.mubr.msk.f32.mxu1 %vm89_vm0, %v709_v37  ;;  %v2086_v36 = vld [vmem:[%s13506_s0 + $0x648] sm:$0xff] }
  0x69   :  { %v10100_v37 = vshrl.u32 %v2917_v34, 7 }
  0x6b   :  { %8252 = vmatmul.mubr.msk.f32.gmra.mxu0 %vm89_vm0, %v70_v38  ;;  %8347 = vmatmul.mubr.msk.f32.gmra.mxu1 %vm89_vm0, %v710_v39  ;;  %13806 = vst [vmem:[#allocation2_spill] sm:$0xff] %v10100_v37  ;;  %v10102_v38 = vand.u32 127, %v2917_v34  ;;  %v1394_v39 = vld [vmem:[%s13506_s0 + $0x4b0] sm:$0xff] }
  0x6c   :  { %8254 = vmatprep.mubr.msk.f32.mxu0 %vm89_vm0, %v71_v40  ;;  %8349 = vmatprep.mubr.msk.f32.mxu1 %vm89_vm0, %v711_v41  ;;  %v2087_v40 = vld [vmem:[%s13506_s0 + $0x650] sm:$0xff]  ;;  %v10111_v41 = vadd.s32 120, %v10100_v37 }
  0x6d   :  { %13807 = vst [vmem:[#allocation3_spill] sm:$0xff] %v10102_v38 }
  0x6e   :  { %13808 = vst [vmem:[#allocation4_spill] sm:$0xff] %v10111_v41 }
  0x6f   :  { %8255 = vmatmul.mubr.msk.f32.gmra.mxu0 %vm89_vm0, %v72_v42  ;;  %8350 = vmatmul.mubr.msk.f32.gmra.mxu1 %vm89_vm0, %v712_v43  ;;  %v1395_v42 = vld [vmem:[%s13506_s0 + $0x4b8] sm:$0xff] }
  0x70   :  { %8257 = vmatprep.mubr.msk.f32.mxu0 %vm89_vm0, %v73_v44  ;;  %8352 = vmatprep.mubr.msk.f32.mxu1 %vm89_vm0, %v713_v45  ;;  %v2088_v43 = vld [vmem:[%s13506_s0 + $0x658] sm:$0xff]  ;;  %v2951_v44 = vsub.s32 %v10111_v41, %v10102_v38  ;;  %v1396_v45 = vld [vmem:[%s13506_s0 + $0x4c0] sm:$0xff] }
  0x72   :  { %vm2967_vm1 = vcmp.ge.s32.totalorder %v2951_v44, 4294967294  ;;  %vm2983_vm2 = vcmp.le.s32.totalorder %v2951_v44, 2 }
  0x73   :  { %8258 = vmatmul.mubr.msk.f32.gmra.mxu0 %vm89_vm0, %v74_v46  ;;  %8353 = vmatmul.mubr.msk.f32.gmra.mxu1 %vm89_vm0, %v714_v47  ;;  %v2089_v46 = vld [vmem:[%s13506_s0 + $0x660] sm:$0xff]  ;;  %v10132_v47 = vadd.s32 112, %v10100_v37  ;;  %vm2999_vm3 = vmand %vm2967_vm1, %vm2983_vm2 }
  0x74   :  { %8260 = vmatprep.mubr.msk.f32.mxu0 %vm89_vm0, %v75_v48  ;;  %8355 = vmatprep.mubr.msk.f32.mxu1 %vm89_vm0, %v715_v49  ;;  %v1397_v48 = vld [vmem:[%s13506_s0 + $0x4c8] sm:$0xff] }
  0x75   :  { %13809 = vst [vmem:[#allocation5_spill] sm:$0xff] %v10132_v47  ;;  %v2090_v49 = vld [vmem:[%s13506_s0 + $0x668] sm:$0xff] }
  0x77   :  { %8261 = vmatmul.mubr.msk.f32.gmra.mxu0 %vm89_vm0, %v76_v50  ;;  %8356 = vmatmul.mubr.msk.f32.gmra.mxu1 %vm89_vm0, %v716_v51  ;;  %v2950_v50 = vsub.s32 %v10132_v47, %v10102_v38  ;;  %v1398_v51 = vld [vmem:[%s13506_s0 + $0x4d0] sm:$0xff] }
  0x78   :  { %8263 = vmatprep.mubr.msk.f32.mxu0 %vm89_vm0, %v77_v52  ;;  %8358 = vmatprep.mubr.msk.f32.mxu1 %vm89_vm0, %v717_v53  ;;  %v2091_v52 = vld [vmem:[%s13506_s0 + $0x670] sm:$0xff]  ;;  %v13511_v53 = vmov 1.0  }
  0x79   :  { %8587 = vmatprep.subr.msk.mxu0 %vm2999_vm3, %v13511_v53  ;;  %vm2966_vm4 = vcmp.ge.s32.totalorder %v2950_v50, 4294967294  ;;  %vm2982_vm5 = vcmp.le.s32.totalorder %v2950_v50, 2 }
  0x7a   :  { %vm2998_vm6 = vmand %vm2966_vm4, %vm2982_vm5 }
  0x7b   :  { %8264 = vmatmul.mubr.msk.f32.gmra.mxu0 %vm89_vm0, %v78_v54  ;;  %8359 = vmatmul.mubr.msk.f32.gmra.mxu1 %vm89_vm0, %v718_v55  ;;  %v1399_v54 = vld [vmem:[%s13506_s0 + $0x4d8] sm:$0xff] }
  0x7c   :  { %8361 = vmatprep.mubr.msk.f32.mxu1 %vm89_vm0, %v719_v56  ;;  %8387 = vmatprep.mubr.msk.f32.mxu0 %vm89_vm0, %v1372_v57  ;;  %v2092_v55 = vld [vmem:[%s13506_s0 + $0x678] sm:$0xff]  ;;  %v1400_v56 = vld [vmem:[%s13506_s0 + $0x4e0] sm:$0xff] }
  0x7d   :  { %v2093_v57 = vld [vmem:[%s13506_s0 + $0x680] sm:$0xff] }
  0x7f   :  { %8362 = vmatmul.mubr.msk.f32.gmra.mxu1 %vm89_vm0, %v720_v58  ;;  %8388 = vmatmul.mubr.msk.f32.vlgmr.msra.gmra.mxu0 %vm89_vm0, %v1373_v59  ;;  %v10173_v58 = vadd.s32 104, %v10100_v37  ;;  %v1401_v59 = vld [vmem:[%s13506_s0 + $0x4e8] sm:$0xff] }
  0x80   :  { %8364 = vmatprep.mubr.msk.f32.mxu1 %vm89_vm0, %v721_v60  ;;  %8390 = vmatprep.mubr.msk.f32.mxu0 %vm89_vm0, %v1374_v61  ;;  %v2094_v60 = vld [vmem:[%s13506_s0 + $0x688] sm:$0xff] }
  0x81   :  { %8588 = vmatpush3.msk.msra.mxu0 %vm2999_vm3, %v13511_v53  ;;  %13810 = vst [vmem:[#allocation6_spill] sm:$0xff] %v10173_v58  ;;  %v2949_v61 = vsub.s32 %v10173_v58, %v10102_v38 }
  0x82   :  { %8589 = vmatprep.subr.msk.mxu0 %vm2998_vm6, %v13511_v53 }
  0x83   :  { %8365 = vmatmul.mubr.msk.f32.gmra.mxu1 %vm89_vm0, %v722_v62  ;;  %8391 = vmatmul.mubr.msk.f32.gmra.mxu0 %vm89_vm0, %v1375_v63  ;;  %v1402_v62 = vld [vmem:[%s13506_s0 + $0x4f0] sm:$0xff]  ;;  %vm2965_vm7 = vcmp.ge.s32.totalorder %v2949_v61, 4294967294  ;;  %vm2981_vm8 = vcmp.le.s32.totalorder %v2949_v61, 2  ;;  %v1417_v61 = vld [vmem:[%s13506_s0 + $0x568] sm:$0xff] }
  0x84   :  { %8367 = vmatprep.mubr.msk.f32.mxu1 %vm89_vm0, %v723_v0  ;;  %8393 = vmatprep.mubr.msk.f32.mxu0 %vm89_vm0, %v1376_v1  ;;  %v2095_v63 = vld [vmem:[%s13506_s0 + $0x690] sm:$0xff]  ;;  %vm2997_vm9 = vmand %vm2965_vm7, %vm2981_vm8  ;;  %v1403_v0 = vld [vmem:[%s13506_s0 + $0x4f8] sm:$0xff] }
  0x85   :  { %8590 = vmatpush3.msk.msra.mxu0 %vm2998_vm6, %v13511_v53  ;;  %v2096_v1 = vld [vmem:[%s13506_s0 + $0x698] sm:$0xff] }
  0x86   :  { %8591 = vmatprep.subr.msk.mxu0 %vm2997_vm9, %v13511_v53 }
  0x87   :  { %8368 = vmatmul.mubr.msk.f32.gmra.mxu1 %vm89_vm0, %v724_v2  ;;  %8394 = vmatmul.mubr.msk.f32.gmra.mxu0 %vm89_vm0, %v1377_v3  ;;  %v1404_v2 = vld [vmem:[%s13506_s0 + $0x500] sm:$0xff] }
  0x88   :  { %8370 = vmatprep.mubr.msk.f32.mxu1 %vm89_vm0, %v725_v4  ;;  %8396 = vmatprep.mubr.msk.f32.mxu0 %vm89_vm0, %v1378_v5  ;;  %v2097_v3 = vld [vmem:[%s13506_s0 + $0x6a0] sm:$0xff]  ;;  %v10212_v4 = vadd.s32 96, %v10100_v37  ;;  %v1405_v5 = vld [vmem:[%s13506_s0 + $0x508] sm:$0xff] }
  0x89   :  { %8592 = vmatpush3.msk.msra.mxu0 %vm2997_vm9, %v13511_v53 }
  0x8a   :  { %13811 = vst [vmem:[#allocation7_spill] sm:$0xff] %v10212_v4 }
  0x8b   :  { %8371 = vmatmul.mubr.msk.f32.gmra.mxu1 %vm89_vm0, %v726_v6  ;;  %8397 = vmatmul.mubr.msk.f32.gmra.mxu0 %vm89_vm0, %v1379_v7  ;;  %v2098_v6 = vld [vmem:[%s13506_s0 + $0x6a8] sm:$0xff]  ;;  %v2948_v7 = vsub.s32 %v10212_v4, %v10102_v38 }
  0x8c   :  { %8373 = vmatprep.mubr.msk.f32.mxu1 %vm89_vm0, %v727_v8  ;;  %8399 = vmatprep.mubr.msk.f32.mxu0 %vm89_vm0, %v1380_v9  ;;  %v1406_v8 = vld [vmem:[%s13506_s0 + $0x510] sm:$0xff] }
  0x8d   :  { %v2099_v9 = vld [vmem:[%s13506_s0 + $0x6b0] sm:$0xff]  ;;  %vm2964_vm10 = vcmp.ge.s32.totalorder %v2948_v7, 4294967294  ;;  %vm2980_vm11 = vcmp.le.s32.totalorder %v2948_v7, 2 }
  0x8e   :  { %vm2996_vm12 = vmand %vm2964_vm10, %vm2980_vm11 }
  0x8f   :  { %8374 = vmatmul.mubr.msk.f32.gmra.mxu1 %vm89_vm0, %v728_v10  ;;  %8400 = vmatmul.mubr.msk.f32.gmra.mxu0 %vm89_vm0, %v1381_v11  ;;  %v1407_v10 = vld [vmem:[%s13506_s0 + $0x518] sm:$0xff] }
  0x90   :  { %8376 = vmatprep.mubr.msk.f32.mxu1 %vm89_vm0, %v729_v12  ;;  %8402 = vmatprep.mubr.msk.f32.mxu0 %vm89_vm0, %v1382_v13  ;;  %v2100_v11 = vld [vmem:[%s13506_s0 + $0x6b8] sm:$0xff]  ;;  %v1408_v12 = vld [vmem:[%s13506_s0 + $0x520] sm:$0xff] }
  0x91   :  { %v2101_v13 = vld [vmem:[%s13506_s0 + $0x6c0] sm:$0xff]  ;;  %8593 = vmatprep.subr.msk.mxu0 %vm2996_vm12, %v13511_v53 }
  0x92   :  { %8594 = vmatpush3.msk.msra.mxu0 %vm2996_vm12, %v13511_v53 }
  0x93   :  { %8377 = vmatmul.mubr.msk.f32.gmra.mxu1 %vm89_vm0, %v730_v14  ;;  %8403 = vmatmul.mubr.msk.f32.gmra.mxu0 %vm89_vm0, %v1383_v15  ;;  %v10251_v14 = vadd.s32 88, %v10100_v37  ;;  %v1409_v15 = vld [vmem:[%s13506_s0 + $0x528] sm:$0xff] }
  0x94   :  { %8405 = vmatprep.mubr.msk.f32.mxu0 %vm89_vm0, %v1384_v16  ;;  %8491 = vmatprep.mubr.msk.f32.mxu1 %vm89_vm0, %v2077_v17  ;;  %v2102_v16 = vld [vmem:[%s13506_s0 + $0x6c8] sm:$0xff] }
  0x95   :  { %13812 = vst [vmem:[#allocation8_spill] sm:$0xff] %v10251_v14  ;;  %v2947_v17 = vsub.s32 %v10251_v14, %v10102_v38 }
  0x97   :  { %8406 = vmatmul.mubr.msk.f32.gmra.mxu0 %vm89_vm0, %v1385_v18  ;;  %8492 = vmatmul.mubr.msk.f32.vlgmr.msra.gmra.mxu1 %vm89_vm0, %v2078_v19  ;;  %v1410_v18 = vld [vmem:[%s13506_s0 + $0x530] sm:$0xff]  ;;  %vm2963_vm13 = vcmp.ge.s32.totalorder %v2947_v17, 4294967294  ;;  %vm2979_vm14 = vcmp.le.s32.totalorder %v2947_v17, 2 }
  0x98   :  { %8408 = vmatprep.mubr.msk.f32.mxu0 %vm89_vm0, %v1386_v20  ;;  %8494 = vmatprep.mubr.msk.f32.mxu1 %vm89_vm0, %v2079_v21  ;;  %v2103_v19 = vld [vmem:[%s13506_s0 + $0x6d0] sm:$0xff]  ;;  %vm2995_vm15 = vmand %vm2963_vm13, %vm2979_vm14  ;;  %v10274_v20 = vadd.s32 80, %v10100_v37  ;;  %v1411_v21 = vld [vmem:[%s13506_s0 + $0x538] sm:$0xff] }
  0x99   :  { %8595 = vmatprep.subr.msk.mxu0 %vm2995_vm15, %v13511_v53 }
  0x9a   :  { %13813 = vst [vmem:[#allocation9_spill] sm:$0xff] %v10274_v20  ;;  %8596 = vmatpush3.msk.msra.mxu0 %vm2995_vm15, %v13511_v53 }
  0x9b   :  { %8409 = vmatmul.mubr.msk.f32.gmra.mxu0 %vm89_vm0, %v1387_v22  ;;  %8495 = vmatmul.mubr.msk.f32.gmra.mxu1 %vm89_vm0, %v2080_v23  ;;  %v2104_v22 = vld [vmem:[%s13506_s0 + $0x6d8] sm:$0xff]  ;;  %v1412_v23 = vld [vmem:[%s13506_s0 + $0x540] sm:$0xff] }
  0x9c   :  { %8411 = vmatprep.mubr.msk.f32.mxu0 %vm89_vm0, %v1388_v24  ;;  %8497 = vmatprep.mubr.msk.f32.mxu1 %vm89_vm0, %v2081_v25  ;;  %v2105_v24 = vld [vmem:[%s13506_s0 + $0x6e0] sm:$0xff]  ;;  %v2946_v25 = vsub.s32 %v10274_v20, %v10102_v38 }
  0x9e   :  { %vm2962_vm1 = vcmp.ge.s32.totalorder %v2946_v25, 4294967294  ;;  %vm2978_vm2 = vcmp.le.s32.totalorder %v2946_v25, 2  ;;  %v1421_v25 = vld [vmem:[%s13506_s0 + $0x588] sm:$0xff] }
  0x9f   :  { %8412 = vmatmul.mubr.msk.f32.gmra.mxu0 %vm89_vm0, %v1389_v26  ;;  %8498 = vmatmul.mubr.msk.f32.gmra.mxu1 %vm89_vm0, %v2082_v27  ;;  %v10294_v26 = vadd.s32 72, %v10100_v37  ;;  %vm2994_vm3 = vmand %vm2962_vm1, %vm2978_vm2 }
  0xa0   :  { %8414 = vmatprep.mubr.msk.f32.mxu0 %vm89_vm0, %v1390_v28  ;;  %8500 = vmatprep.mubr.msk.f32.mxu1 %vm89_vm0, %v2083_v29 }
  0xa1   :  { %13814 = vst [vmem:[#allocation10_spill] sm:$0xff] %v10294_v26  ;;  %v2945_v29 = vsub.s32 %v10294_v26, %v10102_v38  ;;  %8597 = vmatprep.subr.msk.mxu0 %vm2994_vm3, %v13511_v53 }
  0xa2   :  { %8598 = vmatpush3.msk.msra.mxu0 %vm2994_vm3, %v13511_v53 }
  0xa3   :  { %8415 = vmatmul.mubr.msk.f32.gmra.mxu0 %vm89_vm0, %v1391_v30  ;;  %8501 = vmatmul.mubr.msk.f32.gmra.mxu1 %vm89_vm0, %v2084_v31  ;;  %v10306_v30 = vadd.s32 64, %v10100_v37  ;;  %v1413_v31 = vld [vmem:[%s13506_s0 + $0x548] sm:$0xff]  ;;  %vm2961_vm4 = vcmp.ge.s32.totalorder %v2945_v29, 4294967294  ;;  %vm2977_vm5 = vcmp.le.s32.totalorder %v2945_v29, 2 }
  0xa4   :  { %8417 = vmatprep.mubr.msk.f32.mxu0 %vm89_vm0, %v1392_v32  ;;  %8503 = vmatprep.mubr.msk.f32.mxu1 %vm89_vm0, %v2085_v33  ;;  %v2106_v32 = vld [vmem:[%s13506_s0 + $0x6e8] sm:$0xff]  ;;  %vm10333_vm6 = vmand %vm2961_vm4, %vm2977_vm5 }
  0xa5   :  { %13816 = vst [vmem:[#allocation12_spill] sm:$0xff] %v10306_v30  ;;  %8599 = vmatprep.subr.msk.mxu0 %vm10333_vm6, %v13511_v53  ;;  %v2114_v29 = vld [vmem:[%s13506_s0 + $0x728] sm:$0xff] }
  0xa6   :  { %8600 = vmatpush3.msk.msra.mxu0 %vm10333_vm6, %v13511_v53 }
  0xa7   :  { %8418 = vmatmul.mubr.msk.f32.gmra.mxu0 %vm89_vm0, %v1393_v35  ;;  %8504 = vmatmul.mubr.msk.f32.gmra.mxu1 %vm89_vm0, %v2086_v36  ;;  %v1414_v35 = vld [vmem:[%s13506_s0 + $0x550] sm:$0xff] }
  0xa8   :  { %8420 = vmatprep.mubr.msk.f32.mxu0 %vm89_vm0, %v1394_v39  ;;  %8506 = vmatprep.mubr.msk.f32.mxu1 %vm89_vm0, %v2087_v40  ;;  %v2107_v36 = vld [vmem:[%s13506_s0 + $0x6f0] sm:$0xff]  ;;  %v2944_v39 = vsub.s32 %v10306_v30, %v10102_v38  ;;  %v10330_v40 = vadd.s32 56, %v10100_v37 }
  0xaa   :  { %13818 = vst [vmem:[#allocation14_spill] sm:$0xff] %v10330_v40  ;;  %vm2960_vm7 = vcmp.ge.s32.totalorder %v2944_v39, 4294967294  ;;  %vm2976_vm8 = vcmp.le.s32.totalorder %v2944_v39, 2 }
  0xab   :  { %8421 = vmatmul.mubr.msk.f32.gmra.mxu0 %vm89_vm0, %v1395_v42  ;;  %8507 = vmatmul.mubr.msk.f32.gmra.mxu1 %vm89_vm0, %v2088_v43  ;;  %vm10372_vm9 = vmand %vm2960_vm7, %vm2976_vm8  ;;  %v2119_v42 = vld [vmem:[%s13506_s0 + $0x750] sm:$0xff] }
  0xac   :  { %8423 = vmatprep.mubr.msk.f32.mxu0 %vm89_vm0, %v1396_v45  ;;  %8509 = vmatprep.mubr.msk.f32.mxu1 %vm89_vm0, %v2089_v46  ;;  %v2943_v45 = vsub.s32 %v10330_v40, %v10102_v38  ;;  %v10346_v46 = vadd.s32 48, %v10100_v37  ;;  %v2133_v40 = vld [vmem:[%s13506_s0 + $0x7c0] sm:$0xff] }
  0xad   :  { %8601 = vmatprep.subr.msk.mxu0 %vm10372_vm9, %v13511_v53 }
  0xae   :  { %13822 = vst [vmem:[#allocation16_spill] sm:$0xff] %v10346_v46  ;;  %vm2959_vm10 = vcmp.ge.s32.totalorder %v2943_v45, 4294967294  ;;  %vm2975_vm11 = vcmp.le.s32.totalorder %v2943_v45, 2  ;;  %8602 = vmatpush3.msk.msra.mxu0 %vm10372_vm9, %v13511_v53 }
  0xaf   :  { %8424 = vmatmul.mubr.msk.f32.gmra.mxu0 %vm89_vm0, %v1397_v48  ;;  %8510 = vmatmul.mubr.msk.f32.gmra.mxu1 %vm89_vm0, %v2090_v49  ;;  %v1415_v48 = vld [vmem:[%s13506_s0 + $0x558] sm:$0xff]  ;;  %vm10411_vm12 = vmand %vm2959_vm10, %vm2975_vm11 }
  0xb0   :  { %8426 = vmatprep.mubr.msk.f32.mxu0 %vm89_vm0, %v1398_v51  ;;  %8512 = vmatprep.mubr.msk.f32.mxu1 %vm89_vm0, %v2091_v52  ;;  %v2108_v49 = vld [vmem:[%s13506_s0 + $0x6f8] sm:$0xff]  ;;  %v1416_v52 = vld [vmem:[%s13506_s0 + $0x560] sm:$0xff] }
  0xb1   :  { %8603 = vmatprep.subr.msk.mxu0 %vm10411_vm12, %v13511_v53 }
  0xb2   :  { %8604 = vmatpush3.msk.msra.mxu0 %vm10411_vm12, %v13511_v53 }
  0xb3   :  { %8427 = vmatmul.mubr.msk.f32.gmra.mxu0 %vm89_vm0, %v1399_v54  ;;  %8513 = vmatmul.mubr.msk.f32.gmra.mxu1 %vm89_vm0, %v2092_v55  ;;  %v2109_v54 = vld [vmem:[%s13506_s0 + $0x700] sm:$0xff]  ;;  %v1423_v55 = vld [vmem:[%s13506_s0 + $0x598] sm:$0xff] }
  0xb4   :  { %8429 = vmatprep.mubr.msk.f32.mxu0 %vm89_vm0, %v1400_v56  ;;  %8515 = vmatprep.mubr.msk.f32.mxu1 %vm89_vm0, %v2093_v57 }
  0xb7   :  { %8430 = vmatmul.mubr.msk.f32.gmra.mxu0 %vm89_vm0, %v1401_v59  ;;  %8516 = vmatmul.mubr.msk.f32.gmra.mxu1 %vm89_vm0, %v2094_v60  ;;  %v2942_v59 = vsub.s32 %v10346_v46, %v10102_v38  ;;  %v10385_v60 = vadd.s32 40, %v10100_v37 }
  0xb8   :  { %8432 = vmatprep.mubr.msk.f32.mxu0 %vm89_vm0, %v1402_v62  ;;  %8518 = vmatprep.mubr.msk.f32.mxu1 %vm89_vm0, %v2095_v63  ;;  %v2110_v62 = vld [vmem:[%s13506_s0 + $0x708] sm:$0xff] }
  0xb9   :  { %13827 = vst [vmem:[#allocation19_spill] sm:$0xff] %v10385_v60  ;;  %vm2958_vm13 = vcmp.ge.s32.totalorder %v2942_v59, 4294967294  ;;  %vm2974_vm14 = vcmp.le.s32.totalorder %v2942_v59, 2  ;;  %v2941_v7 = vsub.s32 %v10385_v60, %v10102_v38  ;;  %v2116_v59 = vld [vmem:[%s13506_s0 + $0x738] sm:$0xff] }
  0xba   :  { %vm10456_vm15 = vmand %vm2958_vm13, %vm2974_vm14 }
  0xbb   :  { %8433 = vmatmul.mubr.msk.f32.gmra.mxu0 %vm89_vm0, %v1403_v0  ;;  %8519 = vmatmul.mubr.msk.f32.gmra.mxu1 %vm89_vm0, %v2096_v1  ;;  %v1418_v1 = vld [vmem:[%s13506_s0 + $0x570] sm:$0xff]  ;;  %vm2957_vm1 = vcmp.ge.s32.totalorder %v2941_v7, 4294967294  ;;  %vm2973_vm2 = vcmp.le.s32.totalorder %v2941_v7, 2 }
  0xbc   :  { %8435 = vmatprep.mubr.msk.f32.mxu0 %vm89_vm0, %v1404_v2  ;;  %8521 = vmatprep.mubr.msk.f32.mxu1 %vm89_vm0, %v2097_v3  ;;  %v2111_v2 = vld [vmem:[%s13506_s0 + $0x710] sm:$0xff]  ;;  %vm10501_vm3 = vmand %vm2957_vm1, %vm2973_vm2  ;;  %v1431_v3 = vld [vmem:[%s13506_s0 + $0x5d8] sm:$0xff] }
  0xbd   :  { %8605 = vmatprep.subr.msk.mxu0 %vm10456_vm15, %v13511_v53 }
  0xbe   :  { %8606 = vmatpush3.msk.msra.mxu0 %vm10456_vm15, %v13511_v53 }
  0xbf   :  { %8436 = vmatmul.mubr.msk.f32.gmra.mxu0 %vm89_vm0, %v1405_v5  ;;  %8522 = vmatmul.mubr.msk.f32.gmra.mxu1 %vm89_vm0, %v2098_v6 }
  0xc0   :  { %8438 = vmatprep.mubr.msk.f32.mxu0 %vm89_vm0, %v1406_v8  ;;  %8524 = vmatprep.mubr.msk.f32.mxu1 %vm89_vm0, %v2099_v9  ;;  %v10424_v8 = vadd.s32 32, %v10100_v37 }
  0xc1   :  { %8607 = vmatprep.subr.msk.mxu0 %vm10501_vm3, %v13511_v53 }
  0xc2   :  { %13831 = vst [vmem:[#allocation21_spill] sm:$0xff] %v10424_v8  ;;  %8608 = vmatpush3.msk.msra.mxu0 %vm10501_vm3, %v13511_v53 }
  0xc3   :  { %8439 = vmatmul.mubr.msk.f32.gmra.mxu0 %vm89_vm0, %v1407_v10  ;;  %8525 = vmatmul.mubr.msk.f32.gmra.mxu1 %vm89_vm0, %v2100_v11  ;;  %v1419_v10 = vld [vmem:[%s13506_s0 + $0x578] sm:$0xff] }
  0xc4   :  { %8441 = vmatprep.mubr.msk.f32.mxu0 %vm89_vm0, %v1408_v12  ;;  %8527 = vmatprep.mubr.msk.f32.mxu1 %vm89_vm0, %v2101_v13  ;;  %v2112_v11 = vld [vmem:[%s13506_s0 + $0x718] sm:$0xff] }
  0xc7   :  { %8442 = vmatmul.mubr.msk.f32.gmra.mxu0 %vm89_vm0, %v1409_v15  ;;  %8528 = vmatmul.mubr.msk.f32.gmra.mxu1 %vm89_vm0, %v2102_v16  ;;  %v1420_v15 = vld [vmem:[%s13506_s0 + $0x580] sm:$0xff] }
  0xc8   :  { %8444 = vmatprep.mubr.msk.f32.mxu0 %vm89_vm0, %v1410_v18  ;;  %8530 = vmatprep.mubr.msk.f32.mxu1 %vm89_vm0, %v2103_v19  ;;  %v2113_v16 = vld [vmem:[%s13506_s0 + $0x720] sm:$0xff] }
  0xcb   :  { %v10297_v27 = vpop.f32.mrf.mxu0  ;;  %v10299_v28 = vpop.f32.mrf.mxu1  ;;  %8445 = vmatmul.mubr.msk.f32.gmra.mxu0 %vm89_vm0, %v1411_v21  ;;  %8531 = vmatmul.mubr.msk.f32.gmra.mxu1 %vm89_vm0, %v2104_v22  ;;  %v2940_v22 = vsub.s32 %v10424_v8, %v10102_v38  ;;  %v2131_v8 = vld [vmem:[%s13506_s0 + $0x7b0] sm:$0xff] }
  0xcc   :  { %13815 = vst [vmem:[#allocation11_spill] sm:$0xff] %v10299_v28  ;;  %8447 = vmatprep.mubr.msk.f32.mxu0 %vm89_vm0, %v1412_v23  ;;  %8533 = vmatprep.mubr.msk.f32.mxu1 %vm89_vm0, %v2105_v24  ;;  %v10469_v23 = vadd.s32 24, %v10100_v37  ;;  %v2128_v28 = vld [vmem:[%s13506_s0 + $0x798] sm:$0xff] }
  0xcd   :  { %v10316_v33 = vpop.f32.mrf.mxu0  ;;  %v10318_v34 = vpop.f32.mrf.mxu1  ;;  %vm2956_vm4 = vcmp.ge.s32.totalorder %v2940_v22, 4294967294  ;;  %vm2972_vm5 = vcmp.le.s32.totalorder %v2940_v22, 2  ;;  %v1425_v22 = vld [vmem:[%s13506_s0 + $0x5a8] sm:$0xff] }
  0xce   :  { %13817 = vst [vmem:[#allocation13_spill] sm:$0xff] %v10318_v34  ;;  %13834 = vst [vmem:[#allocation22_spill] sm:$0xff] %v10469_v23  ;;  %v1435_v34 = vld [vmem:[%s13506_s0 + $0x5f8] sm:$0xff] }
  0xcf   :  { %v10337_v43 = vpop.f32.mrf.mxu0  ;;  %v10339_v44 = vpop.f32.mrf.mxu1  ;;  %8448 = vmatmul.mubr.msk.f32.gmra.mxu0 %vm89_vm0, %v1413_v31  ;;  %8534 = vmatmul.mubr.msk.f32.gmra.mxu1 %vm89_vm0, %v2106_v32  ;;  %vm10546_vm6 = vmand %vm2956_vm4, %vm2972_vm5 }
  0xd0   :  { %13821 = vst [vmem:[#allocation15_spill] sm:$0xff] %v10339_v44  ;;  %8450 = vmatprep.mubr.msk.f32.mxu0 %vm89_vm0, %v1414_v35  ;;  %8536 = vmatprep.mubr.msk.f32.mxu1 %vm89_vm0, %v2107_v36  ;;  %v1422_v35 = vld [vmem:[%s13506_s0 + $0x590] sm:$0xff] }
  0xd1   :  { %v10356_v50 = vpop.f32.mrf.mxu0  ;;  %v10358_v51 = vpop.f32.mrf.mxu1  ;;  %v2115_v36 = vld [vmem:[%s13506_s0 + $0x730] sm:$0xff]  ;;  %8609 = vmatprep.subr.msk.mxu0 %vm10546_vm6, %v13511_v53 }
  0xd2   :  { %13823 = vst [vmem:[#allocation17_spill] sm:$0xff] %v10358_v51  ;;  %8610 = vmatpush3.msk.msra.mxu0 %vm10546_vm6, %v13511_v53 }
  0xd3   :  { %v10376_v56 = vpop.f32.mrf.mxu0  ;;  %v10378_v57 = vpop.f32.mrf.mxu1  ;;  %8451 = vmatmul.mubr.msk.f32.gmra.mxu0 %vm89_vm0, %v1415_v48  ;;  %8537 = vmatmul.mubr.msk.f32.gmra.mxu1 %vm89_vm0, %v2108_v49  ;;  %v2939_v49 = vsub.s32 %v10469_v23, %v10102_v38 }
  0xd4   :  { %13826 = vst [vmem:[#allocation18_spill] sm:$0xff] %v10378_v57  ;;  %8453 = vmatprep.mubr.msk.f32.mxu0 %vm89_vm0, %v1416_v52  ;;  %8539 = vmatprep.mubr.msk.f32.mxu1 %vm89_vm0, %v2109_v54  ;;  %v10514_v52 = vadd.s32 16, %v10100_v37  ;;  %v2126_v57 = vld [vmem:[%s13506_s0 + $0x788] sm:$0xff] }
  0xd5   :  { %v10395_v63 = vpop.f32.mrf.mxu0  ;;  %v10397_v0 = vpop.f32.mrf.mxu1  ;;  %vm2955_vm7 = vcmp.ge.s32.totalorder %v2939_v49, 4294967294  ;;  %vm2971_vm8 = vcmp.le.s32.totalorder %v2939_v49, 2  ;;  %v1428_v49 = vld [vmem:[%s13506_s0 + $0x5c0] sm:$0xff] }
  0xd6   :  { %13828 = vst [vmem:[#allocation20_spill] sm:$0xff] %v10397_v0  ;;  %13837 = vst [vmem:[#allocation23_spill] sm:$0xff] %v10514_v52 }
  0xd7   :  { %v10415_v5 = vpop.f32.mrf.mxu0  ;;  %v10417_v6 = vpop.f32.mrf.mxu1  ;;  %8454 = vmatmul.mubr.msk.f32.gmra.mxu0 %vm89_vm0, %v1417_v61  ;;  %8540 = vmatmul.mubr.msk.f32.gmra.mxu1 %vm89_vm0, %v2110_v62  ;;  %vm10591_vm9 = vmand %vm2955_vm7, %vm2971_vm8 }
  0xd8   :  { %8456 = vmatprep.mubr.msk.f32.mxu0 %vm89_vm0, %v1418_v1  ;;  %8542 = vmatprep.mubr.msk.f32.mxu1 %vm89_vm0, %v2111_v2  ;;  %v1424_v1 = vld [vmem:[%s13506_s0 + $0x5a0] sm:$0xff] }
  0xd9   :  { %v10436_v12 = vpop.f32.mrf.mxu0  ;;  %v10438_v13 = vpop.f32.mrf.mxu1  ;;  %v2117_v2 = vld [vmem:[%s13506_s0 + $0x740] sm:$0xff]  ;;  %8611 = vmatprep.subr.msk.mxu0 %vm10591_vm9, %v13511_v53 }
  0xda   :  { %8612 = vmatpush3.msk.msra.mxu0 %vm10591_vm9, %v13511_v53 }
  0xdb   :  { %v10460_v19 = vpop.f32.mrf.mxu0  ;;  %v10462_v21 = vpop.f32.mrf.mxu1  ;;  %8457 = vmatmul.mubr.msk.f32.gmra.mxu0 %vm89_vm0, %v1419_v10  ;;  %8543 = vmatmul.mubr.msk.f32.gmra.mxu1 %vm89_vm0, %v2112_v11 }
  0xdc   :  { %8459 = vmatprep.mubr.msk.f32.mxu0 %vm89_vm0, %v1420_v15  ;;  %8545 = vmatprep.mubr.msk.f32.mxu1 %vm89_vm0, %v2113_v16  ;;  %v2938_v15 = vsub.s32 %v10514_v52, %v10102_v38  ;;  %v10559_v16 = vadd.s32 8, %v10100_v37 }
  0xdd   :  { %v10481_v31 = vpop.f32.mrf.mxu0  ;;  %v10483_v32 = vpop.f32.mrf.mxu1 }
  0xde   :  { %13840 = vst [vmem:[#allocation24_spill] sm:$0xff] %v10559_v16  ;;  %vm2954_vm10 = vcmp.ge.s32.totalorder %v2938_v15, 4294967294  ;;  %vm2970_vm11 = vcmp.le.s32.totalorder %v2938_v15, 2  ;;  %v2937_v7 = vsub.s32 %v10559_v16, %v10102_v38  ;;  %v1430_v15 = vld [vmem:[%s13506_s0 + $0x5d0] sm:$0xff]  ;;  %v2130_v16 = vld [vmem:[%s13506_s0 + $0x7a8] sm:$0xff] }
  0xdf   :  { %v10505_v45 = vpop.f32.mrf.mxu0  ;;  %v10507_v48 = vpop.f32.mrf.mxu1  ;;  %8460 = vmatmul.mubr.msk.f32.gmra.mxu0 %vm89_vm0, %v1421_v25  ;;  %8546 = vmatmul.mubr.msk.f32.gmra.mxu1 %vm89_vm0, %v2114_v29  ;;  %v2118_v25 = vld [vmem:[%s13506_s0 + $0x748] sm:$0xff]  ;;  %vm10632_vm12 = vmand %vm2954_vm10, %vm2970_vm11 }
  0xe0   :  { %8462 = vmatprep.mubr.msk.f32.mxu0 %vm89_vm0, %v1422_v35  ;;  %8548 = vmatprep.mubr.msk.f32.mxu1 %vm89_vm0, %v2115_v36  ;;  %v1426_v36 = vld [vmem:[%s13506_s0 + $0x5b0] sm:$0xff]  ;;  %vm2953_vm13 = vcmp.ge.s32.totalorder %v2937_v7, 4294967294  ;;  %vm2969_vm14 = vcmp.le.s32.totalorder %v2937_v7, 2 }
  0xe1   :  { %v10526_v61 = vpop.f32.mrf.mxu0  ;;  %v10528_v62 = vpop.f32.mrf.mxu1  ;;  %8613 = vmatprep.subr.msk.mxu0 %vm10632_vm12, %v13511_v53  ;;  %vm10670_vm15 = vmand %vm2953_vm13, %vm2969_vm14 }
  0xe2   :  { %8614 = vmatpush3.msk.msra.mxu0 %vm10632_vm12, %v13511_v53  ;;  %v2124_v53 = vld [vmem:[%s13506_s0 + $0x778] sm:$0xff] }
  0xe3   :  { %v10550_v10 = vpop.f32.mrf.mxu0  ;;  %v10552_v11 = vpop.f32.mrf.mxu1  ;;  %8463 = vmatmul.mubr.msk.f32.gmra.mxu0 %vm89_vm0, %v1423_v55  ;;  %8549 = vmatmul.mubr.msk.f32.gmra.mxu1 %vm89_vm0, %v2116_v59  ;;  %v1427_v55 = vld [vmem:[%s13506_s0 + $0x5b8] sm:$0xff]  ;;  %v1429_v59 = vld [vmem:[%s13506_s0 + $0x5c8] sm:$0xff] }
  0xe4   :  { %8465 = vmatprep.mubr.msk.f32.mxu0 %vm89_vm0, %v1424_v1  ;;  %8551 = vmatprep.mubr.msk.f32.mxu1 %vm89_vm0, %v2117_v2 }
  0xe5   :  { %v10571_v29 = vpop.f32.mrf.mxu0  ;;  %v10573_v35 = vpop.f32.mrf.mxu1 }
  0xe7   :  { %v10595_v1 = vpop.f32.mrf.mxu0  ;;  %v10597_v2 = vpop.f32.mrf.mxu1  ;;  %8466 = vmatmul.mubr.msk.f32.gmra.mxu0 %vm89_vm0, %v1425_v22  ;;  %8552 = vmatmul.mubr.msk.f32.gmra.mxu1 %vm89_vm0, %v2118_v25  ;;  %v2120_v22 = vld [vmem:[%s13506_s0 + $0x758] sm:$0xff] }
  0xe8   :  { %8468 = vmatprep.mubr.msk.f32.mxu0 %vm89_vm0, %v1426_v36  ;;  %8554 = vmatprep.mubr.msk.f32.mxu1 %vm89_vm0, %v2119_v42  ;;  %v2121_v36 = vld [vmem:[%s13506_s0 + $0x760] sm:$0xff]  ;;  %v2936_v42 = vsub.s32 %v10100_v37, %v10102_v38 }
  0xe9   :  { %v10613_v25 = vpop.f32.mrf.mxu0  ;;  %v10615_v18 = vpop.f32.mrf.mxu1 }
  0xea   :  { %13843 = vst [vmem:[#allocation25_spill] sm:$0xff] %v10613_v25  ;;  %vm2952_vm1 = vcmp.ge.s32.totalorder %v2936_v42, 4294967294  ;;  %vm2968_vm2 = vcmp.le.s32.totalorder %v2936_v42, 2  ;;  %v1432_v42 = vld [vmem:[%s13506_s0 + $0x5e0] sm:$0xff] }
  0xeb   :  { %v10636_v54 = vpop.f32.mrf.mxu0  ;;  %v10638_v39 = vpop.f32.mrf.mxu1  ;;  %8469 = vmatmul.mubr.msk.f32.gmra.mxu0 %vm89_vm0, %v1427_v55  ;;  %8555 = vmatmul.mubr.msk.f32.gmra.mxu1 %vm89_vm0, %v2120_v22  ;;  %v2122_v55 = vld [vmem:[%s13506_s0 + $0x768] sm:$0xff]  ;;  %vm2984_vm3 = vmand %vm2952_vm1, %vm2968_vm2 }
  0xec   :  { %13846 = vst [vmem:[#allocation26_spill] sm:$0xff] %v10636_v54  ;;  %8471 = vmatprep.mubr.msk.f32.mxu0 %vm89_vm0, %v1428_v49  ;;  %8557 = vmatprep.mubr.msk.f32.mxu1 %vm89_vm0, %v2121_v36  ;;  %v2123_v49 = vld [vmem:[%s13506_s0 + $0x770] sm:$0xff]  ;;  %v1433_v36 = vld [vmem:[%s13506_s0 + $0x5e8] sm:$0xff] }
  0xed   :  { %v10654_v22 = vpop.f32.mrf.mxu0  ;;  %v10656_v7 = vpop.f32.mrf.mxu1 }
  0xee   :  { %13847 = vst [vmem:[#allocation27_spill] sm:$0xff] %v10654_v22 }
  0xef   :  { %v10674_v24 = vpop.f32.mrf.mxu0  ;;  %v10676_v17 = vpop.f32.mrf.mxu1  ;;  %8472 = vmatmul.mubr.msk.f32.gmra.mxu0 %vm89_vm0, %v1429_v59  ;;  %8558 = vmatmul.mubr.msk.f32.gmra.mxu1 %vm89_vm0, %v2122_v55 }
  0xf0   :  { %13850 = vst [vmem:[#allocation28_spill] sm:$0xff] %v10674_v24  ;;  %8474 = vmatprep.mubr.msk.f32.mxu0 %vm89_vm0, %v1430_v15  ;;  %8560 = vmatprep.mubr.msk.f32.mxu1 %vm89_vm0, %v2123_v49  ;;  %v2125_v15 = vld [vmem:[%s13506_s0 + $0x780] sm:$0xff]  ;;  %v13852_v49 = vmov 1.0  }
  0xf1   :  { %v10690_v59 = vpop.f32.mrf.mxu0  ;;  %v10692_v55 = vpop.f32.mrf.mxu1  ;;  %8615 = vmatprep.subr.msk.mxu0 %vm10670_vm15, %v13852_v49 }
  0xf2   :  { %13851 = vst [vmem:[#allocation29_spill] sm:$0xff] %v10690_v59  ;;  %8616 = vmatpush3.msk.msra.mxu0 %vm10670_vm15, %v13852_v49 }
  0xf3   :  { %v10706_v9 = vpop.f32.mrf.mxu0  ;;  %v10708_v41 = vpop.f32.mrf.mxu1  ;;  %8475 = vmatmul.mubr.msk.f32.gmra.mxu0 %vm89_vm0, %v1431_v3  ;;  %8561 = vmatmul.mubr.msk.f32.gmra.mxu1 %vm89_vm0, %v2124_v53  ;;  %v1434_v53 = vld [vmem:[%s13506_s0 + $0x5f0] sm:$0xff] }
  0xf4   :  { %13853 = vst [vmem:[#allocation30_spill] sm:$0xff] %v10706_v9  ;;  %8477 = vmatprep.mubr.msk.f32.mxu0 %vm89_vm0, %v1432_v42  ;;  %8563 = vmatprep.mubr.msk.f32.mxu1 %vm89_vm0, %v2125_v15  ;;  %v2127_v42 = vld [vmem:[%s13506_s0 + $0x790] sm:$0xff] }
  0xf5   :  { %v10722_v51 = vpop.f32.mrf.mxu0  ;;  %v10724_v3 = vpop.f32.mrf.mxu1  ;;  %8617 = vmatprep.subr.msk.mxu0 %vm2984_vm3, %v13852_v49 }
  0xf6   :  { %13854 = vst [vmem:[#allocation31_spill] sm:$0xff] %v10722_v51  ;;  %8618 = vmatpush3.msk.msra.mxu0 %vm2984_vm3, %v13852_v49 }
  0xf7   :  { %v10734_v15 = vpop.f32.mrf.mxu0  ;;  %v10736_v0 = vpop.f32.mrf.mxu1  ;;  %8478 = vmatmul.mubr.msk.f32.gmra.mxu0 %vm89_vm0, %v1433_v36  ;;  %8564 = vmatmul.mubr.msk.f32.gmra.mxu1 %vm89_vm0, %v2126_v57  ;;  %v2129_v57 = vld [vmem:[%s13506_s0 + $0x7a0] sm:$0xff] }
  0xf8   :  { %13855 = vst [vmem:[#allocation32_spill] sm:$0xff] %v10734_v15  ;;  %13856 = vst [vmem:[#allocation33_spill] sm:$0xff] %v10736_v0  ;;  %8480 = vmatprep.mubr.msk.f32.mxu0 %vm89_vm0, %v1434_v53  ;;  %8566 = vmatprep.mubr.msk.f32.mxu1 %vm89_vm0, %v2127_v42  ;;  %v2132_v42 = vld [vmem:[%s13506_s0 + $0x7b8] sm:$0xff] }
  0xf9   :  { %v10750_v37 = vpop.f32.mrf.mxu0  ;;  %v10752_v36 = vpop.f32.mrf.mxu1 }
  0xfa   :  { %13857 = vst [vmem:[#allocation34_spill] sm:$0xff] %v10750_v37  ;;  %13858 = vst [vmem:[#allocation35_spill] sm:$0xff] %v10752_v36 }
  0xfb   :  { %v10757_v44 = vpop.f32.mrf.mxu0  ;;  %v10759_v53 = vpop.f32.mrf.mxu1  ;;  %8481 = vmatmul.mubr.msk.f32.gmra.mxu0 %vm89_vm0, %v1435_v34  ;;  %8567 = vmatmul.mubr.msk.f32.gmra.mxu1 %vm89_vm0, %v2128_v28 }
  0xfc   :  { %13859 = vst [vmem:[#allocation36_spill] sm:$0xff] %v10757_v44  ;;  %13860 = vst [vmem:[#allocation37_spill] sm:$0xff] %v10759_v53  ;;  %8569 = vmatprep.mubr.msk.f32.mxu1 %vm89_vm0, %v2129_v57  ;;  %v2134_v57 = vld [vmem:[%s13506_s0 + $0x7c8] sm:$0xff]  ;;  %v2139_v44 = vld [vmem:[%s13506_s0 + $0x7f0] sm:$0xff] }
  0xfd   :  { %v10769_v52 = vpop.f32.mrf.mxu0  ;;  %v10771_v23 = vpop.f32.mrf.mxu1 }
  0xfe   :  { %13861 = vst [vmem:[#allocation38_spill] sm:$0xff] %v10769_v52  ;;  %13862 = vst [vmem:[#allocation39_spill] sm:$0xff] %v10771_v23  ;;  %v2135_v52 = vld [vmem:[%s13506_s0 + $0x7d0] sm:$0xff] }
  0xff   :  { %v10776_v34 = vpop.f32.mrf.mxu0  ;;  %v10778_v28 = vpop.f32.mrf.mxu1  ;;  %8570 = vmatmul.mubr.msk.f32.gmra.mxu1 %vm89_vm0, %v2130_v16 }
 0x100   :  { %13863 = vst [vmem:[#allocation40_spill] sm:$0xff] %v10776_v34  ;;  %13864 = vst [vmem:[#allocation41_spill] sm:$0xff] %v10778_v28  ;;  %8572 = vmatprep.mubr.msk.f32.mxu1 %vm89_vm0, %v2131_v8  ;;  %v2136_v8 = vld [vmem:[%s13506_s0 + $0x7d8] sm:$0xff] }
 0x101   :  { %v10787_v60 = vpop.f32.mrf.mxu0  ;;  %v10789_v46 = vpop.f32.mrf.mxu1 }
 0x102   :  { %13865 = vst [vmem:[#allocation42_spill] sm:$0xff] %v10787_v60  ;;  %13866 = vst [vmem:[#allocation43_spill] sm:$0xff] %v10789_v46 }
 0x103   :  { %v10794_v30 = vpop.f32.mrf.mxu0  ;;  %v10796_v16 = vpop.f32.mrf.mxu1  ;;  %8573 = vmatmul.mubr.msk.f32.gmra.mxu1 %vm89_vm0, %v2132_v42 }
 0x104   :  { %13867 = vst [vmem:[#allocation44_spill] sm:$0xff] %v10794_v30  ;;  %13868 = vst [vmem:[#allocation45_spill] sm:$0xff] %v10796_v16  ;;  %8575 = vmatprep.mubr.msk.f32.mxu1 %vm89_vm0, %v2133_v40  ;;  %v2137_v16 = vld [vmem:[%s13506_s0 + $0x7e0] sm:$0xff]  ;;  %v2138_v40 = vld [vmem:[%s13506_s0 + $0x7e8] sm:$0xff] }
 0x105   :  { %v10805_v26 = vpop.f32.mrf.mxu0  ;;  %v10807_v60 = vpop.f32.mrf.mxu1 }
 0x106   :  { %13869 = vst [vmem:[#allocation46_spill] sm:$0xff] %v10805_v26  ;;  %13870 = vst [vmem:[#allocation47_spill] sm:$0xff] %v10807_v60 }
 0x107   :  { %v10812_v37 = vpop.f32.mrf.mxu0  ;;  %v10814_v42 = vpop.f32.mrf.mxu1  ;;  %8576 = vmatmul.mubr.msk.f32.gmra.mxu1 %vm89_vm0, %v2134_v57 }
 0x108   :  { %13871 = vst [vmem:[#allocation48_spill] sm:$0xff] %v10812_v37  ;;  %13872 = vst [vmem:[#allocation49_spill] sm:$0xff] %v10814_v42  ;;  %8578 = vmatprep.mubr.msk.f32.mxu1 %vm89_vm0, %v2135_v52  ;;  %v2140_v52 = vld [vmem:[%s13506_s0 + $0x7f8] sm:$0xff] }
 0x109   :  { %v10823_v26 = vpop.f32.mrf.mxu0  ;;  %v10825_v60 = vpop.f32.mrf.mxu1 }
 0x10a   :  { %13873 = vst [vmem:[#allocation50_spill] sm:$0xff] %v10823_v26  ;;  %13874 = vst [vmem:[#allocation51_spill] sm:$0xff] %v10825_v60 }
 0x10b   :  { %v10830_v15 = vpop.f32.mrf.mxu0  ;;  %v10832_v57 = vpop.f32.mrf.mxu1  ;;  %8579 = vmatmul.mubr.msk.f32.gmra.mxu1 %vm89_vm0, %v2136_v8 }
 0x10c   :  { %13875 = vst [vmem:[#allocation52_spill] sm:$0xff] %v10830_v15  ;;  %13876 = vst [vmem:[#allocation53_spill] sm:$0xff] %v10832_v57  ;;  %8581 = vmatprep.mubr.msk.f32.mxu1 %vm89_vm0, %v2137_v16 }
 0x10d   :  { %v10841_v26 = vpop.f32.mrf.mxu0  ;;  %v10843_v42 = vpop.f32.mrf.mxu1 }
 0x10e   :  { %13877 = vst [vmem:[#allocation54_spill] sm:$0xff] %v10841_v26  ;;  %13878 = vst [vmem:[#allocation55_spill] sm:$0xff] %v10843_v42 }
 0x10f   :  { %v10848_v60 = vpop.f32.mrf.mxu0  ;;  %v10850_v8 = vpop.f32.mrf.mxu1  ;;  %8582 = vmatmul.mubr.msk.f32.gmra.mxu1 %vm89_vm0, %v2138_v40 }
 0x110   :  { %13879 = vst [vmem:[#allocation56_spill] sm:$0xff] %v10848_v60  ;;  %13880 = vst [vmem:[#allocation57_spill] sm:$0xff] %v10850_v8  ;;  %8584 = vmatprep.mubr.msk.f32.mxu1 %vm89_vm0, %v2139_v44 }
 0x111   :  { %v10859_v26 = vpop.f32.mrf.mxu0  ;;  %v10861_v42 = vpop.f32.mrf.mxu1 }
 0x112   :  { %13881 = vst [vmem:[#allocation58_spill] sm:$0xff] %v10859_v26  ;;  %13882 = vst [vmem:[#allocation59_spill] sm:$0xff] %v10861_v42 }
 0x113   :  { %v10863_v57 = vpop.f32.mrf.mxu0  ;;  %v10865_v34 = vpop.f32.mrf.mxu1  ;;  %8585 = vmatmul.mubr.msk.f32.gmra.mxu1 %vm89_vm0, %v2140_v52 }
 0x114   :  { %13883 = vst [vmem:[#allocation60_spill] sm:$0xff] %v10863_v57  ;;  %13884 = vst [vmem:[#allocation61_spill] sm:$0xff] %v10865_v34 }
 0x115   :  { %v10870_v16 = vpop.f32.mrf.mxu0  ;;  %v10872_v44 = vpop.f32.mrf.mxu1 }
 0x116   :  { %13885 = vst [vmem:[#allocation62_spill] sm:$0xff] %v10870_v16  ;;  %13886 = vst [vmem:[#allocation63_spill] sm:$0xff] %v10872_v44 }
 0x117   :  { %v10874_v8 = vpop.f32.mrf.mxu0  ;;  %v10876_v30 = vpop.f32.mrf.mxu1 }
 0x118   :  { %13887 = vst [vmem:[#allocation64_spill] sm:$0xff] %v10874_v8  ;;  %13888 = vst [vmem:[#allocation65_spill] sm:$0xff] %v10876_v30 }
 0x119   :  { %v10880_v42 = vpop.f32.mrf.mxu0  ;;  %v10882_v28 = vpop.f32.mrf.mxu1 }
 0x11a   :  { %13889 = vst [vmem:[#allocation66_spill] sm:$0xff] %v10880_v42  ;;  %13890 = vst [vmem:[#allocation67_spill] sm:$0xff] %v10882_v28 }
 0x11b   :  { %v10884_v9 = vpop.f32.mrf.mxu0  ;;  %v10886_v52 = vpop.f32.mrf.mxu1 }
 0x11c   :  { %13891 = vst [vmem:[#allocation68_spill] sm:$0xff] %v10884_v9  ;;  %13892 = vst [vmem:[#allocation69_spill] sm:$0xff] %v10886_v52 }
 0x11d   :  { %v10890_v16 = vpop.f32.mrf.mxu0  ;;  %v10892_v44 = vpop.f32.mrf.mxu1 }
 0x11e   :  { %13893 = vst [vmem:[#allocation70_spill] sm:$0xff] %v10890_v16  ;;  %13894 = vst [vmem:[#allocation71_spill] sm:$0xff] %v10892_v44 }
 0x11f   :  { %v10894_v34 = vpop.f32.mrf.mxu0  ;;  %v10896_v37 = vpop.f32.mrf.mxu1 }
 0x120   :  { %13895 = vst [vmem:[#allocation72_spill] sm:$0xff] %v10894_v34  ;;  %13896 = vst [vmem:[#allocation73_spill] sm:$0xff] %v10896_v37 }
 0x121   :  { %v10900_v42 = vpop.f32.mrf.mxu0  ;;  %v10902_v30 = vpop.f32.mrf.mxu1 }
 0x122   :  { %13897 = vst [vmem:[#allocation74_spill] sm:$0xff] %v10900_v42  ;;  %13898 = vst [vmem:[#allocation75_spill] sm:$0xff] %v10902_v30 }
 0x123   :  { %v10904_v15 = vpop.f32.mrf.mxu0  ;;  %v10906_v28 = vpop.f32.mrf.mxu1 }
 0x124   :  { %13899 = vst [vmem:[#allocation76_spill] sm:$0xff] %v10904_v15  ;;  %13900 = vst [vmem:[#allocation77_spill] sm:$0xff] %v10906_v28 }
 0x125   :  { %v10910_v16 = vpop.f32.mrf.mxu0  ;;  %v10912_v44 = vpop.f32.mrf.mxu1 }
 0x126   :  { %13901 = vst [vmem:[#allocation78_spill] sm:$0xff] %v10910_v16  ;;  %13902 = vst [vmem:[#allocation79_spill] sm:$0xff] %v10912_v44 }
 0x127   :  { %v10914_v52 = vpop.f32.mrf.mxu0  ;;  %v10916_v60 = vpop.f32.mrf.mxu1 }
 0x128   :  { %13903 = vst [vmem:[#allocation80_spill] sm:$0xff] %v10914_v52  ;;  %13904 = vst [vmem:[#allocation81_spill] sm:$0xff] %v10916_v60 }
 0x129   :  { %v10920_v42 = vpop.f32.mrf.mxu0  ;;  %v10922_v37 = vpop.f32.mrf.mxu1 }
 0x12a   :  { %13905 = vst [vmem:[#allocation82_spill] sm:$0xff] %v10920_v42  ;;  %13906 = vst [vmem:[#allocation83_spill] sm:$0xff] %v10922_v37 }
 0x12b   :  { %v10924_v57 = vpop.f32.mrf.mxu0  ;;  %v10926_v30 = vpop.f32.mrf.mxu1 }
 0x12c   :  { %13907 = vst [vmem:[#allocation84_spill] sm:$0xff] %v10924_v57  ;;  %13908 = vst [vmem:[#allocation85_spill] sm:$0xff] %v10926_v30 }
 0x12d   :  { %v10930_v16 = vpop.f32.mrf.mxu0  ;;  %v10932_v44 = vpop.f32.mrf.mxu1 }
 0x12e   :  { %13909 = vst [vmem:[#allocation86_spill] sm:$0xff] %v10930_v16  ;;  %13910 = vst [vmem:[#allocation87_spill] sm:$0xff] %v10932_v44 }
 0x12f   :  { %v10934_v28 = vpop.f32.mrf.mxu0  ;;  %v10936_v8 = vpop.f32.mrf.mxu1 }
 0x130   :  { %13911 = vst [vmem:[#allocation88_spill] sm:$0xff] %v10934_v28  ;;  %13912 = vst [vmem:[#allocation89_spill] sm:$0xff] %v10936_v8 }
 0x131   :  { %v10940_v42 = vpop.f32.mrf.mxu0  ;;  %v10942_v60 = vpop.f32.mrf.mxu1 }
 0x132   :  { %13913 = vst [vmem:[#allocation90_spill] sm:$0xff] %v10940_v42  ;;  %13914 = vst [vmem:[#allocation91_spill] sm:$0xff] %v10942_v60 }
 0x133   :  { %v10944_v9 = vpop.f32.mrf.mxu0  ;;  %v10946_v37 = vpop.f32.mrf.mxu1 }
 0x134   :  { %13915 = vst [vmem:[#allocation92_spill] sm:$0xff] %v10944_v9  ;;  %13916 = vst [vmem:[#allocation93_spill] sm:$0xff] %v10946_v37 }
 0x135   :  { %v10950_v16 = vpop.f32.mrf.mxu0  ;;  %v10952_v30 = vpop.f32.mrf.mxu1 }
 0x136   :  { %13917 = vst [vmem:[#allocation94_spill] sm:$0xff] %v10950_v16  ;;  %13918 = vst [vmem:[#allocation95_spill] sm:$0xff] %v10952_v30 }
 0x137   :  { %v10954_v34 = vpop.f32.mrf.mxu0  ;;  %v10956_v44 = vpop.f32.mrf.mxu1 }
 0x138   :  { %13919 = vst [vmem:[#allocation96_spill] sm:$0xff] %v10954_v34  ;;  %13920 = vst [vmem:[#allocation97_spill] sm:$0xff] %v10956_v44 }
 0x139   :  { %v10960_v42 = vpop.f32.mrf.mxu0  ;;  %v10962_v8 = vpop.f32.mrf.mxu1 }
 0x13a   :  { %13921 = vst [vmem:[#allocation98_spill] sm:$0xff] %v10960_v42  ;;  %13922 = vst [vmem:[#allocation99_spill] sm:$0xff] %v10962_v8 }
 0x13b   :  { %v10964_v15 = vpop.f32.mrf.mxu0  ;;  %v10966_v60 = vpop.f32.mrf.mxu1 }
 0x13c   :  { %13923 = vst [vmem:[#allocation100_spill] sm:$0xff] %v10964_v15  ;;  %13924 = vst [vmem:[#allocation101_spill] sm:$0xff] %v10966_v60 }
 0x13d   :  { %v10970_v16 = vpop.f32.mrf.mxu0  ;;  %v10972_v37 = vpop.f32.mrf.mxu1 }
 0x13e   :  { %13925 = vst [vmem:[#allocation102_spill] sm:$0xff] %v10970_v16  ;;  %13926 = vst [vmem:[#allocation103_spill] sm:$0xff] %v10972_v37 }
 0x13f   :  { %v10974_v52 = vpop.f32.mrf.mxu1  ;;  %v8389_v30 = vpop.f32.mrf.mxu0 }
 0x140   :  { %13927 = vst [vmem:[#allocation104_spill] sm:$0xff] %v10974_v52 }
 0x141   :  { %v10978_v42 = vpop.f32.mrf.mxu1  ;;  %v1694_v44 = vpop.f32.mrf.mxu0 }
 0x142   :  { %13928 = vst [vmem:[#allocation105_spill] sm:$0xff] %v10978_v42 }
 0x143   :  { %v10980_v57 = vpop.f32.mrf.mxu1  ;;  %v8392_v8 = vpop.f32.mrf.mxu0 }
 0x144   :  { %13929 = vst [vmem:[#allocation106_spill] sm:$0xff] %v10980_v57 }
 0x145   :  { %v10984_v40 = vpop.f32.mrf.mxu1  ;;  %v1704_v16 = vpop.f32.mrf.mxu0 }
 0x146   :  { %13930 = vst [vmem:[#allocation107_spill] sm:$0xff] %v10984_v40 }
 0x147   :  { %v10986_v60 = vpop.f32.mrf.mxu1  ;;  %v8395_v37 = vpop.f32.mrf.mxu0 }
 0x148   :  { %13931 = vst [vmem:[#allocation108_spill] sm:$0xff] %v10986_v60 }
 0x149   :  { %v10990_v46 = vpop.f32.mrf.mxu1  ;;  %v1714_v26 = vpop.f32.mrf.mxu0 }
 0x14a   :  { %13932 = vst [vmem:[#allocation109_spill] sm:$0xff] %v10990_v46 }
 0x14b   :  { %v10992_v52 = vpop.f32.mrf.mxu1  ;;  %v8398_v9 = vpop.f32.mrf.mxu0 }
 0x14c   :  { %13933 = vst [vmem:[#allocation110_spill] sm:$0xff] %v10992_v52  ;;  %v13939_v52 = vmax.f32 %v10297_v27, %v10417_v6  ;;  %v13941_v27 = vmax.f32 %v10337_v43, %v10462_v21  ;;  %v13943_v43 = vmax.f32 %v10376_v56, %v10507_v48 }
 0x14d   :  { %v10994_v42 = vpop.f32.mrf.mxu1  ;;  %v1724_v59 = vpop.f32.mrf.mxu0 }
 0x14e   :  { %13934 = vst [vmem:[#allocation111_spill] sm:$0xff] %v10994_v42  ;;  %v2014_v42 = vmax.f32 %v13939_v52, %v8389_v30  ;;  %v2016_v30 = vmax.f32 %v13941_v27, %v8392_v8  ;;  %v2018_v21 = vmax.f32 %v13943_v43, %v8395_v37  ;;  %v3799_v27 = vsub.s32 %v10102_v38, %v10132_v47 }
 0x14f   :  { %v10996_v23 = vpop.f32.mrf.mxu1  ;;  %v8401_v51 = vpop.f32.mrf.mxu0  ;;  %v13946_v43 = vmax.f32 %v10436_v12, %v10573_v35 }
 0x150   :  { %13935 = vst [vmem:[#allocation112_spill] sm:$0xff] %v10996_v23  ;;  %vm3815_vm0 = vcmp.eq.s32.totalorder %v3799_v27, 8 }
 0x151   :  { %v10998_v57 = vpop.f32.mrf.mxu1  ;;  %v11000_v34 = vpop.f32.mrf.mxu0  ;;  %8715 = vmatprep.subr.msk.mxu1 %vm3815_vm0, %v13852_v49 }
 0x152   :  { %13936 = vst [vmem:[#allocation113_spill] sm:$0xff] %v10998_v57  ;;  %v11018_v57 = vld [vmem:[%s13507_s2] ss:$0 sm:$0xff]  ;;  %8716 = vmatpush3.msk.msra.mxu1 %vm3815_vm0, %v13852_v49 }
 0x153   :  { %v11002_v40 = vpop.f32.mrf.mxu1  ;;  %v11004_v53 = vpop.f32.mrf.mxu0 }
 0x154   :  { %13937 = vst [vmem:[#allocation114_spill] sm:$0xff] %v11002_v40  ;;  %v13940_v40 = vmax.f32 %v10316_v33, %v10438_v13  ;;  %v13942_v13 = vmax.f32 %v10356_v50, %v10483_v32 }
 0x155   :  { %v11006_v28 = vpop.f32.mrf.mxu1  ;;  %v11008_v60 = vpop.f32.mrf.mxu0 }
 0x156   :  { %13938 = vst [vmem:[#allocation115_spill] sm:$0xff] %v11006_v28  ;;  %v2013_v46 = vmax.f32 %v13940_v40, %v1694_v44 }
 0x157   :  { %v11013_v15 = vpop.f32.mrf.mxu0  ;;  %v8493_v23 = vpop.f32.mrf.mxu1 }
 0x158   :  { %v2719_v24 = vmax.f32 %v2014_v42, %v8493_v23  ;;  %v2015_v23 = vmax.f32 %v13942_v13, %v1704_v16 }
 0x159   :  { %v11023_v28 = vpop.f32.mrf.mxu0  ;;  %v2399_v0 = vpop.f32.mrf.mxu1 }
 0x15a   :  { %v2790_v6 = vadd.f32 %v11018_v57, %v2719_v24  ;;  %v2718_v52 = vmax.f32 %v2013_v46, %v2399_v0 }
 0x15b   :  { %v11029_v54 = vpop.f32.mrf.mxu0  ;;  %v8496_v22 = vpop.f32.mrf.mxu1 }
 0x15c   :  { %v11031_v36 = vmax.f32 %v2790_v6, 0.0  ;;  %v2789_v25 = vadd.f32 %v11018_v57, %v2718_v52  ;;  %v2721_v33 = vmax.f32 %v2016_v30, %v8496_v22  ;;  %v13944_v22 = vmax.f32 %v10395_v63, %v10528_v62 }
 0x15d   :  { %v11037_v42 = vpop.f32.mrf.mxu0  ;;  %v2409_v40 = vpop.f32.mrf.mxu1  ;;  %v11061_v30 = vsub.s32 %v10102_v38, %v10173_v58  ;;  %v13945_v63 = vmax.f32 %v10415_v5, %v10552_v11  ;;  %v2019_v5 = vmax.f32 %v13946_v43, %v1724_v59  ;;  %v13987_v58 = vld [vmem:[#allocation46_spill] sm:$0xff] }
 0x15e   :  { %v11042_v46 = vmax.f32 %v2789_v25, 0.0  ;;  %v2792_v0 = vadd.f32 %v11018_v57, %v2721_v33  ;;  %v2720_v24 = vmax.f32 %v2015_v23, %v2409_v40  ;;  %v2017_v50 = vmax.f32 %v13944_v22, %v1714_v26 }
 0x15f   :  { %v11045_v8 = vpop.f32.mrf.mxu0  ;;  %v8499_v44 = vpop.f32.mrf.mxu1  ;;  %v3033_v32 = vmul.f32 %v11031_v36, %v11031_v36  ;;  %v11065_v26 = vsub.s32 %v10102_v38, %v10212_v4  ;;  %v2020_v62 = vmax.f32 %v13945_v63, %v8398_v9  ;;  %vm3814_vm4 = vcmp.eq.s32.totalorder %v11061_v30, 8 }
 0x160   :  { %v2723_v16 = vmax.f32 %v2018_v21, %v8499_v44  ;;  %v3032_v56 = vmul.f32 %v11042_v46, %v11042_v46  ;;  %v2791_v37 = vadd.f32 %v11018_v57, %v2720_v24  ;;  %v11070_v6 = vmax.f32 %v2792_v0, 0.0  ;;  %8717 = vmatprep.subr.msk.mxu1 %vm3814_vm4, %v13852_v49 }
 0x161   :  { %v11055_v48 = vpop.f32.mrf.mxu0  ;;  %v2419_v25 = vpop.f32.mrf.mxu1  ;;  %v13947_v9 = vmax.f32 %v10460_v19, %v10597_v2  ;;  %vm3813_vm5 = vcmp.eq.s32.totalorder %v11065_v26, 8  ;;  %v11108_v2 = vsub.s32 %v10102_v38, %v10274_v20  ;;  %8718 = vmatpush3.msk.msra.mxu1 %vm3814_vm4, %v13852_v49  ;;  %v13949_v63 = vmax.f32 %v10505_v45, %v10638_v39 }
 0x162   :  { %v2794_v52 = vadd.f32 %v11018_v57, %v2723_v16  ;;  %v2722_v33 = vmax.f32 %v2017_v50, %v2419_v25  ;;  %8619 = vmatprep.mubr.f32.mxu0 %v3032_v56  ;;  %v11073_v13 = vmax.f32 %v2791_v37, 0.0  ;;  %v3035_v12 = vmul.f32 %v11070_v6, %v11070_v6  ;;  %8719 = vmatprep.subr.msk.mxu1 %vm3813_vm5, %v13852_v49 }
 0x163   :  { %v11075_v23 = vpop.f32.mrf.mxu0  ;;  %v8502_v40 = vpop.f32.mrf.mxu1  ;;  %8620 = vmatmul.mubr.f32.vlgmr.msra.gmra.mxu0 %v3033_v32  ;;  %v2022_v11 = vmax.f32 %v13947_v9, %v8401_v51  ;;  %v11096_v51 = vsub.s32 %v10102_v38, %v10251_v14  ;;  %v13948_v56 = vmax.f32 %v10481_v31, %v10615_v18  ;;  %8720 = vmatpush3.msk.msra.mxu1 %vm3813_vm5, %v13852_v49  ;;  %vm3811_vm7 = vcmp.eq.s32.totalorder %v11108_v2, 8 }
 0x164   :  { %v2793_v21 = vadd.f32 %v11018_v57, %v2722_v33  ;;  %v2725_v0 = vmax.f32 %v2020_v62, %v8502_v40  ;;  %v11086_v24 = vmax.f32 %v2794_v52, 0.0  ;;  %v3034_v50 = vmul.f32 %v11073_v13, %v11073_v13 }
 0x165   :  { %v11088_v44 = vpop.f32.mrf.mxu0  ;;  %v2429_v22 = vpop.f32.mrf.mxu1  ;;  %v2021_v37 = vmax.f32 %v13948_v56, %v11000_v34  ;;  %vm3812_vm6 = vcmp.eq.s32.totalorder %v11096_v51, 8  ;;  %v2024_v62 = vmax.f32 %v13949_v63, %v11004_v53  ;;  %v1318_v39 = vmax.f32 %v10526_v61, %v10656_v7 }
 0x166   :  { %v11100_v19 = vmax.f32 %v2793_v21, 0.0  ;;  %v2796_v35 = vadd.f32 %v11018_v57, %v2725_v0  ;;  %v2724_v59 = vmax.f32 %v2019_v5, %v2429_v22  ;;  %8622 = vmatprep.mubr.f32.mxu0 %v3034_v50  ;;  %v3037_v31 = vmul.f32 %v11086_v24, %v11086_v24  ;;  %8721 = vmatprep.subr.msk.mxu1 %vm3812_vm6, %v13852_v49 }
 0x167   :  { %v11110_v32 = vpop.f32.mrf.mxu0  ;;  %v8505_v16 = vpop.f32.mrf.mxu1  ;;  %8623 = vmatmul.mubr.f32.gmra.mxu0 %v3035_v12  ;;  %8722 = vmatpush3.msk.msra.mxu1 %vm3812_vm6, %v13852_v49  ;;  %v1320_v61 = vmax.f32 %v10571_v29, %v10692_v55  ;;  %v2023_v7 = vmax.f32 %v1318_v39, %v11008_v60  ;;  %v13950_v21 = vmax.f32 %v10550_v10, %v10676_v17  ;;  %vm4439_vm3 = vcmp.eq.s32.totalorder %v11061_v30, 16 }
 0x168   :  { %v2727_v25 = vmax.f32 %v2022_v11, %v8505_v16  ;;  %v3036_v27 = vmul.f32 %v11100_v19, %v11100_v19  ;;  %v2795_v18 = vadd.f32 %v11018_v57, %v2724_v59  ;;  %v11137_v33 = vmax.f32 %v2796_v35, 0.0  ;;  %8723 = vmatprep.subr.msk.mxu1 %vm3811_vm7, %v13852_v49  ;;  %8841 = vmatprep.subr.msk.mxu0 %vm4439_vm3, %v13852_v49 }
 0x169   :  { %v11132_v34 = vpop.f32.mrf.mxu0  ;;  %v2439_v52 = vpop.f32.mrf.mxu1  ;;  %v2026_v0 = vmax.f32 %v13950_v21, %v11013_v15  ;;  %8724 = vmatpush3.msk.msra.mxu1 %vm3811_vm7, %v13852_v49  ;;  %v2025_v59 = vmax.f32 %v1320_v61, %v11023_v28  ;;  %v13955_v21 = vld [vmem:[#allocation26_spill] sm:$0xff]  ;;  %vm4438_vm0 = vcmp.eq.s32.totalorder %v11065_v26, 16  ;;  %8842 = vmatpush3.msk.msra.mxu0 %vm4439_vm3, %v13852_v49  ;;  %vm4437_vm4 = vcmp.eq.s32.totalorder %v11096_v51, 16 }
 0x16a   :  { %v2798_v40 = vadd.f32 %v11018_v57, %v2727_v25  ;;  %v2726_v43 = vmax.f32 %v2021_v37, %v2439_v52  ;;  %8625 = vmatprep.mubr.f32.mxu0 %v3036_v27  ;;  %v11143_v45 = vmax.f32 %v2795_v18, 0.0  ;;  %v3039_v29 = vmul.f32 %v11137_v33, %v11137_v33  ;;  %8843 = vmatprep.subr.msk.mxu0 %vm4438_vm0, %v13852_v49 }
 0x16b   :  { %v11145_v53 = vpop.f32.mrf.mxu0  ;;  %v8508_v5 = vpop.f32.mrf.mxu1  ;;  %8626 = vmatmul.mubr.f32.gmra.mxu0 %v3037_v31  ;;  %v13951_v37 = vmax.f32 %v10595_v1, %v10708_v41  ;;  %vm4436_vm5 = vcmp.eq.s32.totalorder %v11108_v2, 16  ;;  %vm5062_vm3 = vcmp.eq.s32.totalorder %v11096_v51, 32  ;;  %v14179_v51 = vld [vmem:[#allocation21_spill] sm:$0xff] }
 0x16c   :  { %v2797_v9 = vadd.f32 %v11018_v57, %v2726_v43  ;;  %v2729_v11 = vmax.f32 %v2024_v62, %v8508_v5  ;;  %v3038_v12 = vmul.f32 %v11143_v45, %v11143_v45  ;;  %v11170_v55 = vmax.f32 %v2798_v40, 0.0  ;;  %v13952_v40 = vld [vmem:[#allocation25_spill] sm:$0xff]  ;;  %8844 = vmatpush3.msk.msra.mxu0 %vm4438_vm0, %v13852_v49 }
 0x16d   :  { %v11161_v22 = vpop.f32.mrf.mxu0  ;;  %v2449_v50 = vpop.f32.mrf.mxu1  ;;  %v2028_v25 = vmax.f32 %v13951_v37, %v11029_v54  ;;  %v1322_v43 = vmax.f32 %v13952_v40, %v10724_v3  ;;  %8845 = vmatprep.subr.msk.mxu0 %vm4437_vm4, %v13852_v49  ;;  %vm5061_vm0 = vcmp.eq.s32.totalorder %v11108_v2, 32  ;;  %v3853_v2 = vand.u32 1, %v14179_v51 }
 0x16e   :  { %v11172_v60 = vmax.f32 %v2797_v9, 0.0  ;;  %v2800_v17 = vadd.f32 %v11018_v57, %v2729_v11  ;;  %v2728_v10 = vmax.f32 %v2023_v7, %v2449_v50  ;;  %8628 = vmatprep.mubr.f32.mxu0 %v3038_v12  ;;  %v3041_v31 = vmul.f32 %v11170_v55, %v11170_v55  ;;  %v13953_v9 = vld [vmem:[#allocation35_spill] sm:$0xff]  ;;  %8846 = vmatpush3.msk.msra.mxu0 %vm4437_vm4, %v13852_v49 }
 0x16f   :  { %v11178_v15 = vpop.f32.mrf.mxu0  ;;  %v8511_v35 = vpop.f32.mrf.mxu1  ;;  %8629 = vmatmul.mubr.f32.gmra.mxu0 %v3039_v29  ;;  %v13954_v11 = vld [vmem:[#allocation27_spill] sm:$0xff]  ;;  %v2027_v7 = vmax.f32 %v1322_v43, %v11037_v42  ;;  %8847 = vmatprep.subr.msk.mxu0 %vm4436_vm5, %v13852_v49 }
 0x170   :  { %v2731_v16 = vmax.f32 %v2026_v0, %v8511_v35  ;;  %v3040_v56 = vmul.f32 %v11172_v60, %v11172_v60  ;;  %v2799_v27 = vadd.f32 %v11018_v57, %v2728_v10  ;;  %v11192_v18 = vmax.f32 %v2800_v17, 0.0  ;;  %v13956_v0 = vld [vmem:[#allocation33_spill] sm:$0xff]  ;;  %8848 = vmatpush3.msk.msra.mxu0 %vm4436_vm5, %v13852_v49 }
 0x171   :  { %v11188_v63 = vpop.f32.mrf.mxu0  ;;  %v2459_v62 = vpop.f32.mrf.mxu1  ;;  %v1324_v61 = vmax.f32 %v13954_v11, %v13953_v9  ;;  %v13957_v50 = vmax.f32 %v13955_v21, %v13956_v0  ;;  %v13961_v11 = vld [vmem:[#allocation39_spill] sm:$0xff] }
 0x172   :  { %v2802_v28 = vadd.f32 %v11018_v57, %v2731_v16  ;;  %v2730_v52 = vmax.f32 %v2025_v59, %v2459_v62  ;;  %8631 = vmatprep.mubr.f32.mxu0 %v3040_v56  ;;  %v11197_v39 = vmax.f32 %v2799_v27, 0.0  ;;  %v3043_v10 = vmul.f32 %v11192_v18, %v11192_v18  ;;  %v13958_v62 = vld [vmem:[#allocation28_spill] sm:$0xff] }
 0x173   :  { %v11199_v41 = vpop.f32.mrf.mxu0  ;;  %v8514_v54 = vpop.f32.mrf.mxu1  ;;  %8632 = vmatmul.mubr.f32.gmra.mxu0 %v3041_v31  ;;  %v2030_v12 = vmax.f32 %v13957_v50, %v11045_v8  ;;  %v2029_v37 = vmax.f32 %v1324_v61, %v11055_v48  ;;  %v13959_v31 = vld [vmem:[#allocation37_spill] sm:$0xff] }
 0x174   :  { %v2801_v1 = vadd.f32 %v11018_v57, %v2730_v52  ;;  %v2733_v5 = vmax.f32 %v2028_v25, %v8514_v54  ;;  %v3042_v17 = vmul.f32 %v11197_v39, %v11197_v39  ;;  %v11215_v35 = vmax.f32 %v2802_v28, 0.0  ;;  %v13962_v61 = vld [vmem:[#allocation29_spill] sm:$0xff] }
 0x175   :  { %v11209_v3 = vpop.f32.mrf.mxu0  ;;  %v2469_v29 = vpop.f32.mrf.mxu1  ;;  %v13960_v28 = vmax.f32 %v13958_v62, %v13959_v31 }
 0x176   :  { %v11217_v59 = vmax.f32 %v2801_v1, 0.0  ;;  %v2804_v42 = vadd.f32 %v11018_v57, %v2733_v5  ;;  %v2732_v16 = vmax.f32 %v2027_v7, %v2469_v29  ;;  %8634 = vmatprep.mubr.f32.mxu0 %v3042_v17  ;;  %v3045_v1 = vmul.f32 %v11215_v35, %v11215_v35  ;;  %v13963_v29 = vld [vmem:[#allocation43_spill] sm:$0xff] }
 0x177   :  { %v11220_v56 = vpop.f32.mrf.mxu0  ;;  %v8517_v8 = vpop.f32.mrf.mxu1  ;;  %8635 = vmatmul.mubr.f32.gmra.mxu0 %v3043_v10  ;;  %v2032_v52 = vmax.f32 %v13960_v28, %v11075_v23  ;;  %v1326_v7 = vmax.f32 %v13962_v61, %v13961_v11  ;;  %v13964_v17 = vld [vmem:[#allocation31_spill] sm:$0xff] }
 0x178   :  { %v2735_v25 = vmax.f32 %v2030_v12, %v8517_v8  ;;  %v3044_v27 = vmul.f32 %v11217_v59, %v11217_v59  ;;  %v2803_v40 = vadd.f32 %v11018_v57, %v2732_v16  ;;  %v11234_v5 = vmax.f32 %v2804_v42, 0.0  ;;  %v13965_v16 = vld [vmem:[#allocation30_spill] sm:$0xff]  ;;  %v13966_v8 = vld [vmem:[#allocation41_spill] sm:$0xff] }
 0x179   :  { %v11230_v43 = vpop.f32.mrf.mxu0  ;;  %v2479_v54 = vpop.f32.mrf.mxu1  ;;  %v1328_v10 = vmax.f32 %v13964_v17, %v13963_v29  ;;  %v2031_v42 = vmax.f32 %v1326_v7, %v11088_v44  ;;  %v13968_v7 = vld [vmem:[#allocation32_spill] sm:$0xff] }
 0x17a   :  { %v2806_v48 = vadd.f32 %v11018_v57, %v2735_v25  ;;  %v2734_v9 = vmax.f32 %v2029_v37, %v2479_v54  ;;  %8637 = vmatprep.mubr.f32.mxu0 %v3044_v27  ;;  %v11239_v21 = vmax.f32 %v2803_v40, 0.0  ;;  %v13967_v37 = vmax.f32 %v13965_v16, %v13966_v8  ;;  %v13971_v8 = vld [vmem:[#allocation47_spill] sm:$0xff] }
 0x17b   :  { %v11241_v23 = vpop.f32.mrf.mxu0  ;;  %v8520_v0 = vpop.f32.mrf.mxu1  ;;  %8638 = vmatmul.mubr.f32.gmra.mxu0 %v3045_v1  ;;  %v3047_v28 = vmul.f32 %v11234_v5, %v11234_v5 }
 0x17c   :  { %v2805_v50 = vadd.f32 %v11018_v57, %v2734_v9  ;;  %v2737_v12 = vmax.f32 %v2032_v52, %v8520_v0  ;;  %v2034_v25 = vmax.f32 %v13967_v37, %v11110_v32  ;;  %v3046_v31 = vmul.f32 %v11239_v21, %v11239_v21  ;;  %v13972_v37 = vld [vmem:[#allocation34_spill] sm:$0xff] }
 0x17d   :  { %v11251_v27 = vpop.f32.mrf.mxu0  ;;  %v2489_v62 = vpop.f32.mrf.mxu1  ;;  %v11257_v52 = vmax.f32 %v2806_v48, 0.0  ;;  %v2033_v9 = vmax.f32 %v1328_v10, %v11132_v34  ;;  %v13969_v48 = vld [vmem:[#allocation45_spill] sm:$0xff] }
 0x17e   :  { %v11259_v40 = vmax.f32 %v2805_v50, 0.0  ;;  %v2808_v44 = vadd.f32 %v11018_v57, %v2737_v12  ;;  %v2736_v54 = vmax.f32 %v2031_v42, %v2489_v62  ;;  %8640 = vmatprep.mubr.f32.mxu0 %v3046_v31  ;;  %v13970_v0 = vmax.f32 %v13968_v7, %v13969_v48  ;;  %v13974_v7 = vld [vmem:[#allocation38_spill] sm:$0xff] }
 0x17f   :  { %v11262_v1 = vpop.f32.mrf.mxu0  ;;  %v8523_v32 = vpop.f32.mrf.mxu1  ;;  %8641 = vmatmul.mubr.f32.gmra.mxu0 %v3047_v28  ;;  %v3049_v42 = vmul.f32 %v11257_v52, %v11257_v52 }
 0x180   :  { %v2739_v11 = vmax.f32 %v2034_v25, %v8523_v32  ;;  %v3048_v61 = vmul.f32 %v11259_v40, %v11259_v40  ;;  %v2036_v50 = vmax.f32 %v13970_v0, %v11145_v53  ;;  %v2807_v29 = vadd.f32 %v11018_v57, %v2736_v54  ;;  %v13973_v32 = vld [vmem:[#allocation51_spill] sm:$0xff] }
 0x181   :  { %v11272_v12 = vpop.f32.mrf.mxu0  ;;  %v2499_v17 = vpop.f32.mrf.mxu1  ;;  %v11276_v16 = vmax.f32 %v2808_v44, 0.0  ;;  %v1330_v25 = vmax.f32 %v13972_v37, %v13971_v8  ;;  %v1332_v44 = vmax.f32 %v13974_v7, %v13973_v32 }
 0x182   :  { %v2810_v34 = vadd.f32 %v11018_v57, %v2739_v11  ;;  %v2738_v10 = vmax.f32 %v2033_v9, %v2499_v17  ;;  %8643 = vmatprep.mubr.f32.mxu0 %v3048_v61  ;;  %v11281_v62 = vmax.f32 %v2807_v29, 0.0  ;;  %v13975_v9 = vld [vmem:[#allocation36_spill] sm:$0xff]  ;;  %v13976_v11 = vld [vmem:[#allocation49_spill] sm:$0xff] }
 0x183   :  { %v11283_v53 = vpop.f32.mrf.mxu0  ;;  %v8526_v31 = vpop.f32.mrf.mxu1  ;;  %8644 = vmatmul.mubr.f32.gmra.mxu0 %v3049_v42  ;;  %v2035_v48 = vmax.f32 %v1330_v25, %v11161_v22  ;;  %v13977_v61 = vmax.f32 %v13975_v9, %v13976_v11  ;;  %v13979_v9 = vld [vmem:[#allocation40_spill] sm:$0xff] }
 0x184   :  { %v2809_v28 = vadd.f32 %v11018_v57, %v2738_v10  ;;  %v2741_v54 = vmax.f32 %v2036_v50, %v8526_v31  ;;  %v3050_v8 = vmul.f32 %v11281_v62, %v11281_v62  ;;  %v3051_v50 = vmul.f32 %v11276_v16, %v11276_v16 }
 0x185   :  { %v2038_v0 = vmax.f32 %v13977_v61, %v11178_v15  ;;  %v11293_v17 = vpop.f32.mrf.mxu0  ;;  %v2509_v29 = vpop.f32.mrf.mxu1  ;;  %v11299_v42 = vmax.f32 %v2810_v34, 0.0  ;;  %v2037_v31 = vmax.f32 %v1332_v44, %v11188_v63  ;;  %v13980_v34 = vld [vmem:[#allocation53_spill] sm:$0xff] }
 0x186   :  { %v11301_v10 = vmax.f32 %v2809_v28, 0.0  ;;  %v2812_v22 = vadd.f32 %v11018_v57, %v2741_v54  ;;  %v2740_v37 = vmax.f32 %v2035_v48, %v2509_v29  ;;  %8646 = vmatprep.mubr.f32.mxu0 %v3050_v8  ;;  %v13981_v11 = vmax.f32 %v13979_v9, %v13980_v34 }
 0x187   :  { %13978 = vst [vmem:[#allocation25_spill] sm:$0xff] %v11299_v42  ;;  %v11304_v25 = vpop.f32.mrf.mxu0  ;;  %v8529_v15 = vpop.f32.mrf.mxu1  ;;  %8647 = vmatmul.mubr.f32.gmra.mxu0 %v3051_v50  ;;  %v3053_v29 = vmul.f32 %v11299_v42, %v11299_v42  ;;  %v13984_v50 = vld [vmem:[#allocation42_spill] sm:$0xff] }
 0x188   :  { %v2743_v32 = vmax.f32 %v2038_v0, %v8529_v15  ;;  %v3052_v7 = vmul.f32 %v11301_v10, %v11301_v10  ;;  %v2040_v28 = vmax.f32 %v13981_v11, %v11199_v41  ;;  %v2811_v61 = vadd.f32 %v11018_v57, %v2740_v37  ;;  %v13983_v0 = vld [vmem:[#allocation55_spill] sm:$0xff] }
 0x189   :  { %v11314_v54 = vpop.f32.mrf.mxu0  ;;  %v2519_v48 = vpop.f32.mrf.mxu1  ;;  %v11318_v8 = vmax.f32 %v2812_v22, 0.0  ;;  %v1334_v15 = vmax.f32 %v13984_v50, %v13983_v0  ;;  %v13986_v11 = vld [vmem:[#allocation59_spill] sm:$0xff] }
 0x18a   :  { %v2814_v63 = vadd.f32 %v11018_v57, %v2743_v32  ;;  %v2742_v44 = vmax.f32 %v2037_v31, %v2519_v48  ;;  %8649 = vmatprep.mubr.f32.mxu0 %v3052_v7  ;;  %v11323_v47 = vmax.f32 %v2811_v61, 0.0  ;;  %v1336_v22 = vmax.f32 %v13987_v58, %v13986_v11  ;;  %v13988_v31 = vld [vmem:[#allocation44_spill] sm:$0xff]  ;;  %v13989_v32 = vld [vmem:[#allocation57_spill] sm:$0xff] }
 0x18b   :  { %13982 = vst [vmem:[#allocation35_spill] sm:$0xff] %v11318_v8  ;;  %v11325_v41 = vpop.f32.mrf.mxu0  ;;  %v8532_v37 = vpop.f32.mrf.mxu1  ;;  %8650 = vmatmul.mubr.f32.gmra.mxu0 %v3053_v29  ;;  %v2039_v4 = vmax.f32 %v1334_v15, %v11209_v3  ;;  %v13990_v7 = vmax.f32 %v13988_v31, %v13989_v32  ;;  %v13993_v32 = vld [vmem:[#allocation48_spill] sm:$0xff] }
 0x18c   :  { %13985 = vst [vmem:[#allocation27_spill] sm:$0xff] %v11323_v47  ;;  %v2813_v9 = vadd.f32 %v11018_v57, %v2742_v44  ;;  %v2745_v34 = vmax.f32 %v2040_v28, %v8532_v37  ;;  %v3054_v50 = vmul.f32 %v11323_v47, %v11323_v47  ;;  %v3055_v28 = vmul.f32 %v11318_v8, %v11318_v8  ;;  %v14033_v8 = vld [vmem:[#allocation10_spill] sm:$0xff] }
 0x18d   :  { %v2042_v48 = vmax.f32 %v13990_v7, %v11220_v56  ;;  %v11335_v0 = vpop.f32.mrf.mxu0  ;;  %v2529_v61 = vpop.f32.mrf.mxu1  ;;  %v11341_v29 = vmax.f32 %v2814_v63, 0.0  ;;  %v2041_v37 = vmax.f32 %v1336_v22, %v11230_v43  ;;  %v13994_v63 = vld [vmem:[#allocation61_spill] sm:$0xff] }
 0x18e   :  { %v11343_v44 = vmax.f32 %v2813_v9, 0.0  ;;  %v2816_v58 = vadd.f32 %v11018_v57, %v2745_v34  ;;  %v2744_v3 = vmax.f32 %v2039_v4, %v2529_v61  ;;  %8652 = vmatprep.mubr.f32.mxu0 %v3054_v50  ;;  %v13995_v7 = vmax.f32 %v13993_v32, %v13994_v63 }
 0x18f   :  { %13991 = vst [vmem:[#allocation26_spill] sm:$0xff] %v11341_v29  ;;  %v11346_v15 = vpop.f32.mrf.mxu0  ;;  %v8535_v56 = vpop.f32.mrf.mxu1  ;;  %8653 = vmatmul.mubr.f32.gmra.mxu0 %v3055_v28  ;;  %v3057_v61 = vmul.f32 %v11341_v29, %v11341_v29  ;;  %v13998_v28 = vld [vmem:[#allocation50_spill] sm:$0xff] }
 0x190   :  { %13992 = vst [vmem:[#allocation33_spill] sm:$0xff] %v11343_v44  ;;  %v2747_v11 = vmax.f32 %v2042_v48, %v8535_v56  ;;  %v3056_v31 = vmul.f32 %v11343_v44, %v11343_v44  ;;  %v2044_v9 = vmax.f32 %v13995_v7, %v11241_v23  ;;  %v2815_v14 = vadd.f32 %v11018_v57, %v2744_v3  ;;  %v13997_v48 = vld [vmem:[#allocation63_spill] sm:$0xff]  ;;  %v14001_v29 = vld [vmem:[#allocation54_spill] sm:$0xff] }
 0x191   :  { %v11356_v34 = vpop.f32.mrf.mxu0  ;;  %v2539_v4 = vpop.f32.mrf.mxu1  ;;  %v11360_v50 = vmax.f32 %v2816_v58, 0.0  ;;  %v1338_v56 = vmax.f32 %v13998_v28, %v13997_v48  ;;  %v14000_v7 = vld [vmem:[#allocation67_spill] sm:$0xff] }
 0x192   :  { %v2818_v43 = vadd.f32 %v11018_v57, %v2747_v11  ;;  %v2746_v22 = vmax.f32 %v2041_v37, %v2539_v4  ;;  %8655 = vmatprep.mubr.f32.mxu0 %v3056_v31  ;;  %v11365_v20 = vmax.f32 %v2815_v14, 0.0  ;;  %v1340_v58 = vmax.f32 %v14001_v29, %v14000_v7  ;;  %v14002_v37 = vld [vmem:[#allocation52_spill] sm:$0xff]  ;;  %v14003_v11 = vld [vmem:[#allocation65_spill] sm:$0xff] }
 0x193   :  { %13996 = vst [vmem:[#allocation28_spill] sm:$0xff] %v11360_v50  ;;  %v11367_v23 = vpop.f32.mrf.mxu0  ;;  %v8538_v3 = vpop.f32.mrf.mxu1  ;;  %8656 = vmatmul.mubr.f32.gmra.mxu0 %v3057_v61  ;;  %v2043_v44 = vmax.f32 %v1338_v56, %v11251_v27  ;;  %v14004_v31 = vmax.f32 %v14002_v37, %v14003_v11  ;;  %v14007_v11 = vld [vmem:[#allocation56_spill] sm:$0xff] }
 0x194   :  { %13999 = vst [vmem:[#allocation37_spill] sm:$0xff] %v11365_v20  ;;  %v2817_v32 = vadd.f32 %v11018_v57, %v2746_v22  ;;  %v2749_v63 = vmax.f32 %v2044_v9, %v8538_v3  ;;  %v3058_v28 = vmul.f32 %v11365_v20, %v11365_v20  ;;  %v3059_v9 = vmul.f32 %v11360_v50, %v11360_v50 }
 0x195   :  { %v2046_v4 = vmax.f32 %v14004_v31, %v11262_v1  ;;  %v11377_v48 = vpop.f32.mrf.mxu0  ;;  %v2549_v14 = vpop.f32.mrf.mxu1  ;;  %v11383_v61 = vmax.f32 %v2818_v43, 0.0  ;;  %v2045_v3 = vmax.f32 %v1340_v58, %v11272_v12  ;;  %v14008_v43 = vld [vmem:[#allocation69_spill] sm:$0xff] }
 0x196   :  { %v11385_v22 = vmax.f32 %v2817_v32, 0.0  ;;  %v2820_v27 = vadd.f32 %v11018_v57, %v2749_v63  ;;  %v2748_v29 = vmax.f32 %v2043_v44, %v2549_v14  ;;  %8658 = vmatprep.mubr.f32.mxu0 %v3058_v28  ;;  %v14009_v31 = vmax.f32 %v14007_v11, %v14008_v43 }
 0x197   :  { %14005 = vst [vmem:[#allocation39_spill] sm:$0xff] %v11383_v61  ;;  %v11388_v56 = vpop.f32.mrf.mxu0  ;;  %v8541_v1 = vpop.f32.mrf.mxu1  ;;  %8659 = vmatmul.mubr.f32.gmra.mxu0 %v3059_v9  ;;  %v3061_v14 = vmul.f32 %v11383_v61, %v11383_v61  ;;  %v14012_v9 = vld [vmem:[#allocation58_spill] sm:$0xff] }
 0x198   :  { %14006 = vst [vmem:[#allocation29_spill] sm:$0xff] %v11385_v22  ;;  %v2751_v7 = vmax.f32 %v2046_v4, %v8541_v1  ;;  %v3060_v37 = vmul.f32 %v11385_v22, %v11385_v22  ;;  %v2048_v32 = vmax.f32 %v14009_v31, %v11283_v53  ;;  %v2819_v50 = vadd.f32 %v11018_v57, %v2748_v29  ;;  %v14011_v4 = vld [vmem:[#allocation71_spill] sm:$0xff]  ;;  %v14015_v61 = vld [vmem:[#allocation62_spill] sm:$0xff] }
 0x199   :  { %v11398_v63 = vpop.f32.mrf.mxu0  ;;  %v2559_v44 = vpop.f32.mrf.mxu1  ;;  %v11402_v28 = vmax.f32 %v2820_v27, 0.0  ;;  %v1342_v1 = vmax.f32 %v14012_v9, %v14011_v4  ;;  %v14014_v31 = vld [vmem:[#allocation75_spill] sm:$0xff] }
 0x19a   :  { %v2822_v12 = vadd.f32 %v11018_v57, %v2751_v7  ;;  %v2750_v58 = vmax.f32 %v2045_v3, %v2559_v44  ;;  %8661 = vmatprep.mubr.f32.mxu0 %v3060_v37  ;;  %v11407_v22 = vmax.f32 %v2819_v50, 0.0  ;;  %v1344_v27 = vmax.f32 %v14015_v61, %v14014_v31  ;;  %v14016_v3 = vld [vmem:[#allocation60_spill] sm:$0xff]  ;;  %v14017_v7 = vld [vmem:[#allocation73_spill] sm:$0xff] }
 0x19b   :  { %14010 = vst [vmem:[#allocation43_spill] sm:$0xff] %v11402_v28  ;;  %v11409_v53 = vpop.f32.mrf.mxu0  ;;  %v8544_v29 = vpop.f32.mrf.mxu1  ;;  %8662 = vmatmul.mubr.f32.gmra.mxu0 %v3061_v14  ;;  %v2047_v20 = vmax.f32 %v1342_v1, %v11293_v17  ;;  %v14018_v37 = vmax.f32 %v14016_v3, %v14017_v7  ;;  %v14021_v7 = vld [vmem:[#allocation64_spill] sm:$0xff] }
 0x19c   :  { %14013 = vst [vmem:[#allocation31_spill] sm:$0xff] %v11407_v22  ;;  %v2821_v11 = vadd.f32 %v11018_v57, %v2750_v58  ;;  %v2753_v43 = vmax.f32 %v2048_v32, %v8544_v29  ;;  %v3062_v9 = vmul.f32 %v11407_v22, %v11407_v22  ;;  %v3063_v32 = vmul.f32 %v11402_v28, %v11402_v28 }
 0x19d   :  { %v2050_v44 = vmax.f32 %v14018_v37, %v11304_v25  ;;  %v11419_v4 = vpop.f32.mrf.mxu0  ;;  %v2569_v50 = vpop.f32.mrf.mxu1  ;;  %v11425_v14 = vmax.f32 %v2822_v12, 0.0  ;;  %v2049_v29 = vmax.f32 %v1344_v27, %v11314_v54  ;;  %v14022_v12 = vld [vmem:[#allocation77_spill] sm:$0xff] }
 0x19e   :  { %v11427_v58 = vmax.f32 %v2821_v11, 0.0  ;;  %v2824_v17 = vadd.f32 %v11018_v57, %v2753_v43  ;;  %v2752_v61 = vmax.f32 %v2047_v20, %v2569_v50  ;;  %8664 = vmatprep.mubr.f32.mxu0 %v3062_v9  ;;  %v14023_v37 = vmax.f32 %v14021_v7, %v14022_v12  ;;  %v14028_v7 = vld [vmem:[#allocation83_spill] sm:$0xff]  ;;  %v14029_v12 = vld [vmem:[#allocation70_spill] sm:$0xff] }
 0x19f   :  { %14019 = vst [vmem:[#allocation30_spill] sm:$0xff] %v11425_v14  ;;  %v11430_v1 = vpop.f32.mrf.mxu0  ;;  %v8547_v25 = vpop.f32.mrf.mxu1  ;;  %8665 = vmatmul.mubr.f32.gmra.mxu0 %v3063_v32  ;;  %v3065_v50 = vmul.f32 %v11425_v14, %v11425_v14  ;;  %v14026_v32 = vld [vmem:[#allocation66_spill] sm:$0xff] }
 0x1a0   :  { %14020 = vst [vmem:[#allocation41_spill] sm:$0xff] %v11427_v58  ;;  %v2755_v31 = vmax.f32 %v2050_v44, %v8547_v25  ;;  %v3064_v3 = vmul.f32 %v11427_v58, %v11427_v58  ;;  %v2052_v11 = vmax.f32 %v14023_v37, %v11325_v41  ;;  %v2823_v28 = vadd.f32 %v11018_v57, %v2752_v61  ;;  %v14025_v44 = vld [vmem:[#allocation79_spill] sm:$0xff] }
 0x1a1   :  { %v11440_v43 = vpop.f32.mrf.mxu0  ;;  %v2579_v20 = vpop.f32.mrf.mxu1  ;;  %v11444_v9 = vmax.f32 %v2824_v17, 0.0  ;;  %v1346_v25 = vmax.f32 %v14026_v32, %v14025_v44  ;;  %v1348_v37 = vmax.f32 %v14029_v12, %v14028_v7  ;;  %v11467_v7 = vsub.s32 %v10102_v38, %v14033_v8 }
 0x1a2   :  { %v2826_v54 = vadd.f32 %v11018_v57, %v2755_v31  ;;  %v2754_v27 = vmax.f32 %v2049_v29, %v2579_v20  ;;  %8667 = vmatprep.mubr.f32.mxu0 %v3064_v3  ;;  %v11449_v58 = vmax.f32 %v2823_v28, 0.0  ;;  %v14030_v29 = vld [vmem:[#allocation68_spill] sm:$0xff]  ;;  %v14031_v31 = vld [vmem:[#allocation81_spill] sm:$0xff] }
 0x1a3   :  { %14024 = vst [vmem:[#allocation32_spill] sm:$0xff] %v11444_v9  ;;  %v11451_v41 = vpop.f32.mrf.mxu0  ;;  %v8550_v61 = vpop.f32.mrf.mxu1  ;;  %8668 = vmatmul.mubr.f32.gmra.mxu0 %v3065_v50  ;;  %v2051_v17 = vmax.f32 %v1346_v25, %v11335_v0  ;;  %v14032_v3 = vmax.f32 %v14030_v29, %v14031_v31  ;;  %v14037_v25 = vld [vmem:[#allocation74_spill] sm:$0xff]  ;;  %vm3810_vm8 = vcmp.eq.s32.totalorder %v11467_v7, 8  ;;  %vm4435_vm6 = vcmp.eq.s32.totalorder %v11467_v7, 16 }
 0x1a4   :  { %14027 = vst [vmem:[#allocation45_spill] sm:$0xff] %v11449_v58  ;;  %v2825_v22 = vadd.f32 %v11018_v57, %v2754_v27  ;;  %v2757_v14 = vmax.f32 %v2052_v11, %v8550_v61  ;;  %v3066_v32 = vmul.f32 %v11449_v58, %v11449_v58  ;;  %v3067_v11 = vmul.f32 %v11444_v9, %v11444_v9 }
 0x1a5   :  { %v2054_v20 = vmax.f32 %v14032_v3, %v11346_v15  ;;  %v11461_v44 = vpop.f32.mrf.mxu0  ;;  %v2589_v28 = vpop.f32.mrf.mxu1  ;;  %v11471_v50 = vmax.f32 %v2826_v54, 0.0  ;;  %v14036_v15 = vld [vmem:[#allocation87_spill] sm:$0xff]  ;;  %v14038_v3 = vld [vmem:[#allocation12_spill] sm:$0xff]  ;;  %v2053_v54 = vmax.f32 %v1348_v37, %v11356_v34  ;;  %8725 = vmatprep.subr.msk.mxu1 %vm3810_vm8, %v13852_v49  ;;  %v14042_v34 = vld [vmem:[#allocation14_spill] sm:$0xff]  ;;  %8849 = vmatprep.subr.msk.mxu0 %vm4435_vm6, %v13852_v49  ;;  %vm5060_vm4 = vcmp.eq.s32.totalorder %v11467_v7, 32 }
 0x1a6   :  { %v11473_v0 = vmax.f32 %v2825_v22, 0.0  ;;  %v2828_v27 = vadd.f32 %v11018_v57, %v2757_v14  ;;  %v1350_v61 = vmax.f32 %v14037_v25, %v14036_v15  ;;  %v2756_v12 = vmax.f32 %v2051_v17, %v2589_v28  ;;  %8670 = vmatprep.mubr.f32.mxu0 %v3066_v32  ;;  %v14039_v17 = vld [vmem:[#allocation72_spill] sm:$0xff]  ;;  %v14040_v28 = vld [vmem:[#allocation85_spill] sm:$0xff]  ;;  %8726 = vmatpush3.msk.msra.mxu1 %vm3810_vm8, %v13852_v49 }
 0x1a7   :  { %14034 = vst [vmem:[#allocation47_spill] sm:$0xff] %v11471_v50  ;;  %v11478_v29 = vpop.f32.mrf.mxu0  ;;  %v8553_v31 = vpop.f32.mrf.mxu1  ;;  %v11483_v8 = vsub.s32 %v10102_v38, %v14038_v3  ;;  %8671 = vmatmul.mubr.f32.gmra.mxu0 %v3067_v11  ;;  %v14041_v32 = vmax.f32 %v14039_v17, %v14040_v28  ;;  %v11500_v37 = vsub.s32 %v10102_v38, %v14042_v34  ;;  %v14045_v17 = vld [vmem:[#allocation78_spill] sm:$0xff]  ;;  %v14047_v34 = vld [vmem:[#allocation16_spill] sm:$0xff] }
 0x1a8   :  { %14035 = vst [vmem:[#allocation34_spill] sm:$0xff] %v11473_v0  ;;  %v2759_v22 = vmax.f32 %v2054_v20, %v8553_v31  ;;  %v3068_v14 = vmul.f32 %v11473_v0, %v11473_v0  ;;  %v2827_v25 = vadd.f32 %v11018_v57, %v2756_v12  ;;  %v3069_v20 = vmul.f32 %v11471_v50, %v11471_v50  ;;  %v14044_v12 = vld [vmem:[#allocation91_spill] sm:$0xff] }
 0x1a9   :  { %v2056_v15 = vmax.f32 %v14041_v32, %v11367_v23  ;;  %v11494_v9 = vpop.f32.mrf.mxu0  ;;  %v2599_v3 = vpop.f32.mrf.mxu1  ;;  %vm3809_vm9 = vcmp.eq.s32.totalorder %v11483_v8, 8  ;;  %v11504_v11 = vmax.f32 %v2828_v27, 0.0  ;;  %v1352_v28 = vmax.f32 %v14045_v17, %v14044_v12  ;;  %8850 = vmatpush3.msk.msra.mxu0 %vm4435_vm6, %v13852_v49 }
 0x1aa   :  { %v2830_v23 = vadd.f32 %v11018_v57, %v2759_v22  ;;  %v2758_v31 = vmax.f32 %v2053_v54, %v2599_v3  ;;  %8673 = vmatprep.mubr.f32.mxu0 %v3068_v14  ;;  %v11509_v32 = vmax.f32 %v2827_v25, 0.0  ;;  %8727 = vmatprep.subr.msk.mxu1 %vm3809_vm9, %v13852_v49  ;;  %vm3808_vm10 = vcmp.eq.s32.totalorder %v11500_v37, 8  ;;  %v14048_v14 = vld [vmem:[#allocation76_spill] sm:$0xff]  ;;  %v14049_v25 = vld [vmem:[#allocation89_spill] sm:$0xff] }
 0x1ab   :  { %14043 = vst [vmem:[#allocation51_spill] sm:$0xff] %v11504_v11  ;;  %v8556_v0 = vpop.f32.mrf.mxu1  ;;  %v11517_v27 = vsub.s32 %v10102_v38, %v14047_v34  ;;  %v2055_v22 = vmax.f32 %v1350_v61, %v11377_v48  ;;  %8674 = vmatmul.mubr.f32.gmra.mxu0 %v3069_v20  ;;  %8728 = vmatpush3.msk.msra.mxu1 %vm3809_vm9, %v13852_v49  ;;  %v11528_v50 = vpop.f32.mrf.mxu0  ;;  %v14051_v48 = vld [vmem:[#allocation19_spill] sm:$0xff]  ;;  %vm4434_vm7 = vcmp.eq.s32.totalorder %v11483_v8, 16  ;;  %vm4433_vm8 = vcmp.eq.s32.totalorder %v11500_v37, 16 }
 0x1ac   :  { %14046 = vst [vmem:[#allocation38_spill] sm:$0xff] %v11509_v32  ;;  %v2829_v3 = vadd.f32 %v11018_v57, %v2758_v31  ;;  %v2761_v54 = vmax.f32 %v2056_v15, %v8556_v0  ;;  %v14050_v12 = vmax.f32 %v14048_v14, %v14049_v25  ;;  %v3070_v34 = vmul.f32 %v11509_v32, %v11509_v32  ;;  %v14054_v31 = vld [vmem:[#allocation95_spill] sm:$0xff]  ;;  %v14055_v14 = vld [vmem:[#allocation82_spill] sm:$0xff] }
 0x1ad   :  { %v2609_v58 = vpop.f32.mrf.mxu1  ;;  %8729 = vmatprep.subr.msk.mxu1 %vm3808_vm10, %v13852_v49  ;;  %vm3807_vm11 = vcmp.eq.s32.totalorder %v11517_v27, 8  ;;  %v11538_v0 = vsub.s32 %v10102_v38, %v14051_v48  ;;  %v3071_v61 = vmul.f32 %v11504_v11, %v11504_v11  ;;  %v1354_v25 = vmax.f32 %v14055_v14, %v14054_v31  ;;  %v11570_v32 = vpop.f32.mrf.mxu0  ;;  %8851 = vmatprep.subr.msk.mxu0 %vm4434_vm7, %v13852_v49 }
 0x1ae   :  { %v2058_v17 = vmax.f32 %v14050_v12, %v11388_v56  ;;  %v11542_v56 = vmax.f32 %v2830_v23, 0.0  ;;  %v11544_v15 = vmax.f32 %v2829_v3, 0.0  ;;  %v2832_v20 = vadd.f32 %v11018_v57, %v2761_v54  ;;  %8730 = vmatpush3.msk.msra.mxu1 %vm3808_vm10, %v13852_v49  ;;  %8676 = vmatprep.mubr.f32.mxu0 %v3070_v34  ;;  %v14056_v23 = vld [vmem:[#allocation21_spill] sm:$0xff] }
 0x1af   :  { %v2760_v12 = vmax.f32 %v2055_v22, %v2609_v58  ;;  %v8559_v48 = vpop.f32.mrf.mxu1  ;;  %8731 = vmatprep.subr.msk.mxu1 %vm3807_vm11, %v13852_v49  ;;  %vm3806_vm12 = vcmp.eq.s32.totalorder %v11538_v0, 8  ;;  %v11558_v3 = vsub.s32 %v10102_v38, %v14056_v23  ;;  %v2057_v54 = vmax.f32 %v1352_v28, %v11398_v63  ;;  %8677 = vmatmul.mubr.f32.gmra.mxu0 %v3071_v61  ;;  %v14057_v58 = vld [vmem:[#allocation80_spill] sm:$0xff]  ;;  %v14058_v34 = vld [vmem:[#allocation93_spill] sm:$0xff]  ;;  %v14060_v63 = vld [vmem:[#allocation22_spill] sm:$0xff] }
 0x1b0   :  { %14052 = vst [vmem:[#allocation36_spill] sm:$0xff] %v11542_v56  ;;  %14053 = vst [vmem:[#allocation49_spill] sm:$0xff] %v11544_v15  ;;  %v2763_v11 = vmax.f32 %v2058_v17, %v8559_v48  ;;  %v3072_v31 = vmul.f32 %v11544_v15, %v11544_v15  ;;  %8732 = vmatpush3.msk.msra.mxu1 %vm3807_vm11, %v13852_v49  ;;  %v14059_v22 = vmax.f32 %v14057_v58, %v14058_v34  ;;  %v14063_v58 = vld [vmem:[#allocation86_spill] sm:$0xff] }
 0x1b1   :  { %v2831_v23 = vadd.f32 %v11018_v57, %v2760_v12  ;;  %v2619_v47 = vpop.f32.mrf.mxu1  ;;  %8733 = vmatprep.subr.msk.mxu1 %vm3806_vm12, %v13852_v49  ;;  %vm3805_vm13 = vcmp.eq.s32.totalorder %v11558_v3, 8  ;;  %v11579_v28 = vsub.s32 %v10102_v38, %v14060_v63  ;;  %v3073_v17 = vmul.f32 %v11542_v56, %v11542_v56  ;;  %v14062_v12 = vld [vmem:[#allocation99_spill] sm:$0xff]  ;;  %8852 = vmatpush3.msk.msra.mxu0 %vm4434_vm7, %v13852_v49 }
 0x1b2   :  { %v2060_v14 = vmax.f32 %v14059_v22, %v11409_v53  ;;  %v11583_v48 = vmax.f32 %v2832_v20, 0.0  ;;  %v2834_v53 = vadd.f32 %v11018_v57, %v2763_v11  ;;  %v2762_v61 = vmax.f32 %v2057_v54, %v2619_v47  ;;  %8679 = vmatprep.mubr.f32.mxu0 %v3072_v31  ;;  %8734 = vmatpush3.msk.msra.mxu1 %vm3806_vm12, %v13852_v49  ;;  %v14065_v63 = vld [vmem:[#allocation23_spill] sm:$0xff] }
 0x1b3   :  { %v1356_v34 = vmax.f32 %v14063_v58, %v14062_v12  ;;  %v11588_v22 = vmax.f32 %v2831_v23, 0.0  ;;  %v8562_v15 = vpop.f32.mrf.mxu1  ;;  %vm3804_vm14 = vcmp.eq.s32.totalorder %v11579_v28, 8  ;;  %v11596_v20 = vsub.s32 %v10102_v38, %v14065_v63  ;;  %8680 = vmatmul.mubr.f32.gmra.mxu0 %v3073_v17  ;;  %8735 = vmatprep.subr.msk.mxu1 %vm3805_vm13, %v13852_v49  ;;  %v11603_v23 = vpop.f32.mrf.mxu0 }
 0x1b4   :  { %14061 = vst [vmem:[#allocation40_spill] sm:$0xff] %v11583_v48  ;;  %v2059_v11 = vmax.f32 %v1354_v25, %v11419_v4  ;;  %v2833_v47 = vadd.f32 %v11018_v57, %v2762_v61  ;;  %v2765_v54 = vmax.f32 %v2060_v14, %v8562_v15  ;;  %v11605_v31 = vmax.f32 %v2834_v53, 0.0  ;;  %8736 = vmatpush3.msk.msra.mxu1 %vm3805_vm13, %v13852_v49  ;;  %v14067_v4 = vld [vmem:[#allocation24_spill] sm:$0xff]  ;;  %v14070_v14 = vld [vmem:[#allocation97_spill] sm:$0xff] }
 0x1b5   :  { %14064 = vst [vmem:[#allocation53_spill] sm:$0xff] %v11588_v22  ;;  %v2629_v12 = vpop.f32.mrf.mxu1  ;;  %v3074_v58 = vmul.f32 %v11588_v22, %v11588_v22  ;;  %vm3803_vm15 = vcmp.eq.s32.totalorder %v11596_v20, 8  ;;  %v11615_v15 = vsub.s32 %v10102_v38, %v14067_v4  ;;  %v14069_v25 = vld [vmem:[#allocation84_spill] sm:$0xff]  ;;  %v3075_v61 = vmul.f32 %v11583_v48, %v11583_v48  ;;  %8737 = vmatprep.subr.msk.mxu1 %vm3804_vm14, %v13852_v49 }
 0x1b6   :  { %14066 = vst [vmem:[#allocation55_spill] sm:$0xff] %v11605_v31  ;;  %v14071_v17 = vmax.f32 %v14069_v25, %v14070_v14  ;;  %v11623_v63 = vmax.f32 %v2833_v47, 0.0  ;;  %v2836_v22 = vadd.f32 %v11018_v57, %v2765_v54  ;;  %v2764_v56 = vmax.f32 %v2059_v11, %v2629_v12  ;;  %8738 = vmatpush3.msk.msra.mxu1 %vm3804_vm14, %v13852_v49  ;;  %v14073_v25 = vld [vmem:[#allocation2_spill] sm:$0xff]  ;;  %v14075_v11 = vld [vmem:[#allocation88_spill] sm:$0xff]  ;;  %v14076_v12 = vld [vmem:[#allocation101_spill] sm:$0xff] }
 0x1b7   :  { %14068 = vst [vmem:[#allocation42_spill] sm:$0xff] %v11615_v15  ;;  %8682 = vmatprep.mubr.f32.mxu0 %v3074_v58  ;;  %v8565_v4 = vpop.f32.mrf.mxu1  ;;  %v2061_v47 = vmax.f32 %v1356_v34, %v11440_v43  ;;  %8739 = vmatprep.subr.msk.mxu1 %vm3803_vm15, %v13852_v49  ;;  %vm3802_vm1 = vcmp.eq.s32.totalorder %v11615_v15, 8  ;;  %v14077_v58 = vmax.f32 %v14075_v11, %v14076_v12  ;;  %v11649_v43 = vpop.f32.mrf.mxu0  ;;  %v14080_v11 = vld [vmem:[#allocation90_spill] sm:$0xff]  ;;  %vm4432_vm9 = vcmp.eq.s32.totalorder %v11517_v27, 16 }
 0x1b8   :  { %v2062_v53 = vmax.f32 %v14071_v17, %v11430_v1  ;;  %14072 = vst [vmem:[#allocation59_spill] sm:$0xff] %v11623_v63  ;;  %v11634_v1 = vsub.s32 %v10102_v38, %v14073_v25  ;;  %8683 = vmatmul.mubr.f32.gmra.mxu0 %v3075_v61  ;;  %v3076_v54 = vmul.f32 %v11623_v63, %v11623_v63  ;;  %vm4431_vm10 = vcmp.eq.s32.totalorder %v11538_v0, 16 }
 0x1b9   :  { %v2064_v17 = vmax.f32 %v14077_v58, %v11451_v41  ;;  %v3077_v38 = vmul.f32 %v11605_v31, %v11605_v31  ;;  %v2835_v34 = vadd.f32 %v11018_v57, %v2764_v56  ;;  %8740 = vmatpush3.msk.msra.mxu1 %vm3803_vm15, %v13852_v49  ;;  %v14079_v41 = vld [vmem:[#allocation103_spill] sm:$0xff]  ;;  %v8476_v48 = vpop.f32.mrf.mxu0  ;;  %8853 = vmatprep.subr.msk.mxu0 %vm4433_vm8, %v13852_v49  ;;  %vm4430_vm11 = vcmp.eq.s32.totalorder %v11558_v3, 16 }
 0x1ba   :  { %14074 = vst [vmem:[#allocation46_spill] sm:$0xff] %v11634_v1  ;;  %v2767_v14 = vmax.f32 %v2062_v53, %v8565_v4  ;;  %v2639_v4 = vpop.f32.mrf.mxu1  ;;  %v11655_v53 = vmax.f32 %v2836_v22, 0.0  ;;  %8685 = vmatprep.mubr.f32.mxu0 %v3076_v54  ;;  %vm3801_vm2 = vcmp.eq.s32.totalorder %v11634_v1, 8  ;;  %v1358_v12 = vmax.f32 %v14080_v11, %v14079_v41  ;;  %8741 = vmatprep.subr.msk.mxu1 %vm3802_vm1, %v13852_v49  ;;  %v14085_v41 = vld [vmem:[#allocation104_spill] sm:$0xff] }
 0x1bb   :  { %v2766_v25 = vmax.f32 %v2061_v47, %v2639_v4  ;;  %v11661_v58 = vmax.f32 %v2835_v34, 0.0  ;;  %8742 = vmatpush3.msk.msra.mxu1 %vm3802_vm1, %v13852_v49  ;;  %v14082_v47 = vld [vmem:[#allocation105_spill] sm:$0xff]  ;;  %v14084_v34 = vld [vmem:[#allocation92_spill] sm:$0xff]  ;;  %8854 = vmatpush3.msk.msra.mxu0 %vm4433_vm8, %v13852_v49  ;;  %vm4429_vm12 = vcmp.eq.s32.totalorder %v11579_v28, 16  ;;  %vm4428_vm13 = vcmp.eq.s32.totalorder %v11596_v20, 16 }
 0x1bc   :  { %14078 = vst [vmem:[#allocation44_spill] sm:$0xff] %v11655_v53  ;;  %v2838_v61 = vadd.f32 %v11018_v57, %v2767_v14  ;;  %v8568_v31 = vpop.f32.mrf.mxu1  ;;  %8686 = vmatmul.mubr.f32.gmra.mxu0 %v3077_v38  ;;  %v14083_v14 = vld [vmem:[#allocation94_spill] sm:$0xff]  ;;  %v2063_v4 = vmax.f32 %v1358_v12, %v11461_v44  ;;  %v14086_v11 = vmax.f32 %v14084_v34, %v14085_v41  ;;  %vm4427_vm14 = vcmp.eq.s32.totalorder %v11615_v15, 16 }
 0x1bd   :  { %14081 = vst [vmem:[#allocation57_spill] sm:$0xff] %v11661_v58  ;;  %v2837_v56 = vadd.f32 %v11018_v57, %v2766_v25  ;;  %v2769_v22 = vmax.f32 %v2064_v17, %v8568_v31  ;;  %v1360_v54 = vmax.f32 %v14083_v14, %v14082_v47  ;;  %v3078_v31 = vmul.f32 %v11661_v58, %v11661_v58  ;;  %v14090_v41 = vld [vmem:[#allocation98_spill] sm:$0xff] }
 0x1be   :  { %v2066_v63 = vmax.f32 %v14086_v11, %v11478_v29  ;;  %v2649_v42 = vpop.f32.mrf.mxu1  ;;  %8743 = vmatprep.subr.msk.mxu1 %vm3801_vm2, %v13852_v49  ;;  %v3079_v38 = vmul.f32 %v11655_v53, %v11655_v53  ;;  %v11684_v25 = vmax.f32 %v2838_v61, 0.0  ;;  %v14089_v61 = vld [vmem:[#allocation107_spill] sm:$0xff]  ;;  %v1984_v11 = vpop.f32.mrf.mxu0  ;;  %8855 = vmatprep.subr.msk.mxu0 %vm4432_vm9, %v13852_v49  ;;  %vm5059_vm7 = vcmp.eq.s32.totalorder %v11483_v8, 32  ;;  %v14182_v8 = vld [vmem:[#allocation14_spill] sm:$0xff] }
 0x1bf   :  { %v11686_v44 = vmax.f32 %v2837_v56, 0.0  ;;  %v2840_v17 = vadd.f32 %v11018_v57, %v2769_v22  ;;  %8744 = vmatpush3.msk.msra.mxu1 %vm3801_vm2, %v13852_v49  ;;  %v2768_v29 = vmax.f32 %v2063_v4, %v2649_v42  ;;  %8688 = vmatprep.mubr.f32.mxu0 %v3078_v31  ;;  %v2065_v47 = vmax.f32 %v1360_v54, %v11494_v9  ;;  %v14092_v42 = vld [vmem:[#allocation96_spill] sm:$0xff]  ;;  %v14093_v4 = vld [vmem:[#allocation106_spill] sm:$0xff] }
 0x1c0   :  { %14087 = vst [vmem:[#allocation48_spill] sm:$0xff] %v11684_v25  ;;  %v8571_v12 = vpop.f32.mrf.mxu1  ;;  %8689 = vmatmul.mubr.f32.gmra.mxu0 %v3079_v38  ;;  %v1362_v56 = vmax.f32 %v14090_v41, %v14089_v61  ;;  %v14094_v31 = vmax.f32 %v14092_v42, %v14093_v4  ;;  %v3081_v9 = vmul.f32 %v11684_v25, %v11684_v25  ;;  %v14095_v41 = vld [vmem:[#allocation109_spill] sm:$0xff]  ;;  %v14098_v4 = vld [vmem:[#allocation108_spill] sm:$0xff]  ;;  %vm5058_vm8 = vcmp.eq.s32.totalorder %v11500_v37, 32 }
 0x1c1   :  { %14088 = vst [vmem:[#allocation61_spill] sm:$0xff] %v11686_v44  ;;  %v2771_v14 = vmax.f32 %v2066_v63, %v8571_v12  ;;  %v3080_v34 = vmul.f32 %v11686_v44, %v11686_v44  ;;  %v11697_v53 = vmax.f32 %v2840_v17, 0.0  ;;  %v2839_v22 = vadd.f32 %v11018_v57, %v2768_v29  ;;  %v14096_v44 = vld [vmem:[#allocation102_spill] sm:$0xff]  ;;  %8856 = vmatpush3.msk.msra.mxu0 %vm4432_vm9, %v13852_v49 }
 0x1c2   :  { %v2659_v58 = vpop.f32.mrf.mxu1  ;;  %v2068_v1 = vmax.f32 %v14094_v31, %v11528_v50  ;;  %v2067_v17 = vmax.f32 %v1362_v56, %v11570_v32  ;;  %v1364_v42 = vmax.f32 %v14096_v44, %v14095_v41  ;;  %v14097_v50 = vld [vmem:[#allocation100_spill] sm:$0xff]  ;;  %v9370_v41 = vld [vmem:[%s13507_s2] ss:$0 sm:$0xff]  ;;  %8857 = vmatprep.subr.msk.mxu0 %vm4431_vm10, %v13852_v49  ;;  %8965 = vmatprep.subr.msk.mxu1 %vm5062_vm3, %v13852_v49  ;;  %vm3917_vm9 = vcmp.ne.s32.totalorder %v3853_v2, 0 }
 0x1c3   :  { %14091 = vst [vmem:[#allocation63_spill] sm:$0xff] %v11697_v53  ;;  %v2842_v63 = vadd.f32 %v11018_v57, %v2771_v14  ;;  %v2770_v54 = vmax.f32 %v2065_v47, %v2659_v58  ;;  %8691 = vmatprep.mubr.f32.mxu0 %v3080_v34  ;;  %v11707_v38 = vmax.f32 %v2839_v22, 0.0  ;;  %v14099_v31 = vmax.f32 %v14097_v50, %v14098_v4  ;;  %v8479_v14 = vpop.f32.mrf.mxu0  ;;  %v14102_v22 = vld [vmem:[#allocation110_spill] sm:$0xff] }
 0x1c4   :  { %v8574_v12 = vpop.f32.mrf.mxu1  ;;  %8692 = vmatmul.mubr.f32.gmra.mxu0 %v3081_v9  ;;  %v3083_v58 = vmul.f32 %v11697_v53, %v11697_v53  ;;  %v14103_v9 = vld [vmem:[#allocation11_spill] sm:$0xff] }
 0x1c5   :  { %v2841_v29 = vadd.f32 %v11018_v57, %v2770_v54  ;;  %v2773_v61 = vmax.f32 %v2068_v1, %v8574_v12  ;;  %v2070_v25 = vmax.f32 %v14099_v31, %v11603_v23  ;;  %v3082_v32 = vmul.f32 %v11707_v38, %v11707_v38  ;;  %v1994_v31 = vpop.f32.mrf.mxu0  ;;  %8858 = vmatpush3.msk.msra.mxu0 %vm4431_vm10, %v13852_v49 }
 0x1c6   :  { %v2669_v47 = vpop.f32.mrf.mxu1  ;;  %v11721_v34 = vmax.f32 %v2842_v63, 0.0  ;;  %v1367_v54 = vmax.f32 %v14103_v9, %v14102_v22  ;;  %v2069_v12 = vmax.f32 %v1364_v42, %v11649_v43  ;;  %8859 = vmatprep.subr.msk.mxu0 %vm4430_vm11, %v13852_v49 }
 0x1c7   :  { %v11723_v1 = vmax.f32 %v2841_v29, 0.0  ;;  %v2844_v56 = vadd.f32 %v11018_v57, %v2773_v61  ;;  %v2772_v44 = vmax.f32 %v2067_v17, %v2669_v47  ;;  %8694 = vmatprep.mubr.f32.mxu0 %v3082_v32  ;;  %v14104_v29 = vld [vmem:[#allocation111_spill] sm:$0xff]  ;;  %v14105_v57 = vld [vmem:[#allocation13_spill] sm:$0xff]  ;;  %8860 = vmatpush3.msk.msra.mxu0 %vm4430_vm11, %v13852_v49  ;;  %vm5057_vm11 = vcmp.eq.s32.totalorder %v11517_v27, 32 }
 0x1c8   :  { %14100 = vst [vmem:[#allocation50_spill] sm:$0xff] %v11721_v34  ;;  %v8577_v23 = vpop.f32.mrf.mxu1  ;;  %8695 = vmatmul.mubr.f32.gmra.mxu0 %v3083_v58  ;;  %v1366_v17 = vmax.f32 %v14105_v57, %v14104_v29  ;;  %v2072_v61 = vmax.f32 %v1367_v54, %v8476_v48  ;;  %v3085_v43 = vmul.f32 %v11721_v34, %v11721_v34  ;;  %v14109_v58 = vld [vmem:[#allocation15_spill] sm:$0xff]  ;;  %v14111_v54 = vld [vmem:[#allocation17_spill] sm:$0xff] }
 0x1c9   :  { %14101 = vst [vmem:[#allocation67_spill] sm:$0xff] %v11723_v1  ;;  %v2843_v50 = vadd.f32 %v9370_v41, %v2772_v44  ;;  %v2775_v4 = vmax.f32 %v2070_v25, %v8577_v23  ;;  %v3084_v63 = vmul.f32 %v11723_v1, %v11723_v1  ;;  %v11736_v47 = vmax.f32 %v2844_v56, 0.0  ;;  %v14108_v25 = vld [vmem:[#allocation112_spill] sm:$0xff]  ;;  %v14110_v56 = vld [vmem:[#allocation113_spill] sm:$0xff]  ;;  %8861 = vmatprep.subr.msk.mxu0 %vm4429_vm12, %v13852_v49 }
 0x1ca   :  { %v2679_v32 = vpop.f32.mrf.mxu1  ;;  %v1369_v9 = vmax.f32 %v14109_v58, %v14108_v25  ;;  %v2071_v1 = vmax.f32 %v1366_v17, %v1984_v11  ;;  %v1368_v57 = vmax.f32 %v14111_v54, %v14110_v56  ;;  %v14115_v54 = vld [vmem:[#allocation20_spill] sm:$0xff]  ;;  %8862 = vmatpush3.msk.msra.mxu0 %vm4429_vm12, %v13852_v49  ;;  %vm5056_vm12 = vcmp.eq.s32.totalorder %v11538_v0, 32 }
 0x1cb   :  { %14106 = vst [vmem:[#allocation54_spill] sm:$0xff] %v11736_v47  ;;  %v11740_v42 = vmax.f32 %v2843_v50, 0.0  ;;  %v2846_v22 = vadd.f32 %v9370_v41, %v2775_v4  ;;  %v2774_v44 = vmax.f32 %v2069_v12, %v2679_v32  ;;  %8697 = vmatprep.mubr.f32.mxu0 %v3084_v63  ;;  %v8482_v50 = vpop.f32.mrf.mxu0  ;;  %v3087_v12 = vmul.f32 %v11736_v47, %v11736_v47 }
 0x1cc   :  { %v8580_v23 = vpop.f32.mrf.mxu1  ;;  %8698 = vmatmul.mubr.f32.gmra.mxu0 %v3085_v43  ;;  %v2074_v34 = vmax.f32 %v1369_v9, %v8479_v14  ;;  %v14113_v43 = vld [vmem:[#allocation18_spill] sm:$0xff]  ;;  %v2073_v58 = vmax.f32 %v1368_v57, %v1994_v31  ;;  %v14114_v9 = vld [vmem:[#allocation115_spill] sm:$0xff]  ;;  %8863 = vmatprep.subr.msk.mxu0 %vm4428_vm13, %v13852_v49 }
 0x1cd   :  { %14107 = vst [vmem:[#allocation52_spill] sm:$0xff] %v11740_v42  ;;  %v2845_v53 = vadd.f32 %v9370_v41, %v2774_v44  ;;  %v2777_v29 = vmax.f32 %v2072_v61, %v8580_v23  ;;  %v3086_v48 = vmul.f32 %v11740_v42, %v11740_v42  ;;  %v11750_v63 = vmax.f32 %v2846_v22, 0.0  ;;  %v14112_v61 = vld [vmem:[#allocation114_spill] sm:$0xff]  ;;  %8864 = vmatpush3.msk.msra.mxu0 %vm4428_vm13, %v13852_v49 }
 0x1ce   :  { %v2689_v4 = vpop.f32.mrf.mxu1  ;;  %v1371_v44 = vmax.f32 %v14113_v43, %v14112_v61  ;;  %v1370_v22 = vmax.f32 %v14115_v54, %v14114_v9  ;;  %8865 = vmatprep.subr.msk.mxu0 %vm4427_vm14, %v13852_v49 }
 0x1cf   :  { %v11752_v32 = vmax.f32 %v2845_v53, 0.0  ;;  %v2848_v11 = vadd.f32 %v9370_v41, %v2777_v29  ;;  %v2776_v17 = vmax.f32 %v2071_v1, %v2689_v4  ;;  %8700 = vmatprep.mubr.f32.mxu0 %v3086_v48  ;;  %v2004_v53 = vpop.f32.mrf.mxu0  ;;  %v3089_v29 = vmul.f32 %v11750_v63, %v11750_v63  ;;  %8866 = vmatpush3.msk.msra.mxu0 %vm4427_vm14, %v13852_v49 }
 0x1d0   :  { %v8583_v25 = vpop.f32.mrf.mxu1  ;;  %8701 = vmatmul.mubr.f32.gmra.mxu0 %v3087_v12  ;;  %v2076_v47 = vmax.f32 %v1371_v44, %v8482_v50  ;;  %v2075_v12 = vmax.f32 %v1370_v22, %v2004_v53 }
 0x1d1   :  { %v2847_v23 = vadd.f32 %v9370_v41, %v2776_v17  ;;  %v2779_v56 = vmax.f32 %v2074_v34, %v8583_v25  ;;  %v3088_v14 = vmul.f32 %v11752_v32, %v11752_v32  ;;  %v11760_v42 = vmax.f32 %v2848_v11, 0.0 }
 0x1d2   :  { %v2699_v1 = vpop.f32.mrf.mxu1 }
 0x1d3   :  { %v11764_v48 = vmax.f32 %v2847_v23, 0.0  ;;  %v2850_v31 = vadd.f32 %v9370_v41, %v2779_v56  ;;  %v2778_v57 = vmax.f32 %v2073_v58, %v2699_v1  ;;  %8703 = vmatprep.mubr.f32.mxu0 %v3088_v14  ;;  %v3091_v11 = vmul.f32 %v11760_v42, %v11760_v42 }
 0x1d4   :  { %v8586_v34 = vpop.f32.mrf.mxu1  ;;  %8704 = vmatmul.mubr.f32.gmra.mxu0 %v3089_v29 }
 0x1d5   :  { %v2849_v4 = vadd.f32 %v9370_v41, %v2778_v57  ;;  %v2781_v17 = vmax.f32 %v2076_v47, %v8586_v34  ;;  %v3090_v50 = vmul.f32 %v11764_v48, %v11764_v48  ;;  %v11770_v43 = vmax.f32 %v2850_v31, 0.0 }
 0x1d6   :  { %v2709_v61 = vpop.f32.mrf.mxu1 }
 0x1d7   :  { %v11772_v44 = vmax.f32 %v2849_v4, 0.0  ;;  %v2852_v25 = vadd.f32 %v9370_v41, %v2781_v17  ;;  %v2780_v23 = vmax.f32 %v2075_v12, %v2709_v61  ;;  %8706 = vmatprep.mubr.f32.mxu0 %v3090_v50  ;;  %v3093_v56 = vmul.f32 %v11770_v43, %v11770_v43 }
 0x1d8   :  { %8707 = vmatmul.mubr.f32.gmra.mxu0 %v3091_v11 }
 0x1d9   :  { %v2851_v58 = vadd.f32 %v9370_v41, %v2780_v23  ;;  %v3092_v47 = vmul.f32 %v11772_v44, %v11772_v44  ;;  %v11778_v14 = vmax.f32 %v2852_v25, 0.0 }
 0x1db   :  { %v11780_v9 = vmax.f32 %v2851_v58, 0.0  ;;  %8709 = vmatprep.mubr.f32.mxu0 %v3092_v47  ;;  %v3095_v22 = vmul.f32 %v11778_v14, %v11778_v14 }
 0x1dc   :  { %8710 = vmatmul.mubr.f32.gmra.mxu0 %v3093_v56 }
 0x1dd   :  { %v3094_v54 = vmul.f32 %v11780_v9, %v11780_v9 }
 0x1df   :  { %8712 = vmatprep.mubr.f32.mxu0 %v3094_v54 }
 0x1e0   :  { %8713 = vmatmul.mubr.f32.gmra.mxu0 %v3095_v22 }
 0x223   :  { %v8621_v41 = vpop.f32.mrf.mxu0 }
 0x224   :  { %v3482_v53 = vmul.f32 0.15, %v8621_v41 }
 0x225   :  { %v3162_v1 = vpop.f32.mrf.mxu0 }
 0x226   :  { %v3546_v29 = vadd.f32 0.0001, %v3482_v53  ;;  %v3481_v31 = vmul.f32 0.15, %v3162_v1 }
 0x227   :  { %v8624_v34 = vpop.f32.mrf.mxu0 }
 0x228   :  { %v3545_v57 = vadd.f32 0.0001, %v3481_v31  ;;  %9238 = vrcp.f32 %v3546_v29  ;;  %v3484_v12 = vmul.f32 0.15, %v8624_v34 }
 0x229   :  { %v3172_v4 = vpop.f32.mrf.mxu0 }
 0x22a   :  { %9240 = vrcp.f32 %v3545_v57  ;;  %v3548_v17 = vadd.f32 0.0001, %v3484_v12  ;;  %v3483_v50 = vmul.f32 0.15, %v3172_v4 }
 0x22b   :  { %v8627_v11 = vpop.f32.mrf.mxu0 }
 0x22c   :  { %v3547_v61 = vadd.f32 0.0001, %v3483_v50  ;;  %v3486_v25 = vmul.f32 0.15, %v8627_v11  ;;  %9242 = vrcp.f32 %v3548_v17 }
 0x22d   :  { %v3182_v23 = vpop.f32.mrf.mxu0 }
 0x22e   :  { %9244 = vrcp.f32 %v3547_v61  ;;  %v3550_v58 = vadd.f32 0.0001, %v3486_v25  ;;  %v3485_v47 = vmul.f32 0.15, %v3182_v23 }
 0x22f   :  { %v8630_v56 = vpop.f32.mrf.mxu0 }
 0x230   :  { %v3549_v54 = vadd.f32 0.0001, %v3485_v47  ;;  %v3488_v22 = vmul.f32 0.15, %v8630_v56  ;;  %9246 = vrcp.f32 %v3550_v58 }
 0x231   :  { %v3192_v41 = vpop.f32.mrf.mxu0 }
 0x232   :  { %9248 = vrcp.f32 %v3549_v54  ;;  %v3552_v53 = vadd.f32 0.0001, %v3488_v22  ;;  %v3487_v1 = vmul.f32 0.15, %v3192_v41 }
 0x233   :  { %v8633_v29 = vpop.f32.mrf.mxu0 }
 0x234   :  { %v3551_v31 = vadd.f32 0.0001, %v3487_v1  ;;  %v3490_v57 = vmul.f32 0.15, %v8633_v29  ;;  %9250 = vrcp.f32 %v3552_v53 }
 0x235   :  { %v9239_v34 = vpop.eup %9238  ;;  %v3202_v12 = vpop.f32.mrf.mxu0 }
 0x236   :  { %9252 = vrcp.f32 %v3551_v31  ;;  %v3554_v17 = vadd.f32 0.0001, %v3490_v57  ;;  %v3489_v50 = vmul.f32 0.15, %v3202_v12  ;;  %v11792_v25 = vmul.f32 %v9239_v34, %v11031_v36 }
 0x237   :  { %v9241_v4 = vpop.eup %9240  ;;  %v8636_v11 = vpop.f32.mrf.mxu0 }
 0x238   :  { %v11787_v61 = vmul.f32 %v9241_v4, %v11042_v46  ;;  %v3553_v23 = vadd.f32 0.0001, %v3489_v50  ;;  %v3492_v58 = vmul.f32 0.15, %v8636_v11  ;;  %9254 = vrcp.f32 %v3554_v17 }
 0x239   :  { %v3212_v47 = vpop.f32.mrf.mxu0  ;;  %v9243_v46 = vpop.eup %9242 }
 0x23a   :  { %8745 = vmatprep.mubr.f32.mxu1 %v11787_v61  ;;  %9256 = vrcp.f32 %v3553_v23  ;;  %v3556_v30 = vadd.f32 0.0001, %v3492_v58  ;;  %v3491_v56 = vmul.f32 0.15, %v3212_v47  ;;  %v11813_v29 = vmul.f32 %v9243_v46, %v11070_v6 }
 0x23b   :  { %8746 = vmatmul.mubr.f32.vlgmr.msra.gmra.mxu1 %v11792_v25  ;;  %v9245_v36 = vpop.eup %9244  ;;  %v8639_v54 = vpop.f32.mrf.mxu0 }
 0x23c   :  { %v3555_v22 = vadd.f32 0.0001, %v3491_v56  ;;  %v3494_v41 = vmul.f32 0.15, %v8639_v54  ;;  %v11807_v53 = vmul.f32 %v9245_v36, %v11073_v13  ;;  %9258 = vrcp.f32 %v3556_v30  ;;  %8966 = vmatpush3.msk.msra.mxu1 %vm5062_vm3, %v13852_v49 }
 0x23d   :  { %v3222_v1 = vpop.f32.mrf.mxu0  ;;  %v9247_v26 = vpop.eup %9246  ;;  %8967 = vmatprep.subr.msk.mxu1 %vm5061_vm0, %v13852_v49 }
 0x23e   :  { %9260 = vrcp.f32 %v3555_v22  ;;  %v3558_v31 = vadd.f32 0.0001, %v3494_v41  ;;  %v3493_v13 = vmul.f32 0.15, %v3222_v1  ;;  %8748 = vmatprep.mubr.f32.mxu1 %v11807_v53  ;;  %v11835_v50 = vmul.f32 %v9247_v26, %v11086_v24  ;;  %8968 = vmatpush3.msk.msra.mxu1 %vm5061_vm0, %v13852_v49 }
 0x23f   :  { %v9249_v57 = vpop.eup %9248  ;;  %v8642_v34 = vpop.f32.mrf.mxu0  ;;  %8749 = vmatmul.mubr.f32.gmra.mxu1 %v11813_v29  ;;  %8969 = vmatprep.subr.msk.mxu1 %vm5060_vm4, %v13852_v49  ;;  %vm5053_vm0 = vcmp.eq.s32.totalorder %v11596_v20, 32 }
 0x240   :  { %v3557_v6 = vadd.f32 0.0001, %v3493_v13  ;;  %v3496_v12 = vmul.f32 0.15, %v8642_v34  ;;  %v11829_v4 = vmul.f32 %v9249_v57, %v11100_v19  ;;  %9262 = vrcp.f32 %v3558_v31  ;;  %8970 = vmatpush3.msk.msra.mxu1 %vm5060_vm4, %v13852_v49 }
 0x241   :  { %v3232_v17 = vpop.f32.mrf.mxu0  ;;  %v9251_v11 = vpop.eup %9250  ;;  %8971 = vmatprep.subr.msk.mxu1 %vm5059_vm7, %v13852_v49 }
 0x242   :  { %9264 = vrcp.f32 %v3557_v6  ;;  %v3560_v23 = vadd.f32 0.0001, %v3496_v12  ;;  %v3495_v19 = vmul.f32 0.15, %v3232_v17  ;;  %8751 = vmatprep.mubr.f32.mxu1 %v11829_v4  ;;  %v11857_v36 = vmul.f32 %v9251_v11, %v11137_v33  ;;  %8972 = vmatpush3.msk.msra.mxu1 %vm5059_vm7, %v13852_v49 }
 0x243   :  { %v9253_v58 = vpop.eup %9252  ;;  %v8645_v47 = vpop.f32.mrf.mxu0  ;;  %8752 = vmatmul.mubr.f32.gmra.mxu1 %v11835_v50  ;;  %8973 = vmatprep.subr.msk.mxu1 %vm5058_vm8, %v13852_v49 }
 0x244   :  { %v3559_v24 = vadd.f32 0.0001, %v3495_v19  ;;  %v3498_v46 = vmul.f32 0.15, %v8645_v47  ;;  %v11851_v30 = vmul.f32 %v9253_v58, %v11143_v45  ;;  %9266 = vrcp.f32 %v3560_v23  ;;  %8974 = vmatpush3.msk.msra.mxu1 %vm5058_vm8, %v13852_v49 }
 0x245   :  { %v3242_v56 = vpop.f32.mrf.mxu0  ;;  %v9255_v54 = vpop.eup %9254  ;;  %8975 = vmatprep.subr.msk.mxu1 %vm5057_vm11, %v13852_v49 }
 0x246   :  { %9268 = vrcp.f32 %v3559_v24  ;;  %v3562_v22 = vadd.f32 0.0001, %v3498_v46  ;;  %v3497_v45 = vmul.f32 0.15, %v3242_v56  ;;  %8754 = vmatprep.mubr.f32.mxu1 %v11851_v30  ;;  %v11879_v57 = vmul.f32 %v9255_v54, %v11170_v55  ;;  %8976 = vmatpush3.msk.msra.mxu1 %vm5057_vm11, %v13852_v49 }
 0x247   :  { %v9257_v41 = vpop.eup %9256  ;;  %v8648_v1 = vpop.f32.mrf.mxu0  ;;  %8755 = vmatmul.mubr.f32.gmra.mxu1 %v11857_v36  ;;  %8977 = vmatprep.subr.msk.mxu1 %vm5056_vm12, %v13852_v49 }
 0x248   :  { %v3561_v33 = vadd.f32 0.0001, %v3497_v45  ;;  %v3500_v26 = vmul.f32 0.15, %v8648_v1  ;;  %v11873_v31 = vmul.f32 %v9257_v41, %v11172_v60  ;;  %9270 = vrcp.f32 %v3562_v22  ;;  %8978 = vmatpush3.msk.msra.mxu1 %vm5056_vm12, %v13852_v49 }
 0x249   :  { %v3252_v13 = vpop.f32.mrf.mxu0  ;;  %v9259_v34 = vpop.eup %9258 }
 0x24a   :  { %9272 = vrcp.f32 %v3561_v33  ;;  %v3564_v6 = vadd.f32 0.0001, %v3500_v26  ;;  %v3499_v60 = vmul.f32 0.15, %v3252_v13  ;;  %8757 = vmatprep.mubr.f32.mxu1 %v11873_v31  ;;  %v11901_v58 = vmul.f32 %v9259_v34, %v11192_v18 }
 0x24b   :  { %v9261_v12 = vpop.eup %9260  ;;  %v8651_v17 = vpop.f32.mrf.mxu0  ;;  %8758 = vmatmul.mubr.f32.gmra.mxu1 %v11879_v57 }
 0x24c   :  { %v3563_v55 = vadd.f32 0.0001, %v3499_v60  ;;  %v3502_v11 = vmul.f32 0.15, %v8651_v17  ;;  %v11895_v23 = vmul.f32 %v9261_v12, %v11197_v39  ;;  %9274 = vrcp.f32 %v3564_v6 }
 0x24d   :  { %v3262_v19 = vpop.f32.mrf.mxu0  ;;  %v9263_v47 = vpop.eup %9262 }
 0x24e   :  { %9276 = vrcp.f32 %v3563_v55  ;;  %v3566_v24 = vadd.f32 0.0001, %v3502_v11  ;;  %v3501_v46 = vmul.f32 0.15, %v3262_v19  ;;  %8760 = vmatprep.mubr.f32.mxu1 %v11895_v23  ;;  %v11918_v41 = vmul.f32 %v9263_v47, %v11215_v35 }
 0x24f   :  { %v9265_v39 = vpop.eup %9264  ;;  %v8654_v56 = vpop.f32.mrf.mxu0  ;;  %8761 = vmatmul.mubr.f32.gmra.mxu1 %v11901_v58 }
 0x250   :  { %v3565_v18 = vadd.f32 0.0001, %v3501_v46  ;;  %v3504_v54 = vmul.f32 0.15, %v8654_v56  ;;  %v11915_v22 = vmul.f32 %v9265_v39, %v11217_v59  ;;  %9278 = vrcp.f32 %v3566_v24 }
 0x251   :  { %v3272_v45 = vpop.f32.mrf.mxu0  ;;  %v9267_v1 = vpop.eup %9266 }
 0x252   :  { %9280 = vrcp.f32 %v3565_v18  ;;  %v3568_v33 = vadd.f32 0.0001, %v3504_v54  ;;  %v3503_v26 = vmul.f32 0.15, %v3272_v45  ;;  %8763 = vmatprep.mubr.f32.mxu1 %v11915_v22  ;;  %v11926_v35 = vmul.f32 %v9267_v1, %v11234_v5 }
 0x253   :  { %v9269_v13 = vpop.eup %9268  ;;  %v8657_v34 = vpop.f32.mrf.mxu0  ;;  %8764 = vmatmul.mubr.f32.gmra.mxu1 %v11918_v41 }
 0x254   :  { %v3567_v6 = vadd.f32 0.0001, %v3503_v26  ;;  %v3506_v60 = vmul.f32 0.15, %v8657_v34  ;;  %v11923_v59 = vmul.f32 %v9269_v13, %v11239_v21  ;;  %9282 = vrcp.f32 %v3568_v33 }
 0x255   :  { %v3282_v12 = vpop.f32.mrf.mxu0  ;;  %v9271_v17 = vpop.eup %9270 }
 0x256   :  { %9284 = vrcp.f32 %v3567_v6  ;;  %v3570_v55 = vadd.f32 0.0001, %v3506_v60  ;;  %v3505_v11 = vmul.f32 0.15, %v3282_v12  ;;  %8766 = vmatprep.mubr.f32.mxu1 %v11923_v59  ;;  %v11934_v5 = vmul.f32 %v9271_v17, %v11257_v52 }
 0x257   :  { %v9273_v19 = vpop.eup %9272  ;;  %v8660_v47 = vpop.f32.mrf.mxu0  ;;  %8767 = vmatmul.mubr.f32.gmra.mxu1 %v11926_v35 }
 0x258   :  { %v3569_v24 = vadd.f32 0.0001, %v3505_v11  ;;  %v3508_v46 = vmul.f32 0.15, %v8660_v47  ;;  %v11931_v21 = vmul.f32 %v9273_v19, %v11259_v40  ;;  %9286 = vrcp.f32 %v3570_v55  ;;  %v14116_v47 = vld [vmem:[#allocation25_spill] sm:$0xff] }
 0x259   :  { %v3292_v39 = vpop.f32.mrf.mxu0  ;;  %v9275_v56 = vpop.eup %9274 }
 0x25a   :  { %9288 = vrcp.f32 %v3569_v24  ;;  %v3572_v18 = vadd.f32 0.0001, %v3508_v46  ;;  %v3507_v54 = vmul.f32 0.15, %v3292_v39  ;;  %8769 = vmatprep.mubr.f32.mxu1 %v11931_v21  ;;  %v11942_v52 = vmul.f32 %v9275_v56, %v11276_v16 }
 0x25b   :  { %v9277_v45 = vpop.eup %9276  ;;  %v8663_v1 = vpop.f32.mrf.mxu0  ;;  %8770 = vmatmul.mubr.f32.gmra.mxu1 %v11934_v5 }
 0x25c   :  { %v3571_v33 = vadd.f32 0.0001, %v3507_v54  ;;  %v3510_v26 = vmul.f32 0.15, %v8663_v1  ;;  %v11939_v40 = vmul.f32 %v9277_v45, %v11281_v62  ;;  %9290 = vrcp.f32 %v3572_v18  ;;  %v14117_v1 = vld [vmem:[#allocation27_spill] sm:$0xff] }
 0x25d   :  { %v3302_v13 = vpop.f32.mrf.mxu0  ;;  %v9279_v34 = vpop.eup %9278 }
 0x25e   :  { %9292 = vrcp.f32 %v3571_v33  ;;  %v3574_v6 = vadd.f32 0.0001, %v3510_v26  ;;  %v3509_v60 = vmul.f32 0.15, %v3302_v13  ;;  %8772 = vmatprep.mubr.f32.mxu1 %v11939_v40  ;;  %v11950_v16 = vmul.f32 %v9279_v34, %v14116_v47  ;;  %v14118_v26 = vld [vmem:[#allocation35_spill] sm:$0xff] }
 0x25f   :  { %v9281_v12 = vpop.eup %9280  ;;  %v8666_v17 = vpop.f32.mrf.mxu0  ;;  %8773 = vmatmul.mubr.f32.gmra.mxu1 %v11942_v52 }
 0x260   :  { %v3573_v55 = vadd.f32 0.0001, %v3509_v60  ;;  %v3512_v11 = vmul.f32 0.15, %v8666_v17  ;;  %v11947_v62 = vmul.f32 %v9281_v12, %v11301_v10  ;;  %9294 = vrcp.f32 %v3574_v6 }
 0x261   :  { %v3312_v19 = vpop.f32.mrf.mxu0  ;;  %v9283_v24 = vpop.eup %9282 }
 0x262   :  { %9296 = vrcp.f32 %v3573_v55  ;;  %v3576_v46 = vadd.f32 0.0001, %v3512_v11  ;;  %v3511_v39 = vmul.f32 0.15, %v3312_v19  ;;  %8775 = vmatprep.mubr.f32.mxu1 %v11947_v62  ;;  %v11958_v13 = vmul.f32 %v9283_v24, %v14118_v26  ;;  %v14119_v19 = vld [vmem:[#allocation33_spill] sm:$0xff] }
 0x263   :  { %v9285_v56 = vpop.eup %9284  ;;  %v8669_v18 = vpop.f32.mrf.mxu0  ;;  %8776 = vmatmul.mubr.f32.gmra.mxu1 %v11950_v16 }
 0x264   :  { %v3575_v54 = vadd.f32 0.0001, %v3511_v39  ;;  %v3514_v45 = vmul.f32 0.15, %v8669_v18  ;;  %v11955_v10 = vmul.f32 %v9285_v56, %v14117_v1  ;;  %9298 = vrcp.f32 %v3576_v46  ;;  %v14120_v39 = vld [vmem:[#allocation26_spill] sm:$0xff] }
 0x265   :  { %v3322_v33 = vpop.f32.mrf.mxu0  ;;  %v9287_v34 = vpop.eup %9286 }
 0x266   :  { %9300 = vrcp.f32 %v3575_v54  ;;  %v3578_v6 = vadd.f32 0.0001, %v3514_v45  ;;  %v3513_v60 = vmul.f32 0.15, %v3322_v33  ;;  %8778 = vmatprep.mubr.f32.mxu1 %v11955_v10  ;;  %v11966_v24 = vmul.f32 %v9287_v34, %v14120_v39 }
 0x267   :  { %v9289_v12 = vpop.eup %9288  ;;  %v8672_v17 = vpop.f32.mrf.mxu0  ;;  %8779 = vmatmul.mubr.f32.gmra.mxu1 %v11958_v13 }
 0x268   :  { %v3577_v55 = vadd.f32 0.0001, %v3513_v60  ;;  %v3516_v11 = vmul.f32 0.15, %v8672_v17  ;;  %v11963_v47 = vmul.f32 %v9289_v12, %v14119_v19  ;;  %9302 = vrcp.f32 %v3578_v6  ;;  %14121 = vst [vmem:[#allocation65_spill] sm:$0xff] %v11966_v24  ;;  %v14122_v60 = vld [vmem:[#allocation37_spill] sm:$0xff] }
 0x269   :  { %v3332_v46 = vpop.f32.mrf.mxu0  ;;  %v9291_v56 = vpop.eup %9290  ;;  %v14124_v17 = vld [vmem:[#allocation28_spill] sm:$0xff] }
 0x26a   :  { %9304 = vrcp.f32 %v3577_v55  ;;  %v3580_v18 = vadd.f32 0.0001, %v3516_v11  ;;  %v3515_v54 = vmul.f32 0.15, %v3332_v46  ;;  %8781 = vmatprep.mubr.f32.mxu1 %v11963_v47  ;;  %v11974_v34 = vmul.f32 %v9291_v56, %v14124_v17 }
 0x26b   :  { %v9293_v45 = vpop.eup %9292  ;;  %v8675_v1 = vpop.f32.mrf.mxu0  ;;  %8782 = vmatmul.mubr.f32.gmra.mxu1 %v11966_v24  ;;  %v14126_v24 = vld [vmem:[#allocation29_spill] sm:$0xff] }
 0x26c   :  { %v3579_v33 = vadd.f32 0.0001, %v3515_v54  ;;  %v3518_v26 = vmul.f32 0.15, %v8675_v1  ;;  %v11971_v12 = vmul.f32 %v9293_v45, %v14122_v60  ;;  %9306 = vrcp.f32 %v3580_v18  ;;  %14125 = vst [vmem:[#allocation69_spill] sm:$0xff] %v11974_v34  ;;  %v14128_v60 = vld [vmem:[#allocation39_spill] sm:$0xff] }
 0x26d   :  { %v3342_v6 = vpop.f32.mrf.mxu0  ;;  %v9295_v19 = vpop.eup %9294 }
 0x26e   :  { %14123 = vst [vmem:[#allocation56_spill] sm:$0xff] %v11971_v12  ;;  %9308 = vrcp.f32 %v3579_v33  ;;  %v3582_v55 = vadd.f32 0.0001, %v3518_v26  ;;  %v3517_v11 = vmul.f32 0.15, %v3342_v6  ;;  %8784 = vmatprep.mubr.f32.mxu1 %v11971_v12  ;;  %v11982_v56 = vmul.f32 %v9295_v19, %v14128_v60 }
 0x26f   :  { %v9297_v46 = vpop.eup %9296  ;;  %v8678_v39 = vpop.f32.mrf.mxu0  ;;  %8785 = vmatmul.mubr.f32.gmra.mxu1 %v11974_v34  ;;  %v14130_v34 = vld [vmem:[#allocation31_spill] sm:$0xff] }
 0x270   :  { %v3581_v54 = vadd.f32 0.0001, %v3517_v11  ;;  %v3520_v1 = vmul.f32 0.15, %v8678_v39  ;;  %v11979_v45 = vmul.f32 %v9297_v46, %v14126_v24  ;;  %9310 = vrcp.f32 %v3582_v55  ;;  %14129 = vst [vmem:[#allocation58_spill] sm:$0xff] %v11982_v56  ;;  %v14132_v46 = vld [vmem:[#allocation43_spill] sm:$0xff] }
 0x271   :  { %v3352_v18 = vpop.f32.mrf.mxu0  ;;  %v9299_v17 = vpop.eup %9298 }
 0x272   :  { %14127 = vst [vmem:[#allocation71_spill] sm:$0xff] %v11979_v45  ;;  %9312 = vrcp.f32 %v3581_v54  ;;  %v3584_v33 = vadd.f32 0.0001, %v3520_v1  ;;  %v3519_v26 = vmul.f32 0.15, %v3352_v18  ;;  %8787 = vmatprep.mubr.f32.mxu1 %v11979_v45  ;;  %v11990_v19 = vmul.f32 %v9299_v17, %v14132_v46 }
 0x273   :  { %v9301_v6 = vpop.eup %9300  ;;  %v8681_v12 = vpop.f32.mrf.mxu0  ;;  %8788 = vmatmul.mubr.f32.gmra.mxu1 %v11982_v56  ;;  %v14133_v56 = vld [vmem:[#allocation41_spill] sm:$0xff] }
 0x274   :  { %v3583_v11 = vadd.f32 0.0001, %v3519_v26  ;;  %v3522_v39 = vmul.f32 0.15, %v8681_v12  ;;  %v11987_v24 = vmul.f32 %v9301_v6, %v14130_v34  ;;  %9314 = vrcp.f32 %v3584_v33  ;;  %v14135_v6 = vld [vmem:[#allocation30_spill] sm:$0xff] }
 0x275   :  { %v3362_v55 = vpop.f32.mrf.mxu0  ;;  %v9303_v60 = vpop.eup %9302 }
 0x276   :  { %14131 = vst [vmem:[#allocation75_spill] sm:$0xff] %v11987_v24  ;;  %9316 = vrcp.f32 %v3583_v11  ;;  %v3586_v54 = vadd.f32 0.0001, %v3522_v39  ;;  %v3521_v1 = vmul.f32 0.15, %v3362_v55  ;;  %8790 = vmatprep.mubr.f32.mxu1 %v11987_v24  ;;  %v11998_v17 = vmul.f32 %v9303_v60, %v14135_v6 }
 0x277   :  { %v9305_v18 = vpop.eup %9304  ;;  %8791 = vmatmul.mubr.f32.gmra.mxu1 %v11990_v19 }
 0x278   :  { %v8684_v45 = vpop.f32.mrf.mxu0  ;;  %v3585_v26 = vadd.f32 0.0001, %v3521_v1  ;;  %v11995_v34 = vmul.f32 %v9305_v18, %v14133_v56  ;;  %9318 = vrcp.f32 %v3586_v54  ;;  %14136 = vst [vmem:[#allocation60_spill] sm:$0xff] %v11998_v17  ;;  %v14137_v1 = vld [vmem:[#allocation45_spill] sm:$0xff]  ;;  %v14139_v18 = vld [vmem:[#allocation32_spill] sm:$0xff] }
 0x279   :  { %v3524_v12 = vmul.f32 0.15, %v8684_v45  ;;  %v9307_v46 = vpop.eup %9306 }
 0x27a   :  { %14134 = vst [vmem:[#allocation62_spill] sm:$0xff] %v11995_v34  ;;  %v3372_v33 = vpop.f32.mrf.mxu0  ;;  %9320 = vrcp.f32 %v3585_v26  ;;  %8793 = vmatprep.mubr.f32.mxu1 %v11995_v34  ;;  %v12008_v26 = vmul.f32 %v9307_v46, %v14139_v18  ;;  %v14146_v34 = vld [vmem:[#allocation38_spill] sm:$0xff] }
 0x27b   :  { %v3588_v11 = vadd.f32 0.0001, %v3524_v12  ;;  %v3523_v39 = vmul.f32 0.15, %v3372_v33  ;;  %v9309_v55 = vpop.eup %9308  ;;  %8794 = vmatmul.mubr.f32.gmra.mxu1 %v11998_v17  ;;  %v14141_v12 = vld [vmem:[#allocation46_spill] sm:$0xff] }
 0x27c   :  { %v8687_v24 = vpop.f32.mrf.mxu0  ;;  %v12004_v54 = vmul.f32 %v9309_v55, %v14137_v1  ;;  %14140 = vst [vmem:[#allocation64_spill] sm:$0xff] %v12008_v26  ;;  %vm4426_vm15 = vcmp.eq.s32.totalorder %v14141_v12, 16  ;;  %v14142_v55 = vld [vmem:[#allocation34_spill] sm:$0xff] }
 0x27d   :  { %v3587_v45 = vadd.f32 0.0001, %v3523_v39  ;;  %v3526_v56 = vmul.f32 0.15, %v8687_v24  ;;  %9322 = vrcp.f32 %v3588_v11  ;;  %v9311_v33 = vpop.eup %9310  ;;  %8867 = vmatprep.subr.msk.mxu0 %vm4426_vm15, %v13852_v49 }
 0x27e   :  { %14138 = vst [vmem:[#allocation73_spill] sm:$0xff] %v12004_v54  ;;  %v3382_v60 = vpop.f32.mrf.mxu0  ;;  %8796 = vmatprep.mubr.f32.mxu1 %v12004_v54  ;;  %8868 = vmatpush3.msk.msra.mxu0 %vm4426_vm15, %v13852_v49  ;;  %vm5055_vm15 = vcmp.eq.s32.totalorder %v11558_v3, 32 }
 0x27f   :  { %9324 = vrcp.f32 %v3587_v45  ;;  %v3590_v6 = vadd.f32 0.0001, %v3526_v56  ;;  %v3525_v15 = vmul.f32 0.15, %v3382_v60  ;;  %v9313_v24 = vpop.eup %9312  ;;  %8797 = vmatmul.mubr.f32.gmra.mxu1 %v12008_v26  ;;  %v14144_v45 = vld [vmem:[#allocation47_spill] sm:$0xff]  ;;  %8979 = vmatprep.subr.msk.mxu1 %vm5055_vm15, %v13852_v49 }
 0x280   :  { %v8690_v39 = vpop.f32.mrf.mxu0  ;;  %v12017_v1 = vmul.f32 %v9313_v24, %v14142_v55  ;;  %v12020_v56 = vmul.f32 %v9311_v33, %v14144_v45  ;;  %v14148_v55 = vld [vmem:[#allocation51_spill] sm:$0xff]  ;;  %8980 = vmatpush3.msk.msra.mxu1 %vm5055_vm15, %v13852_v49 }
 0x281   :  { %v3589_v46 = vadd.f32 0.0001, %v3525_v15  ;;  %v3528_v11 = vmul.f32 0.15, %v8690_v39  ;;  %9326 = vrcp.f32 %v3590_v6  ;;  %v9315_v60 = vpop.eup %9314 }
 0x282   :  { %14143 = vst [vmem:[#allocation77_spill] sm:$0xff] %v12017_v1  ;;  %v3392_v18 = vpop.f32.mrf.mxu0  ;;  %14145 = vst [vmem:[#allocation79_spill] sm:$0xff] %v12020_v56  ;;  %8799 = vmatprep.mubr.f32.mxu1 %v12017_v1  ;;  %v12028_v33 = vmul.f32 %v9315_v60, %v14148_v55 }
 0x283   :  { %9328 = vrcp.f32 %v3589_v46  ;;  %v3592_v54 = vadd.f32 0.0001, %v3528_v11  ;;  %v3527_v12 = vmul.f32 0.15, %v3392_v18  ;;  %v9317_v17 = vpop.eup %9316  ;;  %8800 = vmatmul.mubr.f32.gmra.mxu1 %v12020_v56  ;;  %v14150_v56 = vld [vmem:[#allocation49_spill] sm:$0xff] }
 0x284   :  { %v8693_v26 = vpop.f32.mrf.mxu0  ;;  %v12025_v24 = vmul.f32 %v9317_v17, %v14146_v34  ;;  %14149 = vst [vmem:[#allocation83_spill] sm:$0xff] %v12028_v33 }
 0x285   :  { %v3591_v15 = vadd.f32 0.0001, %v3527_v12  ;;  %v3530_v39 = vmul.f32 0.15, %v8693_v26  ;;  %9330 = vrcp.f32 %v3592_v54  ;;  %v9319_v45 = vpop.eup %9318  ;;  %v14152_v54 = vld [vmem:[#allocation36_spill] sm:$0xff] }
 0x286   :  { %14147 = vst [vmem:[#allocation66_spill] sm:$0xff] %v12025_v24  ;;  %v3402_v6 = vpop.f32.mrf.mxu0  ;;  %8802 = vmatprep.mubr.f32.mxu1 %v12025_v24  ;;  %v12036_v60 = vmul.f32 %v9319_v45, %v14152_v54 }
 0x287   :  { %9332 = vrcp.f32 %v3591_v15  ;;  %v3594_v46 = vadd.f32 0.0001, %v3530_v39  ;;  %v3529_v11 = vmul.f32 0.15, %v3402_v6  ;;  %v9321_v18 = vpop.eup %9320  ;;  %8803 = vmatmul.mubr.f32.gmra.mxu1 %v12028_v33  ;;  %v14154_v33 = vld [vmem:[#allocation53_spill] sm:$0xff] }
 0x288   :  { %v8696_v1 = vpop.f32.mrf.mxu0  ;;  %v12033_v34 = vmul.f32 %v9321_v18, %v14150_v56  ;;  %14153 = vst [vmem:[#allocation68_spill] sm:$0xff] %v12036_v60  ;;  %v14156_v18 = vld [vmem:[#allocation40_spill] sm:$0xff] }
 0x289   :  { %v3593_v12 = vadd.f32 0.0001, %v3529_v11  ;;  %v3532_v26 = vmul.f32 0.15, %v8696_v1  ;;  %9334 = vrcp.f32 %v3594_v46 }
 0x28a   :  { %14151 = vst [vmem:[#allocation70_spill] sm:$0xff] %v12033_v34  ;;  %v3412_v17 = vpop.f32.mrf.mxu0  ;;  %v9323_v55 = vpop.eup %9322  ;;  %8805 = vmatprep.mubr.f32.mxu1 %v12033_v34 }
 0x28b   :  { %9336 = vrcp.f32 %v3593_v12  ;;  %v3596_v15 = vadd.f32 0.0001, %v3532_v26  ;;  %v3531_v39 = vmul.f32 0.15, %v3412_v17  ;;  %8806 = vmatmul.mubr.f32.gmra.mxu1 %v12036_v60  ;;  %v12044_v45 = vmul.f32 %v9323_v55, %v14156_v18  ;;  %v14158_v60 = vld [vmem:[#allocation59_spill] sm:$0xff] }
 0x28c   :  { %v9325_v6 = vpop.eup %9324  ;;  %v8699_v24 = vpop.f32.mrf.mxu0 }
 0x28d   :  { %v3595_v11 = vadd.f32 0.0001, %v3531_v39  ;;  %v3534_v1 = vmul.f32 0.15, %v8699_v24  ;;  %v12041_v56 = vmul.f32 %v9325_v6, %v14154_v33  ;;  %9338 = vrcp.f32 %v3596_v15  ;;  %14157 = vst [vmem:[#allocation87_spill] sm:$0xff] %v12044_v45  ;;  %v14160_v6 = vld [vmem:[#allocation55_spill] sm:$0xff] }
 0x28e   :  { %v3422_v46 = vpop.f32.mrf.mxu0  ;;  %v9327_v54 = vpop.eup %9326 }
 0x28f   :  { %14155 = vst [vmem:[#allocation81_spill] sm:$0xff] %v12041_v56  ;;  %9340 = vrcp.f32 %v3595_v11  ;;  %v3598_v12 = vadd.f32 0.0001, %v3534_v1  ;;  %v3533_v26 = vmul.f32 0.15, %v3422_v46  ;;  %8808 = vmatprep.mubr.f32.mxu1 %v12041_v56  ;;  %v12052_v55 = vmul.f32 %v9327_v54, %v14160_v6 }
 0x290   :  { %v9329_v17 = vpop.eup %9328  ;;  %v8702_v34 = vpop.f32.mrf.mxu0  ;;  %8809 = vmatmul.mubr.f32.gmra.mxu1 %v12044_v45  ;;  %v14162_v45 = vld [vmem:[#allocation57_spill] sm:$0xff] }
 0x291   :  { %v3597_v39 = vadd.f32 0.0001, %v3533_v26  ;;  %v3536_v24 = vmul.f32 0.15, %v8702_v34  ;;  %v12049_v33 = vmul.f32 %v9329_v17, %v14158_v60  ;;  %9342 = vrcp.f32 %v3598_v12  ;;  %14161 = vst [vmem:[#allocation72_spill] sm:$0xff] %v12052_v55  ;;  %v14164_v17 = vld [vmem:[#allocation44_spill] sm:$0xff] }
 0x292   :  { %v3432_v15 = vpop.f32.mrf.mxu0  ;;  %v9331_v18 = vpop.eup %9330 }
 0x293   :  { %14159 = vst [vmem:[#allocation74_spill] sm:$0xff] %v12049_v33  ;;  %9344 = vrcp.f32 %v3597_v39  ;;  %v3600_v11 = vadd.f32 0.0001, %v3536_v24  ;;  %v3535_v1 = vmul.f32 0.15, %v3432_v15  ;;  %8811 = vmatprep.mubr.f32.mxu1 %v12049_v33  ;;  %v12060_v54 = vmul.f32 %v9331_v18, %v14164_v17 }
 0x294   :  { %v9333_v46 = vpop.eup %9332  ;;  %v8705_v56 = vpop.f32.mrf.mxu0  ;;  %8812 = vmatmul.mubr.f32.gmra.mxu1 %v12052_v55  ;;  %v14165_v55 = vld [vmem:[#allocation61_spill] sm:$0xff] }
 0x295   :  { %v3599_v26 = vadd.f32 0.0001, %v3535_v1  ;;  %v3538_v34 = vmul.f32 0.15, %v8705_v56  ;;  %v12057_v60 = vmul.f32 %v9333_v46, %v14162_v45  ;;  %9346 = vrcp.f32 %v3600_v11  ;;  %v14167_v46 = vld [vmem:[#allocation48_spill] sm:$0xff] }
 0x296   :  { %v3442_v12 = vpop.f32.mrf.mxu0  ;;  %v9335_v6 = vpop.eup %9334 }
 0x297   :  { %14163 = vst [vmem:[#allocation85_spill] sm:$0xff] %v12057_v60  ;;  %9348 = vrcp.f32 %v3599_v26  ;;  %v3602_v39 = vadd.f32 0.0001, %v3538_v34  ;;  %v3537_v24 = vmul.f32 0.15, %v3442_v12  ;;  %8814 = vmatprep.mubr.f32.mxu1 %v12057_v60  ;;  %v12068_v18 = vmul.f32 %v9335_v6, %v14167_v46 }
 0x298   :  { %v9337_v15 = vpop.eup %9336  ;;  %v8708_v33 = vpop.f32.mrf.mxu0  ;;  %8815 = vmatmul.mubr.f32.gmra.mxu1 %v12060_v54 }
 0x299   :  { %v3601_v1 = vadd.f32 0.0001, %v3537_v24  ;;  %v3540_v56 = vmul.f32 0.15, %v8708_v33  ;;  %v12065_v45 = vmul.f32 %v9337_v15, %v14165_v55  ;;  %9350 = vrcp.f32 %v3602_v39  ;;  %14168 = vst [vmem:[#allocation78_spill] sm:$0xff] %v12068_v18  ;;  %v14169_v15 = vld [vmem:[#allocation63_spill] sm:$0xff] }
 0x29a   :  { %v3452_v11 = vpop.f32.mrf.mxu0  ;;  %v9339_v17 = vpop.eup %9338 }
 0x29b   :  { %14166 = vst [vmem:[#allocation91_spill] sm:$0xff] %v12065_v45  ;;  %9352 = vrcp.f32 %v3601_v1  ;;  %v3604_v26 = vadd.f32 0.0001, %v3540_v56  ;;  %v3539_v34 = vmul.f32 0.15, %v3452_v11  ;;  %8817 = vmatprep.mubr.f32.mxu1 %v12065_v45  ;;  %v12076_v6 = vmul.f32 %v9339_v17, %v14169_v15 }
 0x29c   :  { %v9341_v12 = vpop.eup %9340  ;;  %v8711_v60 = vpop.f32.mrf.mxu0  ;;  %8818 = vmatmul.mubr.f32.gmra.mxu1 %v12068_v18  ;;  %v14171_v18 = vld [vmem:[#allocation67_spill] sm:$0xff] }
 0x29d   :  { %v3603_v24 = vadd.f32 0.0001, %v3539_v34  ;;  %v3542_v33 = vmul.f32 0.15, %v8711_v60  ;;  %v12073_v55 = vmul.f32 %v9341_v12, %v11707_v38  ;;  %9354 = vrcp.f32 %v3604_v26  ;;  %14170 = vst [vmem:[#allocation76_spill] sm:$0xff] %v12076_v6  ;;  %v14172_v12 = vld [vmem:[#allocation50_spill] sm:$0xff] }
 0x29e   :  { %v3462_v39 = vpop.f32.mrf.mxu0  ;;  %v9343_v46 = vpop.eup %9342 }
 0x29f   :  { %9356 = vrcp.f32 %v3603_v24  ;;  %v3606_v1 = vadd.f32 0.0001, %v3542_v33  ;;  %v3541_v56 = vmul.f32 0.15, %v3462_v39  ;;  %8820 = vmatprep.mubr.f32.mxu1 %v12073_v55  ;;  %v12084_v17 = vmul.f32 %v9343_v46, %v14172_v12 }
 0x2a0   :  { %v9345_v11 = vpop.eup %9344  ;;  %v8714_v45 = vpop.f32.mrf.mxu0  ;;  %8821 = vmatmul.mubr.f32.gmra.mxu1 %v12076_v6 }
 0x2a1   :  { %v3605_v34 = vadd.f32 0.0001, %v3541_v56  ;;  %v3544_v60 = vmul.f32 0.15, %v8714_v45  ;;  %v12081_v38 = vmul.f32 %v9345_v11, %v14171_v18  ;;  %9358 = vrcp.f32 %v3606_v1  ;;  %v14173_v56 = vld [vmem:[#allocation52_spill] sm:$0xff]  ;;  %v14174_v18 = vld [vmem:[#allocation54_spill] sm:$0xff] }
 0x2a2   :  { %v3472_v26 = vpop.f32.mrf.mxu0  ;;  %v9347_v15 = vpop.eup %9346 }
 0x2a3   :  { %9360 = vrcp.f32 %v3605_v34  ;;  %v3608_v24 = vadd.f32 0.0001, %v3544_v60  ;;  %v3543_v33 = vmul.f32 0.15, %v3472_v26  ;;  %8823 = vmatprep.mubr.f32.mxu1 %v12081_v38  ;;  %v12092_v1 = vmul.f32 %v9347_v15, %v14174_v18 }
 0x2a4   :  { %v9349_v39 = vpop.eup %9348  ;;  %8824 = vmatmul.mubr.f32.gmra.mxu1 %v12084_v17 }
 0x2a5   :  { %v3607_v6 = vadd.f32 0.0001, %v3543_v33  ;;  %v12089_v45 = vmul.f32 %v9349_v39, %v14173_v56  ;;  %9362 = vrcp.f32 %v3608_v24 }
 0x2a6   :  { %v9351_v11 = vpop.eup %9350 }
 0x2a7   :  { %9364 = vrcp.f32 %v3607_v6  ;;  %8826 = vmatprep.mubr.f32.mxu1 %v12089_v45  ;;  %v12100_v60 = vmul.f32 %v9351_v11, %v11750_v63 }
 0x2a8   :  { %v9353_v46 = vpop.eup %9352  ;;  %8827 = vmatmul.mubr.f32.gmra.mxu1 %v12092_v1 }
 0x2a9   :  { %v12097_v34 = vmul.f32 %v9353_v46, %v11752_v32 }
 0x2aa   :  { %v9355_v26 = vpop.eup %9354 }
 0x2ab   :  { %8829 = vmatprep.mubr.f32.mxu1 %v12097_v34  ;;  %v12108_v6 = vmul.f32 %v9355_v26, %v11760_v42  ;;  %v14177_v26 = vld [vmem:[#allocation23_spill] sm:$0xff] }
 0x2ac   :  { %v9357_v12 = vpop.eup %9356  ;;  %8830 = vmatmul.mubr.f32.gmra.mxu1 %v12100_v60 }
 0x2ad   :  { %v12105_v15 = vmul.f32 %v9357_v12, %v11764_v48  ;;  %v3851_v12 = vand.u32 1, %v14177_v26 }
 0x2ae   :  { %v9359_v24 = vpop.eup %9358 }
 0x2af   :  { %8832 = vmatprep.mubr.f32.mxu1 %v12105_v15  ;;  %v12116_v33 = vmul.f32 %v9359_v24, %v11770_v43  ;;  %v14176_v43 = vld [vmem:[#allocation24_spill] sm:$0xff]  ;;  %vm3915_vm5 = vcmp.ne.s32.totalorder %v3851_v12, 0 }
 0x2b0   :  { %v9361_v32 = vpop.eup %9360  ;;  %8833 = vmatmul.mubr.f32.gmra.mxu1 %v12108_v6  ;;  %v3850_v11 = vand.u32 1, %v14176_v43  ;;  %v14181_v12 = vld [vmem:[#allocation16_spill] sm:$0xff] }
 0x2b1   :  { %v12113_v63 = vmul.f32 %v9361_v32, %v11772_v44  ;;  %v14175_v44 = vld [vmem:[#allocation2_spill] sm:$0xff] }
 0x2b2   :  { %v9363_v39 = vpop.eup %9362  ;;  %v3849_v18 = vand.u32 1, %v14175_v44  ;;  %vm3914_vm2 = vcmp.ne.s32.totalorder %v3850_v11, 0  ;;  %v14178_v32 = vld [vmem:[#allocation22_spill] sm:$0xff] }
 0x2b3   :  { %8835 = vmatprep.mubr.f32.mxu1 %v12113_v63  ;;  %v12124_v56 = vmul.f32 %v9363_v39, %v11778_v14 }
 0x2b4   :  { %v9365_v48 = vpop.eup %9364  ;;  %8836 = vmatmul.mubr.f32.gmra.mxu1 %v12116_v33  ;;  %vm3913_vm1 = vcmp.ne.s32.totalorder %v3849_v18, 0 }
 0x2b5   :  { %v12121_v42 = vmul.f32 %v9365_v48, %v11780_v9  ;;  %v3852_v9 = vand.u32 1, %v14178_v32 }
 0x2b7   :  { %8838 = vmatprep.mubr.f32.mxu1 %v12121_v42  ;;  %vm3916_vm6 = vcmp.ne.s32.totalorder %v3852_v9, 0 }
 0x2b8   :  { %8839 = vmatmul.mubr.f32.gmra.mxu1 %v12124_v56 }
 0x2fb   :  { %v8747_v46 = vpop.f32.mrf.mxu1 }
 0x2fc   :  { %v12139_v39 = vsel %vm3914_vm2, %v8747_v46, %v11792_v25 }
 0x2fd   :  { %v4043_v24 = vpop.f32.mrf.mxu1 }
 0x2fe   :  { %v12135_v14 = vsel %vm3913_vm1, %v4043_v24, %v11787_v61  ;;  %v14180_v61 = vld [vmem:[#allocation19_spill] sm:$0xff]  ;;  %v3855_v24 = vand.u32 1, %v14181_v12  ;;  %vm5054_vm1 = vcmp.eq.s32.totalorder %v11579_v28, 32 }
 0x2ff   :  { %8869 = vmatprep.mubr.f32.mxu0 %v12135_v14  ;;  %v8750_v48 = vpop.f32.mrf.mxu1  ;;  %v3854_v18 = vand.u32 1, %v14180_v61  ;;  %8981 = vmatprep.subr.msk.mxu1 %vm5054_vm1, %v13852_v49 }
 0x300   :  { %8870 = vmatmul.mubr.f32.vlgmr.msra.gmra.mxu0 %v12139_v39  ;;  %v12157_v11 = vsel %vm3916_vm6, %v8750_v48, %v11813_v29  ;;  %vm3919_vm13 = vcmp.ne.s32.totalorder %v3855_v24, 0  ;;  %8982 = vmatpush3.msk.msra.mxu1 %vm5054_vm1, %v13852_v49 }
 0x301   :  { %v4053_v25 = vpop.f32.mrf.mxu1  ;;  %vm3918_vm10 = vcmp.ne.s32.totalorder %v3854_v18, 0  ;;  %v14183_v18 = vld [vmem:[#allocation12_spill] sm:$0xff]  ;;  %8983 = vmatprep.subr.msk.mxu1 %vm5053_vm0, %v13852_v49 }
 0x302   :  { %v12152_v7 = vsel %vm3915_vm5, %v4053_v25, %v11807_v53  ;;  %v3856_v53 = vand.u32 1, %v14182_v8  ;;  %v3857_v25 = vand.u32 1, %v14183_v18  ;;  %8984 = vmatpush3.msk.msra.mxu1 %vm5053_vm0, %v13852_v49 }
 0x303   :  { %v8753_v46 = vpop.f32.mrf.mxu1  ;;  %8872 = vmatprep.mubr.f32.mxu0 %v12152_v7 }
 0x304   :  { %8873 = vmatmul.mubr.f32.gmra.mxu0 %v12157_v11  ;;  %v12173_v48 = vsel %vm3918_vm10, %v8753_v46, %v11835_v50  ;;  %vm3920_vm14 = vcmp.ne.s32.totalorder %v3856_v53, 0  ;;  %vm3921_vm2 = vcmp.ne.s32.totalorder %v3857_v25, 0  ;;  %v14186_v53 = vld [vmem:[#allocation9_spill] sm:$0xff] }
 0x305   :  { %v4063_v9 = vpop.f32.mrf.mxu1 }
 0x306   :  { %v12168_v29 = vsel %vm3917_vm9, %v4063_v9, %v11829_v4  ;;  %v14184_v4 = vld [vmem:[#allocation10_spill] sm:$0xff] }
 0x307   :  { %v8756_v2 = vpop.f32.mrf.mxu1  ;;  %8875 = vmatprep.mubr.f32.mxu0 %v12168_v29  ;;  %v3858_v9 = vand.u32 1, %v14184_v4  ;;  %v3859_v4 = vand.u32 1, %v14186_v53  ;;  %v14190_v53 = vld [vmem:[#allocation6_spill] sm:$0xff] }
 0x308   :  { %8876 = vmatmul.mubr.f32.gmra.mxu0 %v12173_v48  ;;  %v12189_v46 = vsel %vm3920_vm14, %v8756_v2, %v11857_v36 }
 0x309   :  { %v4073_v8 = vpop.f32.mrf.mxu1  ;;  %14185 = vst [vmem:[#allocation89_spill] sm:$0xff] %v12189_v46  ;;  %vm3922_vm3 = vcmp.ne.s32.totalorder %v3858_v9, 0  ;;  %vm3923_vm4 = vcmp.ne.s32.totalorder %v3859_v4, 0  ;;  %v14189_v9 = vld [vmem:[#allocation7_spill] sm:$0xff]  ;;  %v14191_v4 = vld [vmem:[#allocation5_spill] sm:$0xff] }
 0x30a   :  { %v12184_v50 = vsel %vm3919_vm13, %v4073_v8, %v11851_v30  ;;  %v14187_v30 = vld [vmem:[#allocation8_spill] sm:$0xff] }
 0x30b   :  { %v8759_v24 = vpop.f32.mrf.mxu1  ;;  %8878 = vmatprep.mubr.f32.mxu0 %v12184_v50  ;;  %v3860_v8 = vand.u32 1, %v14187_v30  ;;  %v3861_v30 = vand.u32 1, %v14189_v9  ;;  %v3863_v9 = vand.u32 1, %v14191_v4  ;;  %v12237_v4 = vadd.s32 144, %v14175_v44 }
 0x30c   :  { %8879 = vmatmul.mubr.f32.gmra.mxu0 %v12189_v46  ;;  %v12204_v2 = vsel %vm3922_vm3, %v8759_v24, %v11879_v57  ;;  %v3862_v46 = vand.u32 1, %v14190_v53  ;;  %v14193_v53 = vld [vmem:[#allocation4_spill] sm:$0xff] }
 0x30d   :  { %v4083_v18 = vpop.f32.mrf.mxu1  ;;  %14188 = vst [vmem:[#allocation95_spill] sm:$0xff] %v12204_v2  ;;  %vm3924_vm5 = vcmp.ne.s32.totalorder %v3860_v8, 0  ;;  %vm3925_vm6 = vcmp.ne.s32.totalorder %v3861_v30, 0  ;;  %v12221_v8 = vadd.s32 128, %v14175_v44  ;;  %vm3927_vm8 = vcmp.ne.s32.totalorder %v3863_v9, 0  ;;  %14195 = vst [vmem:[#allocation93_spill] sm:$0xff] %v12237_v4 }
 0x30e   :  { %v12200_v36 = vsel %vm3921_vm2, %v4083_v18, %v11873_v31  ;;  %vm3926_vm7 = vcmp.ne.s32.totalorder %v3862_v46, 0 }
 0x30f   :  { %v8762_v25 = vpop.f32.mrf.mxu1  ;;  %8881 = vmatprep.mubr.f32.mxu0 %v12200_v36  ;;  %14192 = vst [vmem:[#allocation82_spill] sm:$0xff] %v12221_v8  ;;  %v3865_v46 = vand.u32 1, %v12221_v8  ;;  %v12253_v8 = vadd.s32 160, %v14175_v44 }
 0x310   :  { %8882 = vmatmul.mubr.f32.gmra.mxu0 %v12204_v2  ;;  %v12216_v57 = vsel %vm3924_vm5, %v8762_v25, %v11901_v58  ;;  %v3864_v2 = vand.u32 1, %v14193_v53 }
 0x311   :  { %v4093_v31 = vpop.f32.mrf.mxu1  ;;  %vm3929_vm10 = vcmp.ne.s32.totalorder %v3865_v46, 0  ;;  %14197 = vst [vmem:[#allocation86_spill] sm:$0xff] %v12253_v8 }
 0x312   :  { %v12213_v18 = vsel %vm3923_vm4, %v4093_v31, %v11895_v23  ;;  %v12226_v23 = vadd.s32 136, %v14175_v44  ;;  %vm3928_vm9 = vcmp.ne.s32.totalorder %v3864_v2, 0  ;;  %v3867_v2 = vand.u32 1, %v12237_v4 }
 0x313   :  { %v8765_v24 = vpop.f32.mrf.mxu1  ;;  %8884 = vmatprep.mubr.f32.mxu0 %v12213_v18  ;;  %v12269_v4 = vadd.s32 176, %v14175_v44 }
 0x314   :  { %8885 = vmatmul.mubr.f32.gmra.mxu0 %v12216_v57  ;;  %14194 = vst [vmem:[#allocation80_spill] sm:$0xff] %v12226_v23  ;;  %v12232_v25 = vsel %vm3926_vm7, %v8765_v24, %v11918_v41  ;;  %v3866_v53 = vand.u32 1, %v12226_v23  ;;  %vm3931_vm12 = vcmp.ne.s32.totalorder %v3867_v2, 0 }
 0x315   :  { %v4103_v31 = vpop.f32.mrf.mxu1  ;;  %14199 = vst [vmem:[#allocation97_spill] sm:$0xff] %v12269_v4 }
 0x316   :  { %v12229_v58 = vsel %vm3925_vm6, %v4103_v31, %v11915_v22  ;;  %v12242_v22 = vadd.s32 152, %v14175_v44  ;;  %vm3930_vm11 = vcmp.ne.s32.totalorder %v3866_v53, 0  ;;  %v3869_v53 = vand.u32 1, %v12253_v8 }
 0x317   :  { %v8768_v30 = vpop.f32.mrf.mxu1  ;;  %8887 = vmatprep.mubr.f32.mxu0 %v12229_v58  ;;  %v12285_v8 = vadd.s32 192, %v14175_v44 }
 0x318   :  { %8888 = vmatmul.mubr.f32.gmra.mxu0 %v12232_v25  ;;  %14196 = vst [vmem:[#allocation99_spill] sm:$0xff] %v12242_v22  ;;  %v12248_v24 = vsel %vm3928_vm9, %v8768_v30, %v11926_v35  ;;  %v3868_v23 = vand.u32 1, %v12242_v22  ;;  %vm3933_vm14 = vcmp.ne.s32.totalorder %v3869_v53, 0 }
 0x319   :  { %v4113_v31 = vpop.f32.mrf.mxu1  ;;  %14201 = vst [vmem:[#allocation101_spill] sm:$0xff] %v12285_v8 }
 0x31a   :  { %v12245_v41 = vsel %vm3927_vm8, %v4113_v31, %v11923_v59  ;;  %v12258_v59 = vadd.s32 168, %v14175_v44  ;;  %vm3932_vm13 = vcmp.ne.s32.totalorder %v3868_v23, 0  ;;  %v3871_v23 = vand.u32 1, %v12269_v4 }
 0x31b   :  { %v8771_v9 = vpop.f32.mrf.mxu1  ;;  %8890 = vmatprep.mubr.f32.mxu0 %v12245_v41  ;;  %v12301_v4 = vadd.s32 208, %v14175_v44 }
 0x31c   :  { %8891 = vmatmul.mubr.f32.gmra.mxu0 %v12248_v24  ;;  %14198 = vst [vmem:[#allocation84_spill] sm:$0xff] %v12258_v59  ;;  %v12264_v30 = vsel %vm3930_vm11, %v8771_v9, %v11934_v5  ;;  %v3870_v22 = vand.u32 1, %v12258_v59  ;;  %vm3935_vm1 = vcmp.ne.s32.totalorder %v3871_v23, 0 }
 0x31d   :  { %v4123_v31 = vpop.f32.mrf.mxu1  ;;  %14203 = vst [vmem:[#allocation90_spill] sm:$0xff] %v12301_v4 }
 0x31e   :  { %v12261_v35 = vsel %vm3929_vm10, %v4123_v31, %v11931_v21  ;;  %v12274_v21 = vadd.s32 184, %v14175_v44  ;;  %vm3934_vm15 = vcmp.ne.s32.totalorder %v3870_v22, 0  ;;  %v3873_v22 = vand.u32 1, %v12285_v8 }
 0x31f   :  { %v8774_v46 = vpop.f32.mrf.mxu1  ;;  %8893 = vmatprep.mubr.f32.mxu0 %v12261_v35  ;;  %v12317_v8 = vadd.s32 224, %v14175_v44 }
 0x320   :  { %8894 = vmatmul.mubr.f32.gmra.mxu0 %v12264_v30  ;;  %14200 = vst [vmem:[#allocation88_spill] sm:$0xff] %v12274_v21  ;;  %v12280_v9 = vsel %vm3932_vm13, %v8774_v46, %v11942_v52  ;;  %v3872_v59 = vand.u32 1, %v12274_v21  ;;  %vm3937_vm3 = vcmp.ne.s32.totalorder %v3873_v22, 0 }
 0x321   :  { %v4133_v31 = vpop.f32.mrf.mxu1  ;;  %14207 = vst [vmem:[#allocation104_spill] sm:$0xff] %v12317_v8 }
 0x322   :  { %v12277_v5 = vsel %vm3931_vm12, %v4133_v31, %v11939_v40  ;;  %v12290_v40 = vadd.s32 200, %v14175_v44  ;;  %vm3936_vm2 = vcmp.ne.s32.totalorder %v3872_v59, 0  ;;  %v3875_v59 = vand.u32 1, %v12301_v4 }
 0x323   :  { %v8777_v2 = vpop.f32.mrf.mxu1  ;;  %8896 = vmatprep.mubr.f32.mxu0 %v12277_v5  ;;  %v12333_v4 = vadd.s32 240, %v14175_v44 }
 0x324   :  { %8897 = vmatmul.mubr.f32.gmra.mxu0 %v12280_v9  ;;  %14202 = vst [vmem:[#allocation103_spill] sm:$0xff] %v12290_v40  ;;  %v12296_v46 = vsel %vm3934_vm15, %v8777_v2, %v11950_v16  ;;  %v3874_v21 = vand.u32 1, %v12290_v40  ;;  %vm3939_vm4 = vcmp.ne.s32.totalorder %v3875_v59, 0 }
 0x325   :  { %v4143_v31 = vpop.f32.mrf.mxu1  ;;  %14212 = vst [vmem:[#allocation106_spill] sm:$0xff] %v12333_v4 }
 0x326   :  { %v12293_v52 = vsel %vm3933_vm14, %v4143_v31, %v11947_v62  ;;  %v12306_v62 = vadd.s32 216, %v14175_v44  ;;  %vm3938_vm0 = vcmp.ne.s32.totalorder %v3874_v21, 0  ;;  %v3877_v21 = vand.u32 1, %v12317_v8 }
 0x327   :  { %v8780_v53 = vpop.f32.mrf.mxu1  ;;  %8899 = vmatprep.mubr.f32.mxu0 %v12293_v52  ;;  %v12349_v8 = vadd.s32 256, %v14175_v44 }
 0x328   :  { %8900 = vmatmul.mubr.f32.gmra.mxu0 %v12296_v46  ;;  %14204 = vst [vmem:[#allocation105_spill] sm:$0xff] %v12306_v62  ;;  %v12312_v2 = vsel %vm3936_vm2, %v8780_v53, %v11958_v13  ;;  %v3876_v40 = vand.u32 1, %v12306_v62  ;;  %v14210_v53 = vld [vmem:[#allocation65_spill] sm:$0xff]  ;;  %vm3941_vm6 = vcmp.ne.s32.totalorder %v3877_v21, 0 }
 0x329   :  { %v4153_v31 = vpop.f32.mrf.mxu1  ;;  %14206 = vst [vmem:[#allocation92_spill] sm:$0xff] %v12312_v2  ;;  %14217 = vst [vmem:[#allocation100_spill] sm:$0xff] %v12349_v8 }
 0x32a   :  { %v12309_v16 = vsel %vm3935_vm1, %v4153_v31, %v11955_v10  ;;  %v12322_v10 = vadd.s32 232, %v14175_v44  ;;  %vm3940_vm5 = vcmp.ne.s32.totalorder %v3876_v40, 0  ;;  %v3879_v40 = vand.u32 1, %v12333_v4 }
 0x32b   :  { %14205 = vst [vmem:[#allocation94_spill] sm:$0xff] %v12309_v16  ;;  %v8783_v23 = vpop.f32.mrf.mxu1  ;;  %8902 = vmatprep.mubr.f32.mxu0 %v12309_v16  ;;  %v12365_v4 = vadd.s32 272, %v14175_v44 }
 0x32c   :  { %8903 = vmatmul.mubr.f32.gmra.mxu0 %v12312_v2  ;;  %14208 = vst [vmem:[#allocation107_spill] sm:$0xff] %v12322_v10  ;;  %v12328_v16 = vsel %vm3938_vm0, %v8783_v23, %v14210_v53  ;;  %v3878_v62 = vand.u32 1, %v12322_v10  ;;  %v14214_v23 = vld [vmem:[#allocation56_spill] sm:$0xff]  ;;  %v14216_v2 = vld [vmem:[#allocation69_spill] sm:$0xff]  ;;  %vm3943_vm8 = vcmp.ne.s32.totalorder %v3879_v40, 0 }
 0x32d   :  { %v4163_v31 = vpop.f32.mrf.mxu1  ;;  %14211 = vst [vmem:[#allocation96_spill] sm:$0xff] %v12328_v16  ;;  %14223 = vst [vmem:[#allocation111_spill] sm:$0xff] %v12365_v4 }
 0x32e   :  { %v12325_v13 = vsel %vm3937_vm3, %v4163_v31, %v11963_v47  ;;  %v12338_v47 = vadd.s32 248, %v14175_v44  ;;  %vm3942_vm7 = vcmp.ne.s32.totalorder %v3878_v62, 0  ;;  %v3881_v62 = vand.u32 1, %v12349_v8 }
 0x32f   :  { %14209 = vst [vmem:[#allocation98_spill] sm:$0xff] %v12325_v13  ;;  %v8786_v22 = vpop.f32.mrf.mxu1  ;;  %8905 = vmatprep.mubr.f32.mxu0 %v12325_v13  ;;  %v12381_v8 = vadd.s32 288, %v14175_v44 }
 0x330   :  { %8906 = vmatmul.mubr.f32.gmra.mxu0 %v12328_v16  ;;  %14213 = vst [vmem:[#allocation109_spill] sm:$0xff] %v12338_v47  ;;  %v12344_v13 = vsel %vm3940_vm5, %v8786_v22, %v14216_v2  ;;  %v3880_v10 = vand.u32 1, %v12338_v47  ;;  %v14219_v2 = vld [vmem:[#allocation71_spill] sm:$0xff]  ;;  %v14221_v16 = vld [vmem:[#allocation58_spill] sm:$0xff]  ;;  %vm3945_vm10 = vcmp.ne.s32.totalorder %v3881_v62, 0 }
 0x331   :  { %v4173_v31 = vpop.f32.mrf.mxu1  ;;  %14228 = vst [vmem:[#allocation113_spill] sm:$0xff] %v12381_v8 }
 0x332   :  { %v12341_v53 = vsel %vm3939_vm4, %v4173_v31, %v14214_v23  ;;  %v12354_v31 = vadd.s32 264, %v14175_v44  ;;  %vm3944_vm9 = vcmp.ne.s32.totalorder %v3880_v10, 0  ;;  %v3883_v10 = vand.u32 1, %v12365_v4 }
 0x333   :  { %14215 = vst [vmem:[#allocation102_spill] sm:$0xff] %v12341_v53  ;;  %v8789_v59 = vpop.f32.mrf.mxu1  ;;  %8908 = vmatprep.mubr.f32.mxu0 %v12341_v53  ;;  %v12397_v4 = vadd.s32 304, %v14175_v44 }
 0x334   :  { %8909 = vmatmul.mubr.f32.gmra.mxu0 %v12344_v13  ;;  %14218 = vst [vmem:[#allocation108_spill] sm:$0xff] %v12354_v31  ;;  %v12360_v53 = vsel %vm3942_vm7, %v8789_v59, %v14221_v16  ;;  %v3882_v47 = vand.u32 1, %v12354_v31  ;;  %v14225_v16 = vld [vmem:[#allocation75_spill] sm:$0xff]  ;;  %vm3947_vm12 = vcmp.ne.s32.totalorder %v3883_v10, 0  ;;  %v14238_v10 = vld [vmem:[#allocation73_spill] sm:$0xff] }
 0x335   :  { %v4183_v23 = vpop.f32.mrf.mxu1  ;;  %14222 = vst [vmem:[#allocation11_spill] sm:$0xff] %v12360_v53  ;;  %14234 = vst [vmem:[#allocation115_spill] sm:$0xff] %v12397_v4 }
 0x336   :  { %v12357_v22 = vsel %vm3941_vm6, %v4183_v23, %v14219_v2  ;;  %v12370_v23 = vadd.s32 280, %v14175_v44  ;;  %vm3946_vm11 = vcmp.ne.s32.totalorder %v3882_v47, 0  ;;  %v3885_v47 = vand.u32 1, %v12381_v8 }
 0x337   :  { %14220 = vst [vmem:[#allocation110_spill] sm:$0xff] %v12357_v22  ;;  %v8792_v21 = vpop.f32.mrf.mxu1  ;;  %8911 = vmatprep.mubr.f32.mxu0 %v12357_v22 }
 0x338   :  { %8912 = vmatmul.mubr.f32.gmra.mxu0 %v12360_v53  ;;  %14224 = vst [vmem:[#allocation13_spill] sm:$0xff] %v12370_v23  ;;  %v12376_v22 = vsel %vm3944_vm9, %v8792_v21, %v11990_v19  ;;  %v3884_v31 = vand.u32 1, %v12370_v23  ;;  %v14230_v19 = vld [vmem:[#allocation62_spill] sm:$0xff]  ;;  %v14232_v53 = vld [vmem:[#allocation60_spill] sm:$0xff]  ;;  %vm3949_vm1 = vcmp.ne.s32.totalorder %v3885_v47, 0 }
 0x339   :  { %v4193_v2 = vpop.f32.mrf.mxu1  ;;  %14227 = vst [vmem:[#allocation15_spill] sm:$0xff] %v12376_v22 }
 0x33a   :  { %v12373_v59 = vsel %vm3943_vm8, %v4193_v2, %v14225_v16  ;;  %v12386_v2 = vadd.s32 296, %v14175_v44  ;;  %vm3948_vm13 = vcmp.ne.s32.totalorder %v3884_v31, 0  ;;  %v14240_v31 = vld [vmem:[#allocation64_spill] sm:$0xff] }
 0x33b   :  { %14226 = vst [vmem:[#allocation112_spill] sm:$0xff] %v12373_v59  ;;  %v8795_v40 = vpop.f32.mrf.mxu1  ;;  %8914 = vmatprep.mubr.f32.mxu0 %v12373_v59 }
 0x33c   :  { %8915 = vmatmul.mubr.f32.gmra.mxu0 %v12376_v22  ;;  %14229 = vst [vmem:[#allocation17_spill] sm:$0xff] %v12386_v2  ;;  %v12392_v59 = vsel %vm3946_vm11, %v8795_v40, %v14232_v53  ;;  %v3886_v23 = vand.u32 1, %v12386_v2  ;;  %v14237_v40 = vld [vmem:[#allocation46_spill] sm:$0xff]  ;;  %v3887_v2 = vand.u32 1, %v12397_v4  ;;  %v14246_v4 = vld [vmem:[#allocation79_spill] sm:$0xff] }
 0x33d   :  { %v4203_v16 = vpop.f32.mrf.mxu1  ;;  %14233 = vst [vmem:[#allocation18_spill] sm:$0xff] %v12392_v59  ;;  %vm5051_vm15 = vcmp.eq.s32.totalorder %v14237_v40, 32  ;;  %v14252_v22 = vld [vmem:[#allocation83_spill] sm:$0xff] }
 0x33e   :  { %v12389_v21 = vsel %vm3945_vm10, %v4203_v16, %v14230_v19  ;;  %v12402_v16 = vadd.s32 312, %v14175_v44  ;;  %v14236_v19 = vld [vmem:[#allocation42_spill] sm:$0xff]  ;;  %vm3950_vm2 = vcmp.ne.s32.totalorder %v3886_v23, 0  ;;  %vm3951_vm3 = vcmp.ne.s32.totalorder %v3887_v2, 0 }
 0x33f   :  { %14231 = vst [vmem:[#allocation114_spill] sm:$0xff] %v12389_v21  ;;  %v8798_v62 = vpop.f32.mrf.mxu1  ;;  %8917 = vmatprep.mubr.f32.mxu0 %v12389_v21  ;;  %vm5052_vm14 = vcmp.eq.s32.totalorder %v14236_v19, 32  ;;  %v12417_v19 = vadd.s32 320, %v14175_v44 }
 0x340   :  { %8918 = vmatmul.mubr.f32.gmra.mxu0 %v12392_v59  ;;  %14235 = vst [vmem:[#allocation20_spill] sm:$0xff] %v12402_v16  ;;  %8985 = vmatprep.subr.msk.mxu1 %vm5052_vm14, %v13852_v49  ;;  %v12412_v21 = vsel %vm3948_vm13, %v8798_v62, %v14240_v31  ;;  %v14244_v31 = vld [vmem:[#allocation77_spill] sm:$0xff] }
 0x341   :  { %v4213_v53 = vpop.f32.mrf.mxu1  ;;  %8986 = vmatpush3.msk.msra.mxu1 %vm5052_vm14, %v13852_v49  ;;  %14241 = vst [vmem:[#allocation27_spill] sm:$0xff] %v12412_v21  ;;  %14242 = vst [vmem:[#allocation35_spill] sm:$0xff] %v12417_v19  ;;  %v3889_v23 = vand.u32 1, %v12417_v19  ;;  %v12451_v19 = vadd.s32 352, %v14175_v44 }
 0x342   :  { %v12408_v8 = vsel %vm3947_vm12, %v4213_v53, %v14238_v10  ;;  %8987 = vmatprep.subr.msk.mxu1 %vm5051_vm15, %v13852_v49  ;;  %v3888_v53 = vand.u32 1, %v12402_v16  ;;  %v12423_v10 = vadd.s32 328, %v14175_v44  ;;  %v12435_v16 = vadd.s32 336, %v14175_v44 }
 0x343   :  { %14239 = vst [vmem:[#allocation25_spill] sm:$0xff] %v12408_v8  ;;  %v8801_v59 = vpop.f32.mrf.mxu1  ;;  %8920 = vmatprep.mubr.f32.mxu0 %v12408_v8  ;;  %8988 = vmatpush3.msk.msra.mxu1 %vm5051_vm15, %v13852_v49  ;;  %vm3953_vm4 = vcmp.ne.s32.totalorder %v3889_v23, 0  ;;  %14254 = vst [vmem:[#allocation43_spill] sm:$0xff] %v12451_v19 }
 0x344   :  { %8921 = vmatmul.mubr.f32.gmra.mxu0 %v12412_v21  ;;  %14243 = vst [vmem:[#allocation33_spill] sm:$0xff] %v12423_v10  ;;  %v12430_v8 = vsel %vm3950_vm2, %v8801_v59, %v14246_v4  ;;  %14248 = vst [vmem:[#allocation28_spill] sm:$0xff] %v12435_v16  ;;  %vm3952_vm0 = vcmp.ne.s32.totalorder %v3888_v53, 0  ;;  %v3890_v21 = vand.u32 1, %v12423_v10  ;;  %v14250_v4 = vld [vmem:[#allocation66_spill] sm:$0xff]  ;;  %v3891_v53 = vand.u32 1, %v12435_v16 }
 0x345   :  { %v4223_v62 = vpop.f32.mrf.mxu1  ;;  %14247 = vst [vmem:[#allocation37_spill] sm:$0xff] %v12430_v8  ;;  %v12467_v16 = vadd.s32 368, %v14175_v44 }
 0x346   :  { %v12427_v47 = vsel %vm3949_vm1, %v4223_v62, %v14244_v31  ;;  %v12440_v62 = vadd.s32 344, %v14175_v44  ;;  %vm3954_vm5 = vcmp.ne.s32.totalorder %v3890_v21, 0  ;;  %vm3955_vm6 = vcmp.ne.s32.totalorder %v3891_v53, 0 }
 0x347   :  { %14245 = vst [vmem:[#allocation26_spill] sm:$0xff] %v12427_v47  ;;  %v8804_v40 = vpop.f32.mrf.mxu1  ;;  %8923 = vmatprep.mubr.f32.mxu0 %v12427_v47  ;;  %v3893_v21 = vand.u32 1, %v12451_v19  ;;  %14260 = vst [vmem:[#allocation32_spill] sm:$0xff] %v12467_v16  ;;  %v12483_v19 = vadd.s32 384, %v14175_v44 }
 0x348   :  { %8924 = vmatmul.mubr.f32.gmra.mxu0 %v12430_v8  ;;  %14249 = vst [vmem:[#allocation29_spill] sm:$0xff] %v12440_v62  ;;  %v12446_v47 = vsel %vm3952_vm0, %v8804_v40, %v14252_v22  ;;  %v3892_v10 = vand.u32 1, %v12440_v62  ;;  %v14256_v22 = vld [vmem:[#allocation70_spill] sm:$0xff]  ;;  %v14258_v8 = vld [vmem:[#allocation68_spill] sm:$0xff] }
 0x349   :  { %v4233_v31 = vpop.f32.mrf.mxu1  ;;  %14253 = vst [vmem:[#allocation31_spill] sm:$0xff] %v12446_v47  ;;  %vm3957_vm8 = vcmp.ne.s32.totalorder %v3893_v21, 0  ;;  %14265 = vst [vmem:[#allocation38_spill] sm:$0xff] %v12483_v19 }
 0x34a   :  { %v12443_v59 = vsel %vm3951_vm3, %v4233_v31, %v14250_v4  ;;  %v12456_v31 = vadd.s32 360, %v14175_v44  ;;  %vm3956_vm7 = vcmp.ne.s32.totalorder %v3892_v10, 0  ;;  %v3895_v10 = vand.u32 1, %v12467_v16 }
 0x34b   :  { %14251 = vst [vmem:[#allocation39_spill] sm:$0xff] %v12443_v59  ;;  %v8807_v2 = vpop.f32.mrf.mxu1  ;;  %8926 = vmatprep.mubr.f32.mxu0 %v12443_v59  ;;  %v12499_v16 = vadd.s32 400, %v14175_v44 }
 0x34c   :  { %8927 = vmatmul.mubr.f32.gmra.mxu0 %v12446_v47  ;;  %14255 = vst [vmem:[#allocation41_spill] sm:$0xff] %v12456_v31  ;;  %v12462_v59 = vsel %vm3954_vm5, %v8807_v2, %v14258_v8  ;;  %v3894_v62 = vand.u32 1, %v12456_v31  ;;  %v14262_v8 = vld [vmem:[#allocation81_spill] sm:$0xff]  ;;  %v14264_v47 = vld [vmem:[#allocation87_spill] sm:$0xff]  ;;  %vm3959_vm10 = vcmp.ne.s32.totalorder %v3895_v10, 0 }
 0x34d   :  { %v4243_v4 = vpop.f32.mrf.mxu1  ;;  %14259 = vst [vmem:[#allocation45_spill] sm:$0xff] %v12462_v59  ;;  %14271 = vst [vmem:[#allocation53_spill] sm:$0xff] %v12499_v16 }
 0x34e   :  { %v12459_v40 = vsel %vm3953_vm4, %v4243_v4, %v14256_v22  ;;  %v12472_v4 = vadd.s32 376, %v14175_v44  ;;  %vm3958_vm9 = vcmp.ne.s32.totalorder %v3894_v62, 0  ;;  %v3897_v62 = vand.u32 1, %v12483_v19 }
 0x34f   :  { %14257 = vst [vmem:[#allocation30_spill] sm:$0xff] %v12459_v40  ;;  %8929 = vmatprep.mubr.f32.mxu0 %v12459_v40  ;;  %v12515_v19 = vadd.s32 416, %v14175_v44 }
 0x350   :  { %v8810_v23 = vpop.f32.mrf.mxu1  ;;  %8930 = vmatmul.mubr.f32.gmra.mxu0 %v12462_v59  ;;  %14261 = vst [vmem:[#allocation34_spill] sm:$0xff] %v12472_v4  ;;  %v3896_v31 = vand.u32 1, %v12472_v4  ;;  %v14269_v59 = vld [vmem:[#allocation72_spill] sm:$0xff]  ;;  %vm3961_vm12 = vcmp.ne.s32.totalorder %v3897_v62, 0 }
 0x351   :  { %v12478_v40 = vsel %vm3956_vm7, %v8810_v23, %v14264_v47  ;;  %v14267_v47 = vld [vmem:[#allocation74_spill] sm:$0xff]  ;;  %14275 = vst [vmem:[#allocation55_spill] sm:$0xff] %v12515_v19 }
 0x352   :  { %v4253_v22 = vpop.f32.mrf.mxu1  ;;  %vm3960_vm11 = vcmp.ne.s32.totalorder %v3896_v31, 0  ;;  %v3899_v31 = vand.u32 1, %v12499_v16  ;;  %v12531_v16 = vadd.s32 432, %v14175_v44 }
 0x353   :  { %v12475_v2 = vsel %vm3955_vm6, %v4253_v22, %v14262_v8  ;;  %v12488_v22 = vadd.s32 392, %v14175_v44 }
 0x354   :  { %14263 = vst [vmem:[#allocation47_spill] sm:$0xff] %v12475_v2  ;;  %v8813_v53 = vpop.f32.mrf.mxu1  ;;  %8932 = vmatprep.mubr.f32.mxu0 %v12475_v2  ;;  %vm3963_vm14 = vcmp.ne.s32.totalorder %v3899_v31, 0  ;;  %14280 = vst [vmem:[#allocation61_spill] sm:$0xff] %v12531_v16 }
 0x355   :  { %8933 = vmatmul.mubr.f32.gmra.mxu0 %v12478_v40  ;;  %14266 = vst [vmem:[#allocation51_spill] sm:$0xff] %v12488_v22  ;;  %v12494_v2 = vsel %vm3958_vm9, %v8813_v53, %v14269_v59  ;;  %v3898_v4 = vand.u32 1, %v12488_v22  ;;  %v14273_v59 = vld [vmem:[#allocation85_spill] sm:$0xff] }
 0x356   :  { %v4263_v8 = vpop.f32.mrf.mxu1  ;;  %14270 = vst [vmem:[#allocation36_spill] sm:$0xff] %v12494_v2 }
 0x357   :  { %v12491_v23 = vsel %vm3957_vm8, %v4263_v8, %v14267_v47  ;;  %v12504_v8 = vadd.s32 408, %v14175_v44  ;;  %vm3962_vm13 = vcmp.ne.s32.totalorder %v3898_v4, 0  ;;  %v3901_v4 = vand.u32 1, %v12515_v19 }
 0x358   :  { %14268 = vst [vmem:[#allocation49_spill] sm:$0xff] %v12491_v23  ;;  %v8816_v21 = vpop.f32.mrf.mxu1  ;;  %8935 = vmatprep.mubr.f32.mxu0 %v12491_v23  ;;  %v12547_v19 = vadd.s32 448, %v14175_v44 }
 0x359   :  { %8936 = vmatmul.mubr.f32.gmra.mxu0 %v12494_v2  ;;  %14272 = vst [vmem:[#allocation40_spill] sm:$0xff] %v12504_v8  ;;  %v12510_v23 = vsel %vm3960_vm11, %v8816_v21, %v12060_v54  ;;  %v3900_v22 = vand.u32 1, %v12504_v8  ;;  %v14277_v54 = vld [vmem:[#allocation91_spill] sm:$0xff]  ;;  %v14279_v2 = vld [vmem:[#allocation78_spill] sm:$0xff]  ;;  %vm3965_vm1 = vcmp.ne.s32.totalorder %v3901_v4, 0 }
 0x35a   :  { %v4273_v47 = vpop.f32.mrf.mxu1  ;;  %14283 = vst [vmem:[#allocation63_spill] sm:$0xff] %v12547_v19 }
 0x35b   :  { %v12507_v53 = vsel %vm3959_vm10, %v4273_v47, %v14273_v59  ;;  %v12520_v47 = vadd.s32 424, %v14175_v44  ;;  %vm3964_vm15 = vcmp.ne.s32.totalorder %v3900_v22, 0  ;;  %v3903_v22 = vand.u32 1, %v12531_v16 }
 0x35c   :  { %14274 = vst [vmem:[#allocation59_spill] sm:$0xff] %v12507_v53  ;;  %v8819_v10 = vpop.f32.mrf.mxu1  ;;  %8938 = vmatprep.mubr.f32.mxu0 %v12507_v53  ;;  %v12563_v16 = vadd.s32 464, %v14175_v44 }
 0x35d   :  { %8939 = vmatmul.mubr.f32.gmra.mxu0 %v12510_v23  ;;  %14276 = vst [vmem:[#allocation57_spill] sm:$0xff] %v12520_v47  ;;  %v12526_v53 = vsel %vm3962_vm13, %v8819_v10, %v14279_v2  ;;  %v3902_v8 = vand.u32 1, %v12520_v47  ;;  %v14282_v10 = vld [vmem:[#allocation76_spill] sm:$0xff]  ;;  %vm3967_vm3 = vcmp.ne.s32.totalorder %v3903_v22, 0 }
 0x35e   :  { %v4283_v59 = vpop.f32.mrf.mxu1  ;;  %14285 = vst [vmem:[#allocation50_spill] sm:$0xff] %v12563_v16 }
 0x35f   :  { %v12523_v21 = vsel %vm3961_vm12, %v4283_v59, %v14277_v54  ;;  %v12536_v59 = vadd.s32 440, %v14175_v44  ;;  %vm3966_vm2 = vcmp.ne.s32.totalorder %v3902_v8, 0  ;;  %v3905_v8 = vand.u32 1, %v12547_v19 }
 0x360   :  { %14278 = vst [vmem:[#allocation44_spill] sm:$0xff] %v12523_v21  ;;  %v8822_v62 = vpop.f32.mrf.mxu1  ;;  %8941 = vmatprep.mubr.f32.mxu0 %v12523_v21  ;;  %v12579_v19 = vadd.s32 480, %v14175_v44 }
 0x361   :  { %8942 = vmatmul.mubr.f32.gmra.mxu0 %v12526_v53  ;;  %14281 = vst [vmem:[#allocation48_spill] sm:$0xff] %v12536_v59  ;;  %v12542_v21 = vsel %vm3964_vm15, %v8822_v62, %v14282_v10  ;;  %v3904_v47 = vand.u32 1, %v12536_v59  ;;  %vm3969_vm4 = vcmp.ne.s32.totalorder %v3905_v8, 0  ;;  %vm5682_vm15 = vcmp.eq.s32.totalorder %v11517_v27, 64 }
 0x362   :  { %v4293_v54 = vpop.f32.mrf.mxu1  ;;  %14287 = vst [vmem:[#allocation54_spill] sm:$0xff] %v12579_v19  ;;  %v4479_v27 = vand.u32 2, %v14180_v61 }
 0x363   :  { %v12539_v2 = vsel %vm3963_vm14, %v4293_v54, %v12073_v55  ;;  %v12552_v55 = vadd.s32 456, %v14175_v44  ;;  %vm3968_vm0 = vcmp.ne.s32.totalorder %v3904_v47, 0  ;;  %v3907_v47 = vand.u32 1, %v12563_v16 }
 0x364   :  { %v8825_v31 = vpop.f32.mrf.mxu1  ;;  %8944 = vmatprep.mubr.f32.mxu0 %v12539_v2  ;;  %v12595_v16 = vadd.s32 496, %v14175_v44  ;;  %vm5683_vm14 = vcmp.eq.s32.totalorder %v11500_v37, 64  ;;  %v4478_v37 = vand.u32 2, %v14179_v51 }
 0x365   :  { %8945 = vmatmul.mubr.f32.gmra.mxu0 %v12542_v21  ;;  %14284 = vst [vmem:[#allocation67_spill] sm:$0xff] %v12552_v55  ;;  %v12558_v10 = vsel %vm3966_vm2, %v8825_v31, %v12084_v17  ;;  %v3906_v59 = vand.u32 1, %v12552_v55  ;;  %vm3971_vm6 = vcmp.ne.s32.totalorder %v3907_v47, 0  ;;  %9085 = vmatprep.subr.msk.mxu0 %vm5683_vm14, %v13852_v49 }
 0x366   :  { %v4303_v54 = vpop.f32.mrf.mxu1  ;;  %9086 = vmatpush3.msk.msra.mxu0 %vm5683_vm14, %v13852_v49 }
 0x367   :  { %v12555_v62 = vsel %vm3965_vm1, %v4303_v54, %v12081_v38  ;;  %v12568_v38 = vadd.s32 472, %v14175_v44  ;;  %vm3970_vm5 = vcmp.ne.s32.totalorder %v3906_v59, 0  ;;  %v3909_v59 = vand.u32 1, %v12579_v19  ;;  %9087 = vmatprep.subr.msk.mxu0 %vm5682_vm15, %v13852_v49 }
 0x368   :  { %v8828_v4 = vpop.f32.mrf.mxu1  ;;  %8947 = vmatprep.mubr.f32.mxu0 %v12555_v62  ;;  %vm5681_vm1 = vcmp.eq.s32.totalorder %v11538_v0, 64  ;;  %9088 = vmatpush3.msk.msra.mxu0 %vm5682_vm15, %v13852_v49 }
 0x369   :  { %8948 = vmatmul.mubr.f32.gmra.mxu0 %v12558_v10  ;;  %14286 = vst [vmem:[#allocation52_spill] sm:$0xff] %v12568_v38  ;;  %v12574_v31 = vsel %vm3968_vm0, %v8828_v4, %v12092_v1  ;;  %v3908_v55 = vand.u32 1, %v12568_v38  ;;  %vm3973_vm8 = vcmp.ne.s32.totalorder %v3909_v59, 0  ;;  %vm5680_vm0 = vcmp.eq.s32.totalorder %v11558_v3, 64  ;;  %9089 = vmatprep.subr.msk.mxu0 %vm5681_vm1, %v13852_v49  ;;  %v14290_v3 = vld [vmem:[#allocation14_spill] sm:$0xff] }
 0x36a   :  { %v4313_v54 = vpop.f32.mrf.mxu1  ;;  %9090 = vmatpush3.msk.msra.mxu0 %vm5681_vm1, %v13852_v49 }
 0x36b   :  { %v12571_v17 = vsel %vm3967_vm3, %v4313_v54, %v12089_v45  ;;  %v12584_v45 = vadd.s32 488, %v14175_v44  ;;  %vm3972_vm7 = vcmp.ne.s32.totalorder %v3908_v55, 0  ;;  %v3911_v55 = vand.u32 1, %v12595_v16  ;;  %9091 = vmatprep.subr.msk.mxu0 %vm5680_vm0, %v13852_v49 }
 0x36c   :  { %v8831_v22 = vpop.f32.mrf.mxu1  ;;  %8950 = vmatprep.mubr.f32.mxu0 %v12571_v17  ;;  %9092 = vmatpush3.msk.msra.mxu0 %vm5680_vm0, %v13852_v49 }
 0x36d   :  { %8951 = vmatmul.mubr.f32.gmra.mxu0 %v12574_v31  ;;  %14288 = vst [vmem:[#allocation2_spill] sm:$0xff] %v12584_v45  ;;  %v12590_v4 = vsel %vm3970_vm5, %v8831_v22, %v12100_v60  ;;  %v3910_v38 = vand.u32 1, %v12584_v45  ;;  %vm3975_vm10 = vcmp.ne.s32.totalorder %v3911_v55, 0  ;;  %vm4542_vm5 = vcmp.ne.s32.totalorder %v4478_v37, 0 }
 0x36e   :  { %v4323_v54 = vpop.f32.mrf.mxu1  ;;  %14289 = vst [vmem:[#allocation24_spill] sm:$0xff] %v12590_v4 }
 0x36f   :  { %v12587_v1 = vsel %vm3969_vm4, %v4323_v54, %v12097_v34  ;;  %v12600_v34 = vadd.s32 504, %v14175_v44  ;;  %vm3974_vm9 = vcmp.ne.s32.totalorder %v3910_v38, 0  ;;  %vm5679_vm4 = vcmp.eq.s32.totalorder %v11579_v28, 64 }
 0x370   :  { %v8834_v8 = vpop.f32.mrf.mxu1  ;;  %8953 = vmatprep.mubr.f32.mxu0 %v12587_v1  ;;  %9093 = vmatprep.subr.msk.mxu0 %vm5679_vm4, %v13852_v49 }
 0x371   :  { %8954 = vmatmul.mubr.f32.gmra.mxu0 %v12590_v4  ;;  %v12606_v22 = vsel %vm3972_vm7, %v8834_v8, %v12108_v6  ;;  %v3912_v45 = vand.u32 1, %v12600_v34  ;;  %vm5678_vm7 = vcmp.eq.s32.totalorder %v11596_v20, 64  ;;  %v14292_v20 = vld [vmem:[#allocation10_spill] sm:$0xff] }
 0x372   :  { %v4333_v54 = vpop.f32.mrf.mxu1  ;;  %9094 = vmatpush3.msk.msra.mxu0 %vm5679_vm4, %v13852_v49 }
 0x373   :  { %v12603_v60 = vsel %vm3971_vm6, %v4333_v54, %v12105_v15  ;;  %vm3976_vm11 = vcmp.ne.s32.totalorder %v3912_v45, 0  ;;  %v4476_v45 = vand.u32 2, %v14177_v26  ;;  %vm4543_vm6 = vcmp.ne.s32.totalorder %v4479_v27, 0  ;;  %9095 = vmatprep.subr.msk.mxu0 %vm5678_vm7, %v13852_v49  ;;  %v14295_v27 = vld [vmem:[#allocation9_spill] sm:$0xff] }
 0x374   :  { %v8837_v47 = vpop.f32.mrf.mxu1  ;;  %8956 = vmatprep.mubr.f32.mxu0 %v12603_v60  ;;  %9096 = vmatpush3.msk.msra.mxu0 %vm5678_vm7, %v13852_v49 }
 0x375   :  { %8957 = vmatmul.mubr.f32.gmra.mxu0 %v12606_v22  ;;  %v12616_v15 = vsel %vm3974_vm9, %v8837_v47, %v12116_v33  ;;  %v4475_v33 = vand.u32 2, %v14176_v43  ;;  %vm4540_vm2 = vcmp.ne.s32.totalorder %v4476_v45, 0 }
 0x376   :  { %v4343_v19 = vpop.f32.mrf.mxu1 }
 0x377   :  { %v12613_v4 = vsel %vm3973_vm8, %v4343_v19, %v12113_v63  ;;  %v4474_v63 = vand.u32 2, %v14175_v44  ;;  %vm4539_vm13 = vcmp.ne.s32.totalorder %v4475_v33, 0 }
 0x378   :  { %v8840_v6 = vpop.f32.mrf.mxu1  ;;  %8959 = vmatprep.mubr.f32.mxu0 %v12613_v4 }
 0x379   :  { %8960 = vmatmul.mubr.f32.gmra.mxu0 %v12616_v15  ;;  %v12624_v59 = vsel %vm3976_vm11, %v8840_v6, %v12124_v56  ;;  %vm4538_vm12 = vcmp.ne.s32.totalorder %v4474_v63, 0 }
 0x37a   :  { %v4353_v8 = vpop.f32.mrf.mxu1 }
 0x37b   :  { %v12621_v38 = vsel %vm3975_vm10, %v4353_v8, %v12121_v42  ;;  %v4477_v42 = vand.u32 2, %v14178_v32  ;;  %v4480_v8 = vand.u32 2, %v14181_v12 }
 0x37c   :  { %8962 = vmatprep.mubr.f32.mxu0 %v12621_v38 }
 0x37d   :  { %8963 = vmatmul.mubr.f32.gmra.mxu0 %v12624_v59  ;;  %vm4541_vm3 = vcmp.ne.s32.totalorder %v4477_v42, 0  ;;  %vm4544_vm8 = vcmp.ne.s32.totalorder %v4480_v8, 0 }
 0x3c0   :  { %v8871_v19 = vpop.f32.mrf.mxu0 }
 0x3c1   :  { %v12639_v47 = vsel %vm4539_vm13, %v8871_v19, %v12139_v39  ;;  %v14291_v19 = vld [vmem:[#allocation12_spill] sm:$0xff] }
 0x3c2   :  { %v4668_v54 = vpop.f32.mrf.mxu0  ;;  %v4482_v45 = vand.u32 2, %v14291_v19 }
 0x3c3   :  { %v12635_v56 = vsel %vm4538_vm12, %v4668_v54, %v12135_v14  ;;  %v4483_v54 = vand.u32 2, %v14292_v20 }
 0x3c4   :  { %8989 = vmatprep.mubr.f32.mxu1 %v12635_v56  ;;  %v8874_v55 = vpop.f32.mrf.mxu0  ;;  %vm4546_vm10 = vcmp.ne.s32.totalorder %v4482_v45, 0 }
 0x3c5   :  { %8990 = vmatmul.mubr.f32.vlgmr.msra.gmra.mxu1 %v12639_v47  ;;  %v12657_v39 = vsel %vm4541_vm3, %v8874_v55, %v12157_v11  ;;  %vm4547_vm11 = vcmp.ne.s32.totalorder %v4483_v54, 0  ;;  %v14299_v54 = vld [vmem:[#allocation6_spill] sm:$0xff] }
 0x3c6   :  { %v4678_v14 = vpop.f32.mrf.mxu0 }
 0x3c7   :  { %v12652_v0 = vsel %vm4540_vm2, %v4678_v14, %v12152_v7  ;;  %v4481_v7 = vand.u32 2, %v14290_v3  ;;  %v4484_v14 = vand.u32 2, %v14295_v27  ;;  %v4487_v27 = vand.u32 2, %v14299_v54 }
 0x3c8   :  { %v8877_v6 = vpop.f32.mrf.mxu0  ;;  %8992 = vmatprep.mubr.f32.mxu1 %v12652_v0 }
 0x3c9   :  { %8993 = vmatmul.mubr.f32.gmra.mxu1 %v12657_v39  ;;  %v12672_v63 = vsel %vm4543_vm6, %v8877_v6, %v12173_v48  ;;  %vm4545_vm9 = vcmp.ne.s32.totalorder %v4481_v7, 0  ;;  %v14293_v48 = vld [vmem:[#allocation89_spill] sm:$0xff]  ;;  %v14296_v6 = vld [vmem:[#allocation8_spill] sm:$0xff]  ;;  %vm4548_vm12 = vcmp.ne.s32.totalorder %v4484_v14, 0  ;;  %vm4551_vm15 = vcmp.ne.s32.totalorder %v4487_v27, 0 }
 0x3ca   :  { %v4688_v28 = vpop.f32.mrf.mxu0  ;;  %v4485_v8 = vand.u32 2, %v14296_v6  ;;  %v14303_v27 = vld [vmem:[#allocation80_spill] sm:$0xff] }
 0x3cb   :  { %v12668_v11 = vsel %vm4542_vm5, %v4688_v28, %v12168_v29 }
 0x3cc   :  { %v8880_v33 = vpop.f32.mrf.mxu0  ;;  %8995 = vmatprep.mubr.f32.mxu1 %v12668_v11  ;;  %vm4549_vm13 = vcmp.ne.s32.totalorder %v4485_v8, 0  ;;  %v14301_v8 = vld [vmem:[#allocation4_spill] sm:$0xff] }
 0x3cd   :  { %8996 = vmatmul.mubr.f32.gmra.mxu1 %v12672_v63  ;;  %v12684_v55 = vsel %vm4545_vm9, %v8880_v33, %v14293_v48  ;;  %v14298_v48 = vld [vmem:[#allocation7_spill] sm:$0xff] }
 0x3ce   :  { %v4698_v29 = vpop.f32.mrf.mxu0  ;;  %14294 = vst [vmem:[#allocation23_spill] sm:$0xff] %v12684_v55  ;;  %v4486_v45 = vand.u32 2, %v14298_v48 }
 0x3cf   :  { %v12681_v42 = vsel %vm4544_vm8, %v4698_v29, %v12184_v50  ;;  %v14297_v50 = vld [vmem:[#allocation95_spill] sm:$0xff] }
 0x3d0   :  { %v8883_v37 = vpop.f32.mrf.mxu0  ;;  %8998 = vmatprep.mubr.f32.mxu1 %v12681_v42  ;;  %vm4550_vm14 = vcmp.ne.s32.totalorder %v4486_v45, 0  ;;  %v4491_v45 = vand.u32 2, %v14303_v27 }
 0x3d1   :  { %8999 = vmatmul.mubr.f32.gmra.mxu1 %v12684_v55  ;;  %v12694_v29 = vsel %vm4547_vm11, %v8883_v37, %v14297_v50  ;;  %v4489_v50 = vand.u32 2, %v14301_v8 }
 0x3d2   :  { %v4708_v7 = vpop.f32.mrf.mxu0  ;;  %vm4555_vm0 = vcmp.ne.s32.totalorder %v4491_v45, 0 }
 0x3d3   :  { %v12691_v28 = vsel %vm4546_vm10, %v4708_v7, %v12200_v36  ;;  %v14300_v7 = vld [vmem:[#allocation5_spill] sm:$0xff]  ;;  %vm4553_vm2 = vcmp.ne.s32.totalorder %v4489_v50, 0 }
 0x3d4   :  { %v8886_v33 = vpop.f32.mrf.mxu0  ;;  %9001 = vmatprep.mubr.f32.mxu1 %v12691_v28  ;;  %v4488_v14 = vand.u32 2, %v14300_v7 }
 0x3d5   :  { %9002 = vmatmul.mubr.f32.gmra.mxu1 %v12694_v29  ;;  %v12704_v36 = vsel %vm4549_vm13, %v8886_v33, %v12216_v57 }
 0x3d6   :  { %v4718_v55 = vpop.f32.mrf.mxu0  ;;  %vm4552_vm1 = vcmp.ne.s32.totalorder %v4488_v14, 0  ;;  %v14305_v14 = vld [vmem:[#allocation99_spill] sm:$0xff] }
 0x3d7   :  { %v12701_v6 = vsel %vm4548_vm12, %v4718_v55, %v12213_v18  ;;  %v14302_v55 = vld [vmem:[#allocation82_spill] sm:$0xff]  ;;  %v4493_v50 = vand.u32 2, %v14305_v14 }
 0x3d8   :  { %v8889_v37 = vpop.f32.mrf.mxu0  ;;  %9004 = vmatprep.mubr.f32.mxu1 %v12701_v6  ;;  %v4490_v33 = vand.u32 2, %v14302_v55 }
 0x3d9   :  { %9005 = vmatmul.mubr.f32.gmra.mxu1 %v12704_v36  ;;  %v12714_v18 = vsel %vm4551_vm15, %v8889_v37, %v12232_v25  ;;  %vm4557_vm5 = vcmp.ne.s32.totalorder %v4493_v50, 0 }
 0x3da   :  { %v4728_v48 = vpop.f32.mrf.mxu0  ;;  %vm4554_vm3 = vcmp.ne.s32.totalorder %v4490_v33, 0  ;;  %v14307_v33 = vld [vmem:[#allocation84_spill] sm:$0xff] }
 0x3db   :  { %v12711_v54 = vsel %vm4550_vm14, %v4728_v48, %v12229_v58  ;;  %v14304_v48 = vld [vmem:[#allocation93_spill] sm:$0xff]  ;;  %v4495_v45 = vand.u32 2, %v14307_v33 }
 0x3dc   :  { %v8892_v57 = vpop.f32.mrf.mxu0  ;;  %9007 = vmatprep.mubr.f32.mxu1 %v12711_v54  ;;  %v4492_v37 = vand.u32 2, %v14304_v48 }
 0x3dd   :  { %9008 = vmatmul.mubr.f32.gmra.mxu1 %v12714_v18  ;;  %v12724_v58 = vsel %vm4553_vm2, %v8892_v57, %v12248_v24  ;;  %vm4559_vm7 = vcmp.ne.s32.totalorder %v4495_v45, 0 }
 0x3de   :  { %v4738_v7 = vpop.f32.mrf.mxu0  ;;  %vm4556_vm4 = vcmp.ne.s32.totalorder %v4492_v37, 0  ;;  %v14310_v37 = vld [vmem:[#allocation88_spill] sm:$0xff] }
 0x3df   :  { %v12721_v8 = vsel %vm4552_vm1, %v4738_v7, %v12245_v41  ;;  %v14306_v7 = vld [vmem:[#allocation86_spill] sm:$0xff]  ;;  %v4497_v50 = vand.u32 2, %v14310_v37 }
 0x3e0   :  { %v8895_v25 = vpop.f32.mrf.mxu0  ;;  %9010 = vmatprep.mubr.f32.mxu1 %v12721_v8  ;;  %v4494_v57 = vand.u32 2, %v14306_v7  ;;  %v14315_v37 = vld [vmem:[#allocation94_spill] sm:$0xff] }
 0x3e1   :  { %9011 = vmatmul.mubr.f32.gmra.mxu1 %v12724_v58  ;;  %v12734_v41 = vsel %vm4555_vm0, %v8895_v25, %v12264_v30  ;;  %vm4561_vm9 = vcmp.ne.s32.totalorder %v4497_v50, 0  ;;  %v14320_v50 = vld [vmem:[#allocation105_spill] sm:$0xff] }
 0x3e2   :  { %v4748_v55 = vpop.f32.mrf.mxu0  ;;  %vm4558_vm6 = vcmp.ne.s32.totalorder %v4494_v57, 0  ;;  %v14314_v57 = vld [vmem:[#allocation103_spill] sm:$0xff] }
 0x3e3   :  { %v12731_v27 = vsel %vm4554_vm3, %v4748_v55, %v12261_v35  ;;  %v14309_v55 = vld [vmem:[#allocation97_spill] sm:$0xff]  ;;  %v4499_v45 = vand.u32 2, %v14314_v57  ;;  %v14321_v57 = vld [vmem:[#allocation98_spill] sm:$0xff] }
 0x3e4   :  { %v8898_v24 = vpop.f32.mrf.mxu0  ;;  %9013 = vmatprep.mubr.f32.mxu1 %v12731_v27  ;;  %v4496_v25 = vand.u32 2, %v14309_v55 }
 0x3e5   :  { %9014 = vmatmul.mubr.f32.gmra.mxu1 %v12734_v41  ;;  %v12744_v35 = vsel %vm4557_vm5, %v8898_v24, %v12280_v9  ;;  %vm4563_vm11 = vcmp.ne.s32.totalorder %v4499_v45, 0  ;;  %v14325_v45 = vld [vmem:[#allocation107_spill] sm:$0xff] }
 0x3e6   :  { %v4758_v48 = vpop.f32.mrf.mxu0  ;;  %14308 = vst [vmem:[#allocation21_spill] sm:$0xff] %v12744_v35  ;;  %vm4560_vm8 = vcmp.ne.s32.totalorder %v4496_v25, 0 }
 0x3e7   :  { %v12741_v14 = vsel %vm4556_vm4, %v4758_v48, %v12277_v5  ;;  %v14313_v48 = vld [vmem:[#allocation101_spill] sm:$0xff] }
 0x3e8   :  { %v8901_v30 = vpop.f32.mrf.mxu0  ;;  %9016 = vmatprep.mubr.f32.mxu1 %v12741_v14  ;;  %v4498_v24 = vand.u32 2, %v14313_v48  ;;  %v4501_v48 = vand.u32 2, %v14320_v50  ;;  %v14326_v50 = vld [vmem:[#allocation102_spill] sm:$0xff] }
 0x3e9   :  { %9017 = vmatmul.mubr.f32.gmra.mxu1 %v12744_v35  ;;  %v12754_v5 = vsel %vm4559_vm7, %v8901_v30, %v12296_v46  ;;  %v14319_v30 = vld [vmem:[#allocation90_spill] sm:$0xff] }
 0x3ea   :  { %v4768_v7 = vpop.f32.mrf.mxu0  ;;  %14312 = vst [vmem:[#allocation16_spill] sm:$0xff] %v12754_v5  ;;  %vm4562_vm10 = vcmp.ne.s32.totalorder %v4498_v24, 0  ;;  %v4500_v25 = vand.u32 2, %v14319_v30  ;;  %vm4565_vm13 = vcmp.ne.s32.totalorder %v4501_v48, 0  ;;  %v4503_v30 = vand.u32 2, %v14325_v45  ;;  %v14330_v48 = vld [vmem:[#allocation109_spill] sm:$0xff] }
 0x3eb   :  { %v12751_v33 = vsel %vm4558_vm6, %v4768_v7, %v12293_v52  ;;  %v14317_v52 = vld [vmem:[#allocation92_spill] sm:$0xff]  ;;  %v14331_v45 = vld [vmem:[#allocation110_spill] sm:$0xff] }
 0x3ec   :  { %14311 = vst [vmem:[#allocation19_spill] sm:$0xff] %v12751_v33  ;;  %v8904_v9 = vpop.f32.mrf.mxu0  ;;  %9019 = vmatprep.mubr.f32.mxu1 %v12751_v33  ;;  %vm4564_vm12 = vcmp.ne.s32.totalorder %v4500_v25, 0  ;;  %vm4567_vm15 = vcmp.ne.s32.totalorder %v4503_v30, 0  ;;  %v14336_v30 = vld [vmem:[#allocation108_spill] sm:$0xff] }
 0x3ed   :  { %9020 = vmatmul.mubr.f32.gmra.mxu1 %v12754_v5  ;;  %v12764_v7 = vsel %vm4561_vm9, %v8904_v9, %v14317_v52  ;;  %v14324_v52 = vld [vmem:[#allocation104_spill] sm:$0xff] }
 0x3ee   :  { %v4778_v55 = vpop.f32.mrf.mxu0  ;;  %14318 = vst [vmem:[#allocation56_spill] sm:$0xff] %v12764_v7  ;;  %v4502_v24 = vand.u32 2, %v14324_v52 }
 0x3ef   :  { %v12761_v35 = vsel %vm4560_vm8, %v4778_v55, %v14315_v37  ;;  %v14322_v55 = vld [vmem:[#allocation96_spill] sm:$0xff] }
 0x3f0   :  { %14316 = vst [vmem:[#allocation65_spill] sm:$0xff] %v12761_v35  ;;  %v8907_v46 = vpop.f32.mrf.mxu0  ;;  %9022 = vmatprep.mubr.f32.mxu1 %v12761_v35  ;;  %vm4566_vm14 = vcmp.ne.s32.totalorder %v4502_v24, 0 }
 0x3f1   :  { %9023 = vmatmul.mubr.f32.gmra.mxu1 %v12764_v7  ;;  %v12774_v37 = vsel %vm4563_vm11, %v8907_v46, %v14322_v55  ;;  %v14329_v46 = vld [vmem:[#allocation106_spill] sm:$0xff]  ;;  %v4505_v55 = vand.u32 2, %v14330_v48  ;;  %v14337_v48 = vld [vmem:[#allocation112_spill] sm:$0xff] }
 0x3f2   :  { %v4788_v5 = vpop.f32.mrf.mxu0  ;;  %14323 = vst [vmem:[#allocation69_spill] sm:$0xff] %v12774_v37  ;;  %v4504_v25 = vand.u32 2, %v14329_v46  ;;  %v4507_v46 = vand.u32 2, %v14336_v30  ;;  %v14342_v30 = vld [vmem:[#allocation114_spill] sm:$0xff] }
 0x3f3   :  { %v12771_v33 = vsel %vm4562_vm10, %v4788_v5, %v14321_v57  ;;  %vm4569_vm2 = vcmp.ne.s32.totalorder %v4505_v55, 0  ;;  %v14341_v55 = vld [vmem:[#allocation13_spill] sm:$0xff] }
 0x3f4   :  { %v8910_v9 = vpop.f32.mrf.mxu0  ;;  %9025 = vmatprep.mubr.f32.mxu1 %v12771_v33  ;;  %vm4568_vm1 = vcmp.ne.s32.totalorder %v4504_v25, 0  ;;  %vm4571_vm0 = vcmp.ne.s32.totalorder %v4507_v46, 0  ;;  %v14347_v46 = vld [vmem:[#allocation17_spill] sm:$0xff] }
 0x3f5   :  { %9026 = vmatmul.mubr.f32.gmra.mxu1 %v12774_v37  ;;  %v12784_v5 = vsel %vm4565_vm13, %v8910_v9, %v12344_v13  ;;  %v14335_v9 = vld [vmem:[#allocation100_spill] sm:$0xff] }
 0x3f6   :  { %v4798_v7 = vpop.f32.mrf.mxu0  ;;  %14328 = vst [vmem:[#allocation58_spill] sm:$0xff] %v12784_v5  ;;  %v4506_v24 = vand.u32 2, %v14335_v9  ;;  %v4509_v9 = vand.u32 2, %v14341_v55 }
 0x3f7   :  { %v12781_v35 = vsel %vm4564_vm12, %v4798_v7, %v14326_v50  ;;  %v14333_v7 = vld [vmem:[#allocation11_spill] sm:$0xff] }
 0x3f8   :  { %14327 = vst [vmem:[#allocation71_spill] sm:$0xff] %v12781_v35  ;;  %v8913_v57 = vpop.f32.mrf.mxu0  ;;  %9028 = vmatprep.mubr.f32.mxu1 %v12781_v35  ;;  %vm4570_vm3 = vcmp.ne.s32.totalorder %v4506_v24, 0  ;;  %vm4573_vm5 = vcmp.ne.s32.totalorder %v4509_v9, 0 }
 0x3f9   :  { %9029 = vmatmul.mubr.f32.gmra.mxu1 %v12784_v5  ;;  %v12794_v50 = vsel %vm4567_vm15, %v8913_v57, %v14333_v7  ;;  %v14340_v7 = vld [vmem:[#allocation111_spill] sm:$0xff] }
 0x3fa   :  { %v4808_v52 = vpop.f32.mrf.mxu0  ;;  %14334 = vst [vmem:[#allocation62_spill] sm:$0xff] %v12794_v50  ;;  %v4508_v25 = vand.u32 2, %v14340_v7  ;;  %v4511_v7 = vand.u32 2, %v14347_v46  ;;  %v14354_v46 = vld [vmem:[#allocation115_spill] sm:$0xff] }
 0x3fb   :  { %v12791_v37 = vsel %vm4566_vm14, %v4808_v52, %v14331_v45  ;;  %v14338_v52 = vld [vmem:[#allocation15_spill] sm:$0xff] }
 0x3fc   :  { %14332 = vst [vmem:[#allocation75_spill] sm:$0xff] %v12791_v37  ;;  %v8916_v13 = vpop.f32.mrf.mxu0  ;;  %9031 = vmatprep.mubr.f32.mxu1 %v12791_v37  ;;  %vm4572_vm4 = vcmp.ne.s32.totalorder %v4508_v25, 0  ;;  %v14352_v25 = vld [vmem:[#allocation27_spill] sm:$0xff]  ;;  %vm4575_vm9 = vcmp.ne.s32.totalorder %v4511_v7, 0  ;;  %v14361_v7 = vld [vmem:[#allocation33_spill] sm:$0xff] }
 0x3fd   :  { %9032 = vmatmul.mubr.f32.gmra.mxu1 %v12794_v50  ;;  %v12804_v45 = vsel %vm4569_vm2, %v8916_v13, %v14338_v52  ;;  %v14346_v52 = vld [vmem:[#allocation113_spill] sm:$0xff] }
 0x3fe   :  { %v4818_v5 = vpop.f32.mrf.mxu0  ;;  %14339 = vst [vmem:[#allocation60_spill] sm:$0xff] %v12804_v45  ;;  %v4510_v24 = vand.u32 2, %v14346_v52  ;;  %v4512_v52 = vand.u32 2, %v14354_v46 }
 0x3ff   :  { %v12801_v35 = vsel %vm4568_vm1, %v4818_v5, %v14337_v48  ;;  %v14344_v5 = vld [vmem:[#allocation18_spill] sm:$0xff] }
 0x400   :  { %v8919_v57 = vpop.f32.mrf.mxu0  ;;  %9034 = vmatprep.mubr.f32.mxu1 %v12801_v35  ;;  %vm4574_vm8 = vcmp.ne.s32.totalorder %v4510_v24, 0  ;;  %vm4576_vm10 = vcmp.ne.s32.totalorder %v4512_v52, 0  ;;  %v14360_v24 = vld [vmem:[#allocation35_spill] sm:$0xff] }
 0x401   :  { %9035 = vmatmul.mubr.f32.gmra.mxu1 %v12804_v45  ;;  %v12814_v48 = vsel %vm4571_vm0, %v8919_v57, %v14344_v5  ;;  %v14348_v45 = vld [vmem:[#allocation42_spill] sm:$0xff]  ;;  %v4514_v46 = vand.u32 2, %v14360_v24 }
 0x402   :  { %v4828_v50 = vpop.f32.mrf.mxu0  ;;  %14345 = vst [vmem:[#allocation64_spill] sm:$0xff] %v12814_v48  ;;  %vm5677_vm6 = vcmp.eq.s32.totalorder %v14348_v45, 64  ;;  %v14355_v45 = vld [vmem:[#allocation20_spill] sm:$0xff] }
 0x403   :  { %v12811_v37 = vsel %vm4570_vm3, %v4828_v50, %v14342_v30  ;;  %9097 = vmatprep.subr.msk.mxu0 %vm5677_vm6, %v13852_v49  ;;  %v14349_v50 = vld [vmem:[#allocation46_spill] sm:$0xff]  ;;  %v14350_v30 = vld [vmem:[#allocation25_spill] sm:$0xff]  ;;  %vm4578_vm12 = vcmp.ne.s32.totalorder %v4514_v46, 0 }
 0x404   :  { %14343 = vst [vmem:[#allocation73_spill] sm:$0xff] %v12811_v37  ;;  %v8922_v13 = vpop.f32.mrf.mxu0  ;;  %9037 = vmatprep.mubr.f32.mxu1 %v12811_v37  ;;  %vm5676_vm7 = vcmp.eq.s32.totalorder %v14349_v50, 64  ;;  %9098 = vmatpush3.msk.msra.mxu0 %vm5677_vm6, %v13852_v49  ;;  %v4513_v50 = vand.u32 2, %v14355_v45  ;;  %v4515_v45 = vand.u32 2, %v14361_v7  ;;  %v14368_v7 = vld [vmem:[#allocation30_spill] sm:$0xff] }
 0x405   :  { %9038 = vmatmul.mubr.f32.gmra.mxu1 %v12814_v48  ;;  %v12828_v5 = vsel %vm4573_vm5, %v8922_v13, %v14352_v25  ;;  %9099 = vmatprep.subr.msk.mxu0 %vm5676_vm7, %v13852_v49  ;;  %v14358_v13 = vld [vmem:[#allocation37_spill] sm:$0xff] }
 0x406   :  { %v4838_v55 = vpop.f32.mrf.mxu0  ;;  %14353 = vst [vmem:[#allocation79_spill] sm:$0xff] %v12828_v5  ;;  %9100 = vmatpush3.msk.msra.mxu0 %vm5676_vm7, %v13852_v49  ;;  %vm4577_vm11 = vcmp.ne.s32.totalorder %v4513_v50, 0  ;;  %v14362_v49 = vld [vmem:[#allocation39_spill] sm:$0xff]  ;;  %vm4579_vm13 = vcmp.ne.s32.totalorder %v4515_v45, 0  ;;  %v14367_v50 = vld [vmem:[#allocation29_spill] sm:$0xff] }
 0x407   :  { %v12824_v57 = vsel %vm4572_vm4, %v4838_v55, %v14350_v30  ;;  %v14356_v30 = vld [vmem:[#allocation26_spill] sm:$0xff]  ;;  %v4517_v24 = vand.u32 2, %v14367_v50  ;;  %v14372_v45 = vld [vmem:[#allocation41_spill] sm:$0xff]  ;;  %v14373_v50 = vld [vmem:[#allocation47_spill] sm:$0xff] }
 0x408   :  { %14351 = vst [vmem:[#allocation77_spill] sm:$0xff] %v12824_v57  ;;  %v8925_v9 = vpop.f32.mrf.mxu0  ;;  %9040 = vmatprep.mubr.f32.mxu1 %v12824_v57 }
 0x409   :  { %9041 = vmatmul.mubr.f32.gmra.mxu1 %v12828_v5  ;;  %v12840_v25 = vsel %vm4575_vm9, %v8925_v9, %v14358_v13  ;;  %v14366_v13 = vld [vmem:[#allocation28_spill] sm:$0xff]  ;;  %vm4581_vm15 = vcmp.ne.s32.totalorder %v4517_v24, 0  ;;  %v14377_v24 = vld [vmem:[#allocation34_spill] sm:$0xff] }
 0x40a   :  { %v4848_v55 = vpop.f32.mrf.mxu0  ;;  %14359 = vst [vmem:[#allocation83_spill] sm:$0xff] %v12840_v25  ;;  %v4516_v52 = vand.u32 2, %v14366_v13  ;;  %v4519_v13 = vand.u32 2, %v14372_v45  ;;  %v14378_v45 = vld [vmem:[#allocation49_spill] sm:$0xff] }
 0x40b   :  { %v12837_v48 = vsel %vm4574_vm8, %v4848_v55, %v14356_v30  ;;  %v14364_v55 = vld [vmem:[#allocation31_spill] sm:$0xff] }
 0x40c   :  { %14357 = vst [vmem:[#allocation66_spill] sm:$0xff] %v12837_v48  ;;  %v8928_v57 = vpop.f32.mrf.mxu0  ;;  %9043 = vmatprep.mubr.f32.mxu1 %v12837_v48  ;;  %vm4580_vm14 = vcmp.ne.s32.totalorder %v4516_v52, 0  ;;  %vm4583_vm2 = vcmp.ne.s32.totalorder %v4519_v13, 0  ;;  %v14382_v13 = vld [vmem:[#allocation51_spill] sm:$0xff] }
 0x40d   :  { %9044 = vmatmul.mubr.f32.gmra.mxu1 %v12840_v25  ;;  %v12850_v30 = vsel %vm4577_vm11, %v8928_v57, %v14364_v55  ;;  %v14371_v55 = vld [vmem:[#allocation43_spill] sm:$0xff] }
 0x40e   :  { %v4858_v5 = vpop.f32.mrf.mxu0  ;;  %14365 = vst [vmem:[#allocation68_spill] sm:$0xff] %v12850_v30  ;;  %v4518_v46 = vand.u32 2, %v14371_v55 }
 0x40f   :  { %v12847_v37 = vsel %vm4576_vm10, %v4858_v5, %v14362_v49  ;;  %v14369_v49 = vld [vmem:[#allocation45_spill] sm:$0xff] }
 0x410   :  { %14363 = vst [vmem:[#allocation70_spill] sm:$0xff] %v12847_v37  ;;  %v8931_v9 = vpop.f32.mrf.mxu0  ;;  %9046 = vmatprep.mubr.f32.mxu1 %v12847_v37  ;;  %vm4582_vm1 = vcmp.ne.s32.totalorder %v4518_v46, 0 }
 0x411   :  { %9047 = vmatmul.mubr.f32.gmra.mxu1 %v12850_v30  ;;  %v12860_v5 = vsel %vm4579_vm13, %v8931_v9, %v14369_v49  ;;  %v14376_v9 = vld [vmem:[#allocation32_spill] sm:$0xff]  ;;  %v4521_v49 = vand.u32 2, %v14377_v24  ;;  %v14383_v24 = vld [vmem:[#allocation59_spill] sm:$0xff] }
 0x412   :  { %v4868_v25 = vpop.f32.mrf.mxu0  ;;  %14370 = vst [vmem:[#allocation81_spill] sm:$0xff] %v12860_v5  ;;  %v4520_v52 = vand.u32 2, %v14376_v9  ;;  %v4523_v9 = vand.u32 2, %v14382_v13  ;;  %v14386_v13 = vld [vmem:[#allocation44_spill] sm:$0xff] }
 0x413   :  { %v12857_v48 = vsel %vm4578_vm12, %v4868_v25, %v14368_v7  ;;  %vm4585_vm0 = vcmp.ne.s32.totalorder %v4521_v49, 0  ;;  %v14385_v49 = vld [vmem:[#allocation40_spill] sm:$0xff] }
 0x414   :  { %9049 = vmatprep.mubr.f32.mxu1 %v12857_v48  ;;  %vm4584_vm3 = vcmp.ne.s32.totalorder %v4520_v52, 0  ;;  %vm4587_vm5 = vcmp.ne.s32.totalorder %v4523_v9, 0  ;;  %v14388_v9 = vld [vmem:[#allocation57_spill] sm:$0xff] }
 0x415   :  { %v8934_v57 = vpop.f32.mrf.mxu0  ;;  %9050 = vmatmul.mubr.f32.gmra.mxu1 %v12860_v5 }
 0x416   :  { %v12870_v25 = vsel %vm4581_vm15, %v8934_v57, %v12478_v40  ;;  %v14381_v57 = vld [vmem:[#allocation38_spill] sm:$0xff] }
 0x417   :  { %v4878_v30 = vpop.f32.mrf.mxu0  ;;  %14375 = vst [vmem:[#allocation74_spill] sm:$0xff] %v12870_v25  ;;  %v4522_v46 = vand.u32 2, %v14381_v57 }
 0x418   :  { %v12867_v37 = vsel %vm4580_vm14, %v4878_v30, %v14373_v50  ;;  %v14379_v30 = vld [vmem:[#allocation36_spill] sm:$0xff] }
 0x419   :  { %14374 = vst [vmem:[#allocation87_spill] sm:$0xff] %v12867_v37  ;;  %v8937_v7 = vpop.f32.mrf.mxu0  ;;  %9052 = vmatprep.mubr.f32.mxu1 %v12867_v37  ;;  %vm4586_vm4 = vcmp.ne.s32.totalorder %v4522_v46, 0  ;;  %v4527_v46 = vand.u32 2, %v14388_v9 }
 0x41a   :  { %9053 = vmatmul.mubr.f32.gmra.mxu1 %v12870_v25  ;;  %v12880_v50 = vsel %vm4583_vm2, %v8937_v7, %v14379_v30  ;;  %v14384_v7 = vld [vmem:[#allocation53_spill] sm:$0xff]  ;;  %v4525_v30 = vand.u32 2, %v14385_v49 }
 0x41b   :  { %v4888_v55 = vpop.f32.mrf.mxu0  ;;  %14380 = vst [vmem:[#allocation72_spill] sm:$0xff] %v12880_v50  ;;  %v4524_v52 = vand.u32 2, %v14384_v7  ;;  %vm4591_vm9 = vcmp.ne.s32.totalorder %v4527_v46, 0 }
 0x41c   :  { %v12877_v5 = vsel %vm4582_vm1, %v4888_v55, %v14378_v45  ;;  %vm4589_vm7 = vcmp.ne.s32.totalorder %v4525_v30, 0 }
 0x41d   :  { %v8940_v40 = vpop.f32.mrf.mxu0  ;;  %9055 = vmatprep.mubr.f32.mxu1 %v12877_v5  ;;  %vm4588_vm6 = vcmp.ne.s32.totalorder %v4524_v52, 0  ;;  %v14390_v52 = vld [vmem:[#allocation48_spill] sm:$0xff] }
 0x41e   :  { %9056 = vmatmul.mubr.f32.gmra.mxu1 %v12880_v50  ;;  %v12890_v55 = vsel %vm4585_vm0, %v8940_v40, %v12510_v23  ;;  %v4529_v30 = vand.u32 2, %v14390_v52 }
 0x41f   :  { %v4898_v25 = vpop.f32.mrf.mxu0 }
 0x420   :  { %v12887_v37 = vsel %vm4584_vm3, %v4898_v25, %v14383_v24  ;;  %v14387_v24 = vld [vmem:[#allocation55_spill] sm:$0xff]  ;;  %vm4593_vm11 = vcmp.ne.s32.totalorder %v4529_v30, 0 }
 0x421   :  { %v8943_v45 = vpop.f32.mrf.mxu0  ;;  %9058 = vmatprep.mubr.f32.mxu1 %v12887_v37  ;;  %v4526_v40 = vand.u32 2, %v14387_v24 }
 0x422   :  { %9059 = vmatmul.mubr.f32.gmra.mxu1 %v12890_v55  ;;  %v12900_v25 = vsel %vm4587_vm5, %v8943_v45, %v12526_v53 }
 0x423   :  { %v4908_v57 = vpop.f32.mrf.mxu0  ;;  %vm4590_vm8 = vcmp.ne.s32.totalorder %v4526_v40, 0  ;;  %v14392_v40 = vld [vmem:[#allocation67_spill] sm:$0xff] }
 0x424   :  { %v12897_v50 = vsel %vm4586_vm4, %v4908_v57, %v14386_v13  ;;  %v14389_v13 = vld [vmem:[#allocation61_spill] sm:$0xff]  ;;  %v4531_v46 = vand.u32 2, %v14392_v40 }
 0x425   :  { %v8946_v23 = vpop.f32.mrf.mxu0  ;;  %9061 = vmatprep.mubr.f32.mxu1 %v12897_v50  ;;  %v4528_v45 = vand.u32 2, %v14389_v13 }
 0x426   :  { %9062 = vmatmul.mubr.f32.gmra.mxu1 %v12900_v25  ;;  %v12910_v57 = vsel %vm4589_vm7, %v8946_v23, %v12542_v21  ;;  %vm4595_vm13 = vcmp.ne.s32.totalorder %v4531_v46, 0  ;;  %v14398_v46 = vld [vmem:[#allocation2_spill] sm:$0xff] }
 0x427   :  { %v4918_v7 = vpop.f32.mrf.mxu0  ;;  %vm4592_vm10 = vcmp.ne.s32.totalorder %v4528_v45, 0  ;;  %v14395_v45 = vld [vmem:[#allocation52_spill] sm:$0xff] }
 0x428   :  { %v12907_v49 = vsel %vm4588_vm6, %v4918_v7, %v12539_v2  ;;  %v14391_v7 = vld [vmem:[#allocation63_spill] sm:$0xff]  ;;  %v4533_v30 = vand.u32 2, %v14395_v45 }
 0x429   :  { %v8949_v53 = vpop.f32.mrf.mxu0  ;;  %9064 = vmatprep.mubr.f32.mxu1 %v12907_v49  ;;  %v4530_v23 = vand.u32 2, %v14391_v7 }
 0x42a   :  { %9065 = vmatmul.mubr.f32.gmra.mxu1 %v12910_v57  ;;  %v12920_v2 = vsel %vm4591_vm9, %v8949_v53, %v12558_v10  ;;  %vm4597_vm15 = vcmp.ne.s32.totalorder %v4533_v30, 0 }
 0x42b   :  { %v4928_v24 = vpop.f32.mrf.mxu0  ;;  %vm4594_vm12 = vcmp.ne.s32.totalorder %v4530_v23, 0 }
 0x42c   :  { %v12917_v9 = vsel %vm4590_vm8, %v4928_v24, %v12555_v62  ;;  %v14394_v24 = vld [vmem:[#allocation50_spill] sm:$0xff] }
 0x42d   :  { %v8952_v21 = vpop.f32.mrf.mxu0  ;;  %9067 = vmatprep.mubr.f32.mxu1 %v12917_v9  ;;  %v4532_v53 = vand.u32 2, %v14394_v24  ;;  %v4535_v24 = vand.u32 2, %v14398_v46 }
 0x42e   :  { %9068 = vmatmul.mubr.f32.gmra.mxu1 %v12920_v2  ;;  %v12930_v62 = vsel %vm4593_vm11, %v8952_v21, %v12574_v31  ;;  %v14397_v21 = vld [vmem:[#allocation54_spill] sm:$0xff] }
 0x42f   :  { %v4938_v13 = vpop.f32.mrf.mxu0  ;;  %14393 = vst [vmem:[#allocation85_spill] sm:$0xff] %v12930_v62  ;;  %vm4596_vm14 = vcmp.ne.s32.totalorder %v4532_v53, 0  ;;  %v4534_v23 = vand.u32 2, %v14397_v21  ;;  %vm4599_vm2 = vcmp.ne.s32.totalorder %v4535_v24, 0  ;;  %v4537_v53 = vand.u32 2, %v12600_v34 }
 0x430   :  { %v12927_v52 = vsel %vm4592_vm10, %v4938_v13, %v12571_v17  ;;  %v14396_v17 = vld [vmem:[#allocation24_spill] sm:$0xff] }
 0x431   :  { %v8955_v10 = vpop.f32.mrf.mxu0  ;;  %9070 = vmatprep.mubr.f32.mxu1 %v12927_v52  ;;  %vm4598_vm1 = vcmp.ne.s32.totalorder %v4534_v23, 0  ;;  %vm4601_vm0 = vcmp.ne.s32.totalorder %v4537_v53, 0 }
 0x432   :  { %9071 = vmatmul.mubr.f32.gmra.mxu1 %v12930_v62  ;;  %v12940_v13 = vsel %vm4595_vm13, %v8955_v10, %v14396_v17  ;;  %v4536_v10 = vand.u32 2, %v12595_v16 }
 0x433   :  { %v4948_v7 = vpop.f32.mrf.mxu0 }
 0x434   :  { %v12937_v40 = vsel %vm4594_vm12, %v4948_v7, %v12587_v1  ;;  %vm4600_vm3 = vcmp.ne.s32.totalorder %v4536_v10, 0 }
 0x435   :  { %v8958_v31 = vpop.f32.mrf.mxu0  ;;  %9073 = vmatprep.mubr.f32.mxu1 %v12937_v40 }
 0x436   :  { %9074 = vmatmul.mubr.f32.gmra.mxu1 %v12940_v13  ;;  %v12950_v1 = vsel %vm4597_vm15, %v8958_v31, %v12606_v22 }
 0x437   :  { %v4958_v62 = vpop.f32.mrf.mxu0 }
 0x438   :  { %v12947_v45 = vsel %vm4596_vm14, %v4958_v62, %v12603_v60 }
 0x439   :  { %v8961_v7 = vpop.f32.mrf.mxu0  ;;  %9076 = vmatprep.mubr.f32.mxu1 %v12947_v45 }
 0x43a   :  { %9077 = vmatmul.mubr.f32.gmra.mxu1 %v12950_v1  ;;  %v12960_v60 = vsel %vm4599_vm2, %v8961_v7, %v12616_v15  ;;  %v5100_v15 = vand.u32 4, %v14176_v43  ;;  %v5101_v7 = vand.u32 4, %v14177_v26 }
 0x43b   :  { %v4968_v30 = vpop.f32.mrf.mxu0 }
 0x43c   :  { %v12957_v17 = vsel %vm4598_vm1, %v4968_v30, %v12613_v4  ;;  %v5099_v4 = vand.u32 4, %v14175_v44  ;;  %vm5164_vm5 = vcmp.ne.s32.totalorder %v5100_v15, 0  ;;  %vm5165_vm6 = vcmp.ne.s32.totalorder %v5101_v7, 0 }
 0x43d   :  { %v8964_v22 = vpop.f32.mrf.mxu0  ;;  %9079 = vmatprep.mubr.f32.mxu1 %v12957_v17 }
 0x43e   :  { %9080 = vmatmul.mubr.f32.gmra.mxu1 %v12960_v60  ;;  %v12968_v31 = vsel %vm4601_vm0, %v8964_v22, %v12624_v59  ;;  %vm5163_vm4 = vcmp.ne.s32.totalorder %v5099_v4, 0  ;;  %v5103_v22 = vand.u32 4, %v14179_v51 }
 0x43f   :  { %v4978_v62 = vpop.f32.mrf.mxu0 }
 0x440   :  { %v12965_v24 = vsel %vm4600_vm3, %v4978_v62, %v12621_v38  ;;  %v5102_v38 = vand.u32 4, %v14178_v32  ;;  %v5104_v62 = vand.u32 4, %v14180_v61  ;;  %vm5167_vm8 = vcmp.ne.s32.totalorder %v5103_v22, 0 }
 0x441   :  { %9082 = vmatprep.mubr.f32.mxu1 %v12965_v24 }
 0x442   :  { %9083 = vmatmul.mubr.f32.gmra.mxu1 %v12968_v31  ;;  %vm5166_vm7 = vcmp.ne.s32.totalorder %v5102_v38, 0  ;;  %vm5168_vm9 = vcmp.ne.s32.totalorder %v5104_v62, 0 }
 0x485   :  { %v8991_v23 = vpop.f32.mrf.mxu1 }
 0x486   :  { %v5613_v59 = vsel %vm5164_vm5, %v8991_v23, %v12639_v47  ;;  %v5105_v47 = vand.u32 4, %v14181_v12  ;;  %v5106_v23 = vand.u32 4, %v14290_v3  ;;  %v5108_v12 = vand.u32 4, %v14292_v20  ;;  %v14399_v3 = vld [vmem:[#allocation23_spill] sm:$0xff] }
 0x487   :  { %v5293_v10 = vpop.f32.mrf.mxu1 }
 0x488   :  { %v12977_v53 = vsel %vm5163_vm4, %v5293_v10, %v12635_v56  ;;  %vm5169_vm10 = vcmp.ne.s32.totalorder %v5105_v47, 0  ;;  %vm5170_vm11 = vcmp.ne.s32.totalorder %v5106_v23, 0  ;;  %vm5172_vm13 = vcmp.ne.s32.totalorder %v5108_v12, 0  ;;  %v14403_v47 = vld [vmem:[#allocation6_spill] sm:$0xff]  ;;  %v14405_v12 = vld [vmem:[#allocation4_spill] sm:$0xff] }
 0x489   :  { %9101 = vmatprep.mubr.f32.mxu0 %v12977_v53  ;;  %v8994_v30 = vpop.f32.mrf.mxu1  ;;  %v5112_v23 = vand.u32 4, %v14403_v47 }
 0x48a   :  { %9102 = vmatmul.mubr.f32.vlgmr.msra.gmra.mxu0 %v5613_v59  ;;  %v5615_v32 = vsel %vm5166_vm7, %v8994_v30, %v12657_v39  ;;  %v5107_v39 = vand.u32 4, %v14291_v19  ;;  %v14401_v30 = vld [vmem:[#allocation8_spill] sm:$0xff] }
 0x48b   :  { %v5303_v4 = vpop.f32.mrf.mxu1  ;;  %v5110_v19 = vand.u32 4, %v14401_v30  ;;  %vm5176_vm2 = vcmp.ne.s32.totalorder %v5112_v23, 0 }
 0x48c   :  { %v12984_v15 = vsel %vm5165_vm6, %v5303_v4, %v12652_v0  ;;  %vm5171_vm12 = vcmp.ne.s32.totalorder %v5107_v39, 0  ;;  %v14402_v4 = vld [vmem:[#allocation7_spill] sm:$0xff] }
 0x48d   :  { %v8997_v56 = vpop.f32.mrf.mxu1  ;;  %9104 = vmatprep.mubr.f32.mxu0 %v12984_v15  ;;  %vm5174_vm15 = vcmp.ne.s32.totalorder %v5110_v19, 0 }
 0x48e   :  { %9105 = vmatmul.mubr.f32.gmra.mxu0 %v5615_v32  ;;  %v5617_v61 = vsel %vm5168_vm9, %v8997_v56, %v12672_v63  ;;  %v14400_v63 = vld [vmem:[#allocation9_spill] sm:$0xff]  ;;  %v5111_v56 = vand.u32 4, %v14402_v4  ;;  %v14409_v4 = vld [vmem:[#allocation99_spill] sm:$0xff] }
 0x48f   :  { %v5313_v51 = vpop.f32.mrf.mxu1  ;;  %v5109_v59 = vand.u32 4, %v14400_v63 }
 0x490   :  { %v12991_v7 = vsel %vm5167_vm8, %v5313_v51, %v12668_v11  ;;  %vm5175_vm1 = vcmp.ne.s32.totalorder %v5111_v56, 0  ;;  %v5118_v56 = vand.u32 4, %v14409_v4 }
 0x491   :  { %v9000_v0 = vpop.f32.mrf.mxu1  ;;  %9107 = vmatprep.mubr.f32.mxu0 %v12991_v7  ;;  %vm5173_vm14 = vcmp.ne.s32.totalorder %v5109_v59, 0  ;;  %v14407_v59 = vld [vmem:[#allocation80_spill] sm:$0xff] }
 0x492   :  { %9108 = vmatmul.mubr.f32.gmra.mxu0 %v5617_v61  ;;  %v5619_v38 = vsel %vm5170_vm11, %v9000_v0, %v14399_v3  ;;  %v5116_v30 = vand.u32 4, %v14407_v59  ;;  %vm5182_vm7 = vcmp.ne.s32.totalorder %v5118_v56, 0  ;;  %v14415_v59 = vld [vmem:[#allocation19_spill] sm:$0xff] }
 0x493   :  { %v5323_v10 = vpop.f32.mrf.mxu1 }
 0x494   :  { %v12998_v32 = vsel %vm5169_vm10, %v5323_v10, %v12681_v42  ;;  %v5114_v10 = vand.u32 4, %v14405_v12  ;;  %vm5180_vm5 = vcmp.ne.s32.totalorder %v5116_v30, 0 }
 0x495   :  { %v9003_v11 = vpop.f32.mrf.mxu1  ;;  %9110 = vmatprep.mubr.f32.mxu0 %v12998_v32 }
 0x496   :  { %9111 = vmatmul.mubr.f32.gmra.mxu0 %v5619_v38  ;;  %v5621_v20 = vsel %vm5172_vm13, %v9003_v11, %v12694_v29  ;;  %v14404_v29 = vld [vmem:[#allocation5_spill] sm:$0xff]  ;;  %vm5178_vm0 = vcmp.ne.s32.totalorder %v5114_v10, 0 }
 0x497   :  { %v5333_v22 = vpop.f32.mrf.mxu1  ;;  %v5113_v39 = vand.u32 4, %v14404_v29  ;;  %v14412_v10 = vld [vmem:[#allocation21_spill] sm:$0xff] }
 0x498   :  { %v13005_v62 = vsel %vm5171_vm12, %v5333_v22, %v12691_v28 }
 0x499   :  { %v9006_v42 = vpop.f32.mrf.mxu1  ;;  %9113 = vmatprep.mubr.f32.mxu0 %v13005_v62  ;;  %vm5177_vm3 = vcmp.ne.s32.totalorder %v5113_v39, 0 }
 0x49a   :  { %9114 = vmatmul.mubr.f32.gmra.mxu0 %v5621_v20  ;;  %v5623_v0 = vsel %vm5174_vm15, %v9006_v42, %v12704_v36  ;;  %v14406_v36 = vld [vmem:[#allocation82_spill] sm:$0xff] }
 0x49b   :  { %v5343_v51 = vpop.f32.mrf.mxu1  ;;  %v5115_v63 = vand.u32 4, %v14406_v36 }
 0x49c   :  { %v13012_v61 = vsel %vm5173_vm14, %v5343_v51, %v12701_v6 }
 0x49d   :  { %v9009_v28 = vpop.f32.mrf.mxu1  ;;  %9116 = vmatprep.mubr.f32.mxu0 %v13012_v61  ;;  %vm5179_vm4 = vcmp.ne.s32.totalorder %v5115_v63, 0 }
 0x49e   :  { %9117 = vmatmul.mubr.f32.gmra.mxu0 %v5623_v0  ;;  %v5625_v11 = vsel %vm5176_vm2, %v9009_v28, %v12714_v18  ;;  %v14408_v18 = vld [vmem:[#allocation93_spill] sm:$0xff]  ;;  %v14411_v28 = vld [vmem:[#allocation84_spill] sm:$0xff] }
 0x49f   :  { %v5353_v3 = vpop.f32.mrf.mxu1  ;;  %v5117_v42 = vand.u32 4, %v14408_v18  ;;  %v5120_v29 = vand.u32 4, %v14411_v28  ;;  %v14421_v28 = vld [vmem:[#allocation90_spill] sm:$0xff] }
 0x4a0   :  { %v13019_v38 = vsel %vm5175_vm1, %v5353_v3, %v12711_v54 }
 0x4a1   :  { %v9012_v6 = vpop.f32.mrf.mxu1  ;;  %9119 = vmatprep.mubr.f32.mxu0 %v13019_v38  ;;  %vm5181_vm6 = vcmp.ne.s32.totalorder %v5117_v42, 0  ;;  %vm5184_vm9 = vcmp.ne.s32.totalorder %v5120_v29, 0  ;;  %v14418_v42 = vld [vmem:[#allocation103_spill] sm:$0xff]  ;;  %v5125_v29 = vand.u32 4, %v14421_v28 }
 0x4a2   :  { %9120 = vmatmul.mubr.f32.gmra.mxu0 %v5625_v11  ;;  %v5627_v20 = vsel %vm5178_vm0, %v9012_v6, %v12724_v58  ;;  %v14410_v58 = vld [vmem:[#allocation86_spill] sm:$0xff]  ;;  %v14414_v6 = vld [vmem:[#allocation88_spill] sm:$0xff]  ;;  %v5124_v4 = vand.u32 4, %v14418_v42 }
 0x4a3   :  { %v5363_v19 = vpop.f32.mrf.mxu1  ;;  %v5119_v0 = vand.u32 4, %v14410_v58  ;;  %v5122_v36 = vand.u32 4, %v14414_v6  ;;  %vm5189_vm14 = vcmp.ne.s32.totalorder %v5125_v29, 0  ;;  %v14431_v29 = vld [vmem:[#allocation62_spill] sm:$0xff] }
 0x4a4   :  { %v13026_v22 = vsel %vm5177_vm3, %v5363_v19, %v12721_v8  ;;  %v14416_v19 = vld [vmem:[#allocation16_spill] sm:$0xff]  ;;  %vm5188_vm13 = vcmp.ne.s32.totalorder %v5124_v4, 0  ;;  %v14428_v4 = vld [vmem:[#allocation106_spill] sm:$0xff] }
 0x4a5   :  { %v9015_v54 = vpop.f32.mrf.mxu1  ;;  %9122 = vmatprep.mubr.f32.mxu0 %v13026_v22  ;;  %vm5183_vm8 = vcmp.ne.s32.totalorder %v5119_v0, 0  ;;  %vm5186_vm11 = vcmp.ne.s32.totalorder %v5122_v36, 0  ;;  %v14424_v36 = vld [vmem:[#allocation104_spill] sm:$0xff] }
 0x4a6   :  { %9123 = vmatmul.mubr.f32.gmra.mxu0 %v5627_v20  ;;  %v5629_v51 = vsel %vm5180_vm5, %v9015_v54, %v12734_v41  ;;  %v14413_v41 = vld [vmem:[#allocation97_spill] sm:$0xff] }
 0x4a7   :  { %v5373_v47 = vpop.f32.mrf.mxu1  ;;  %v5121_v11 = vand.u32 4, %v14413_v41  ;;  %v14417_v54 = vld [vmem:[#allocation101_spill] sm:$0xff] }
 0x4a8   :  { %v13033_v23 = vsel %vm5179_vm4, %v5373_v47, %v12731_v27  ;;  %v5123_v18 = vand.u32 4, %v14417_v54  ;;  %v14419_v47 = vld [vmem:[#allocation65_spill] sm:$0xff] }
 0x4a9   :  { %v9018_v8 = vpop.f32.mrf.mxu1  ;;  %9125 = vmatprep.mubr.f32.mxu0 %v13033_v23  ;;  %vm5185_vm10 = vcmp.ne.s32.totalorder %v5121_v11, 0  ;;  %v14423_v41 = vld [vmem:[#allocation69_spill] sm:$0xff] }
 0x4aa   :  { %9126 = vmatmul.mubr.f32.gmra.mxu0 %v5629_v51  ;;  %v5631_v3 = vsel %vm5182_vm7, %v9018_v8, %v14412_v10  ;;  %v14420_v8 = vld [vmem:[#allocation56_spill] sm:$0xff]  ;;  %vm5187_vm12 = vcmp.ne.s32.totalorder %v5123_v18, 0  ;;  %v14427_v18 = vld [vmem:[#allocation58_spill] sm:$0xff] }
 0x4ab   :  { %v5383_v39 = vpop.f32.mrf.mxu1 }
 0x4ac   :  { %v13040_v12 = vsel %vm5181_vm6, %v5383_v39, %v12741_v14  ;;  %v14422_v39 = vld [vmem:[#allocation105_spill] sm:$0xff] }
 0x4ad   :  { %v9021_v27 = vpop.f32.mrf.mxu1  ;;  %9128 = vmatprep.mubr.f32.mxu0 %v13040_v12  ;;  %v5126_v10 = vand.u32 4, %v14422_v39 }
 0x4ae   :  { %9129 = vmatmul.mubr.f32.gmra.mxu0 %v5631_v3  ;;  %v5633_v20 = vsel %vm5184_vm9, %v9021_v27, %v14416_v19 }
 0x4af   :  { %v5393_v63 = vpop.f32.mrf.mxu1  ;;  %vm5190_vm15 = vcmp.ne.s32.totalorder %v5126_v10, 0 }
 0x4b0   :  { %v13047_v30 = vsel %vm5183_vm8, %v5393_v63, %v14415_v59  ;;  %v5127_v63 = vand.u32 4, %v14424_v36  ;;  %v14425_v59 = vld [vmem:[#allocation107_spill] sm:$0xff] }
 0x4b1   :  { %v9024_v14 = vpop.f32.mrf.mxu1  ;;  %9131 = vmatprep.mubr.f32.mxu0 %v13047_v30  ;;  %v5128_v19 = vand.u32 4, %v14425_v59  ;;  %v14434_v59 = vld [vmem:[#allocation60_spill] sm:$0xff] }
 0x4b2   :  { %9132 = vmatmul.mubr.f32.gmra.mxu0 %v5633_v20  ;;  %v5635_v58 = vsel %vm5186_vm11, %v9024_v14, %v14420_v8  ;;  %v14426_v14 = vld [vmem:[#allocation71_spill] sm:$0xff]  ;;  %vm5191_vm1 = vcmp.ne.s32.totalorder %v5127_v63, 0 }
 0x4b3   :  { %v5403_v56 = vpop.f32.mrf.mxu1  ;;  %vm5192_vm2 = vcmp.ne.s32.totalorder %v5128_v19, 0 }
 0x4b4   :  { %v13054_v51 = vsel %vm5185_vm10, %v5403_v56, %v14419_v47  ;;  %v5129_v56 = vand.u32 4, %v14428_v4  ;;  %v14429_v47 = vld [vmem:[#allocation109_spill] sm:$0xff] }
 0x4b5   :  { %v9027_v0 = vpop.f32.mrf.mxu1  ;;  %9134 = vmatprep.mubr.f32.mxu0 %v13054_v51  ;;  %v5130_v8 = vand.u32 4, %v14429_v47 }
 0x4b6   :  { %9135 = vmatmul.mubr.f32.gmra.mxu0 %v5635_v58  ;;  %v5637_v11 = vsel %vm5188_vm13, %v9027_v0, %v14423_v41  ;;  %v14430_v0 = vld [vmem:[#allocation75_spill] sm:$0xff]  ;;  %vm5193_vm3 = vcmp.ne.s32.totalorder %v5129_v56, 0  ;;  %v14437_v56 = vld [vmem:[#allocation73_spill] sm:$0xff] }
 0x4b7   :  { %v5413_v3 = vpop.f32.mrf.mxu1  ;;  %vm5194_vm0 = vcmp.ne.s32.totalorder %v5130_v8, 0  ;;  %v14439_v8 = vld [vmem:[#allocation64_spill] sm:$0xff] }
 0x4b8   :  { %v13061_v27 = vsel %vm5187_vm12, %v5413_v3, %v12771_v33  ;;  %v14432_v3 = vld [vmem:[#allocation100_spill] sm:$0xff] }
 0x4b9   :  { %v9030_v6 = vpop.f32.mrf.mxu1  ;;  %9137 = vmatprep.mubr.f32.mxu0 %v13061_v27  ;;  %v5131_v41 = vand.u32 4, %v14432_v3 }
 0x4ba   :  { %9138 = vmatmul.mubr.f32.gmra.mxu0 %v5637_v11  ;;  %v5639_v42 = vsel %vm5190_vm15, %v9030_v6, %v14427_v18  ;;  %v14433_v11 = vld [vmem:[#allocation108_spill] sm:$0xff] }
 0x4bb   :  { %v5423_v20 = vpop.f32.mrf.mxu1  ;;  %v5132_v6 = vand.u32 4, %v14433_v11  ;;  %vm5195_vm4 = vcmp.ne.s32.totalorder %v5131_v41, 0  ;;  %v14442_v41 = vld [vmem:[#allocation77_spill] sm:$0xff] }
 0x4bc   :  { %v13068_v54 = vsel %vm5189_vm14, %v5423_v20, %v14426_v14  ;;  %v14435_v14 = vld [vmem:[#allocation111_spill] sm:$0xff] }
 0x4bd   :  { %v9033_v33 = vpop.f32.mrf.mxu1  ;;  %9140 = vmatprep.mubr.f32.mxu0 %v13068_v54  ;;  %v5133_v18 = vand.u32 4, %v14435_v14  ;;  %vm5196_vm5 = vcmp.ne.s32.totalorder %v5132_v6, 0  ;;  %v14444_v6 = vld [vmem:[#allocation79_spill] sm:$0xff]  ;;  %v14446_v14 = vld [vmem:[#allocation20_spill] sm:$0xff] }
 0x4be   :  { %9141 = vmatmul.mubr.f32.gmra.mxu0 %v5639_v42  ;;  %v5641_v39 = vsel %vm5192_vm2, %v9033_v33, %v14431_v29  ;;  %v14436_v42 = vld [vmem:[#allocation13_spill] sm:$0xff] }
 0x4bf   :  { %v5433_v58 = vpop.f32.mrf.mxu1  ;;  %v5134_v33 = vand.u32 4, %v14436_v42  ;;  %vm5197_vm6 = vcmp.ne.s32.totalorder %v5133_v18, 0  ;;  %v5138_v18 = vand.u32 4, %v14446_v14 }
 0x4c0   :  { %v13075_v28 = vsel %vm5191_vm1, %v5433_v58, %v14430_v0  ;;  %v14440_v0 = vld [vmem:[#allocation113_spill] sm:$0xff] }
 0x4c1   :  { %v9036_v10 = vpop.f32.mrf.mxu1  ;;  %9143 = vmatprep.mubr.f32.mxu0 %v13075_v28  ;;  %v5135_v29 = vand.u32 4, %v14440_v0  ;;  %vm5198_vm7 = vcmp.ne.s32.totalorder %v5134_v33, 0  ;;  %v14447_v33 = vld [vmem:[#allocation66_spill] sm:$0xff]  ;;  %vm5202_vm11 = vcmp.ne.s32.totalorder %v5138_v18, 0 }
 0x4c2   :  { %9144 = vmatmul.mubr.f32.gmra.mxu0 %v5641_v39  ;;  %v5643_v19 = vsel %vm5194_vm0, %v9036_v10, %v14434_v59  ;;  %v14441_v39 = vld [vmem:[#allocation17_spill] sm:$0xff] }
 0x4c3   :  { %v5443_v36 = vpop.f32.mrf.mxu1  ;;  %v5136_v10 = vand.u32 4, %v14441_v39  ;;  %vm5199_vm8 = vcmp.ne.s32.totalorder %v5135_v29, 0  ;;  %v14450_v29 = vld [vmem:[#allocation33_spill] sm:$0xff] }
 0x4c4   :  { %v13082_v63 = vsel %vm5193_vm3, %v5443_v36, %v12801_v35  ;;  %v5140_v39 = vand.u32 4, %v14450_v29 }
 0x4c5   :  { %v9039_v20 = vpop.f32.mrf.mxu1  ;;  %9146 = vmatprep.mubr.f32.mxu0 %v13082_v63  ;;  %vm5200_vm9 = vcmp.ne.s32.totalorder %v5136_v10, 0 }
 0x4c6   :  { %9147 = vmatmul.mubr.f32.gmra.mxu0 %v5643_v19  ;;  %v5645_v58 = vsel %vm5196_vm5, %v9039_v20, %v14439_v8  ;;  %v14445_v19 = vld [vmem:[#allocation115_spill] sm:$0xff]  ;;  %vm5204_vm13 = vcmp.ne.s32.totalorder %v5140_v39, 0 }
 0x4c7   :  { %v5453_v4 = vpop.f32.mrf.mxu1  ;;  %v5137_v20 = vand.u32 4, %v14445_v19 }
 0x4c8   :  { %v13089_v47 = vsel %vm5195_vm4, %v5453_v4, %v14437_v56  ;;  %v14448_v56 = vld [vmem:[#allocation83_spill] sm:$0xff] }
 0x4c9   :  { %14438 = vst [vmem:[#allocation91_spill] sm:$0xff] %v13089_v47  ;;  %v9042_v35 = vpop.f32.mrf.mxu1  ;;  %9149 = vmatprep.mubr.f32.mxu0 %v13089_v47  ;;  %vm5201_vm10 = vcmp.ne.s32.totalorder %v5137_v20, 0  ;;  %v14454_v20 = vld [vmem:[#allocation29_spill] sm:$0xff] }
 0x4ca   :  { %9150 = vmatmul.mubr.f32.gmra.mxu0 %v5645_v58  ;;  %v5647_v36 = vsel %vm5198_vm7, %v9042_v35, %v14444_v6  ;;  %v14449_v35 = vld [vmem:[#allocation35_spill] sm:$0xff]  ;;  %v14452_v6 = vld [vmem:[#allocation68_spill] sm:$0xff] }
 0x4cb   :  { %v5463_v3 = vpop.f32.mrf.mxu1  ;;  %v5139_v0 = vand.u32 4, %v14449_v35 }
 0x4cc   :  { %v13096_v11 = vsel %vm5197_vm6, %v5463_v3, %v14442_v41  ;;  %v14451_v3 = vld [vmem:[#allocation70_spill] sm:$0xff] }
 0x4cd   :  { %14443 = vst [vmem:[#allocation78_spill] sm:$0xff] %v13096_v11  ;;  %v9045_v59 = vpop.f32.mrf.mxu1  ;;  %9152 = vmatprep.mubr.f32.mxu0 %v13096_v11  ;;  %vm5203_vm12 = vcmp.ne.s32.totalorder %v5139_v0, 0  ;;  %v14457_v0 = vld [vmem:[#allocation41_spill] sm:$0xff] }
 0x4ce   :  { %9153 = vmatmul.mubr.f32.gmra.mxu0 %v5647_v36  ;;  %v5649_v8 = vsel %vm5200_vm9, %v9045_v59, %v14448_v56  ;;  %v14453_v59 = vld [vmem:[#allocation28_spill] sm:$0xff]  ;;  %v14455_v56 = vld [vmem:[#allocation81_spill] sm:$0xff] }
 0x4cf   :  { %v5473_v42 = vpop.f32.mrf.mxu1  ;;  %v5141_v14 = vand.u32 4, %v14453_v59 }
 0x4d0   :  { %v13103_v4 = vsel %vm5199_vm8, %v5473_v42, %v14447_v33  ;;  %v5142_v42 = vand.u32 4, %v14454_v20 }
 0x4d1   :  { %v9048_v58 = vpop.f32.mrf.mxu1  ;;  %9155 = vmatprep.mubr.f32.mxu0 %v13103_v4  ;;  %vm5205_vm14 = vcmp.ne.s32.totalorder %v5141_v14, 0  ;;  %v14461_v14 = vld [vmem:[#allocation34_spill] sm:$0xff] }
 0x4d2   :  { %9156 = vmatmul.mubr.f32.gmra.mxu0 %v5649_v8  ;;  %v5651_v36 = vsel %vm5202_vm11, %v9048_v58, %v14452_v6  ;;  %v14456_v58 = vld [vmem:[#allocation43_spill] sm:$0xff]  ;;  %vm5206_vm15 = vcmp.ne.s32.totalorder %v5142_v42, 0 }
 0x4d3   :  { %v5483_v10 = vpop.f32.mrf.mxu1  ;;  %v5143_v29 = vand.u32 4, %v14456_v58 }
 0x4d4   :  { %v13110_v41 = vsel %vm5201_vm10, %v5483_v10, %v14451_v3  ;;  %v5144_v10 = vand.u32 4, %v14457_v0  ;;  %v14458_v3 = vld [vmem:[#allocation87_spill] sm:$0xff] }
 0x4d5   :  { %v9051_v19 = vpop.f32.mrf.mxu1  ;;  %9158 = vmatprep.mubr.f32.mxu0 %v13110_v41  ;;  %vm5207_vm1 = vcmp.ne.s32.totalorder %v5143_v29, 0  ;;  %v14464_v29 = vld [vmem:[#allocation51_spill] sm:$0xff] }
 0x4d6   :  { %9159 = vmatmul.mubr.f32.gmra.mxu0 %v5651_v36  ;;  %v5653_v8 = vsel %vm5204_vm13, %v9051_v19, %v14455_v56  ;;  %v14459_v36 = vld [vmem:[#allocation74_spill] sm:$0xff]  ;;  %v14460_v19 = vld [vmem:[#allocation32_spill] sm:$0xff]  ;;  %vm5208_vm2 = vcmp.ne.s32.totalorder %v5144_v10, 0 }
 0x4d7   :  { %v5493_v18 = vpop.f32.mrf.mxu1  ;;  %v5145_v20 = vand.u32 4, %v14460_v19 }
 0x4d8   :  { %v13117_v33 = vsel %vm5203_vm12, %v5493_v18, %v12857_v48  ;;  %v5146_v18 = vand.u32 4, %v14461_v14 }
 0x4d9   :  { %9161 = vmatprep.mubr.f32.mxu0 %v13117_v33  ;;  %vm5209_vm3 = vcmp.ne.s32.totalorder %v5145_v20, 0  ;;  %v14466_v20 = vld [vmem:[#allocation40_spill] sm:$0xff] }
 0x4da   :  { %v9054_v35 = vpop.f32.mrf.mxu1  ;;  %9162 = vmatmul.mubr.f32.gmra.mxu0 %v5653_v8  ;;  %v14462_v8 = vld [vmem:[#allocation72_spill] sm:$0xff]  ;;  %vm5210_vm0 = vcmp.ne.s32.totalorder %v5146_v18, 0  ;;  %v5150_v14 = vand.u32 4, %v14466_v20 }
 0x4db   :  { %v5655_v59 = vsel %vm5206_vm15, %v9054_v35, %v14459_v36  ;;  %v14463_v35 = vld [vmem:[#allocation38_spill] sm:$0xff] }
 0x4dc   :  { %v5503_v39 = vpop.f32.mrf.mxu1  ;;  %vm5214_vm7 = vcmp.ne.s32.totalorder %v5150_v14, 0 }
 0x4dd   :  { %v13124_v6 = vsel %vm5205_vm14, %v5503_v39, %v14458_v3  ;;  %v5147_v39 = vand.u32 4, %v14463_v35  ;;  %v5148_v3 = vand.u32 4, %v14464_v29 }
 0x4de   :  { %v9057_v48 = vpop.f32.mrf.mxu1  ;;  %9164 = vmatprep.mubr.f32.mxu0 %v13124_v6 }
 0x4df   :  { %9165 = vmatmul.mubr.f32.gmra.mxu0 %v5655_v59  ;;  %v5657_v58 = vsel %vm5208_vm2, %v9057_v48, %v14462_v8  ;;  %vm5211_vm4 = vcmp.ne.s32.totalorder %v5147_v39, 0  ;;  %v14465_v48 = vld [vmem:[#allocation53_spill] sm:$0xff]  ;;  %vm5212_vm5 = vcmp.ne.s32.totalorder %v5148_v3, 0 }
 0x4e0   :  { %v5513_v42 = vpop.f32.mrf.mxu1  ;;  %v5149_v19 = vand.u32 4, %v14465_v48 }
 0x4e1   :  { %v13131_v56 = vsel %vm5207_vm1, %v5513_v42, %v12877_v5 }
 0x4e2   :  { %v9060_v0 = vpop.f32.mrf.mxu1  ;;  %9167 = vmatprep.mubr.f32.mxu0 %v13131_v56  ;;  %vm5213_vm6 = vcmp.ne.s32.totalorder %v5149_v19, 0 }
 0x4e3   :  { %9168 = vmatmul.mubr.f32.gmra.mxu0 %v5657_v58  ;;  %v5659_v59 = vsel %vm5210_vm0, %v9060_v0, %v12890_v55  ;;  %v14468_v55 = vld [vmem:[#allocation55_spill] sm:$0xff]  ;;  %v14469_v0 = vld [vmem:[#allocation57_spill] sm:$0xff] }
 0x4e4   :  { %v5523_v10 = vpop.f32.mrf.mxu1  ;;  %v5151_v58 = vand.u32 4, %v14468_v55  ;;  %v5152_v35 = vand.u32 4, %v14469_v0 }
 0x4e5   :  { %v13138_v36 = vsel %vm5209_vm3, %v5523_v10, %v12887_v37 }
 0x4e6   :  { %v9063_v5 = vpop.f32.mrf.mxu1  ;;  %9170 = vmatprep.mubr.f32.mxu0 %v13138_v36  ;;  %vm5215_vm8 = vcmp.ne.s32.totalorder %v5151_v58, 0  ;;  %vm5216_vm9 = vcmp.ne.s32.totalorder %v5152_v35, 0  ;;  %v14474_v58 = vld [vmem:[#allocation85_spill] sm:$0xff] }
 0x4e7   :  { %9171 = vmatmul.mubr.f32.gmra.mxu0 %v5659_v59  ;;  %v5661_v8 = vsel %vm5212_vm5, %v9063_v5, %v12900_v25  ;;  %v14470_v25 = vld [vmem:[#allocation61_spill] sm:$0xff]  ;;  %v14471_v59 = vld [vmem:[#allocation48_spill] sm:$0xff] }
 0x4e8   :  { %v5533_v18 = vpop.f32.mrf.mxu1  ;;  %v5153_v10 = vand.u32 4, %v14470_v25  ;;  %v5154_v5 = vand.u32 4, %v14471_v59  ;;  %v5159_v59 = vand.u32 4, %v14397_v21  ;;  %v5162_v21 = vand.u32 4, %v12600_v34 }
 0x4e9   :  { %v13145_v42 = vsel %vm5211_vm4, %v5533_v18, %v12897_v50  ;;  %v14473_v18 = vld [vmem:[#allocation67_spill] sm:$0xff]  ;;  %v6324_v34 = vadd.s32 1, %v14175_v44 }
 0x4ea   :  { %14467 = vst [vmem:[#allocation76_spill] sm:$0xff] %v13145_v42  ;;  %v9066_v37 = vpop.f32.mrf.mxu1  ;;  %9173 = vmatprep.mubr.f32.mxu0 %v13145_v42  ;;  %vm5217_vm10 = vcmp.ne.s32.totalorder %v5153_v10, 0  ;;  %vm5218_vm11 = vcmp.ne.s32.totalorder %v5154_v5, 0  ;;  %v5160_v5 = vand.u32 4, %v14398_v46  ;;  %vm5223_vm1 = vcmp.ne.s32.totalorder %v5159_v59, 0 }
 0x4eb   :  { %9174 = vmatmul.mubr.f32.gmra.mxu0 %v5661_v8  ;;  %v5663_v3 = vsel %vm5214_vm7, %v9066_v37, %v12910_v57  ;;  %v14472_v57 = vld [vmem:[#allocation63_spill] sm:$0xff]  ;;  %v5156_v8 = vand.u32 4, %v14473_v18  ;;  %vm5226_vm0 = vcmp.ne.s32.totalorder %v5162_v21, 0  ;;  %v13226_v21 = vmul.u32 16, %v14176_v43 }
 0x4ec   :  { %v5543_v39 = vpop.f32.mrf.mxu1  ;;  %v5155_v14 = vand.u32 4, %v14472_v57  ;;  %vm5224_vm2 = vcmp.ne.s32.totalorder %v5160_v5, 0  ;;  %v6325_v5 = vadd.s32 1, %v14176_v43 }
 0x4ed   :  { %v13152_v29 = vsel %vm5213_vm6, %v5543_v39, %v12907_v49  ;;  %vm5220_vm13 = vcmp.ne.s32.totalorder %v5156_v8, 0  ;;  %v14476_v39 = vld [vmem:[#allocation52_spill] sm:$0xff] }
 0x4ee   :  { %v9069_v50 = vpop.f32.mrf.mxu1  ;;  %9176 = vmatprep.mubr.f32.mxu0 %v13152_v29  ;;  %vm5219_vm12 = vcmp.ne.s32.totalorder %v5155_v14, 0 }
 0x4ef   :  { %9177 = vmatmul.mubr.f32.gmra.mxu0 %v5663_v3  ;;  %v5665_v20 = vsel %vm5216_vm9, %v9069_v50, %v12920_v2  ;;  %v14475_v2 = vld [vmem:[#allocation50_spill] sm:$0xff]  ;;  %v5158_v3 = vand.u32 4, %v14476_v39 }
 0x4f0   :  { %v5553_v48 = vpop.f32.mrf.mxu1  ;;  %v5157_v35 = vand.u32 4, %v14475_v2 }
 0x4f1   :  { %v13159_v19 = vsel %vm5215_vm8, %v5553_v48, %v12917_v9  ;;  %vm5222_vm15 = vcmp.ne.s32.totalorder %v5158_v3, 0 }
 0x4f2   :  { %v9072_v49 = vpop.f32.mrf.mxu1  ;;  %9179 = vmatprep.mubr.f32.mxu0 %v13159_v19  ;;  %vm5221_vm14 = vcmp.ne.s32.totalorder %v5157_v35, 0 }
 0x4f3   :  { %9180 = vmatmul.mubr.f32.gmra.mxu0 %v5665_v20  ;;  %v5667_v0 = vsel %vm5218_vm11, %v9072_v49, %v14474_v58 }
 0x4f4   :  { %v5563_v37 = vpop.f32.mrf.mxu1 }
 0x4f5   :  { %v13166_v55 = vsel %vm5217_vm10, %v5563_v37, %v12927_v52  ;;  %v6328_v37 = vmul.u32 16, %v6324_v34  ;;  %v14486_v34 = vmov 0 }
 0x4f6   :  { %v9075_v9 = vpop.f32.mrf.mxu1  ;;  %9182 = vmatprep.mubr.f32.mxu0 %v13166_v55 }
 0x4f7   :  { %9183 = vmatmul.mubr.f32.gmra.mxu0 %v5667_v0  ;;  %v5669_v10 = vsel %vm5220_vm13, %v9075_v9, %v12940_v13  ;;  %v5161_v13 = vand.u32 4, %v12595_v16 }
 0x4f8   :  { %v5573_v50 = vpop.f32.mrf.mxu1 }
 0x4f9   :  { %v13173_v25 = vsel %vm5219_vm12, %v5573_v50, %v12937_v40  ;;  %vm5225_vm3 = vcmp.ne.s32.totalorder %v5161_v13, 0 }
 0x4fa   :  { %v9078_v52 = vpop.f32.mrf.mxu1  ;;  %9185 = vmatprep.mubr.f32.mxu0 %v13173_v25 }
 0x4fb   :  { %9186 = vmatmul.mubr.f32.gmra.mxu0 %v5669_v10  ;;  %v5671_v49 = vsel %vm5222_vm15, %v9078_v52, %v12950_v1 }
 0x4fc   :  { %v5583_v48 = vpop.f32.mrf.mxu1 }
 0x4fd   :  { %v13180_v20 = vsel %vm5221_vm14, %v5583_v48, %v12947_v45 }
 0x4fe   :  { %v9081_v40 = vpop.f32.mrf.mxu1  ;;  %9188 = vmatprep.mubr.f32.mxu0 %v13180_v20 }
 0x4ff   :  { %9189 = vmatmul.mubr.f32.gmra.mxu0 %v5671_v49  ;;  %v5673_v46 = vsel %vm5224_vm2, %v9081_v40, %v12960_v60  ;;  %v6304_v60 = vmul.u32 16, %v14175_v44 }
 0x500   :  { %v5593_v57 = vpop.f32.mrf.mxu1 }
 0x501   :  { %v13187_v14 = vsel %vm5223_vm1, %v5593_v57, %v12957_v17  ;;  %v14477_v17 = vld [vmem:[#allocation3_spill] sm:$0xff]  ;;  %v13228_v57 = vmul.u32 16, %v6325_v5 }
 0x502   :  { %v9084_v45 = vpop.f32.mrf.mxu1  ;;  %9191 = vmatprep.mubr.f32.mxu0 %v13187_v14  ;;  %v13198_v8 = vadd.s32 128, %v14477_v17  ;;  %vm6308_vm7 = vcmp.ge.s32.totalorder %v14477_v17, %v6304_v60  ;;  %vm6332_vm8 = vcmp.lt.s32.totalorder %v14477_v17, %v6328_v37  ;;  %v6303_v49 = vadd.s32 384, %v14477_v17 }
 0x503   :  { %9192 = vmatmul.mubr.f32.gmra.mxu0 %v5673_v46  ;;  %v5675_v16 = vsel %vm5226_vm0, %v9084_v45, %v12968_v31  ;;  %vm13206_vm9 = vmand %vm6308_vm7, %vm6332_vm8  ;;  %v6302_v40 = vadd.s32 256, %v14477_v17  ;;  %v6326_v46 = vadd.s32 1, %v14177_v26  ;;  %v9212_v45 = vld [vmem:[%s13508_s3 + $0x60] sm:$0xff]  }
 0x504   :  { %v5603_v1 = vpop.f32.mrf.mxu1  ;;  %vm6309_vm4 = vcmp.ge.s32.totalorder %v13198_v8, %v6304_v60  ;;  %vm6333_vm5 = vcmp.lt.s32.totalorder %v13198_v8, %v6328_v37  ;;  %vm6311_vm10 = vcmp.ge.s32.totalorder %v6303_v49, %v6304_v60  ;;  %vm6335_vm11 = vcmp.lt.s32.totalorder %v6303_v49, %v6328_v37 }
 0x505   :  { %v13192_v18 = vsel %vm5225_vm3, %v5603_v1, %v12965_v24  ;;  %vm6349_vm6 = vmand %vm6309_vm4, %vm6333_vm5  ;;  %v14478_v24 = vmov 1.0   ;;  %vm6310_vm13 = vcmp.ge.s32.totalorder %v6302_v40, %v6304_v60  ;;  %vm6334_vm14 = vcmp.lt.s32.totalorder %v6302_v40, %v6328_v37 }
 0x506   :  { %9194 = vmatprep.mubr.f32.mxu0 %v13192_v18  ;;  %7333 = vmatprep.mubr.msk.f32.mxu1 %vm6349_vm6, %v14478_v24  ;;  %vm13231_vm12 = vmand %vm6311_vm10, %vm6335_vm11  ;;  %vm6315_vm1 = vcmp.ge.s32.totalorder %v6303_v49, %v13226_v21  ;;  %vm6339_vm2 = vcmp.lt.s32.totalorder %v6303_v49, %v13228_v57  ;;  %vm6314_vm0 = vcmp.ge.s32.totalorder %v6302_v40, %v13226_v21  ;;  %v13248_v60 = vmul.u32 16, %v14177_v26 }
 0x507   :  { %9195 = vmatmul.mubr.f32.gmra.mxu0 %v5675_v16  ;;  %vm13235_vm15 = vmand %vm6310_vm13, %vm6334_vm14  ;;  %v14483_v16 = vmov 0  ;;  %vm6338_vm4 = vcmp.lt.s32.totalorder %v6302_v40, %v13228_v57  ;;  %v13250_v37 = vmul.u32 16, %v6326_v46 }
 0x508   :  { %v14484_v16 = vsel %vm13235_vm15, 4294967295, %v14483_v16  ;;  %vm13241_vm3 = vmand %vm6315_vm1, %vm6339_vm2  ;;  %vm6319_vm6 = vcmp.ge.s32.totalorder %v6303_v49, %v13248_v60  ;;  %vm6318_vm10 = vcmp.ge.s32.totalorder %v6302_v40, %v13248_v60 }
 0x509   :  { %14485 = vst [vmem:[#allocation14_spill] sm:$0xff] %v14484_v16  ;;  %v14487_v34 = vsel %vm13241_vm3, 4294967295, %v14486_v34  ;;  %vm13253_vm5 = vmand %vm6314_vm0, %vm6338_vm4  ;;  %vm6343_vm7 = vcmp.lt.s32.totalorder %v6303_v49, %v13250_v37  ;;  %vm6342_vm11 = vcmp.lt.s32.totalorder %v6302_v40, %v13250_v37 }
 0x50a   :  { %14488 = vst [vmem:[#allocation12_spill] sm:$0xff] %v14487_v34  ;;  %vm13261_vm8 = vmand %vm6319_vm6, %vm6343_vm7  ;;  %vm6313_vm7 = vcmp.ge.s32.totalorder %v13198_v8, %v13226_v21 }
 0x50b   :  { %vm13272_vm13 = vmand %vm6318_vm10, %vm6342_vm11  ;;  %vm6337_vm10 = vcmp.lt.s32.totalorder %v13198_v8, %v13228_v57 }
 0x50c   :  { %vm6353_vm11 = vmand %vm6313_vm7, %vm6337_vm10 }
 0x54a   :  { %v13210_v58 = vpop.f32.mrf.mxu0 }
 0x54c   :  { %v5918_v0 = vpop.f32.mrf.mxu0 }
 0x54d   :  { %v14489_v0 = vld [vmem:[#allocation22_spill] sm:$0xff] }
 0x54e   :  { %v13212_v44 = vpop.f32.mrf.mxu0  ;;  %v13268_v26 = vmul.u32 16, %v14489_v0 }
 0x550   :  { %v5928_v9 = vpop.f32.mrf.mxu0  ;;  %vm6323_vm14 = vcmp.ge.s32.totalorder %v6303_v49, %v13268_v26  ;;  %vm6322_vm0 = vcmp.ge.s32.totalorder %v6302_v40, %v13268_v26 }
 0x551   :  { %v6327_v9 = vadd.s32 1, %v14489_v0  ;;  %v14502_v0 = vmov 0 }
 0x552   :  { %v13214_v2 = vpop.f32.mrf.mxu0 }
 0x553   :  { %v13270_v5 = vmul.u32 16, %v6327_v9 }
 0x554   :  { %v5938_v35 = vpop.f32.mrf.mxu0 }
 0x555   :  { %v14490_v35 = vmov 0  ;;  %vm6347_vm1 = vcmp.lt.s32.totalorder %v6303_v49, %v13270_v5  ;;  %vm6346_vm4 = vcmp.lt.s32.totalorder %v6302_v40, %v13270_v5 }
 0x556   :  { %v13216_v39 = vpop.f32.mrf.mxu0  ;;  %v14491_v35 = vsel %vm13253_vm5, 4294967295, %v14490_v35  ;;  %vm13278_vm2 = vmand %vm6323_vm14, %vm6347_vm1  ;;  %vm6312_vm14 = vcmp.ge.s32.totalorder %v14477_v17, %v13226_v21  ;;  %vm6336_vm1 = vcmp.lt.s32.totalorder %v14477_v17, %v13228_v57 }
 0x557   :  { %14492 = vst [vmem:[#allocation10_spill] sm:$0xff] %v14491_v35  ;;  %vm13284_vm6 = vmand %vm6322_vm0, %vm6346_vm4  ;;  %vm6317_vm0 = vcmp.ge.s32.totalorder %v13198_v8, %v13248_v60  ;;  %vm6341_vm4 = vcmp.lt.s32.totalorder %v13198_v8, %v13250_v37 }
 0x558   :  { %v5948_v3 = vpop.f32.mrf.mxu0  ;;  %v14503_v0 = vsel %vm13284_vm6, 4294967295, %v14502_v0  ;;  %vm6352_vm7 = vmand %vm6312_vm14, %vm6336_vm1  ;;  %vm6316_vm6 = vcmp.ge.s32.totalorder %v14477_v17, %v13248_v60  ;;  %vm6320_vm14 = vcmp.ge.s32.totalorder %v14477_v17, %v13268_v26  ;;  %vm6344_vm1 = vcmp.lt.s32.totalorder %v14477_v17, %v13270_v5  ;;  %v9214_v60 = vld [vmem:[%s13508_s3 + $0x58] sm:$0xff]  }
 0x559   :  { %vm6357_vm10 = vmand %vm6317_vm0, %vm6341_vm4 }
 0x55a   :  { %v13218_v50 = vpop.f32.mrf.mxu0  ;;  %vm6360_vm0 = vmand %vm6320_vm14, %vm6344_vm1 }
 0x55c   :  { %v5958_v10 = vpop.f32.mrf.mxu0 }
 0x55e   :  { %v13220_v52 = vpop.f32.mrf.mxu0 }
 0x560   :  { %v5968_v59 = vpop.f32.mrf.mxu0 }
 0x561   :  { %v14493_v59 = vmov 0 }
 0x562   :  { %v9121_v48 = vpop.f32.mrf.mxu0  ;;  %v14494_v59 = vsel %vm13261_vm8, 4294967295, %v14493_v59  ;;  %vm6345_vm8 = vcmp.lt.s32.totalorder %v13198_v8, %v13270_v5  ;;  %v9221_v5 = vld [vmem:[%s13508_s3] sm:$0xff]  }
 0x563   :  { %14495 = vst [vmem:[#allocation89_spill] sm:$0xff] %v14494_v59 }
 0x564   :  { %v5978_v13 = vpop.f32.mrf.mxu0 }
 0x565   :  { %v14496_v13 = vmov 0 }
 0x566   :  { %v9124_v1 = vpop.f32.mrf.mxu0  ;;  %v14497_v13 = vsel %vm13272_vm13, 4294967295, %v14496_v13  ;;  %vm6321_vm13 = vcmp.ge.s32.totalorder %v13198_v8, %v13268_v26  ;;  %v9220_v26 = vld [vmem:[%s13508_s3 + $0x40] sm:$0xff]  }
 0x567   :  { %14498 = vst [vmem:[#allocation95_spill] sm:$0xff] %v14497_v13 }
 0x568   :  { %v5988_v43 = vpop.f32.mrf.mxu0 }
 0x56a   :  { %v13257_v3 = vpop.f32.mrf.mxu0 }
 0x56c   :  { %v5998_v10 = vpop.f32.mrf.mxu0 }
 0x56d   :  { %v14499_v10 = vmov 0 }
 0x56e   :  { %v9130_v46 = vpop.f32.mrf.mxu0  ;;  %v14500_v10 = vsel %vm13278_vm2, 4294967295, %v14499_v10  ;;  %vm6340_vm2 = vcmp.lt.s32.totalorder %v14477_v17, %v13250_v37  ;;  %v14512_v57 = vld [vmem:[#allocation95_spill] sm:$0xff]  ;;  %v9215_v37 = vld [vmem:[%s13508_s3 + $0x18] sm:$0xff]  }
 0x56f   :  { %14501 = vst [vmem:[#allocation94_spill] sm:$0xff] %v14500_v10 }
 0x570   :  { %v6008_v43 = vpop.f32.mrf.mxu0 }
 0x572   :  { %v9133_v9 = vpop.f32.mrf.mxu0 }
 0x574   :  { %v6018_v13 = vpop.f32.mrf.mxu0 }
 0x576   :  { %v9136_v59 = vpop.f32.mrf.mxu0 }
 0x578   :  { %v6028_v35 = vpop.f32.mrf.mxu0 }
 0x579   :  { %v9216_v35 = vld [vmem:[%s13508_s3 + $0x50] sm:$0xff]  }
 0x57a   :  { %v9139_v34 = vpop.f32.mrf.mxu0 }
 0x57c   :  { %v6038_v16 = vpop.f32.mrf.mxu0 }
 0x57e   :  { %v9142_v49 = vpop.f32.mrf.mxu0 }
 0x580   :  { %v6048_v43 = vpop.f32.mrf.mxu0 }
 0x582   :  { %v9145_v47 = vpop.f32.mrf.mxu0 }
 0x584   :  { %v6058_v42 = vpop.f32.mrf.mxu0 }
 0x586   :  { %v9148_v11 = vpop.f32.mrf.mxu0 }
 0x587   :  { %8039 = vmatprep.subr.mxu1 %v9148_v11 }
 0x588   :  { %v6068_v10 = vpop.f32.mrf.mxu0  ;;  %8040 = vmatpush3.msra.mxu1 %v9124_v1  ;;  %v14514_v1 = vld [vmem:[#allocation94_spill] sm:$0xff] }
 0x589   :  { %8041 = vmatprep.subr.mxu1 %v13082_v63 }
 0x58a   :  { %v13289_v40 = vpop.f32.mrf.mxu0  ;;  %8042 = vmatpush3.msra.mxu1 %v13026_v22 }
 0x58b   :  { %8043 = vmatprep.subr.mxu1 %v9145_v47 }
 0x58c   :  { %v6078_v13 = vpop.f32.mrf.mxu0  ;;  %8044 = vmatpush3.msra.mxu1 %v9121_v48 }
 0x58d   :  { %8045 = vmatprep.subr.mxu1 %v13075_v28 }
 0x58e   :  { %v13293_v16 = vpop.f32.mrf.mxu0  ;;  %8046 = vmatpush3.msra.mxu1 %v13019_v38 }
 0x58f   :  { %8047 = vmatprep.subr.mxu1 %v9142_v49 }
 0x590   :  { %v6088_v42 = vpop.f32.mrf.mxu0  ;;  %8048 = vmatpush3.msra.mxu1 %v13220_v52 }
 0x591   :  { %8049 = vmatprep.subr.mxu1 %v13068_v54 }
 0x592   :  { %v13298_v63 = vpop.f32.mrf.mxu0  ;;  %8050 = vmatpush3.msra.mxu1 %v13012_v61 }
 0x593   :  { %8051 = vmatprep.subr.mxu1 %v9139_v34  ;;  %v9213_v34 = vld [vmem:[%s13508_s3 + $0x20] sm:$0xff]  }
 0x594   :  { %v6098_v22 = vpop.f32.mrf.mxu0  ;;  %8052 = vmatpush3.msra.mxu1 %v13218_v50 }
 0x595   :  { %8053 = vmatprep.subr.mxu1 %v13061_v27 }
 0x596   :  { %v13303_v28 = vpop.f32.mrf.mxu0  ;;  %8054 = vmatpush3.msra.mxu1 %v13005_v62 }
 0x597   :  { %8055 = vmatprep.subr.mxu1 %v9136_v59  ;;  %v9219_v59 = vld [vmem:[%s13508_s3 + $0x8] sm:$0xff]  }
 0x598   :  { %v6108_v38 = vpop.f32.mrf.mxu0  ;;  %8056 = vmatpush3.msra.mxu1 %v13216_v39 }
 0x599   :  { %8057 = vmatprep.subr.mxu1 %v13054_v51 }
 0x59a   :  { %v13308_v54 = vpop.f32.mrf.mxu0  ;;  %8058 = vmatpush3.msra.mxu1 %v12998_v32 }
 0x59b   :  { %8059 = vmatprep.subr.mxu1 %v9133_v9 }
 0x59c   :  { %v6118_v61 = vpop.f32.mrf.mxu0  ;;  %8060 = vmatpush3.msra.mxu1 %v13214_v2 }
 0x59d   :  { %8061 = vmatprep.subr.mxu1 %v13047_v30 }
 0x59e   :  { %8062 = vmatpush3.msra.mxu1 %v12991_v7 }
 0x59f   :  { %v13313_v27 = vpop.f32.mrf.mxu0  ;;  %8063 = vmatprep.subr.mxu1 %v9130_v46  ;;  %v9222_v46 = vld [vmem:[%s13508_s3 + $0xf8] sm:$0xff]  }
 0x5a0   :  { %8064 = vmatpush3.msra.mxu1 %v13212_v44 }
 0x5a1   :  { %v6128_v62 = vpop.f32.mrf.mxu0  ;;  %8065 = vmatprep.subr.mxu1 %v13040_v12 }
 0x5a2   :  { %8066 = vmatpush3.msra.mxu1 %v12984_v15 }
 0x5a3   :  { %v9169_v51 = vpop.f32.mrf.mxu0  ;;  %8067 = vmatprep.subr.mxu1 %v13257_v3  ;;  %v9217_v3 = vld [vmem:[%s13508_s3 + $0x10] sm:$0xff]  }
 0x5a4   :  { %8068 = vmatpush3.msra.mxu1 %v13210_v58 }
 0x5a5   :  { %v6138_v32 = vpop.f32.mrf.mxu0  ;;  %8069 = vmatprep.subr.mxu1 %v13033_v23 }
 0x5a6   :  { %8070 = vmatpush3.msra.mxu1 %v12977_v53 }
 0x5a7   :  { %v9172_v15 = vpop.f32.mrf.mxu0  ;;  %7334 = vmatmul.mubr.msk.f32.vlgmr.msra.gmra.mxu1 %vm13206_vm9, %v14478_v24  ;;  %vm6356_vm9 = vmand %vm6316_vm6, %vm6340_vm2 }
 0x5a8   :  { %7335 = vmatprep.mubr.msk.f32.mxu1 %vm6353_vm11, %v14478_v24  ;;  %vm6361_vm11 = vmand %vm6321_vm13, %vm6345_vm8  ;;  %vm6913_vm8 = vcmp.lt.s32.totalorder %v14477_v17, 10 }
 0x5a9   :  { %v6148_v7 = vpop.f32.mrf.mxu0 }
 0x5ab   :  { %v9175_v53 = vpop.f32.mrf.mxu0  ;;  %7336 = vmatmul.mubr.msk.f32.gmra.mxu1 %vm6352_vm7, %v14478_v24 }
 0x5ac   :  { %7337 = vmatprep.mubr.msk.f32.mxu1 %vm6357_vm10, %v14478_v24 }
 0x5ad   :  { %v6158_v23 = vpop.f32.mrf.mxu0 }
 0x5af   :  { %v9178_v12 = vpop.f32.mrf.mxu0  ;;  %7338 = vmatmul.mubr.msk.f32.gmra.mxu1 %vm6356_vm9, %v14478_v24 }
 0x5b0   :  { %7339 = vmatprep.mubr.msk.f32.mxu1 %vm6361_vm11, %v14478_v24 }
 0x5b1   :  { %v6168_v30 = vpop.f32.mrf.mxu0 }
 0x5b3   :  { %v9181_v47 = vpop.f32.mrf.mxu0  ;;  %7340 = vmatmul.mubr.msk.f32.gmra.mxu1 %vm6360_vm0, %v14478_v24 }
 0x5b4   :  { %7341 = vmatprep.mubr.msk.f32.mxu1 %vm13231_vm12, %v14478_v24 }
 0x5b5   :  { %v6178_v11 = vpop.f32.mrf.mxu0 }
 0x5b7   :  { %v9184_v8 = vpop.f32.mrf.mxu0 }
 0x5b9   :  { %v6188_v31 = vpop.f32.mrf.mxu0 }
 0x5bb   :  { %v9187_v58 = vpop.f32.mrf.mxu0 }
 0x5bd   :  { %v6198_v44 = vpop.f32.mrf.mxu0 }
 0x5bf   :  { %v9190_v2 = vpop.f32.mrf.mxu0 }
 0x5c1   :  { %v6208_v39 = vpop.f32.mrf.mxu0 }
 0x5c3   :  { %v9193_v50 = vpop.f32.mrf.mxu0 }
 0x5c5   :  { %v6218_v52 = vpop.f32.mrf.mxu0 }
 0x5c6   :  { %v9229_v52 = vld [vmem:[%s13508_s3 + $0xa0] sm:$0xff]  }
 0x5c7   :  { %v9196_v48 = vpop.f32.mrf.mxu0 }
 0x5c8   :  { %8083 = vmatprep.subr.mxu1 %v9196_v48  ;;  %v9230_v48 = vld [vmem:[%s13508_s3 + $0xd8] sm:$0xff]  }
 0x5c9   :  { %v6228_v21 = vpop.f32.mrf.mxu0  ;;  %8084 = vmatpush3.msra.mxu1 %v9172_v15 }
 0x5ca   :  { %8085 = vmatprep.subr.mxu1 %v13192_v18  ;;  %v9211_v18 = vld [vmem:[%s13508_s3 + $0x28] sm:$0xff]   ;;  %v9231_v21 = vld [vmem:[%s13508_s3 + $0x98] sm:$0xff]  }
 0x5cb   :  { %8086 = vmatpush3.msra.mxu1 %v13138_v36  ;;  %v9236_v36 = vld [vmem:[%s13508_s3 + $0xc0] sm:$0xff]  }
 0x5cc   :  { %8087 = vmatprep.subr.mxu1 %v9193_v50  ;;  %v9228_v50 = vld [vmem:[%s13508_s3 + $0xe0] sm:$0xff]  }
 0x5cd   :  { %8088 = vmatpush3.msra.mxu1 %v9169_v51 }
 0x5ce   :  { %8089 = vmatprep.subr.mxu1 %v13187_v14  ;;  %v14510_v14 = vld [vmem:[#allocation89_spill] sm:$0xff] }
 0x5cf   :  { %8090 = vmatpush3.msra.mxu1 %v13131_v56  ;;  %v14505_v56 = vld [vmem:[#allocation76_spill] sm:$0xff]  ;;  %vm14511_vm12 = vnez %v14510_v14 }
 0x5d0   :  { %8091 = vmatprep.subr.mxu1 %v9190_v2  ;;  %v9227_v2 = vld [vmem:[%s13508_s3 + $0xa8] sm:$0xff]  }
 0x5d1   :  { %8092 = vmatpush3.msra.mxu1 %v13313_v27 }
 0x5d2   :  { %8093 = vmatprep.subr.mxu1 %v13180_v20  ;;  %v9210_v20 = vld [vmem:[%s13508_s3 + $0x68] sm:$0xff]  }
 0x5d3   :  { %8094 = vmatpush3.msra.mxu1 %v13124_v6  ;;  %v9206_v6 = vld [vmem:[%s13508_s3 + $0x78] sm:$0xff]  }
 0x5d4   :  { %8095 = vmatprep.subr.mxu1 %v9187_v58  ;;  %v9226_v58 = vld [vmem:[%s13508_s3 + $0xe8] sm:$0xff]  }
 0x5d5   :  { %8096 = vmatpush3.msra.mxu1 %v13308_v54 }
 0x5d6   :  { %8097 = vmatprep.subr.mxu1 %v13173_v25 }
 0x5d7   :  { %8098 = vmatpush3.msra.mxu1 %v13117_v33  ;;  %v14504_v33 = vld [vmem:[#allocation78_spill] sm:$0xff] }
 0x5d8   :  { %8099 = vmatprep.subr.mxu1 %v9184_v8  ;;  %v9225_v8 = vld [vmem:[%s13508_s3 + $0xb0] sm:$0xff]  }
 0x5d9   :  { %8100 = vmatpush3.msra.mxu1 %v13303_v28 }
 0x5da   :  { %8101 = vmatprep.subr.mxu1 %v13166_v55  ;;  %v9209_v55 = vld [vmem:[%s13508_s3 + $0x30] sm:$0xff]  }
 0x5db   :  { %8102 = vmatpush3.msra.mxu1 %v13110_v41  ;;  %v9207_v41 = vld [vmem:[%s13508_s3 + $0x38] sm:$0xff]  }
 0x5dc   :  { %8103 = vmatprep.subr.mxu1 %v9181_v47 }
 0x5dd   :  { %8104 = vmatpush3.msra.mxu1 %v13298_v63 }
 0x5de   :  { %8105 = vmatprep.subr.mxu1 %v13159_v19  ;;  %v9237_v19 = vld [vmem:[%s13508_s3 + $0x80] sm:$0xff]  }
 0x5df   :  { %8106 = vmatpush3.msra.mxu1 %v13103_v4  ;;  %v14506_v4 = vld [vmem:[#allocation91_spill] sm:$0xff] }
 0x5e0   :  { %8107 = vmatprep.subr.mxu1 %v9178_v12  ;;  %v9224_v12 = vld [vmem:[%s13508_s3 + $0xf0] sm:$0xff]  }
 0x5e1   :  { %8108 = vmatpush3.msra.mxu1 %v13293_v16 }
 0x5e2   :  { %8109 = vmatprep.subr.mxu1 %v13152_v29  ;;  %v9208_v29 = vld [vmem:[%s13508_s3 + $0x70] sm:$0xff]  }
 0x5e3   :  { %8110 = vmatpush3.msra.mxu1 %v14504_v33  ;;  %v9232_v33 = vld [vmem:[%s13508_s3 + $0xd0] sm:$0xff]  }
 0x5e4   :  { %8111 = vmatprep.subr.mxu1 %v9175_v53  ;;  %v9223_v53 = vld [vmem:[%s13508_s3 + $0xb8] sm:$0xff]  }
 0x5e5   :  { %8112 = vmatpush3.msra.mxu1 %v13289_v40 }
 0x5e6   :  { %8113 = vmatprep.subr.mxu1 %v14505_v56  ;;  %v9235_v56 = vld [vmem:[%s13508_s3 + $0x88] sm:$0xff]  }
 0x5e7   :  { %8114 = vmatpush3.msra.mxu1 %v14506_v4 }
 0x5e8   :  { %7342 = vmatmul.mubr.msk.f32.vlgmr.msra.gmra.mxu1 %vm13235_vm15, %v14478_v24  ;;  %8127 = vmatprep.subr.bf16.mxu1 %v9206_v6  ;;  %vm14513_vm15 = vnez %v14512_v57  ;;  %v9233_v6 = vld [vmem:[%s13508_s3 + $0x90] sm:$0xff]  }
 0x5e9   :  { %7343 = vmatprep.mubr.msk.f32.mxu1 %vm13241_vm3, %v14478_v24  ;;  %8128 = vmatpush3.bf16.msra.mxu1 %v9207_v41  ;;  %vm14515_vm3 = vnez %v14514_v1  ;;  %v9234_v41 = vld [vmem:[%s13508_s3 + $0xc8] sm:$0xff]   ;;  %v7349_v1 = vld [vmem:[%s13509_s4] ss:$0 sm:$0xff] }
 0x5ea   :  { %8129 = vmatprep.subr.bf16.mxu1 %v9208_v29 }
 0x5ec   :  { %7344 = vmatmul.mubr.msk.f32.gmra.mxu1 %vm13253_vm5, %v14478_v24  ;;  %vm14516_vm5 = vnez %v14503_v0 }
 0x5ed   :  { %7345 = vmatprep.mubr.msk.f32.mxu1 %vm14511_vm12, %v14478_v24  ;;  %8130 = vmatpush3.bf16.msra.mxu1 %v9209_v55 }
 0x5ee   :  { %8131 = vmatprep.subr.bf16.mxu1 %v9210_v20 }
 0x5f0   :  { %7346 = vmatmul.mubr.msk.f32.gmra.mxu1 %vm14513_vm15, %v14478_v24 }
 0x5f1   :  { %7347 = vmatprep.mubr.msk.f32.mxu1 %vm14515_vm3, %v14478_v24  ;;  %8132 = vmatpush3.bf16.msra.mxu1 %v9211_v18 }
 0x5f2   :  { %8133 = vmatprep.subr.bf16.mxu1 %v9212_v45 }
 0x5f4   :  { %7348 = vmatmul.mubr.msk.f32.gmra.mxu1 %vm14516_vm5, %v14478_v24  ;;  %v9218_v24 = vld [vmem:[%s13508_s3 + $0x48] sm:$0xff]  }
 0x5f5   :  { %8134 = vmatpush3.bf16.msra.mxu1 %v9213_v34 }
 0x5f6   :  { %8135 = vmatprep.subr.bf16.mxu1 %v9214_v60 }
 0x5f9   :  { %8136 = vmatpush3.bf16.msra.mxu1 %v9215_v37 }
 0x5fa   :  { %8137 = vmatprep.subr.bf16.mxu1 %v9216_v35 }
 0x5fd   :  { %8138 = vmatpush3.bf16.msra.mxu1 %v9217_v3 }
 0x5fe   :  { %8139 = vmatprep.subr.bf16.mxu1 %v9218_v24 }
 0x601   :  { %8140 = vmatpush3.bf16.msra.mxu1 %v9219_v59 }
 0x602   :  { %8141 = vmatprep.subr.bf16.mxu1 %v9220_v26 }
 0x605   :  { %8142 = vmatpush3.bf16.msra.mxu1 %v9221_v5 }
 0x606   :  { %8149 = vmatprep.subr.bf16.mxu1 %v9222_v46 }
 0x667   :  { %v8071_v10 = vpop.f32.mrf.mxu1 }
 0x669   :  { %v8072_v0 = vpop.f32.mrf.mxu1 }
 0x66a   :  { %v8073_v38 = vadd.f32 %v8072_v0, %v8071_v10 }
 0x66b   :  { %v8074_v9 = vpop.f32.mrf.mxu1 }
 0x66d   :  { %v8075_v49 = vpop.f32.mrf.mxu1 }
 0x66e   :  { %v8076_v61 = vadd.f32 %v8075_v49, %v8074_v9 }
 0x66f   :  { %v8077_v43 = vpop.f32.mrf.mxu1 }
 0x671   :  { %v8078_v40 = vpop.f32.mrf.mxu1 }
 0x672   :  { %v8079_v29 = vadd.f32 %v8078_v40, %v8077_v43 }
 0x673   :  { %v8080_v13 = vpop.f32.mrf.mxu1 }
 0x675   :  { %v8081_v16 = vpop.f32.mrf.mxu1 }
 0x676   :  { %v8082_v11 = vadd.f32 %v8081_v16, %v8080_v13 }
 0x6a8   :  { %v8115_v42 = vpop.f32.mrf.mxu1 }
 0x6aa   :  { %v8116_v63 = vpop.f32.mrf.mxu1 }
 0x6ab   :  { %v8117_v22 = vadd.f32 %v8116_v63, %v8115_v42 }
 0x6ac   :  { %v8118_v28 = vpop.f32.mrf.mxu1 }
 0x6ad   :  { %v6548_v62 = vadd.f32 %v8117_v22, %v8073_v38 }
 0x6ae   :  { %v8119_v54 = vpop.f32.mrf.mxu1 }
 0x6af   :  { %v8120_v27 = vadd.f32 %v8119_v54, %v8118_v28  ;;  %v6566_v23 = vpack.c.bf16 %v6548_v62, %v6548_v62 }
 0x6b0   :  { %v8121_v51 = vpop.f32.mrf.mxu1 }
 0x6b1   :  { %v6553_v32 = vadd.f32 %v8120_v27, %v8076_v61 }
 0x6b2   :  { %v8122_v15 = vpop.f32.mrf.mxu1 }
 0x6b3   :  { %v6567_v7 = vpack.c.bf16 %v6553_v32, %v6553_v32  ;;  %v8123_v4 = vadd.f32 %v8122_v15, %v8121_v51 }
 0x6b4   :  { %v8124_v30 = vpop.f32.mrf.mxu1 }
 0x6b5   :  { %6865 = vmatprep.mubr.bf16.mxu1 %v6567_v7  ;;  %v6558_v55 = vadd.f32 %v8123_v4, %v8079_v29 }
 0x6b6   :  { %6866 = vmatmul.mubr.bf16.vlgmr.msra.gmra.mxu1 %v6566_v23  ;;  %v8125_v47 = vpop.f32.mrf.mxu1 }
 0x6b7   :  { %8150 = vmatpush3.bf16.msra.mxu1 %v9223_v53  ;;  %v8126_v31 = vadd.f32 %v8125_v47, %v8124_v30  ;;  %v6568_v25 = vpack.c.bf16 %v6558_v55, %v6558_v55 }
 0x6b8   :  { %8151 = vmatprep.subr.bf16.mxu1 %v9224_v12 }
 0x6b9   :  { %v6563_v44 = vadd.f32 %v8126_v31, %v8082_v11 }
 0x6bb   :  { %8152 = vmatpush3.bf16.msra.mxu1 %v9225_v8  ;;  %v6569_v39 = vpack.c.bf16 %v6563_v44, %v6563_v44 }
 0x6bc   :  { %8153 = vmatprep.subr.bf16.mxu1 %v9226_v58 }
 0x6bd   :  { %6905 = vmatprep.mubr.bf16.mxu1 %v6569_v39 }
 0x6bf   :  { %8154 = vmatpush3.bf16.msra.mxu1 %v9227_v2 }
 0x6c0   :  { %8155 = vmatprep.subr.bf16.mxu1 %v9228_v50 }
 0x6c3   :  { %8156 = vmatpush3.bf16.msra.mxu1 %v9229_v52 }
 0x6c4   :  { %8157 = vmatprep.subr.bf16.mxu1 %v9230_v48 }
 0x6c7   :  { %8158 = vmatpush3.bf16.msra.mxu1 %v9231_v21 }
 0x6c8   :  { %8159 = vmatprep.subr.bf16.mxu1 %v9232_v33 }
 0x6cb   :  { %8160 = vmatpush3.bf16.msra.mxu1 %v9233_v6 }
 0x6cc   :  { %8161 = vmatprep.subr.bf16.mxu1 %v9234_v41 }
 0x6cf   :  { %8162 = vmatpush3.bf16.msra.mxu1 %v9235_v56 }
 0x6d0   :  { %8163 = vmatprep.subr.bf16.mxu1 %v9236_v36 }
 0x6d3   :  { %8164 = vmatpush3.bf16.msra.mxu1 %v9237_v19 }
 0x6d6   :  { %6906 = vmatmul.mubr.bf16.vlgmr.msra.gmra.mxu1 %v6568_v25 }
 0x776   :  { %v8143_v20 = vpop.f32.mrf.mxu1 }
 0x778   :  { %v8144_v14 = vpop.f32.mrf.mxu1 }
 0x779   :  { %v8145_v45 = vadd.f32 %v8144_v14, %v8143_v20 }
 0x77a   :  { %v8146_v18 = vpop.f32.mrf.mxu1 }
 0x77b   :  { %v6868_v37 = vadd.f32 %v8145_v45, %v7349_v1 }
 0x77c   :  { %v8147_v57 = vpop.f32.mrf.mxu1 }
 0x796   :  { %v8165_v34 = vpop.f32.mrf.mxu1 }
 0x798   :  { %v8166_v60 = vpop.f32.mrf.mxu1 }
 0x799   :  { %v8167_v35 = vadd.f32 %v8166_v60, %v8165_v34 }
 0x79a   :  { %v8168_v3 = vpop.f32.mrf.mxu1 }
 0x79b   :  { %v6908_v24 = vadd.f32 %v8167_v35, %v6868_v37 }
 0x79c   :  { %v8169_v59 = vpop.f32.mrf.mxu1 }
 0x79d   :  { %v6914_v26 = vsel %vm6913_vm8, %v6908_v24, -1e+30 }
 0x79e   :  { %6915 = vmax.xlane.f32.xlu0 %v6914_v26 }
 0x827   :  { %v6916_v5 = vpop.xlane.xlu0 %6915 }
 0x828   :  { %v6917_v46 = vsub.f32 %v6914_v26, %v6916_v5 }
 0x82a   :  { %v6918_v10 = vmul.f32 1.442695, %v6917_v46 }
 0x82c   :  { %9366 = vpow2.f32 %v6918_v10 }
 0x839   :  { %v9367_v0 = vpop.eup %9366 }
 0x83a   :  { %v6920_v9 = vsel %vm6913_vm8, %v9367_v0, 0.0 }
 0x83b   :  { %6921 = vadd.xlane.f32.xlu0 %v6920_v9 }
 0x8c4   :  { %v6922_v49 = vpop.xlane.xlu0 %6921 }
 0x8c5   :  { %9368 = vrcp.f32 %v6922_v49 }
 0x8d2   :  { %v9369_v43 = vpop.eup %9368 }
 0x8d3   :  { %v6924_v40 = vmul.f32 %v9369_v43, %v6920_v9 }
 0x8d5   :  { %6925 = vst [vmem:[%s13510_s5] sm:$0xff] %v6924_v40 }

</bundles_post_ra>
